<compile_context>
chip_gen: v7x
topology: tpu7x:2x2x1
jax: 0.10.0
libtpu: 0.0.40
codegen_flags: <defaults>
</compile_context>

<pallas_src>
import functools

import jax
import jax.numpy as jnp
from jax.experimental import pallas as pl
from jax.experimental.pallas import tpu as pltpu

NEG_SLOPE = 0.2          # LeakyReLU negative slope (Cvi before='LReLU')
BN_EPS = 1e-5            # nn.BatchNorm2d default eps
VMEM_LIMIT = 48 * 1024 * 1024


def _round_up(x, m):
    return ((x + m - 1) // m) * m


def _m_plan(m):
    # bf16 A operand packs 16 sublanes per vreg; 256 fills the v6e/v7x MXU.
    if m >= 256:
        tm = 256
    elif m >= 128:
        tm = 128
    else:
        tm = _round_up(m, 16)
    return tm, _round_up(m, tm)


# ---------------------------------------------------------------------------
# Matmul kernels: bf16 operands, f32 MXU accumulation, full K per block
# (weight stays VMEM-resident; grid is over M blocks only).
# ---------------------------------------------------------------------------
def _matmul_kernel(a_ref, w_ref, o_ref, *, post, cout):
    r = jnp.dot(a_ref[...], w_ref[...], preferred_element_type=jnp.float32)
    r = r[:, :cout]
    if post == "lrelu":
        r = jnp.where(r > 0, r, NEG_SLOPE * r)
    elif post == "sigmoid":
        r = jax.nn.sigmoid(r)
    o_ref[...] = r.astype(o_ref.dtype)


def _matmul_stats_kernel(a_ref, w_ref, o_ref, sum_ref, sq_ref):
    # Conv matmul + fused per-channel partial sum / sum-of-squares (BatchNorm
    # batch stats).  Each M block writes its own partial row block, so the grid
    # axis is fully parallel (no cross-block accumulation race).
    r = jnp.dot(a_ref[...], w_ref[...], preferred_element_type=jnp.float32)
    o_ref[...] = r.astype(o_ref.dtype)          # bf16 Y (stats taken from f32 r)
    n = sum_ref.shape[-1]
    part = jnp.sum(r, axis=0, keepdims=True).reshape(1, 1, n)
    part_sq = jnp.sum(r * r, axis=0, keepdims=True).reshape(1, 1, n)
    sum_ref[...] = jnp.broadcast_to(part, (1, 8, n))
    sq_ref[...] = jnp.broadcast_to(part_sq, (1, 8, n))


def _affine_lrelu_kernel(y_ref, s_ref, b_ref, z_ref):
    # z = LeakyReLU(y * scale + shift), f32 math, bf16 out (next layer's A side).
    z = y_ref[...].astype(jnp.float32) * s_ref[...] + b_ref[...]
    z = jnp.where(z > 0, z, NEG_SLOPE * z)
    z_ref[...] = z.astype(z_ref.dtype)


# ---------------------------------------------------------------------------
# pallas_call wrappers
# ---------------------------------------------------------------------------
def conv_matmul(a, w_mat, *, cout, post=None, with_stats=False):
    """a: (M, K) bf16 im2col matrix (unpadded K).  w_mat: (K, Np) bf16
    (Np = Cout rounded up to 128).  Returns (Mp, Cout) conv output, plus
    per-block partial (sum, sq) stats if requested."""
    m, k = a.shape
    k_w, np_ = w_mat.shape
    assert k == k_w, "weight layout must match im2col K"
    tm, mp = _m_plan(m)
    if mp != m:
        a = jnp.pad(a, ((0, mp - m), (0, 0)))
    mblocks = mp // tm

    in_specs = [pl.BlockSpec((tm, k), lambda i: (i, 0)),      # A: one M block
                pl.BlockSpec((k, np_), lambda i: (0, 0))]     # W: VMEM-resident

    if with_stats:
        kernel = _matmul_stats_kernel
        out_shape = (jax.ShapeDtypeStruct((mp, cout), jnp.bfloat16),
                     jax.ShapeDtypeStruct((mblocks, 8, np_), jnp.float32),
                     jax.ShapeDtypeStruct((mblocks, 8, np_), jnp.float32))
        out_specs = (pl.BlockSpec((tm, cout), lambda i: (i, 0)),
                     pl.BlockSpec((1, 8, np_), lambda i: (i, 0, 0)),
                     pl.BlockSpec((1, 8, np_), lambda i: (i, 0, 0)))
    else:
        out_dtype = jnp.float32 if post == "sigmoid" else jnp.bfloat16
        kernel = functools.partial(_matmul_kernel, post=post, cout=cout)
        out_shape = jax.ShapeDtypeStruct((mp, cout), out_dtype)
        out_specs = pl.BlockSpec((tm, cout), lambda i: (i, 0))

    return pl.pallas_call(
        kernel,
        out_shape=out_shape,
        grid_spec=pltpu.PrefetchScalarGridSpec(
            num_scalar_prefetch=0,
            grid=(mblocks,),
            in_specs=in_specs,
            out_specs=out_specs),
        compiler_params=pltpu.CompilerParams(
            dimension_semantics=("parallel",),
            vmem_limit_bytes=VMEM_LIMIT),
    )(a, w_mat)


def affine_lrelu(y, scale, shift):
    """Per-channel affine (folded BN) + LeakyReLU(0.2) on the (Mp, Cout) bf16
    conv output; bf16 out (half-width A matrix for the next layer)."""
    mp, c = y.shape
    tm = mp
    for cand in (1024, 512, 256, 128):
        if mp >= cand and mp % cand == 0:
            tm = cand
            break
    s = scale.reshape(1, c).astype(jnp.float32)
    b = shift.reshape(1, c).astype(jnp.float32)
    return pl.pallas_call(
        _affine_lrelu_kernel,
        out_shape=jax.ShapeDtypeStruct((mp, c), jnp.bfloat16),
        grid_spec=pltpu.PrefetchScalarGridSpec(
            num_scalar_prefetch=0,
            grid=(mp // tm,),
            in_specs=[pl.BlockSpec((tm, c), lambda i: (i, 0)),
                      pl.BlockSpec((1, c), lambda i: (0, 0)),
                      pl.BlockSpec((1, c), lambda i: (0, 0))],
            out_specs=pl.BlockSpec((tm, c), lambda i: (i, 0))),
        compiler_params=pltpu.CompilerParams(
            dimension_semantics=("parallel",),
            vmem_limit_bytes=VMEM_LIMIT),
    )(y, s, b)


def bn_scale_shift(col_sum, col_sq, m_rows, cout):
    """Finalize BatchNorm (training-mode batch stats, biased var, gamma=1, beta=0):
    BN(y) = y * scale + shift.  Tiny per-channel math; plain JAX.
    Note: E[x^2]-E[x]^2 in f32 — adequate here, but a mean-shifted / Welford
    combine would be more robust for very large M."""
    s = jnp.sum(col_sum[:, 0, :cout], axis=0)
    sq = jnp.sum(col_sq[:, 0, :cout], axis=0)
    mean = s / m_rows
    var = sq / m_rows - mean * mean
    scale = jax.lax.rsqrt(jnp.maximum(var, 0.0) + BN_EPS)
    shift = -mean * scale
    return scale, shift


# ---------------------------------------------------------------------------
# Space-to-depth im2col for Conv2d(kernel=4, stride=2, padding=1), NHWC bf16.
# Pad (p=1) then pixel-unshuffle by 2: the conv becomes k=2, s=1 on a 4*Cin image,
# so the A matrix is 4 contiguous tap slices (4x less replication than 16 taps).
# Column order: (dh, dw, sh, sw, cin) with cin fastest — matches weight layout.
# ---------------------------------------------------------------------------
def extract_patches(x):
    n, h, w, c = x.shape
    assert h % 2 == 0 and w % 2 == 0, "even spatial dims required"
    xp = jnp.pad(x, ((0, 0), (1, 1), (1, 1), (0, 0)))
    hs, ws = (h + 2) // 2, (w + 2) // 2
    x2 = xp.reshape(n, hs, 2, ws, 2, c).transpose(0, 1, 3, 2, 4, 5)
    x2 = x2.reshape(n, hs, ws, 4 * c)                       # space-to-depth
    ho, wo = hs - 1, ws - 1
    taps = [x2[:, dh:dh + ho, dw:dw + wo, :] for dh in (0, 1) for dw in (0, 1)]
    a = jnp.concatenate(taps, axis=-1)                      # (n, ho, wo, 16c)
    return a.reshape(n * ho * wo, 16 * c), ho, wo


# ---------------------------------------------------------------------------
# Parameters: Conv2d weights ~ N(0, 0.02), bias=False (Cvi + weights_init).
# Stored in the space-to-depth matmul layout, N padded to 128 and cast to bf16
# once at init (no per-forward weight re-packing).
# ---------------------------------------------------------------------------
def init_params(key, in_channels=4):
    layer_channels = [(in_channels, 64), (64, 128), (128, 256), (256, 512), (512, 1)]
    params = []
    for cin, cout in layer_channels:
        key, sub = jax.random.split(key)
        w = jax.random.normal(sub, (cout, cin, 4, 4), jnp.float32) * 0.02
        # (co, ci, kh, kw) -> (co, ci, dh, sh, dw, sw) -> (dh, dw, sh, sw, ci, co)
        w6 = w.reshape(cout, cin, 2, 2, 2, 2)
        w_mat = jnp.transpose(w6, (2, 4, 3, 5, 1, 0)).reshape(16 * cin, cout)
        np_ = _round_up(cout, 128)
        if np_ != cout:
            w_mat = jnp.pad(w_mat, ((0, 0), (0, np_ - cout)))
        params.append(w_mat.astype(jnp.bfloat16))
    return params


def discriminator_forward(x_nchw, params):
    # Accepts NCHW like the PyTorch module, returns NCHW.
    x = jnp.transpose(x_nchw, (0, 2, 3, 1)).astype(jnp.bfloat16)   # NHWC bf16
    batch = x.shape[0]
    wm0, wm1, wm2, wm3, wm4 = params

    # Cv0: conv; Cv1's `before` LeakyReLU is fused in the matmul epilogue (bf16 out).
    a, ho, wo = extract_patches(x)
    m = a.shape[0]
    y = conv_matmul(a, wm0, cout=64, post="lrelu")
    img = y[:m].reshape(batch, ho, wo, 64)

    # Cv1..Cv3: (LReLU already applied) conv -> BN.  BN batch stats are fused in
    # the matmul; BN affine + the next layer's LeakyReLU are applied once per
    # image element (not on the 4x-replicated im2col columns).
    for w_mat, cout in ((wm1, 128), (wm2, 256), (wm3, 512)):
        a, ho, wo = extract_patches(img)
        m = a.shape[0]
        y, c_sum, c_sq = conv_matmul(a, w_mat, cout=cout, with_stats=True)
        scale, shift = bn_scale_shift(c_sum, c_sq, m, cout)
        z = affine_lrelu(y, scale, shift)
        img = z[:m].reshape(batch, ho, wo, cout)

    # Cv4: (LReLU already applied above) -> conv -> sigmoid (fused in epilogue).
    a, ho, wo = extract_patches(img)
    m = a.shape[0]
    y = conv_matmul(a, wm4, cout=1, post="sigmoid")
    out = y[:m].reshape(batch, ho, wo, 1)
    return jnp.transpose(out, (0, 3, 1, 2))                 # back to NCHW


if __name__ == "__main__":
    key = jax.random.PRNGKey(0)
    pkey, xkey = jax.random.split(key)
    params = init_params(pkey, in_channels=4)
    # Smallest spatial size for which all 5 stride-2 (k=4, p=1) convs are valid is 32.
    x = jax.random.normal(xkey, (2, 4, 32, 32), jnp.float32)
    fwd = jax.jit(discriminator_forward)
    out = fwd(x, params)
    jax.block_until_ready(out)
    assert out.shape == (2, 1, 1, 1)
    assert bool(jnp.all((out >= 0.0) & (out <= 1.0)))
    print("KERNEL_OK")
</pallas_src>

<mosaic_0001>
module attributes {stable_mosaic.version = 11 : i64} {
  func.func @_matmul_kernel(%arg0: i32, %arg1: memref<256x64xbf16, #tpu.memory_space<vmem>>, %arg2: memref<64x128xbf16, #tpu.memory_space<vmem>>, %arg3: memref<256x64xbf16, #tpu.memory_space<vmem>>) attributes {dimension_semantics = [#tpu.dimension_semantics<parallel>], iteration_bounds = array<i64: 2>, scalar_prefetch = 0 : i64, scratch_operands = 0 : i64, tpu.core_type = #tpu.core_type<tc>, window_params = [{transform_indices = @transform_0, window_bounds = array<i64: 256, 64>}, {pipeline_mode = #tpu.pipeline_mode<synchronous>, transform_indices = @transform_1, window_bounds = array<i64: 64, 128>}, {transform_indices = @transform_2, window_bounds = array<i64: 256, 64>}]} {
    %c0 = arith.constant 0 : index
    %c0_0 = arith.constant 0 : index
    %0 = vector.load %arg1[%c0, %c0_0] : memref<256x64xbf16, #tpu.memory_space<vmem>>, vector<256x64xbf16>
    %c0_1 = arith.constant 0 : index
    %c0_2 = arith.constant 0 : index
    %1 = vector.load %arg2[%c0_1, %c0_2] : memref<64x128xbf16, #tpu.memory_space<vmem>>, vector<64x128xbf16>
    %cst = arith.constant dense<0.000000e+00> : vector<256x128xf32>
    %2 = tpu.matmul %0, %1, %cst {dimension_numbers = #tpu.dot_dimension_numbers<[1], [0], [0], [1], [0, 0, 1, 1], [], []>} : vector<256x64xbf16>, vector<64x128xbf16>, vector<256x128xf32> -> vector<256x128xf32>
    %3 = vector.extract_strided_slice %2 {offsets = [0, 0], sizes = [256, 64], strides = [1, 1]} : vector<256x128xf32> to vector<256x64xf32>
    %cst_3 = arith.constant 0.000000e+00 : f32
    %4 = vector.broadcast %cst_3 : f32 to vector<256x64xf32>
    %5 = arith.cmpf ogt, %3, %4 : vector<256x64xf32>
    %cst_4 = arith.constant 2.000000e-01 : f32
    %6 = vector.broadcast %cst_4 : f32 to vector<256x64xf32>
    %7 = arith.mulf %6, %3 : vector<256x64xf32>
    %8 = arith.select %5, %3, %7 : vector<256x64xi1>, vector<256x64xf32>
    %9 = arith.truncf %8 : vector<256x64xf32> to vector<256x64xbf16>
    %c0_5 = arith.constant 0 : index
    %c0_6 = arith.constant 0 : index
    %10 = vector.load %arg3[%c0_5, %c0_6] : memref<256x64xbf16, #tpu.memory_space<vmem>>, vector<256x64xbf16>
    tpu.vector_store %arg3[%c0_5, %c0_6], %9 {strides = array<i32>} : memref<256x64xbf16, #tpu.memory_space<vmem>>, vector<256x64xbf16>,
    return
  }
  func.func @transform_0(%arg0: i32) -> (i32, i32) {
    %c0_i32 = arith.constant 0 : i32
    %c0_i32_0 = arith.constant 0 : i32
    return %arg0, %c0_i32 : i32, i32
  }
  func.func @transform_1(%arg0: i32) -> (i32, i32) {
    %c0_i32 = arith.constant 0 : i32
    %c0_i32_0 = arith.constant 0 : i32
    %c0_i32_1 = arith.constant 0 : i32
    return %c0_i32, %c0_i32_0 : i32, i32
  }
  func.func @transform_2(%arg0: i32) -> (i32, i32) {
    %c0_i32 = arith.constant 0 : i32
    %c0_i32_0 = arith.constant 0 : i32
    return %arg0, %c0_i32 : i32, i32
  }
}

module attributes {stable_mosaic.version = 11 : i64} {
  func.func @_matmul_stats_kernel(%arg0: i32, %arg1: memref<128x1024xbf16, #tpu.memory_space<vmem>>, %arg2: memref<1024x128xbf16, #tpu.memory_space<vmem>>, %arg3: memref<128x128xbf16, #tpu.memory_space<vmem>>, %arg4: memref<1x8x128xf32, #tpu.memory_space<vmem>>, %arg5: memref<1x8x128xf32, #tpu.memory_space<vmem>>) attributes {dimension_semantics = [#tpu.dimension_semantics<parallel>], iteration_bounds = array<i64: 1>, scalar_prefetch = 0 : i64, scratch_operands = 0 : i64, tpu.core_type = #tpu.core_type<tc>, window_params = [{transform_indices = @transform_0, window_bounds = array<i64: 128, 1024>}, {pipeline_mode = #tpu.pipeline_mode<synchronous>, transform_indices = @transform_1, window_bounds = array<i64: 1024, 128>}, {transform_indices = @transform_2, window_bounds = array<i64: 128, 128>}, {transform_indices = @transform_3, window_bounds = array<i64: 1, 8, 128>}, {transform_indices = @transform_4, window_bounds = array<i64: 1, 8, 128>}]} {
    %c0 = arith.constant 0 : index
    %c0_0 = arith.constant 0 : index
    %0 = vector.load %arg1[%c0, %c0_0] : memref<128x1024xbf16, #tpu.memory_space<vmem>>, vector<128x1024xbf16>
    %c0_1 = arith.constant 0 : index
    %c0_2 = arith.constant 0 : index
    %1 = vector.load %arg2[%c0_1, %c0_2] : memref<1024x128xbf16, #tpu.memory_space<vmem>>, vector<1024x128xbf16>
    %cst = arith.constant dense<0.000000e+00> : vector<128x128xf32>
    %2 = tpu.matmul %0, %1, %cst {dimension_numbers = #tpu.dot_dimension_numbers<[1], [0], [0], [1], [0, 0, 1, 1], [], []>} : vector<128x1024xbf16>, vector<1024x128xbf16>, vector<128x128xf32> -> vector<128x128xf32>
    %3 = arith.truncf %2 : vector<128x128xf32> to vector<128x128xbf16>
    %c0_3 = arith.constant 0 : index
    %c0_4 = arith.constant 0 : index
    %4 = vector.load %arg3[%c0_3, %c0_4] : memref<128x128xbf16, #tpu.memory_space<vmem>>, vector<128x128xbf16>
    tpu.vector_store %arg3[%c0_3, %c0_4], %3 {strides = array<i32>} : memref<128x128xbf16, #tpu.memory_space<vmem>>, vector<128x128xbf16>,
    %cst_5 = arith.constant dense<0.000000e+00> : vector<128xf32>
    %5 = vector.multi_reduction <add>, %2, %cst_5 [0] : vector<128x128xf32> to vector<128xf32>
    %6 = vector.shape_cast %5 : vector<128xf32> to vector<1x128xf32>
    %7 = vector.shape_cast %6 : vector<1x128xf32> to vector<1x1x128xf32>
    %8 = arith.mulf %2, %2 : vector<128x128xf32>
    %cst_6 = arith.constant dense<0.000000e+00> : vector<128xf32>
    %9 = vector.multi_reduction <add>, %8, %cst_6 [0] : vector<128x128xf32> to vector<128xf32>
    %10 = vector.shape_cast %9 : vector<128xf32> to vector<1x128xf32>
    %11 = vector.shape_cast %10 : vector<1x128xf32> to vector<1x1x128xf32>
    %12 = vector.shape_cast %7 : vector<1x1x128xf32> to vector<1x1x128xf32>
    %13 = vector.broadcast %12 : vector<1x1x128xf32> to vector<1x8x128xf32>
    %c0_7 = arith.constant 0 : index
    %c0_8 = arith.constant 0 : index
    %c0_9 = arith.constant 0 : index
    %14 = vector.load %arg4[%c0_7, %c0_8, %c0_9] : memref<1x8x128xf32, #tpu.memory_space<vmem>>, vector<1x8x128xf32>
    tpu.vector_store %arg4[%c0_7, %c0_8, %c0_9], %13 {strides = array<i32>} : memref<1x8x128xf32, #tpu.memory_space<vmem>>, vector<1x8x128xf32>,
    %15 = vector.shape_cast %11 : vector<1x1x128xf32> to vector<1x1x128xf32>
    %16 = vector.broadcast %15 : vector<1x1x128xf32> to vector<1x8x128xf32>
    %c0_10 = arith.constant 0 : index
    %c0_11 = arith.constant 0 : index
    %c0_12 = arith.constant 0 : index
    %17 = vector.load %arg5[%c0_10, %c0_11, %c0_12] : memref<1x8x128xf32, #tpu.memory_space<vmem>>, vector<1x8x128xf32>
    tpu.vector_store %arg5[%c0_10, %c0_11, %c0_12], %16 {strides = array<i32>} : memref<1x8x128xf32, #tpu.memory_space<vmem>>, vector<1x8x128xf32>,
    return
  }
  func.func @transform_0(%arg0: i32) -> (i32, i32) {
    %c0_i32 = arith.constant 0 : i32
    %c0_i32_0 = arith.constant 0 : i32
    return %arg0, %c0_i32 : i32, i32
  }
  func.func @transform_1(%arg0: i32) -> (i32, i32) {
    %c0_i32 = arith.constant 0 : i32
    %c0_i32_0 = arith.constant 0 : i32
    %c0_i32_1 = arith.constant 0 : i32
    return %c0_i32, %c0_i32_0 : i32, i32
  }
  func.func @transform_2(%arg0: i32) -> (i32, i32) {
    %c0_i32 = arith.constant 0 : i32
    %c0_i32_0 = arith.constant 0 : i32
    return %arg0, %c0_i32 : i32, i32
  }
  func.func @transform_3(%arg0: i32) -> (i32, i32, i32) {
    %c0_i32 = arith.constant 0 : i32
    %c0_i32_0 = arith.constant 0 : i32
    %c0_i32_1 = arith.constant 0 : i32
    return %arg0, %c0_i32, %c0_i32_0 : i32, i32, i32
  }
  func.func @transform_4(%arg0: i32) -> (i32, i32, i32) {
    %c0_i32 = arith.constant 0 : i32
    %c0_i32_0 = arith.constant 0 : i32
    %c0_i32_1 = arith.constant 0 : i32
    return %arg0, %c0_i32, %c0_i32_0 : i32, i32, i32
  }
}

module attributes {stable_mosaic.version = 11 : i64} {
  func.func @_affine_lrelu_kernel(%arg0: i32, %arg1: memref<128x128xbf16, #tpu.memory_space<vmem>>, %arg2: memref<1x128xf32, #tpu.memory_space<vmem>>, %arg3: memref<1x128xf32, #tpu.memory_space<vmem>>, %arg4: memref<128x128xbf16, #tpu.memory_space<vmem>>) attributes {dimension_semantics = [#tpu.dimension_semantics<parallel>], iteration_bounds = array<i64: 1>, scalar_prefetch = 0 : i64, scratch_operands = 0 : i64, tpu.core_type = #tpu.core_type<tc>, window_params = [{transform_indices = @transform_0, window_bounds = array<i64: 128, 128>}, {pipeline_mode = #tpu.pipeline_mode<synchronous>, transform_indices = @transform_1, window_bounds = array<i64: 1, 128>}, {pipeline_mode = #tpu.pipeline_mode<synchronous>, transform_indices = @transform_2, window_bounds = array<i64: 1, 128>}, {transform_indices = @transform_3, window_bounds = array<i64: 128, 128>}]} {
    %c0 = arith.constant 0 : index
    %c0_0 = arith.constant 0 : index
    %0 = vector.load %arg1[%c0, %c0_0] : memref<128x128xbf16, #tpu.memory_space<vmem>>, vector<128x128xbf16>
    %1 = arith.extf %0 : vector<128x128xbf16> to vector<128x128xf32>
    %c0_1 = arith.constant 0 : index
    %c0_2 = arith.constant 0 : index
    %2 = vector.load %arg2[%c0_1, %c0_2] : memref<1x128xf32, #tpu.memory_space<vmem>>, vector<1x128xf32>
    %3 = vector.broadcast %2 : vector<1x128xf32> to vector<128x128xf32>
    %4 = arith.mulf %1, %3 : vector<128x128xf32>
    %c0_3 = arith.constant 0 : index
    %c0_4 = arith.constant 0 : index
    %5 = vector.load %arg3[%c0_3, %c0_4] : memref<1x128xf32, #tpu.memory_space<vmem>>, vector<1x128xf32>
    %6 = vector.broadcast %5 : vector<1x128xf32> to vector<128x128xf32>
    %7 = arith.addf %4, %6 : vector<128x128xf32>
    %cst = arith.constant 0.000000e+00 : f32
    %8 = vector.broadcast %cst : f32 to vector<128x128xf32>
    %9 = arith.cmpf ogt, %7, %8 : vector<128x128xf32>
    %cst_5 = arith.constant 2.000000e-01 : f32
    %10 = vector.broadcast %cst_5 : f32 to vector<128x128xf32>
    %11 = arith.mulf %10, %7 : vector<128x128xf32>
    %12 = arith.select %9, %7, %11 : vector<128x128xi1>, vector<128x128xf32>
    %13 = arith.truncf %12 : vector<128x128xf32> to vector<128x128xbf16>
    %c0_6 = arith.constant 0 : index
    %c0_7 = arith.constant 0 : index
    %14 = vector.load %arg4[%c0_6, %c0_7] : memref<128x128xbf16, #tpu.memory_space<vmem>>, vector<128x128xbf16>
    tpu.vector_store %arg4[%c0_6, %c0_7], %13 {strides = array<i32>} : memref<128x128xbf16, #tpu.memory_space<vmem>>, vector<128x128xbf16>,
    return
  }
  func.func @transform_0(%arg0: i32) -> (i32, i32) {
    %c0_i32 = arith.constant 0 : i32
    %c0_i32_0 = arith.constant 0 : i32
    return %arg0, %c0_i32 : i32, i32
  }
  func.func @transform_1(%arg0: i32) -> (i32, i32) {
    %c0_i32 = arith.constant 0 : i32
    %c0_i32_0 = arith.constant 0 : i32
    %c0_i32_1 = arith.constant 0 : i32
    return %c0_i32, %c0_i32_0 : i32, i32
  }
  func.func @transform_2(%arg0: i32) -> (i32, i32) {
    %c0_i32 = arith.constant 0 : i32
    %c0_i32_0 = arith.constant 0 : i32
    %c0_i32_1 = arith.constant 0 : i32
    return %c0_i32, %c0_i32_0 : i32, i32
  }
  func.func @transform_3(%arg0: i32) -> (i32, i32) {
    %c0_i32 = arith.constant 0 : i32
    %c0_i32_0 = arith.constant 0 : i32
    return %arg0, %c0_i32 : i32, i32
  }
}

module attributes {stable_mosaic.version = 11 : i64} {
  func.func @_affine_lrelu_kernel(%arg0: i32, %arg1: memref<32x256xbf16, #tpu.memory_space<vmem>>, %arg2: memref<1x256xf32, #tpu.memory_space<vmem>>, %arg3: memref<1x256xf32, #tpu.memory_space<vmem>>, %arg4: memref<32x256xbf16, #tpu.memory_space<vmem>>) attributes {dimension_semantics = [#tpu.dimension_semantics<parallel>], iteration_bounds = array<i64: 1>, scalar_prefetch = 0 : i64, scratch_operands = 0 : i64, tpu.core_type = #tpu.core_type<tc>, window_params = [{transform_indices = @transform_0, window_bounds = array<i64: 32, 256>}, {pipeline_mode = #tpu.pipeline_mode<synchronous>, transform_indices = @transform_1, window_bounds = array<i64: 1, 256>}, {pipeline_mode = #tpu.pipeline_mode<synchronous>, transform_indices = @transform_2, window_bounds = array<i64: 1, 256>}, {transform_indices = @transform_3, window_bounds = array<i64: 32, 256>}]} {
    %c0 = arith.constant 0 : index
    %c0_0 = arith.constant 0 : index
    %0 = vector.load %arg1[%c0, %c0_0] : memref<32x256xbf16, #tpu.memory_space<vmem>>, vector<32x256xbf16>
    %1 = arith.extf %0 : vector<32x256xbf16> to vector<32x256xf32>
    %c0_1 = arith.constant 0 : index
    %c0_2 = arith.constant 0 : index
    %2 = vector.load %arg2[%c0_1, %c0_2] : memref<1x256xf32, #tpu.memory_space<vmem>>, vector<1x256xf32>
    %3 = vector.broadcast %2 : vector<1x256xf32> to vector<32x256xf32>
    %4 = arith.mulf %1, %3 : vector<32x256xf32>
    %c0_3 = arith.constant 0 : index
    %c0_4 = arith.constant 0 : index
    %5 = vector.load %arg3[%c0_3, %c0_4] : memref<1x256xf32, #tpu.memory_space<vmem>>, vector<1x256xf32>
    %6 = vector.broadcast %5 : vector<1x256xf32> to vector<32x256xf32>
    %7 = arith.addf %4, %6 : vector<32x256xf32>
    %cst = arith.constant 0.000000e+00 : f32
    %8 = vector.broadcast %cst : f32 to vector<32x256xf32>
    %9 = arith.cmpf ogt, %7, %8 : vector<32x256xf32>
    %cst_5 = arith.constant 2.000000e-01 : f32
    %10 = vector.broadcast %cst_5 : f32 to vector<32x256xf32>
    %11 = arith.mulf %10, %7 : vector<32x256xf32>
    %12 = arith.select %9, %7, %11 : vector<32x256xi1>, vector<32x256xf32>
    %13 = arith.truncf %12 : vector<32x256xf32> to vector<32x256xbf16>
    %c0_6 = arith.constant 0 : index
    %c0_7 = arith.constant 0 : index
    %14 = vector.load %arg4[%c0_6, %c0_7] : memref<32x256xbf16, #tpu.memory_space<vmem>>, vector<32x256xbf16>
    tpu.vector_store %arg4[%c0_6, %c0_7], %13 {strides = array<i32>} : memref<32x256xbf16, #tpu.memory_space<vmem>>, vector<32x256xbf16>,
    return
  }
  func.func @transform_0(%arg0: i32) -> (i32, i32) {
    %c0_i32 = arith.constant 0 : i32
    %c0_i32_0 = arith.constant 0 : i32
    return %arg0, %c0_i32 : i32, i32
  }
  func.func @transform_1(%arg0: i32) -> (i32, i32) {
    %c0_i32 = arith.constant 0 : i32
    %c0_i32_0 = arith.constant 0 : i32
    %c0_i32_1 = arith.constant 0 : i32
    return %c0_i32, %c0_i32_0 : i32, i32
  }
  func.func @transform_2(%arg0: i32) -> (i32, i32) {
    %c0_i32 = arith.constant 0 : i32
    %c0_i32_0 = arith.constant 0 : i32
    %c0_i32_1 = arith.constant 0 : i32
    return %c0_i32, %c0_i32_0 : i32, i32
  }
  func.func @transform_3(%arg0: i32) -> (i32, i32) {
    %c0_i32 = arith.constant 0 : i32
    %c0_i32_0 = arith.constant 0 : i32
    return %arg0, %c0_i32 : i32, i32
  }
}

module attributes {stable_mosaic.version = 11 : i64} {
  func.func @_matmul_stats_kernel(%arg0: i32, %arg1: memref<32x2048xbf16, #tpu.memory_space<vmem>>, %arg2: memref<2048x256xbf16, #tpu.memory_space<vmem>>, %arg3: memref<32x256xbf16, #tpu.memory_space<vmem>>, %arg4: memref<1x8x256xf32, #tpu.memory_space<vmem>>, %arg5: memref<1x8x256xf32, #tpu.memory_space<vmem>>) attributes {dimension_semantics = [#tpu.dimension_semantics<parallel>], iteration_bounds = array<i64: 1>, scalar_prefetch = 0 : i64, scratch_operands = 0 : i64, tpu.core_type = #tpu.core_type<tc>, window_params = [{transform_indices = @transform_0, window_bounds = array<i64: 32, 2048>}, {pipeline_mode = #tpu.pipeline_mode<synchronous>, transform_indices = @transform_1, window_bounds = array<i64: 2048, 256>}, {transform_indices = @transform_2, window_bounds = array<i64: 32, 256>}, {transform_indices = @transform_3, window_bounds = array<i64: 1, 8, 256>}, {transform_indices = @transform_4, window_bounds = array<i64: 1, 8, 256>}]} {
    %c0 = arith.constant 0 : index
    %c0_0 = arith.constant 0 : index
    %0 = vector.load %arg1[%c0, %c0_0] : memref<32x2048xbf16, #tpu.memory_space<vmem>>, vector<32x2048xbf16>
    %c0_1 = arith.constant 0 : index
    %c0_2 = arith.constant 0 : index
    %1 = vector.load %arg2[%c0_1, %c0_2] : memref<2048x256xbf16, #tpu.memory_space<vmem>>, vector<2048x256xbf16>
    %cst = arith.constant dense<0.000000e+00> : vector<32x256xf32>
    %2 = tpu.matmul %0, %1, %cst {dimension_numbers = #tpu.dot_dimension_numbers<[1], [0], [0], [1], [0, 0, 1, 1], [], []>} : vector<32x2048xbf16>, vector<2048x256xbf16>, vector<32x256xf32> -> vector<32x256xf32>
    %3 = arith.truncf %2 : vector<32x256xf32> to vector<32x256xbf16>
    %c0_3 = arith.constant 0 : index
    %c0_4 = arith.constant 0 : index
    %4 = vector.load %arg3[%c0_3, %c0_4] : memref<32x256xbf16, #tpu.memory_space<vmem>>, vector<32x256xbf16>
    tpu.vector_store %arg3[%c0_3, %c0_4], %3 {strides = array<i32>} : memref<32x256xbf16, #tpu.memory_space<vmem>>, vector<32x256xbf16>,
    %cst_5 = arith.constant dense<0.000000e+00> : vector<256xf32>
    %5 = vector.multi_reduction <add>, %2, %cst_5 [0] : vector<32x256xf32> to vector<256xf32>
    %6 = vector.shape_cast %5 : vector<256xf32> to vector<1x256xf32>
    %7 = vector.shape_cast %6 : vector<1x256xf32> to vector<1x1x256xf32>
    %8 = arith.mulf %2, %2 : vector<32x256xf32>
    %cst_6 = arith.constant dense<0.000000e+00> : vector<256xf32>
    %9 = vector.multi_reduction <add>, %8, %cst_6 [0] : vector<32x256xf32> to vector<256xf32>
    %10 = vector.shape_cast %9 : vector<256xf32> to vector<1x256xf32>
    %11 = vector.shape_cast %10 : vector<1x256xf32> to vector<1x1x256xf32>
    %12 = vector.shape_cast %7 : vector<1x1x256xf32> to vector<1x1x256xf32>
    %13 = vector.broadcast %12 : vector<1x1x256xf32> to vector<1x8x256xf32>
    %c0_7 = arith.constant 0 : index
    %c0_8 = arith.constant 0 : index
    %c0_9 = arith.constant 0 : index
    %14 = vector.load %arg4[%c0_7, %c0_8, %c0_9] : memref<1x8x256xf32, #tpu.memory_space<vmem>>, vector<1x8x256xf32>
    tpu.vector_store %arg4[%c0_7, %c0_8, %c0_9], %13 {strides = array<i32>} : memref<1x8x256xf32, #tpu.memory_space<vmem>>, vector<1x8x256xf32>,
    %15 = vector.shape_cast %11 : vector<1x1x256xf32> to vector<1x1x256xf32>
    %16 = vector.broadcast %15 : vector<1x1x256xf32> to vector<1x8x256xf32>
    %c0_10 = arith.constant 0 : index
    %c0_11 = arith.constant 0 : index
    %c0_12 = arith.constant 0 : index
    %17 = vector.load %arg5[%c0_10, %c0_11, %c0_12] : memref<1x8x256xf32, #tpu.memory_space<vmem>>, vector<1x8x256xf32>
    tpu.vector_store %arg5[%c0_10, %c0_11, %c0_12], %16 {strides = array<i32>} : memref<1x8x256xf32, #tpu.memory_space<vmem>>, vector<1x8x256xf32>,
    return
  }
  func.func @transform_0(%arg0: i32) -> (i32, i32) {
    %c0_i32 = arith.constant 0 : i32
    %c0_i32_0 = arith.constant 0 : i32
    return %arg0, %c0_i32 : i32, i32
  }
  func.func @transform_1(%arg0: i32) -> (i32, i32) {
    %c0_i32 = arith.constant 0 : i32
    %c0_i32_0 = arith.constant 0 : i32
    %c0_i32_1 = arith.constant 0 : i32
    return %c0_i32, %c0_i32_0 : i32, i32
  }
  func.func @transform_2(%arg0: i32) -> (i32, i32) {
    %c0_i32 = arith.constant 0 : i32
    %c0_i32_0 = arith.constant 0 : i32
    return %arg0, %c0_i32 : i32, i32
  }
  func.func @transform_3(%arg0: i32) -> (i32, i32, i32) {
    %c0_i32 = arith.constant 0 : i32
    %c0_i32_0 = arith.constant 0 : i32
    %c0_i32_1 = arith.constant 0 : i32
    return %arg0, %c0_i32, %c0_i32_0 : i32, i32, i32
  }
  func.func @transform_4(%arg0: i32) -> (i32, i32, i32) {
    %c0_i32 = arith.constant 0 : i32
    %c0_i32_0 = arith.constant 0 : i32
    %c0_i32_1 = arith.constant 0 : i32
    return %arg0, %c0_i32, %c0_i32_0 : i32, i32, i32
  }
}

module attributes {stable_mosaic.version = 11 : i64} {
  func.func @_matmul_stats_kernel(%arg0: i32, %arg1: memref<16x4096xbf16, #tpu.memory_space<vmem>>, %arg2: memref<4096x512xbf16, #tpu.memory_space<vmem>>, %arg3: memref<16x512xbf16, #tpu.memory_space<vmem>>, %arg4: memref<1x8x512xf32, #tpu.memory_space<vmem>>, %arg5: memref<1x8x512xf32, #tpu.memory_space<vmem>>) attributes {dimension_semantics = [#tpu.dimension_semantics<parallel>], iteration_bounds = array<i64: 1>, scalar_prefetch = 0 : i64, scratch_operands = 0 : i64, tpu.core_type = #tpu.core_type<tc>, window_params = [{transform_indices = @transform_0, window_bounds = array<i64: 16, 4096>}, {pipeline_mode = #tpu.pipeline_mode<synchronous>, transform_indices = @transform_1, window_bounds = array<i64: 4096, 512>}, {transform_indices = @transform_2, window_bounds = array<i64: 16, 512>}, {transform_indices = @transform_3, window_bounds = array<i64: 1, 8, 512>}, {transform_indices = @transform_4, window_bounds = array<i64: 1, 8, 512>}]} {
    %c0 = arith.constant 0 : index
    %c0_0 = arith.constant 0 : index
    %0 = vector.load %arg1[%c0, %c0_0] : memref<16x4096xbf16, #tpu.memory_space<vmem>>, vector<16x4096xbf16>
    %c0_1 = arith.constant 0 : index
    %c0_2 = arith.constant 0 : index
    %1 = vector.load %arg2[%c0_1, %c0_2] : memref<4096x512xbf16, #tpu.memory_space<vmem>>, vector<4096x512xbf16>
    %cst = arith.constant dense<0.000000e+00> : vector<16x512xf32>
    %2 = tpu.matmul %0, %1, %cst {dimension_numbers = #tpu.dot_dimension_numbers<[1], [0], [0], [1], [0, 0, 1, 1], [], []>} : vector<16x4096xbf16>, vector<4096x512xbf16>, vector<16x512xf32> -> vector<16x512xf32>
    %3 = arith.truncf %2 : vector<16x512xf32> to vector<16x512xbf16>
    %c0_3 = arith.constant 0 : index
    %c0_4 = arith.constant 0 : index
    %4 = vector.load %arg3[%c0_3, %c0_4] : memref<16x512xbf16, #tpu.memory_space<vmem>>, vector<16x512xbf16>
    tpu.vector_store %arg3[%c0_3, %c0_4], %3 {strides = array<i32>} : memref<16x512xbf16, #tpu.memory_space<vmem>>, vector<16x512xbf16>,
    %cst_5 = arith.constant dense<0.000000e+00> : vector<512xf32>
    %5 = vector.multi_reduction <add>, %2, %cst_5 [0] : vector<16x512xf32> to vector<512xf32>
    %6 = vector.shape_cast %5 : vector<512xf32> to vector<1x512xf32>
    %7 = vector.shape_cast %6 : vector<1x512xf32> to vector<1x1x512xf32>
    %8 = arith.mulf %2, %2 : vector<16x512xf32>
    %cst_6 = arith.constant dense<0.000000e+00> : vector<512xf32>
    %9 = vector.multi_reduction <add>, %8, %cst_6 [0] : vector<16x512xf32> to vector<512xf32>
    %10 = vector.shape_cast %9 : vector<512xf32> to vector<1x512xf32>
    %11 = vector.shape_cast %10 : vector<1x512xf32> to vector<1x1x512xf32>
    %12 = vector.shape_cast %7 : vector<1x1x512xf32> to vector<1x1x512xf32>
    %13 = vector.broadcast %12 : vector<1x1x512xf32> to vector<1x8x512xf32>
    %c0_7 = arith.constant 0 : index
    %c0_8 = arith.constant 0 : index
    %c0_9 = arith.constant 0 : index
    %14 = vector.load %arg4[%c0_7, %c0_8, %c0_9] : memref<1x8x512xf32, #tpu.memory_space<vmem>>, vector<1x8x512xf32>
    tpu.vector_store %arg4[%c0_7, %c0_8, %c0_9], %13 {strides = array<i32>} : memref<1x8x512xf32, #tpu.memory_space<vmem>>, vector<1x8x512xf32>,
    %15 = vector.shape_cast %11 : vector<1x1x512xf32> to vector<1x1x512xf32>
    %16 = vector.broadcast %15 : vector<1x1x512xf32> to vector<1x8x512xf32>
    %c0_10 = arith.constant 0 : index
    %c0_11 = arith.constant 0 : index
    %c0_12 = arith.constant 0 : index
    %17 = vector.load %arg5[%c0_10, %c0_11, %c0_12] : memref<1x8x512xf32, #tpu.memory_space<vmem>>, vector<1x8x512xf32>
    tpu.vector_store %arg5[%c0_10, %c0_11, %c0_12], %16 {strides = array<i32>} : memref<1x8x512xf32, #tpu.memory_space<vmem>>, vector<1x8x512xf32>,
    return
  }
  func.func @transform_0(%arg0: i32) -> (i32, i32) {
    %c0_i32 = arith.constant 0 : i32
    %c0_i32_0 = arith.constant 0 : i32
    return %arg0, %c0_i32 : i32, i32
  }
  func.func @transform_1(%arg0: i32) -> (i32, i32) {
    %c0_i32 = arith.constant 0 : i32
    %c0_i32_0 = arith.constant 0 : i32
    %c0_i32_1 = arith.constant 0 : i32
    return %c0_i32, %c0_i32_0 : i32, i32
  }
  func.func @transform_2(%arg0: i32) -> (i32, i32) {
    %c0_i32 = arith.constant 0 : i32
    %c0_i32_0 = arith.constant 0 : i32
    return %arg0, %c0_i32 : i32, i32
  }
  func.func @transform_3(%arg0: i32) -> (i32, i32, i32) {
    %c0_i32 = arith.constant 0 : i32
    %c0_i32_0 = arith.constant 0 : i32
    %c0_i32_1 = arith.constant 0 : i32
    return %arg0, %c0_i32, %c0_i32_0 : i32, i32, i32
  }
  func.func @transform_4(%arg0: i32) -> (i32, i32, i32) {
    %c0_i32 = arith.constant 0 : i32
    %c0_i32_0 = arith.constant 0 : i32
    %c0_i32_1 = arith.constant 0 : i32
    return %arg0, %c0_i32, %c0_i32_0 : i32, i32, i32
  }
}

module attributes {stable_mosaic.version = 11 : i64} {
  func.func @_affine_lrelu_kernel(%arg0: i32, %arg1: memref<16x512xbf16, #tpu.memory_space<vmem>>, %arg2: memref<1x512xf32, #tpu.memory_space<vmem>>, %arg3: memref<1x512xf32, #tpu.memory_space<vmem>>, %arg4: memref<16x512xbf16, #tpu.memory_space<vmem>>) attributes {dimension_semantics = [#tpu.dimension_semantics<parallel>], iteration_bounds = array<i64: 1>, scalar_prefetch = 0 : i64, scratch_operands = 0 : i64, tpu.core_type = #tpu.core_type<tc>, window_params = [{transform_indices = @transform_0, window_bounds = array<i64: 16, 512>}, {pipeline_mode = #tpu.pipeline_mode<synchronous>, transform_indices = @transform_1, window_bounds = array<i64: 1, 512>}, {pipeline_mode = #tpu.pipeline_mode<synchronous>, transform_indices = @transform_2, window_bounds = array<i64: 1, 512>}, {transform_indices = @transform_3, window_bounds = array<i64: 16, 512>}]} {
    %c0 = arith.constant 0 : index
    %c0_0 = arith.constant 0 : index
    %0 = vector.load %arg1[%c0, %c0_0] : memref<16x512xbf16, #tpu.memory_space<vmem>>, vector<16x512xbf16>
    %1 = arith.extf %0 : vector<16x512xbf16> to vector<16x512xf32>
    %c0_1 = arith.constant 0 : index
    %c0_2 = arith.constant 0 : index
    %2 = vector.load %arg2[%c0_1, %c0_2] : memref<1x512xf32, #tpu.memory_space<vmem>>, vector<1x512xf32>
    %3 = vector.broadcast %2 : vector<1x512xf32> to vector<16x512xf32>
    %4 = arith.mulf %1, %3 : vector<16x512xf32>
    %c0_3 = arith.constant 0 : index
    %c0_4 = arith.constant 0 : index
    %5 = vector.load %arg3[%c0_3, %c0_4] : memref<1x512xf32, #tpu.memory_space<vmem>>, vector<1x512xf32>
    %6 = vector.broadcast %5 : vector<1x512xf32> to vector<16x512xf32>
    %7 = arith.addf %4, %6 : vector<16x512xf32>
    %cst = arith.constant 0.000000e+00 : f32
    %8 = vector.broadcast %cst : f32 to vector<16x512xf32>
    %9 = arith.cmpf ogt, %7, %8 : vector<16x512xf32>
    %cst_5 = arith.constant 2.000000e-01 : f32
    %10 = vector.broadcast %cst_5 : f32 to vector<16x512xf32>
    %11 = arith.mulf %10, %7 : vector<16x512xf32>
    %12 = arith.select %9, %7, %11 : vector<16x512xi1>, vector<16x512xf32>
    %13 = arith.truncf %12 : vector<16x512xf32> to vector<16x512xbf16>
    %c0_6 = arith.constant 0 : index
    %c0_7 = arith.constant 0 : index
    %14 = vector.load %arg4[%c0_6, %c0_7] : memref<16x512xbf16, #tpu.memory_space<vmem>>, vector<16x512xbf16>
    tpu.vector_store %arg4[%c0_6, %c0_7], %13 {strides = array<i32>} : memref<16x512xbf16, #tpu.memory_space<vmem>>, vector<16x512xbf16>,
    return
  }
  func.func @transform_0(%arg0: i32) -> (i32, i32) {
    %c0_i32 = arith.constant 0 : i32
    %c0_i32_0 = arith.constant 0 : i32
    return %arg0, %c0_i32 : i32, i32
  }
  func.func @transform_1(%arg0: i32) -> (i32, i32) {
    %c0_i32 = arith.constant 0 : i32
    %c0_i32_0 = arith.constant 0 : i32
    %c0_i32_1 = arith.constant 0 : i32
    return %c0_i32, %c0_i32_0 : i32, i32
  }
  func.func @transform_2(%arg0: i32) -> (i32, i32) {
    %c0_i32 = arith.constant 0 : i32
    %c0_i32_0 = arith.constant 0 : i32
    %c0_i32_1 = arith.constant 0 : i32
    return %c0_i32, %c0_i32_0 : i32, i32
  }
  func.func @transform_3(%arg0: i32) -> (i32, i32) {
    %c0_i32 = arith.constant 0 : i32
    %c0_i32_0 = arith.constant 0 : i32
    return %arg0, %c0_i32 : i32, i32
  }
}

module attributes {stable_mosaic.version = 11 : i64} {
  func.func @_matmul_kernel(%arg0: i32, %arg1: memref<16x8192xbf16, #tpu.memory_space<vmem>>, %arg2: memref<8192x128xbf16, #tpu.memory_space<vmem>>, %arg3: memref<16x1xf32, #tpu.memory_space<vmem>>) attributes {dimension_semantics = [#tpu.dimension_semantics<parallel>], iteration_bounds = array<i64: 1>, scalar_prefetch = 0 : i64, scratch_operands = 0 : i64, tpu.core_type = #tpu.core_type<tc>, window_params = [{transform_indices = @transform_0, window_bounds = array<i64: 16, 8192>}, {pipeline_mode = #tpu.pipeline_mode<synchronous>, transform_indices = @transform_1, window_bounds = array<i64: 8192, 128>}, {transform_indices = @transform_2, window_bounds = array<i64: 16, 1>}]} {
    %c0 = arith.constant 0 : index
    %c0_0 = arith.constant 0 : index
    %0 = vector.load %arg1[%c0, %c0_0] : memref<16x8192xbf16, #tpu.memory_space<vmem>>, vector<16x8192xbf16>
    %c0_1 = arith.constant 0 : index
    %c0_2 = arith.constant 0 : index
    %1 = vector.load %arg2[%c0_1, %c0_2] : memref<8192x128xbf16, #tpu.memory_space<vmem>>, vector<8192x128xbf16>
    %cst = arith.constant dense<0.000000e+00> : vector<16x128xf32>
    %2 = tpu.matmul %0, %1, %cst {dimension_numbers = #tpu.dot_dimension_numbers<[1], [0], [0], [1], [0, 0, 1, 1], [], []>} : vector<16x8192xbf16>, vector<8192x128xbf16>, vector<16x128xf32> -> vector<16x128xf32>
    %3 = vector.extract_strided_slice %2 {offsets = [0, 0], sizes = [16, 1], strides = [1, 1]} : vector<16x128xf32> to vector<16x1xf32>
    %4 = arith.negf %3 : vector<16x1xf32>
    %5 = math.exp %4 : vector<16x1xf32>
    %cst_3 = arith.constant 1.000000e+00 : f32
    %6 = vector.broadcast %cst_3 : f32 to vector<16x1xf32>
    %7 = arith.addf %6, %5 : vector<16x1xf32>
    %8 = arith.divf %6, %7 : vector<16x1xf32>
    %c0_4 = arith.constant 0 : index
    %c0_5 = arith.constant 0 : index
    %9 = vector.load %arg3[%c0_4, %c0_5] : memref<16x1xf32, #tpu.memory_space<vmem>>, vector<16x1xf32>
    tpu.vector_store %arg3[%c0_4, %c0_5], %8 {strides = array<i32>} : memref<16x1xf32, #tpu.memory_space<vmem>>, vector<16x1xf32>,
    return
  }
  func.func @transform_0(%arg0: i32) -> (i32, i32) {
    %c0_i32 = arith.constant 0 : i32
    %c0_i32_0 = arith.constant 0 : i32
    return %arg0, %c0_i32 : i32, i32
  }
  func.func @transform_1(%arg0: i32) -> (i32, i32) {
    %c0_i32 = arith.constant 0 : i32
    %c0_i32_0 = arith.constant 0 : i32
    %c0_i32_1 = arith.constant 0 : i32
    return %c0_i32, %c0_i32_0 : i32, i32
  }
  func.func @transform_2(%arg0: i32) -> (i32, i32) {
    %c0_i32 = arith.constant 0 : i32
    %c0_i32_0 = arith.constant 0 : i32
    return %arg0, %c0_i32 : i32, i32
  }
}

</mosaic_0001>

<bundles_post_ra>
// kernel: discriminator_forward.8
= control target key start
LH: loop header
LB: loop body
LE: loop exit
PB: predicated region body
PF: predicated region fallthrough
CT: control target
= control target key end

     0   :  { %s1045_s9 = smov 0   ;;  %s1182_s0 = inlined_call_operand.vmem [shape: bf16[512,64], index: 0, kind: input, shape index: {}]   ;;  %s1183_s1 = inlined_call_operand.vmem [shape: bf16[64,128], index: 1, kind: input, shape index: {}]   ;;  %s1184_s2 = inlined_call_operand.vmem [shape: bf16[512,64], index: 2, kind: output, shape index: {}]  }
   0x1 LB: > { %s815_s10 = sadd.s32 4294967295, %s1028_s9   ;;  %p819_p0 = scmp.ge.s32.totalorder %s1028_s9, 1  ;;  %s1028_s9 = sphi %s1045_s9, %s12_s9  }
   0x2   : > { %p113_p1 = scmp.lt.s32.totalorder %s1028_s9, 3 }
   0x4   : > { %p114_p2 = pnand %p819_p0, %p113_p1 }
   0x5   : > { %v1002_v0 = vld [vmem:[%s1183_s1] sm:$0xff] (!%p114_p2)   ;;  %s820_s13 = sshll.u32 (!%p114_p2), %s815_s10, 5  ;;  %v1003_v1 = vld [vmem:[%s1183_s1 + $0x8] sm:$0xff] (!%p114_p2)   ;;  %v1004_v2 = vld [vmem:[%s1183_s1 + $0x10] sm:$0xff] (!%p114_p2)   ;;  %vm292_vm0 = vcmask (!%p114_p2), 523264   ;;  %vm726_vm3 = vcmask (!%p114_p2), 519168  }
   0x6   : > { %117 = sbr.rel (%p114_p2) target bundleno = 273 (0x111), region = 28  ;;  %p136_p3 = scmp.lt.s32.totalorder (!%p114_p2), %s820_s13, 63  ;;  %946 = vmatprep.subr.bf16.mxu0 (!%p114_p2), %v1002_v0  ;;  %986 = vmatprep.subr.bf16.mxu1 (!%p114_p2), %v1002_v0  ;;  %v1005_v3 = vld [vmem:[%s1183_s1 + $0x18] sm:$0xff] (!%p114_p2)  }
   0x7   : > { %947 = vmatpush3.bf16.msra.mxu0 (!%p114_p2), %v1002_v0  ;;  %990 = vmatpush3.bf16.msra.mxu1 (!%p114_p2), %v1002_v0 }
   0x8   : > { %948 = vmatprep.subr.bf16.mxu0 (!%p114_p2), %v1003_v1  ;;  %987 = vmatprep.subr.bf16.mxu1 (!%p114_p2), %v1003_v1 }
   0xb   : > { %949 = vmatpush3.bf16.msra.mxu0 (!%p114_p2), %v1003_v1  ;;  %991 = vmatpush3.bf16.msra.mxu1 (!%p114_p2), %v1003_v1 }
   0xc   : > { %950 = vmatprep.subr.bf16.mxu0 (!%p114_p2), %v1004_v2  ;;  %988 = vmatprep.subr.bf16.mxu1 (!%p114_p2), %v1004_v2 }
   0xd   : > { %s1186_s13 = smov (!%p136_p3, %s820_s13), 63 }
   0xe   : > { %s821_s18 = sshll.u32 %s1186_s13, 2 }
   0xf   : > { %s1073_s23 = scalar_lea.vmem %s1182_s0, %s821_s18  ;;  %951 = vmatpush3.bf16.msra.mxu0 %v1004_v2  ;;  %992 = vmatpush3.bf16.msra.mxu1 %v1004_v2  ;;  %s1112_s26 = scalar_lea.vmem %s1184_s2, %s821_s18 }
  0x10   : > { %v1006_v4 = vld [vmem:[%s1073_s23] sm:$0xff]   ;;  %952 = vmatprep.subr.bf16.mxu0 %v1005_v3  ;;  %989 = vmatprep.subr.bf16.mxu1 %v1005_v3  ;;  %v1008_v6 = vld [vmem:[%s1073_s23 + $0x8] sm:$0xff]   ;;  %v1010_v8 = vld [vmem:[%s1073_s23 + $0x10] sm:$0xff]  }
  0x11   : > { %v1007_v5 = vld [vmem:[%s1073_s23 + $0x40] sm:$0xff]   ;;  %954 = vmatprep.mubr.msk.bf16.mxu0 %vm292_vm0, %v1006_v4  ;;  %v1009_v7 = vld [vmem:[%s1073_s23 + $0x48] sm:$0xff]   ;;  %v1011_v9 = vld [vmem:[%s1073_s23 + $0x50] sm:$0xff]  }
  0x12   : > { %970 = vmatprep.mubr.msk.bf16.mxu1 %vm292_vm0, %v1007_v5  ;;  %v1012_v10 = vld [vmem:[%s1073_s23 + $0x18] sm:$0xff]   ;;  %v1014_v12 = vld [vmem:[%s1073_s23 + $0x20] sm:$0xff]   ;;  %v1016_v14 = vld [vmem:[%s1073_s23 + $0x28] sm:$0xff]  }
  0x13   : > { %953 = vmatpush3.bf16.msra.mxu0 %v1005_v3  ;;  %993 = vmatpush3.bf16.msra.mxu1 %v1005_v3  ;;  %v1013_v11 = vld [vmem:[%s1073_s23 + $0x58] sm:$0xff]   ;;  %v1015_v13 = vld [vmem:[%s1073_s23 + $0x60] sm:$0xff]   ;;  %v1017_v15 = vld [vmem:[%s1073_s23 + $0x68] sm:$0xff]  }
  0x14   : > { %v1018_v16 = vld [vmem:[%s1073_s23 + $0x30] sm:$0xff]   ;;  %v1020_v18 = vld [vmem:[%s1073_s23 + $0x38] sm:$0xff]  }
  0x15   : > { %v1019_v17 = vld [vmem:[%s1073_s23 + $0x70] sm:$0xff]   ;;  %v1021_v19 = vld [vmem:[%s1073_s23 + $0x78] sm:$0xff]  }
  0x16   : > { %955 = vmatmul.mubr.msk.bf16.vlgmr.msra.gmra.mrb[0].mxu0 %vm292_vm0, %v1008_v6  ;;  %971 = vmatmul.mubr.msk.bf16.vlgmr.msra.gmra.mrb[0].mxu1 %vm292_vm0, %v1009_v7 }
  0x17   : > { %958 = vmatprep.mubr.msk.bf16.mxu0 %vm292_vm0, %v1010_v8  ;;  %974 = vmatprep.mubr.msk.bf16.mxu1 %vm292_vm0, %v1011_v9 }
  0x1e   : > { %959 = vmatmul.mubr.msk.bf16.gmra.mrb[4].mxu0 %vm292_vm0, %v1012_v10  ;;  %975 = vmatmul.mubr.msk.bf16.gmra.mrb[4].mxu1 %vm292_vm0, %v1013_v11 }
  0x1f   : > { %962 = vmatprep.mubr.msk.bf16.mxu0 %vm292_vm0, %v1014_v12  ;;  %978 = vmatprep.mubr.msk.bf16.mxu1 %vm292_vm0, %v1015_v13 }
  0x26   : > { %963 = vmatmul.mubr.msk.bf16.gmra.mrb[8].mxu0 %vm292_vm0, %v1016_v14  ;;  %979 = vmatmul.mubr.msk.bf16.gmra.mrb[8].mxu1 %vm292_vm0, %v1017_v15 }
  0x27   : > { %966 = vmatprep.mubr.msk.bf16.mxu0 %vm292_vm0, %v1018_v16  ;;  %982 = vmatprep.mubr.msk.bf16.mxu1 %vm292_vm0, %v1019_v17 }
  0x2e   : > { %967 = vmatmul.mubr.msk.bf16.gmra.mrb[12].mxu0 %vm292_vm0, %v1020_v18  ;;  %983 = vmatmul.mubr.msk.bf16.gmra.mrb[12].mxu1 %vm292_vm0, %v1021_v19 }
  0xe9   : > { %v956_v20 = vpop.f32.mrb[0].mxu0  ;;  %v972_v21 = vpop.f32.mrb[0].mxu1 }
  0xea   : > { %vm504_vm1 = vcmp.gt.f32.partialorder %v956_v20, 0.0  ;;  %v536_v22 = vmul.f32 0.2, %v956_v20  ;;  %vm520_vm2 = vcmp.gt.f32.partialorder %v972_v21, 0.0  ;;  %v552_v23 = vmul.f32 0.2, %v972_v21 }
  0xeb   : > { %v375_v24 = vpop.f32.mrb[1].mxu0  ;;  %v439_v25 = vpop.f32.mrb[1].mxu1 }
  0xec   : > { %v568_v26 = vsel %vm504_vm1, %v956_v20, %v536_v22  ;;  %v584_v27 = vsel %vm520_vm2, %v972_v21, %v552_v23  ;;  %vm502_vm4 = vcmp.gt.f32.partialorder %v375_v24, 0.0  ;;  %v534_v28 = vmul.f32 0.2, %v375_v24  ;;  %v957_v29 = vpop.f32.mrb[2].mxu0  ;;  %v973_v30 = vpop.f32.mrb[2].mxu1 }
  0xed   : > { %v896_v31 = vpack.c.bf16 %v568_v26, %v568_v26  ;;  %v912_v32 = vpack.c.bf16 %v584_v27, %v584_v27  ;;  %vm518_vm5 = vcmp.gt.f32.partialorder %v439_v25, 0.0  ;;  %v550_v33 = vmul.f32 0.2, %v439_v25  ;;  %v378_v34 = vpop.f32.mrb[3].mxu0  ;;  %v442_v35 = vpop.f32.mrb[3].mxu1 }
  0xee   : > { %v566_v36 = vsel %vm502_vm4, %v375_v24, %v534_v28  ;;  %vm505_vm6 = vcmp.gt.f32.partialorder %v957_v29, 0.0  ;;  %v537_v37 = vmul.f32 0.2, %v957_v29  ;;  %vm521_vm7 = vcmp.gt.f32.partialorder %v973_v30, 0.0 }
  0xef   : > { %729 = vst.msk [vmem:[%s1112_s26 + $0x8] sm:$0xf] %vm726_vm3, %v896_v31  ;;  %745 = vst.msk [vmem:[%s1112_s26 + $0x48] sm:$0xf] %vm726_vm3, %v912_v32  ;;  %v894_v38 = vpack.c.bf16 %v566_v36, %v566_v36  ;;  %v582_v39 = vsel %vm518_vm5, %v439_v25, %v550_v33  ;;  %v553_v40 = vmul.f32 0.2, %v973_v30 }
  0xf0   : > { %vm503_vm8 = vcmp.gt.f32.partialorder %v378_v34, 0.0  ;;  %v910_v41 = vpack.c.bf16 %v582_v39, %v582_v39  ;;  %v569_v42 = vsel %vm505_vm6, %v957_v29, %v537_v37  ;;  %v535_v43 = vmul.f32 0.2, %v378_v34 }
  0xf1   : > { %vm519_vm9 = vcmp.gt.f32.partialorder %v442_v35, 0.0  ;;  %727 = vst.msk [vmem:[%s1112_s26] sm:$0xf] %vm726_vm3, %v894_v38  ;;  %v897_v44 = vpack.c.bf16 %v569_v42, %v569_v42  ;;  %v585_v45 = vsel %vm521_vm7, %v973_v30, %v553_v40  ;;  %v551_v46 = vmul.f32 0.2, %v442_v35  ;;  %v960_v47 = vpop.f32.mrb[4].mxu0 }
  0xf2   : > { %v976_v48 = vpop.f32.mrb[4].mxu1  ;;  %743 = vst.msk [vmem:[%s1112_s26 + $0x40] sm:$0xf] %vm726_vm3, %v910_v41  ;;  %v913_v49 = vpack.c.bf16 %v585_v45, %v585_v45  ;;  %v567_v50 = vsel %vm503_vm8, %v378_v34, %v535_v43  ;;  %vm508_vm10 = vcmp.gt.f32.partialorder %v960_v47, 0.0  ;;  %v540_v51 = vmul.f32 0.2, %v960_v47 }
  0xf3   : > { %v391_v52 = vpop.f32.mrb[5].mxu0  ;;  %v455_v53 = vpop.f32.mrb[5].mxu1  ;;  %730 = vst.msk [vmem:[%s1112_s26 + $0xc] sm:$0xf] %vm726_vm3, %v897_v44  ;;  %v895_v54 = vpack.c.bf16 %v567_v50, %v567_v50  ;;  %v583_v55 = vsel %vm519_vm9, %v442_v35, %v551_v46  ;;  %vm524_vm11 = vcmp.gt.f32.partialorder %v976_v48, 0.0 }
  0xf4   : > { %v556_v56 = vmul.f32 0.2, %v976_v48  ;;  %v961_v57 = vpop.f32.mrb[6].mxu0  ;;  %v977_v58 = vpop.f32.mrb[6].mxu1  ;;  %746 = vst.msk [vmem:[%s1112_s26 + $0x4c] sm:$0xf] %vm726_vm3, %v913_v49  ;;  %v911_v59 = vpack.c.bf16 %v583_v55, %v583_v55  ;;  %v572_v60 = vsel %vm508_vm10, %v960_v47, %v540_v51 }
  0xf5   : > { %vm506_vm12 = vcmp.gt.f32.partialorder %v391_v52, 0.0  ;;  %v538_v61 = vmul.f32 0.2, %v391_v52  ;;  %v394_v62 = vpop.f32.mrb[7].mxu0  ;;  %v458_v63 = vpop.f32.mrb[7].mxu1  ;;  %v900_v0 = vpack.c.bf16 %v572_v60, %v572_v60  ;;  %vm522_vm13 = vcmp.gt.f32.partialorder %v455_v53, 0.0 }
  0xf6   : > { %728 = vst.msk [vmem:[%s1112_s26 + $0x4] sm:$0xf] %vm726_vm3, %v895_v54  ;;  %v588_v1 = vsel %vm524_vm11, %v976_v48, %v556_v56  ;;  %v554_v2 = vmul.f32 0.2, %v455_v53  ;;  %744 = vst.msk [vmem:[%s1112_s26 + $0x44] sm:$0xf] %vm726_vm3, %v911_v59 }
  0xf7   : > { %v916_v3 = vpack.c.bf16 %v588_v1, %v588_v1  ;;  %v570_v4 = vsel %vm506_vm12, %v391_v52, %v538_v61  ;;  %vm509_vm14 = vcmp.gt.f32.partialorder %v961_v57, 0.0  ;;  %v541_v5 = vmul.f32 0.2, %v961_v57  ;;  %733 = vst.msk [vmem:[%s1112_s26 + $0x18] sm:$0xf] %vm726_vm3, %v900_v0 }
  0xf8   : > { %v898_v6 = vpack.c.bf16 %v570_v4, %v570_v4  ;;  %v586_v7 = vsel %vm522_vm13, %v455_v53, %v554_v2  ;;  %vm525_vm15 = vcmp.gt.f32.partialorder %v977_v58, 0.0  ;;  %v557_v8 = vmul.f32 0.2, %v977_v58 }
  0xf9   : > { %749 = vst.msk [vmem:[%s1112_s26 + $0x58] sm:$0xf] %vm726_vm3, %v916_v3  ;;  %v914_v9 = vpack.c.bf16 %v586_v7, %v586_v7  ;;  %v573_v10 = vsel %vm509_vm14, %v961_v57, %v541_v5  ;;  %vm507_vm0 = vcmp.gt.f32.partialorder %v394_v62, 0.0  ;;  %v539_v11 = vmul.f32 0.2, %v394_v62  ;;  %v964_v15 = vpop.f32.mrb[8].mxu0 }
  0xfa   : > { %731 = vst.msk [vmem:[%s1112_s26 + $0x10] sm:$0xf] %vm726_vm3, %v898_v6  ;;  %v901_v12 = vpack.c.bf16 %v573_v10, %v573_v10  ;;  %v589_v13 = vsel %vm525_vm15, %v977_v58, %v557_v8  ;;  %vm523_vm1 = vcmp.gt.f32.partialorder %v458_v63, 0.0  ;;  %v555_v14 = vmul.f32 0.2, %v458_v63  ;;  %v980_v16 = vpop.f32.mrb[8].mxu1 }
  0xfb   : > { %747 = vst.msk [vmem:[%s1112_s26 + $0x50] sm:$0xf] %vm726_vm3, %v914_v9  ;;  %v917_v17 = vpack.c.bf16 %v589_v13, %v589_v13  ;;  %v571_v18 = vsel %vm507_vm0, %v394_v62, %v539_v11  ;;  %vm512_vm2 = vcmp.gt.f32.partialorder %v964_v15, 0.0  ;;  %v544_v19 = vmul.f32 0.2, %v964_v15  ;;  %v407_v20 = vpop.f32.mrb[9].mxu0 }
  0xfc   : > { %v471_v21 = vpop.f32.mrb[9].mxu1  ;;  %734 = vst.msk [vmem:[%s1112_s26 + $0x1c] sm:$0xf] %vm726_vm3, %v901_v12  ;;  %v899_v22 = vpack.c.bf16 %v571_v18, %v571_v18  ;;  %v587_v23 = vsel %vm523_vm1, %v458_v63, %v555_v14  ;;  %vm528_vm4 = vcmp.gt.f32.partialorder %v980_v16, 0.0  ;;  %v560_v24 = vmul.f32 0.2, %v980_v16 }
  0xfd   : > { %v965_v25 = vpop.f32.mrb[10].mxu0  ;;  %v981_v26 = vpop.f32.mrb[10].mxu1  ;;  %750 = vst.msk [vmem:[%s1112_s26 + $0x5c] sm:$0xf] %vm726_vm3, %v917_v17  ;;  %v915_v27 = vpack.c.bf16 %v587_v23, %v587_v23  ;;  %v576_v28 = vsel %vm512_vm2, %v964_v15, %v544_v19  ;;  %vm510_vm5 = vcmp.gt.f32.partialorder %v407_v20, 0.0  ;;  %vm526_vm6 = vcmp.gt.f32.partialorder %v471_v21, 0.0 }
  0xfe   : > { %v542_v29 = vmul.f32 0.2, %v407_v20  ;;  %v410_v30 = vpop.f32.mrb[11].mxu0  ;;  %v474_v31 = vpop.f32.mrb[11].mxu1  ;;  %732 = vst.msk [vmem:[%s1112_s26 + $0x14] sm:$0xf] %vm726_vm3, %v899_v22  ;;  %v904_v32 = vpack.c.bf16 %v576_v28, %v576_v28  ;;  %v592_v33 = vsel %vm528_vm4, %v980_v16, %v560_v24 }
  0xff   : > { %v558_v34 = vmul.f32 0.2, %v471_v21  ;;  %748 = vst.msk [vmem:[%s1112_s26 + $0x54] sm:$0xf] %vm726_vm3, %v915_v27  ;;  %v920_v35 = vpack.c.bf16 %v592_v33, %v592_v33  ;;  %vm513_vm7 = vcmp.gt.f32.partialorder %v965_v25, 0.0  ;;  %vm529_vm8 = vcmp.gt.f32.partialorder %v981_v26, 0.0 }
 0x100   : > { %v574_v36 = vsel %vm510_vm5, %v407_v20, %v542_v29  ;;  %v545_v37 = vmul.f32 0.2, %v965_v25  ;;  %737 = vst.msk [vmem:[%s1112_s26 + $0x28] sm:$0xf] %vm726_vm3, %v904_v32  ;;  %v561_v40 = vmul.f32 0.2, %v981_v26 }
 0x101   : > { %v902_v38 = vpack.c.bf16 %v574_v36, %v574_v36  ;;  %v590_v39 = vsel %vm526_vm6, %v471_v21, %v558_v34  ;;  %753 = vst.msk [vmem:[%s1112_s26 + $0x68] sm:$0xf] %vm726_vm3, %v920_v35  ;;  %vm511_vm9 = vcmp.gt.f32.partialorder %v410_v30, 0.0  ;;  %v543_v43 = vmul.f32 0.2, %v410_v30  ;;  %v968_v47 = vpop.f32.mrb[12].mxu0 }
 0x102   : > { %v918_v41 = vpack.c.bf16 %v590_v39, %v590_v39  ;;  %v577_v42 = vsel %vm513_vm7, %v965_v25, %v545_v37  ;;  %v593_v45 = vsel %vm529_vm8, %v981_v26, %v561_v40  ;;  %vm527_vm10 = vcmp.gt.f32.partialorder %v474_v31, 0.0  ;;  %v984_v48 = vpop.f32.mrb[12].mxu1  ;;  %v423_v52 = vpop.f32.mrb[13].mxu0 }
 0x103   : > { %735 = vst.msk [vmem:[%s1112_s26 + $0x20] sm:$0xf] %vm726_vm3, %v902_v38  ;;  %v905_v44 = vpack.c.bf16 %v577_v42, %v577_v42  ;;  %v559_v46 = vmul.f32 0.2, %v474_v31  ;;  %v921_v49 = vpack.c.bf16 %v593_v45, %v593_v45  ;;  %v575_v50 = vsel %vm511_vm9, %v410_v30, %v543_v43  ;;  %v487_v53 = vpop.f32.mrb[13].mxu1  ;;  %v969_v57 = vpop.f32.mrb[14].mxu0 }
 0x104   : > { %751 = vst.msk [vmem:[%s1112_s26 + $0x60] sm:$0xf] %vm726_vm3, %v918_v41  ;;  %vm516_vm11 = vcmp.gt.f32.partialorder %v968_v47, 0.0  ;;  %v548_v51 = vmul.f32 0.2, %v968_v47  ;;  %v903_v54 = vpack.c.bf16 %v575_v50, %v575_v50  ;;  %vm532_vm12 = vcmp.gt.f32.partialorder %v984_v48, 0.0 }
 0x105   : > { %738 = vst.msk [vmem:[%s1112_s26 + $0x2c] sm:$0xf] %vm726_vm3, %v905_v44  ;;  %v591_v55 = vsel %vm527_vm10, %v474_v31, %v559_v46  ;;  %v564_v56 = vmul.f32 0.2, %v984_v48  ;;  %v985_v58 = vpop.f32.mrb[14].mxu1  ;;  %vm514_vm13 = vcmp.gt.f32.partialorder %v423_v52, 0.0 }
 0x106   : > { %754 = vst.msk [vmem:[%s1112_s26 + $0x6c] sm:$0xf] %vm726_vm3, %v921_v49  ;;  %v919_v59 = vpack.c.bf16 %v591_v55, %v591_v55  ;;  %v580_v60 = vsel %vm516_vm11, %v968_v47, %v548_v51  ;;  %v546_v61 = vmul.f32 0.2, %v423_v52  ;;  %v426_v62 = vpop.f32.mrb[15].mxu0  ;;  %v490_v63 = vpop.f32.mrb[15].mxu1 }
 0x107   : > { %736 = vst.msk [vmem:[%s1112_s26 + $0x24] sm:$0xf] %vm726_vm3, %v903_v54  ;;  %v908_v0 = vpack.c.bf16 %v580_v60, %v580_v60  ;;  %v596_v1 = vsel %vm532_vm12, %v984_v48, %v564_v56  ;;  %vm530_vm14 = vcmp.gt.f32.partialorder %v487_v53, 0.0  ;;  %v562_v2 = vmul.f32 0.2, %v487_v53 }
 0x108   : > { %752 = vst.msk [vmem:[%s1112_s26 + $0x64] sm:$0xf] %vm726_vm3, %v919_v59  ;;  %v924_v3 = vpack.c.bf16 %v596_v1, %v596_v1  ;;  %v578_v4 = vsel %vm514_vm13, %v423_v52, %v546_v61  ;;  %vm517_vm15 = vcmp.gt.f32.partialorder %v969_v57, 0.0  ;;  %v549_v5 = vmul.f32 0.2, %v969_v57 }
 0x109   : > { %741 = vst.msk [vmem:[%s1112_s26 + $0x38] sm:$0xf] %vm726_vm3, %v908_v0  ;;  %v906_v6 = vpack.c.bf16 %v578_v4, %v578_v4  ;;  %v594_v7 = vsel %vm530_vm14, %v487_v53, %v562_v2  ;;  %vm533_vm0 = vcmp.gt.f32.partialorder %v985_v58, 0.0  ;;  %v565_v8 = vmul.f32 0.2, %v985_v58 }
 0x10a   : > { %757 = vst.msk [vmem:[%s1112_s26 + $0x78] sm:$0xf] %vm726_vm3, %v924_v3  ;;  %v922_v9 = vpack.c.bf16 %v594_v7, %v594_v7  ;;  %v581_v10 = vsel %vm517_vm15, %v969_v57, %v549_v5  ;;  %vm515_vm1 = vcmp.gt.f32.partialorder %v426_v62, 0.0  ;;  %v547_v11 = vmul.f32 0.2, %v426_v62 }
 0x10b   : > { %739 = vst.msk [vmem:[%s1112_s26 + $0x30] sm:$0xf] %vm726_vm3, %v906_v6  ;;  %v909_v12 = vpack.c.bf16 %v581_v10, %v581_v10  ;;  %v597_v13 = vsel %vm533_vm0, %v985_v58, %v565_v8  ;;  %vm531_vm2 = vcmp.gt.f32.partialorder %v490_v63, 0.0  ;;  %v563_v14 = vmul.f32 0.2, %v490_v63 }
 0x10c   : > { %755 = vst.msk [vmem:[%s1112_s26 + $0x70] sm:$0xf] %vm726_vm3, %v922_v9  ;;  %v925_v15 = vpack.c.bf16 %v597_v13, %v597_v13  ;;  %v579_v16 = vsel %vm515_vm1, %v426_v62, %v547_v11 }
 0x10d   : > { %742 = vst.msk [vmem:[%s1112_s26 + $0x3c] sm:$0xf] %vm726_vm3, %v909_v12  ;;  %v907_v17 = vpack.c.bf16 %v579_v16, %v579_v16  ;;  %v595_v18 = vsel %vm531_vm2, %v490_v63, %v563_v14 }
 0x10e   : > { %758 = vst.msk [vmem:[%s1112_s26 + $0x7c] sm:$0xf] %vm726_vm3, %v925_v15  ;;  %v923_v19 = vpack.c.bf16 %v595_v18, %v595_v18 }
 0x10f   : > { %740 = vst.msk [vmem:[%s1112_s26 + $0x34] sm:$0xf] %vm726_vm3, %v907_v17 }
 0x110   : > { %756 = vst.msk [vmem:[%s1112_s26 + $0x74] sm:$0xf] %vm726_vm3, %v923_v19 }
 0x111 PF: > { %s12_s9 = sadd.s32 1, %s1028_s9  }
 0x112   : > { %p9_p4 = scmp.ge.s32.totalorder %s12_s9, 4  }
 0x114   :  { %11 = sbr.rel (!%p9_p4) target bundleno = 1 (0x1), region = 58 }

// kernel: discriminator_forward.10
= control target key start
LH: loop header
LB: loop body
LE: loop exit
PB: predicated region body
PF: predicated region fallthrough
CT: control target
= control target key end

     0   :  { %s455_s0 = inlined_call_operand.vmem [shape: bf16[128,128], index: 0, kind: input, shape index: {}]   ;;  %s456_s1 = inlined_call_operand.vmem [shape: f32[1,128], index: 1, kind: input, shape index: {}]   ;;  %s457_s2 = inlined_call_operand.vmem [shape: f32[1,128], index: 2, kind: input, shape index: {}]   ;;  %s458_s3 = inlined_call_operand.vmem [shape: bf16[128,128], index: 3, kind: output, shape index: {}]  }
   0x1   :  { %v259_v0 = vld [vmem:[%s455_s0] sm:$0xff]   ;;  %v330_v4 = vld [vmem:[%s455_s0 + $0x8] sm:$0xff]   ;;  %v331_v5 = vld [vmem:[%s455_s0 + $0x10] sm:$0xff]  }
   0x2   :  { %v370_v1 = vld [vmem:[%s456_s1] ss:$0 sm:$0xff]  ;;  %v260_v2 = vunpack.c.l.bf16 %v259_v0  ;;  %v261_v3 = vunpack.c.h.bf16 %v259_v0  ;;  %v332_v6 = vld [vmem:[%s455_s0 + $0x18] sm:$0xff]   ;;  %v264_v8 = vunpack.c.l.bf16 %v330_v4  ;;  %v265_v9 = vunpack.c.h.bf16 %v330_v4  ;;  %v334_v35 = vld [vmem:[%s455_s0 + $0x28] sm:$0xff]  }
   0x3   :  { %v384_v7 = vld [vmem:[%s457_s2] ss:$0 sm:$0xff]  ;;  %v268_v10 = vunpack.c.l.bf16 %v331_v5  ;;  %v269_v11 = vunpack.c.h.bf16 %v331_v5  ;;  %v272_v14 = vunpack.c.l.bf16 %v332_v6  ;;  %v273_v15 = vunpack.c.h.bf16 %v332_v6  ;;  %v335_v48 = vld [vmem:[%s455_s0 + $0x30] sm:$0xff]   ;;  %v336_v4 = vld [vmem:[%s455_s0 + $0x38] sm:$0xff]  }
   0x4   :  { %v53_v12 = vmul.f32 %v260_v2, %v370_v1  ;;  %v54_v13 = vmul.f32 %v261_v3, %v370_v1  ;;  %v55_v16 = vmul.f32 %v264_v8, %v370_v1  ;;  %v56_v17 = vmul.f32 %v265_v9, %v370_v1  ;;  %v333_v34 = vld [vmem:[%s455_s0 + $0x20] sm:$0xff]  }
   0x5   :  { %v57_v18 = vmul.f32 %v268_v10, %v370_v1  ;;  %v58_v19 = vmul.f32 %v269_v11, %v370_v1  ;;  %v59_v22 = vmul.f32 %v272_v14, %v370_v1  ;;  %v60_v23 = vmul.f32 %v273_v15, %v370_v1 }
   0x6   :  { %v76_v20 = vadd.f32 %v384_v7, %v53_v12  ;;  %v77_v21 = vadd.f32 %v384_v7, %v54_v13  ;;  %v78_v24 = vadd.f32 %v384_v7, %v55_v16  ;;  %v79_v25 = vadd.f32 %v384_v7, %v56_v17 }
   0x7   :  { %v80_v26 = vadd.f32 %v384_v7, %v57_v18  ;;  %v81_v27 = vadd.f32 %v384_v7, %v58_v19  ;;  %v82_v42 = vadd.f32 %v384_v7, %v59_v22  ;;  %v83_v43 = vadd.f32 %v384_v7, %v60_v23 }
   0x8   :  { %vm92_vm0 = vcmp.gt.f32.partialorder %v76_v20, 0.0  ;;  %vm93_vm1 = vcmp.gt.f32.partialorder %v77_v21, 0.0  ;;  %v108_v28 = vmul.f32 0.2, %v76_v20  ;;  %v109_v29 = vmul.f32 0.2, %v77_v21 }
   0x9   :  { %vm94_vm2 = vcmp.gt.f32.partialorder %v78_v24, 0.0  ;;  %vm95_vm3 = vcmp.gt.f32.partialorder %v79_v25, 0.0  ;;  %v110_v30 = vmul.f32 0.2, %v78_v24  ;;  %v111_v31 = vmul.f32 0.2, %v79_v25 }
   0xa   :  { %v124_v32 = vsel %vm92_vm0, %v76_v20, %v108_v28  ;;  %v125_v33 = vsel %vm93_vm1, %v77_v21, %v109_v29  ;;  %vm96_vm4 = vcmp.gt.f32.partialorder %v80_v26, 0.0  ;;  %vm97_vm5 = vcmp.gt.f32.partialorder %v81_v27, 0.0 }
   0xb   :  { %v293_v36 = vpack.c.bf16 %v125_v33, %v124_v32  ;;  %v126_v37 = vsel %vm94_vm2, %v78_v24, %v110_v30  ;;  %v127_v38 = vsel %vm95_vm3, %v79_v25, %v111_v31  ;;  %v112_v39 = vmul.f32 0.2, %v80_v26 }
   0xc   :  { %v298_v40 = vpack.c.bf16 %v127_v38, %v126_v37  ;;  %v113_v41 = vmul.f32 0.2, %v81_v27  ;;  %v276_v45 = vunpack.c.l.bf16 %v333_v34  ;;  %v277_v46 = vunpack.c.h.bf16 %v333_v34 }
   0xd   :  { %294 = vst [vmem:[%s458_s3] sm:$0xff] %v293_v36   ;;  %v128_v44 = vsel %vm96_vm4, %v80_v26, %v112_v39  ;;  %v280_v47 = vunpack.c.l.bf16 %v334_v35  ;;  %vm98_vm6 = vcmp.gt.f32.partialorder %v82_v42, 0.0  ;;  %vm99_vm7 = vcmp.gt.f32.partialorder %v83_v43, 0.0 }
   0xe   :  { %337 = vst [vmem:[%s458_s3 + $0x8] sm:$0xff] %v298_v40   ;;  %v129_v49 = vsel %vm97_vm5, %v81_v27, %v113_v41  ;;  %v114_v50 = vmul.f32 0.2, %v82_v42  ;;  %v115_v52 = vmul.f32 0.2, %v83_v43  ;;  %v61_v53 = vmul.f32 %v276_v45, %v370_v1 }
   0xf   :  { %v303_v51 = vpack.c.bf16 %v129_v49, %v128_v44  ;;  %v62_v54 = vmul.f32 %v277_v46, %v370_v1  ;;  %v281_v56 = vunpack.c.h.bf16 %v334_v35  ;;  %v63_v57 = vmul.f32 %v280_v47, %v370_v1 }
  0x10   :  { %v130_v55 = vsel %vm98_vm6, %v82_v42, %v114_v50  ;;  %v284_v58 = vunpack.c.l.bf16 %v335_v48  ;;  %v131_v59 = vsel %vm99_vm7, %v83_v43, %v115_v52  ;;  %v84_v60 = vadd.f32 %v384_v7, %v61_v53 }
  0x11   :  { %338 = vst [vmem:[%s458_s3 + $0x10] sm:$0xff] %v303_v51   ;;  %v85_v61 = vadd.f32 %v384_v7, %v62_v54  ;;  %v285_v62 = vunpack.c.h.bf16 %v335_v48  ;;  %v308_v63 = vpack.c.bf16 %v131_v59, %v130_v55  ;;  %v64_v0 = vmul.f32 %v281_v56, %v370_v1 }
  0x12   :  { %v86_v2 = vadd.f32 %v384_v7, %v63_v57  ;;  %v65_v3 = vmul.f32 %v284_v58, %v370_v1  ;;  %vm100_vm8 = vcmp.gt.f32.partialorder %v84_v60, 0.0  ;;  %v116_v5 = vmul.f32 0.2, %v84_v60 }
  0x13   :  { %vm101_vm9 = vcmp.gt.f32.partialorder %v85_v61, 0.0  ;;  %v117_v6 = vmul.f32 0.2, %v85_v61  ;;  %339 = vst [vmem:[%s458_s3 + $0x18] sm:$0xff] %v308_v63   ;;  %v87_v8 = vadd.f32 %v384_v7, %v64_v0  ;;  %v66_v10 = vmul.f32 %v285_v62, %v370_v1 }
  0x14   :  { %vm102_vm10 = vcmp.gt.f32.partialorder %v86_v2, 0.0  ;;  %v118_v9 = vmul.f32 0.2, %v86_v2  ;;  %v132_v11 = vsel %vm100_vm8, %v84_v60, %v116_v5  ;;  %v88_v13 = vadd.f32 %v384_v7, %v65_v3 }
  0x15   :  { %v133_v12 = vsel %vm101_vm9, %v85_v61, %v117_v6  ;;  %v288_v14 = vunpack.c.l.bf16 %v336_v4  ;;  %vm103_vm11 = vcmp.gt.f32.partialorder %v87_v8, 0.0  ;;  %v119_v16 = vmul.f32 0.2, %v87_v8 }
  0x16   :  { %v313_v15 = vpack.c.bf16 %v133_v12, %v132_v11  ;;  %v134_v17 = vsel %vm102_vm10, %v86_v2, %v118_v9  ;;  %v89_v18 = vadd.f32 %v384_v7, %v66_v10  ;;  %vm104_vm12 = vcmp.gt.f32.partialorder %v88_v13, 0.0 }
  0x17   :  { %v120_v19 = vmul.f32 0.2, %v88_v13  ;;  %v289_v20 = vunpack.c.h.bf16 %v336_v4  ;;  %v135_v21 = vsel %vm103_vm11, %v87_v8, %v119_v16  ;;  %v67_v22 = vmul.f32 %v288_v14, %v370_v1 }
  0x18   :  { %340 = vst [vmem:[%s458_s3 + $0x20] sm:$0xff] %v313_v15   ;;  %v318_v23 = vpack.c.bf16 %v135_v21, %v134_v17  ;;  %vm105_vm13 = vcmp.gt.f32.partialorder %v89_v18, 0.0  ;;  %v121_v24 = vmul.f32 0.2, %v89_v18 }
  0x19   :  { %v136_v25 = vsel %vm104_vm12, %v88_v13, %v120_v19  ;;  %v68_v26 = vmul.f32 %v289_v20, %v370_v1  ;;  %v90_v27 = vadd.f32 %v384_v7, %v67_v22 }
  0x1a   :  { %341 = vst [vmem:[%s458_s3 + $0x28] sm:$0xff] %v318_v23   ;;  %v137_v28 = vsel %vm105_vm13, %v89_v18, %v121_v24 }
  0x1b   :  { %v323_v29 = vpack.c.bf16 %v137_v28, %v136_v25  ;;  %v91_v30 = vadd.f32 %v384_v7, %v68_v26  ;;  %vm106_vm14 = vcmp.gt.f32.partialorder %v90_v27, 0.0  ;;  %v122_v31 = vmul.f32 0.2, %v90_v27 }
  0x1d   :  { %342 = vst [vmem:[%s458_s3 + $0x30] sm:$0xff] %v323_v29   ;;  %vm107_vm15 = vcmp.gt.f32.partialorder %v91_v30, 0.0  ;;  %v123_v32 = vmul.f32 0.2, %v91_v30  ;;  %v138_v33 = vsel %vm106_vm14, %v90_v27, %v122_v31 }
  0x1f   :  { %v139_v1 = vsel %vm107_vm15, %v91_v30, %v123_v32 }
  0x20   :  { %v328_v34 = vpack.c.bf16 %v139_v1, %v138_v33 }
  0x22   :  { %343 = vst [vmem:[%s458_s3 + $0x38] sm:$0xff] %v328_v34  }

// kernel: discriminator_forward.9
= control target key start
LH: loop header
LB: loop body
LE: loop exit
PB: predicated region body
PF: predicated region fallthrough
CT: control target
= control target key end

     0   :  { %s2465_s1 = inlined_call_operand.vmem [shape: bf16[1024,128], index: 1, kind: input, shape index: {}]   ;;  %s2466_s0 = inlined_call_operand.vmem [shape: bf16[128,1024], index: 0, kind: input, shape index: {}]   ;;  %s2467_s2 = inlined_call_operand.vmem [shape: bf16[128,128], index: 2, kind: output, shape index: {0}]   ;;  %s2468_s3 = inlined_call_operand.vmem [shape: f32[1,8,128], index: 3, kind: output, shape index: {1}]   ;;  %s2469_s4 = inlined_call_operand.vmem [shape: f32[1,8,128], index: 4, kind: output, shape index: {2}]  }
   0x1   :  { %v1914_v0 = vld [vmem:[%s2465_s1 + $0x40] sm:$0xff]   ;;  %v1918_v4 = vld [vmem:[%s2465_s1 + $0x48] sm:$0xff]   ;;  %v1922_v8 = vld [vmem:[%s2465_s1 + $0x50] sm:$0xff]  }
   0x2   :  { %v1915_v1 = vld [vmem:[%s2465_s1 + $0xc0] sm:$0xff]   ;;  %1658 = vmatprep.subr.bf16.mxu0 %v1914_v0  ;;  %v1919_v5 = vld [vmem:[%s2465_s1 + $0xc8] sm:$0xff]   ;;  %v1923_v9 = vld [vmem:[%s2465_s1 + $0xd0] sm:$0xff]  }
   0x3   :  { %v1916_v2 = vld [vmem:[%s2465_s1] sm:$0xff]   ;;  %1722 = vmatprep.subr.bf16.mxu1 %v1915_v1  ;;  %v1920_v6 = vld [vmem:[%s2465_s1 + $0x8] sm:$0xff]   ;;  %v1924_v10 = vld [vmem:[%s2465_s1 + $0x10] sm:$0xff]  }
   0x4   :  { %v1917_v3 = vld [vmem:[%s2465_s1 + $0x80] sm:$0xff]   ;;  %1659 = vmatpush3.bf16.msra.mxu0 %v1916_v2  ;;  %v1921_v7 = vld [vmem:[%s2465_s1 + $0x88] sm:$0xff]   ;;  %v1925_v11 = vld [vmem:[%s2465_s1 + $0x90] sm:$0xff]  }
   0x5   :  { %1723 = vmatpush3.bf16.msra.mxu1 %v1917_v3  ;;  %1660 = vmatprep.subr.bf16.mxu0 %v1918_v4  ;;  %v1926_v12 = vld [vmem:[%s2465_s1 + $0x58] sm:$0xff]   ;;  %v1930_v16 = vld [vmem:[%s2465_s1 + $0x60] sm:$0xff]   ;;  %v1934_v20 = vld [vmem:[%s2465_s1 + $0x68] sm:$0xff]  }
   0x6   :  { %1724 = vmatprep.subr.bf16.mxu1 %v1919_v5  ;;  %v1927_v13 = vld [vmem:[%s2465_s1 + $0xd8] sm:$0xff]   ;;  %v1931_v17 = vld [vmem:[%s2465_s1 + $0xe0] sm:$0xff]   ;;  %v1935_v21 = vld [vmem:[%s2465_s1 + $0xe8] sm:$0xff]  }
   0x7   :  { %v1928_v14 = vld [vmem:[%s2465_s1 + $0x18] sm:$0xff]   ;;  %v1932_v18 = vld [vmem:[%s2465_s1 + $0x20] sm:$0xff]   ;;  %v1936_v22 = vld [vmem:[%s2465_s1 + $0x28] sm:$0xff]  }
   0x8   :  { %1661 = vmatpush3.bf16.msra.mxu0 %v1920_v6  ;;  %v1929_v15 = vld [vmem:[%s2465_s1 + $0x98] sm:$0xff]   ;;  %v1933_v19 = vld [vmem:[%s2465_s1 + $0xa0] sm:$0xff]   ;;  %v1937_v23 = vld [vmem:[%s2465_s1 + $0xa8] sm:$0xff]  }
   0x9   :  { %1725 = vmatpush3.bf16.msra.mxu1 %v1921_v7  ;;  %1662 = vmatprep.subr.bf16.mxu0 %v1922_v8  ;;  %v1938_v24 = vld [vmem:[%s2465_s1 + $0x70] sm:$0xff]   ;;  %v1942_v28 = vld [vmem:[%s2465_s1 + $0x78] sm:$0xff]   ;;  %v15_v32 = vld [vmem:[%s2466_s0] sm:$0xff] }
   0xa   :  { %1726 = vmatprep.subr.bf16.mxu1 %v1923_v9  ;;  %v1939_v25 = vld [vmem:[%s2465_s1 + $0xf0] sm:$0xff]   ;;  %v1943_v29 = vld [vmem:[%s2465_s1 + $0xf8] sm:$0xff]   ;;  %v19_v33 = vld [vmem:[%s2466_s0 + $0x20] sm:$0xff] }
   0xb   :  { %v1940_v26 = vld [vmem:[%s2465_s1 + $0x30] sm:$0xff]   ;;  %v1944_v30 = vld [vmem:[%s2465_s1 + $0x38] sm:$0xff]   ;;  %v16_v34 = vld [vmem:[%s2466_s0 + $0x8] sm:$0xff]  ;;  %v1451_v35 = vcombine.low %v15_v32, %v19_v33  ;;  %v1452_v36 = vcombine.high %v15_v32, %v19_v33 }
   0xc   :  { %1663 = vmatpush3.bf16.msra.mxu0 %v1924_v10  ;;  %v1941_v27 = vld [vmem:[%s2465_s1 + $0xb0] sm:$0xff]   ;;  %v1945_v31 = vld [vmem:[%s2465_s1 + $0xb8] sm:$0xff]   ;;  %v20_v37 = vld [vmem:[%s2466_s0 + $0x28] sm:$0xff] }
   0xd   :  { %1727 = vmatpush3.bf16.msra.mxu1 %v1925_v11  ;;  %1664 = vmatprep.subr.bf16.mxu0 %v1926_v12  ;;  %v1453_v38 = vcombine.low %v16_v34, %v20_v37  ;;  %v1454_v39 = vcombine.high %v16_v34, %v20_v37  ;;  %v1946_v40 = vld [vmem:[%s2465_s1 + $0x140] sm:$0xff]   ;;  %v24_v47 = vld [vmem:[%s2466_s0 + $0x48] sm:$0xff]  ;;  %v1954_v62 = vld [vmem:[%s2465_s1 + $0x150] sm:$0xff]  }
   0xe   :  { %1728 = vmatprep.subr.bf16.mxu1 %v1927_v13  ;;  %943 = vmatprep.mubr.bf16.mxu0 %v1452_v36  ;;  %v1947_v41 = vld [vmem:[%s2465_s1 + $0x100] sm:$0xff]   ;;  %v28_v48 = vld [vmem:[%s2466_s0 + $0x68] sm:$0xff]  ;;  %v1955_v63 = vld [vmem:[%s2465_s1 + $0x110] sm:$0xff]  }
   0xf   :  { %1040 = vmatprep.mubr.bf16.mxu1 %v1454_v39  ;;  %v1948_v42 = vld [vmem:[%s2465_s1 + $0x1c0] sm:$0xff]   ;;  %v1462_v49 = vcombine.high %v24_v47, %v28_v48  ;;  %v1950_v50 = vld [vmem:[%s2465_s1 + $0x148] sm:$0xff]   ;;  %v1461_v53 = vcombine.low %v24_v47, %v28_v48  ;;  %v1956_v0 = vld [vmem:[%s2465_s1 + $0x1d0] sm:$0xff]  }
  0x10   :  { %1665 = vmatpush3.bf16.msra.mxu0 %v1928_v14  ;;  %v1949_v43 = vld [vmem:[%s2465_s1 + $0x180] sm:$0xff]   ;;  %v1951_v52 = vld [vmem:[%s2465_s1 + $0x108] sm:$0xff]   ;;  %v1957_v1 = vld [vmem:[%s2465_s1 + $0x190] sm:$0xff]  }
  0x11   :  { %1729 = vmatpush3.bf16.msra.mxu1 %v1929_v15  ;;  %1666 = vmatprep.subr.bf16.mxu0 %v1930_v16  ;;  %v23_v44 = vld [vmem:[%s2466_s0 + $0x40] sm:$0xff]  ;;  %v1952_v54 = vld [vmem:[%s2465_s1 + $0x1c8] sm:$0xff]   ;;  %v1958_v10 = vld [vmem:[%s2465_s1 + $0x158] sm:$0xff]  }
  0x12   :  { %1730 = vmatprep.subr.bf16.mxu1 %v1931_v17  ;;  %v27_v45 = vld [vmem:[%s2466_s0 + $0x60] sm:$0xff]  ;;  %v1953_v55 = vld [vmem:[%s2465_s1 + $0x188] sm:$0xff]   ;;  %v1959_v11 = vld [vmem:[%s2465_s1 + $0x118] sm:$0xff]  }
  0x13   :  { %v1460_v46 = vcombine.high %v23_v44, %v27_v45  ;;  %v1459_v51 = vcombine.low %v23_v44, %v27_v45  ;;  %v31_v56 = vld [vmem:[%s2466_s0 + $0x80] sm:$0xff]  ;;  %v32_v58 = vld [vmem:[%s2466_s0 + $0x88] sm:$0xff]  ;;  %v1960_v12 = vld [vmem:[%s2465_s1 + $0x1d8] sm:$0xff]  }
  0x14   :  { %1667 = vmatpush3.bf16.msra.mxu0 %v1932_v18  ;;  %v35_v57 = vld [vmem:[%s2466_s0 + $0xa0] sm:$0xff]  ;;  %v36_v59 = vld [vmem:[%s2466_s0 + $0xa8] sm:$0xff]  ;;  %v1961_v13 = vld [vmem:[%s2465_s1 + $0x198] sm:$0xff]  }
  0x15   :  { %1731 = vmatpush3.bf16.msra.mxu1 %v1933_v19  ;;  %1668 = vmatprep.subr.bf16.mxu0 %v1934_v20  ;;  %v1468_v60 = vcombine.high %v31_v56, %v35_v57  ;;  %v1470_v61 = vcombine.high %v32_v58, %v36_v59  ;;  %v1467_v2 = vcombine.low %v31_v56, %v35_v57  ;;  %v39_v3 = vld [vmem:[%s2466_s0 + $0xc0] sm:$0xff]  ;;  %v40_v5 = vld [vmem:[%s2466_s0 + $0xc8] sm:$0xff]  ;;  %v1971_v39 = vld [vmem:[%s2465_s1 + $0x130] sm:$0xff]  }
  0x16   :  { %1732 = vmatprep.subr.bf16.mxu1 %v1935_v21  ;;  %v43_v4 = vld [vmem:[%s2466_s0 + $0xe0] sm:$0xff]  ;;  %v1469_v6 = vcombine.low %v32_v58, %v36_v59  ;;  %v44_v8 = vld [vmem:[%s2466_s0 + $0xe8] sm:$0xff]  ;;  %v1975_v48 = vld [vmem:[%s2465_s1 + $0x138] sm:$0xff]  }
  0x17   :  { %v1476_v7 = vcombine.high %v39_v3, %v43_v4  ;;  %v1478_v9 = vcombine.high %v40_v5, %v44_v8  ;;  %v47_v14 = vld [vmem:[%s2466_s0 + $0x100] sm:$0xff]  ;;  %v48_v16 = vld [vmem:[%s2466_s0 + $0x108] sm:$0xff]  ;;  %v1475_v19 = vcombine.low %v39_v3, %v43_v4  ;;  %v1477_v21 = vcombine.low %v40_v5, %v44_v8  ;;  %v26_v8 = vld [vmem:[%s2466_s0 + $0x58] sm:$0xff] }
  0x18   :  { %1669 = vmatpush3.bf16.msra.mxu0 %v1936_v22  ;;  %v51_v15 = vld [vmem:[%s2466_s0 + $0x120] sm:$0xff]  ;;  %v52_v17 = vld [vmem:[%s2466_s0 + $0x128] sm:$0xff] }
  0x19   :  { %1733 = vmatpush3.bf16.msra.mxu1 %v1937_v23  ;;  %1670 = vmatprep.subr.bf16.mxu0 %v1938_v24  ;;  %v1962_v18 = vld [vmem:[%s2465_s1 + $0x160] sm:$0xff]   ;;  %v1484_v22 = vcombine.high %v47_v14, %v51_v15  ;;  %v1486_v24 = vcombine.high %v48_v16, %v52_v17  ;;  %v1968_v32 = vld [vmem:[%s2465_s1 + $0x1e8] sm:$0xff]   ;;  %v1483_v34 = vcombine.low %v47_v14, %v51_v15  ;;  %v33_v14 = vld [vmem:[%s2466_s0 + $0x90] sm:$0xff] }
  0x1a   :  { %1734 = vmatprep.subr.bf16.mxu1 %v1939_v25  ;;  %v1963_v20 = vld [vmem:[%s2465_s1 + $0x120] sm:$0xff]   ;;  %v1969_v33 = vld [vmem:[%s2465_s1 + $0x1a8] sm:$0xff]   ;;  %v37_v15 = vld [vmem:[%s2466_s0 + $0xb0] sm:$0xff] }
  0x1b   :  { %v1964_v23 = vld [vmem:[%s2465_s1 + $0x1e0] sm:$0xff]   ;;  %v64_v44 = vld [vmem:[%s2466_s0 + $0x188] sm:$0xff] }
  0x1c   :  { %1671 = vmatpush3.bf16.msra.mxu0 %v1940_v26  ;;  %v1965_v25 = vld [vmem:[%s2465_s1 + $0x1a0] sm:$0xff]   ;;  %v68_v45 = vld [vmem:[%s2466_s0 + $0x1a8] sm:$0xff] }
  0x1d   :  { %1735 = vmatpush3.bf16.msra.mxu1 %v1941_v27  ;;  %1672 = vmatprep.subr.bf16.mxu0 %v1942_v28  ;;  %v55_v26 = vld [vmem:[%s2466_s0 + $0x140] sm:$0xff]  ;;  %v1966_v28 = vld [vmem:[%s2465_s1 + $0x168] sm:$0xff]   ;;  %v1501_v59 = vcombine.low %v64_v44, %v68_v45 }
  0x1e   :  { %1736 = vmatprep.subr.bf16.mxu1 %v1943_v29  ;;  %v59_v27 = vld [vmem:[%s2466_s0 + $0x160] sm:$0xff]  ;;  %v56_v29 = vld [vmem:[%s2466_s0 + $0x148] sm:$0xff] }
  0x1f   :  { %v1492_v36 = vcombine.high %v55_v26, %v59_v27  ;;  %v1491_v47 = vcombine.low %v55_v26, %v59_v27  ;;  %v72_v56 = vld [vmem:[%s2466_s0 + $0x1c8] sm:$0xff]  ;;  %v1471_v26 = vcombine.low %v33_v14, %v37_v15 }
  0x20   :  { %1673 = vmatpush3.bf16.msra.mxu0 %v1944_v30  ;;  %v60_v30 = vld [vmem:[%s2466_s0 + $0x168] sm:$0xff] }
  0x21   :  { %1737 = vmatpush3.bf16.msra.mxu1 %v1945_v31  ;;  %1786 = vmatprep.subr.bf16.mxu0 %v1946_v40  ;;  %v1967_v31 = vld [vmem:[%s2465_s1 + $0x128] sm:$0xff]   ;;  %v1494_v37 = vcombine.high %v56_v29, %v60_v30  ;;  %v1972_v40 = vld [vmem:[%s2465_s1 + $0x1f0] sm:$0xff]  }
  0x22   :  { %1850 = vmatprep.subr.bf16.mxu1 %v1948_v42  ;;  %v67_v42 = vld [vmem:[%s2466_s0 + $0x1a0] sm:$0xff]  ;;  %v76_v57 = vld [vmem:[%s2466_s0 + $0x1e8] sm:$0xff] }
  0x23   :  { %944 = vmatmul.mubr.bf16.vlgmr.msra.gmra.mrb[0].mxu0 %v1451_v35  ;;  %v1485_v35 = vcombine.low %v48_v16, %v52_v17  ;;  %v1509_v3 = vcombine.low %v72_v56, %v76_v57  ;;  %v34_v16 = vld [vmem:[%s2466_s0 + $0x98] sm:$0xff] }
  0x24   :  { %1041 = vmatmul.mubr.bf16.vlgmr.msra.gmra.mrb[0].mxu1 %v1453_v38  ;;  %1787 = vmatpush3.bf16.msra.mxu0 %v1947_v41  ;;  %v1970_v38 = vld [vmem:[%s2465_s1 + $0x170] sm:$0xff]   ;;  %v63_v41 = vld [vmem:[%s2466_s0 + $0x180] sm:$0xff]  ;;  %v38_v17 = vld [vmem:[%s2466_s0 + $0xb8] sm:$0xff] }
  0x25   :  { %1851 = vmatpush3.bf16.msra.mxu1 %v1949_v43  ;;  %951 = vmatprep.mubr.bf16.mxu0 %v1460_v46  ;;  %v1973_v43 = vld [vmem:[%s2465_s1 + $0x1b0] sm:$0xff]   ;;  %v1974_v46 = vld [vmem:[%s2465_s1 + $0x178] sm:$0xff]   ;;  %v1499_v58 = vcombine.low %v63_v41, %v67_v42  ;;  %v1473_v27 = vcombine.low %v34_v16, %v38_v17 }
  0x26   :  { %1048 = vmatprep.mubr.bf16.mxu1 %v1462_v49  ;;  %1788 = vmatprep.subr.bf16.mxu0 %v1950_v50  ;;  %v1493_v49 = vcombine.low %v56_v29, %v60_v30  ;;  %v1500_v50 = vcombine.high %v63_v41, %v67_v42  ;;  %v49_v30 = vld [vmem:[%s2466_s0 + $0x110] sm:$0xff]  ;;  %v62_v41 = vld [vmem:[%s2466_s0 + $0x178] sm:$0xff] }
  0x27   :  { %1852 = vmatprep.subr.bf16.mxu1 %v1952_v54  ;;  %v71_v54 = vld [vmem:[%s2466_s0 + $0x1c0] sm:$0xff] }
  0x28   :  { %1789 = vmatpush3.bf16.msra.mxu0 %v1951_v52  ;;  %v1502_v52 = vcombine.high %v64_v44, %v68_v45 }
  0x29   :  { %1853 = vmatpush3.bf16.msra.mxu1 %v1953_v55  ;;  %1790 = vmatprep.subr.bf16.mxu0 %v1954_v62  ;;  %v75_v55 = vld [vmem:[%s2466_s0 + $0x1e0] sm:$0xff]  ;;  %v17_v62 = vld [vmem:[%s2466_s0 + $0x10] sm:$0xff] }
  0x2a   :  { %1854 = vmatprep.subr.bf16.mxu1 %v1956_v0  ;;  %v18_v0 = vld [vmem:[%s2466_s0 + $0x18] sm:$0xff] }
  0x2b   :  { %952 = vmatmul.mubr.bf16.gmra.mrb[4].mxu0 %v1459_v51  ;;  %v1976_v51 = vld [vmem:[%s2465_s1 + $0x1f8] sm:$0xff]  }
  0x2c   :  { %1049 = vmatmul.mubr.bf16.gmra.mrb[4].mxu1 %v1461_v53  ;;  %959 = vmatprep.mubr.bf16.mxu0 %v1468_v60  ;;  %v1977_v53 = vld [vmem:[%s2465_s1 + $0x1b8] sm:$0xff]   ;;  %v1508_v60 = vcombine.high %v71_v54, %v75_v55 }
  0x2d   :  { %1056 = vmatprep.mubr.bf16.mxu1 %v1470_v61  ;;  %1791 = vmatpush3.bf16.msra.mxu0 %v1955_v63  ;;  %v1510_v61 = vcombine.high %v72_v56, %v76_v57  ;;  %v21_v63 = vld [vmem:[%s2466_s0 + $0x30] sm:$0xff]  ;;  %v74_v56 = vld [vmem:[%s2466_s0 + $0x1d8] sm:$0xff] }
  0x2e   :  { %1855 = vmatpush3.bf16.msra.mxu1 %v1957_v1  ;;  %1792 = vmatprep.subr.bf16.mxu0 %v1958_v10  ;;  %v22_v1 = vld [vmem:[%s2466_s0 + $0x38] sm:$0xff]  ;;  %v1456_v4 = vcombine.high %v17_v62, %v21_v63  ;;  %v1455_v10 = vcombine.low %v17_v62, %v21_v63 }
  0x2f   :  { %1856 = vmatprep.subr.bf16.mxu1 %v1960_v12  ;;  %v1458_v5 = vcombine.high %v18_v0, %v22_v1  ;;  %v78_v57 = vld [vmem:[%s2466_s0 + $0x1f8] sm:$0xff] }
  0x30   :  { %v1513_v63 = vcombine.low %v74_v56, %v78_v57 }
  0x31   :  { %1793 = vmatpush3.bf16.msra.mxu0 %v1959_v11  ;;  %v1457_v11 = vcombine.low %v18_v0, %v22_v1 }
  0x32   :  { %1857 = vmatpush3.bf16.msra.mxu1 %v1961_v13  ;;  %1794 = vmatprep.subr.bf16.mxu0 %v1962_v18 }
  0x33   :  { %960 = vmatmul.mubr.bf16.gmra.mrb[8].mxu0 %v1467_v2  ;;  %1858 = vmatprep.subr.bf16.mxu1 %v1964_v23  ;;  %v1507_v2 = vcombine.low %v71_v54, %v75_v55  ;;  %v45_v23 = vld [vmem:[%s2466_s0 + $0xf0] sm:$0xff] }
  0x34   :  { %1057 = vmatmul.mubr.bf16.gmra.mrb[8].mxu1 %v1469_v6  ;;  %967 = vmatprep.mubr.bf16.mxu0 %v1476_v7  ;;  %v25_v6 = vld [vmem:[%s2466_s0 + $0x50] sm:$0xff] }
  0x35   :  { %1064 = vmatprep.mubr.bf16.mxu1 %v1478_v9  ;;  %1795 = vmatpush3.bf16.msra.mxu0 %v1963_v20  ;;  %v29_v7 = vld [vmem:[%s2466_s0 + $0x70] sm:$0xff]  ;;  %v30_v9 = vld [vmem:[%s2466_s0 + $0x78] sm:$0xff]  ;;  %v1472_v20 = vcombine.high %v33_v14, %v37_v15 }
  0x36   :  { %1859 = vmatpush3.bf16.msra.mxu1 %v1965_v25  ;;  %1796 = vmatprep.subr.bf16.mxu0 %v1966_v28  ;;  %v1464_v12 = vcombine.high %v25_v6, %v29_v7  ;;  %v1466_v13 = vcombine.high %v26_v8, %v30_v9  ;;  %v1463_v18 = vcombine.low %v25_v6, %v29_v7  ;;  %v46_v25 = vld [vmem:[%s2466_s0 + $0xf8] sm:$0xff]  ;;  %v73_v54 = vld [vmem:[%s2466_s0 + $0x1d0] sm:$0xff] }
  0x37   :  { %1860 = vmatprep.subr.bf16.mxu1 %v1968_v32  ;;  %v50_v32 = vld [vmem:[%s2466_s0 + $0x118] sm:$0xff]  ;;  %v77_v55 = vld [vmem:[%s2466_s0 + $0x1f0] sm:$0xff] }
  0x38   :  { %v1511_v62 = vcombine.low %v73_v54, %v77_v55 }
  0x39   :  { %1797 = vmatpush3.bf16.msra.mxu0 %v1967_v31  ;;  %v53_v31 = vld [vmem:[%s2466_s0 + $0x130] sm:$0xff] }
  0x3a   :  { %1861 = vmatpush3.bf16.msra.mxu1 %v1969_v33  ;;  %1798 = vmatprep.subr.bf16.mxu0 %v1970_v38  ;;  %v54_v33 = vld [vmem:[%s2466_s0 + $0x138] sm:$0xff]  ;;  %v57_v38 = vld [vmem:[%s2466_s0 + $0x150] sm:$0xff]  ;;  %v1487_v42 = vcombine.low %v49_v30, %v53_v31 }
  0x3b   :  { %968 = vmatmul.mubr.bf16.gmra.mrb[12].mxu0 %v1475_v19  ;;  %1862 = vmatprep.subr.bf16.mxu1 %v1972_v40  ;;  %v1465_v19 = vcombine.low %v26_v8, %v30_v9  ;;  %v58_v40 = vld [vmem:[%s2466_s0 + $0x158] sm:$0xff] }
  0x3c   :  { %1065 = vmatmul.mubr.bf16.gmra.mrb[12].mxu1 %v1477_v21  ;;  %975 = vmatprep.mubr.bf16.mxu0 %v1484_v22  ;;  %v1474_v21 = vcombine.high %v34_v16, %v38_v17  ;;  %v41_v22 = vld [vmem:[%s2466_s0 + $0xd0] sm:$0xff]  ;;  %v1498_v45 = vcombine.high %v58_v40, %v62_v41 }
  0x3d   :  { %1072 = vmatprep.mubr.bf16.mxu1 %v1486_v24  ;;  %1799 = vmatpush3.bf16.msra.mxu0 %v1971_v39  ;;  %v42_v24 = vld [vmem:[%s2466_s0 + $0xd8] sm:$0xff]  ;;  %v1480_v28 = vcombine.high %v41_v22, %v45_v23  ;;  %v61_v39 = vld [vmem:[%s2466_s0 + $0x170] sm:$0xff] }
  0x3e   :  { %1863 = vmatpush3.bf16.msra.mxu1 %v1973_v43  ;;  %1800 = vmatprep.subr.bf16.mxu0 %v1974_v46  ;;  %v1482_v29 = vcombine.high %v42_v24, %v46_v25  ;;  %v1489_v43 = vcombine.low %v50_v32, %v54_v33  ;;  %v1496_v44 = vcombine.high %v57_v38, %v61_v39  ;;  %v65_v46 = vld [vmem:[%s2466_s0 + $0x190] sm:$0xff] }
  0x3f   :  { %1864 = vmatprep.subr.bf16.mxu1 %v1976_v51  ;;  %v1497_v51 = vcombine.low %v58_v40, %v62_v41 }
  0x41   :  { %1801 = vmatpush3.bf16.msra.mxu0 %v1975_v48  ;;  %v66_v48 = vld [vmem:[%s2466_s0 + $0x198] sm:$0xff] }
  0x42   :  { %1865 = vmatpush3.bf16.msra.mxu1 %v1977_v53 }
  0x43   :  { %976 = vmatmul.mubr.bf16.gmra.mrb[16].mxu0 %v1483_v34  ;;  %v1479_v34 = vcombine.low %v41_v22, %v45_v23 }
  0x44   :  { %1073 = vmatmul.mubr.bf16.gmra.mrb[16].mxu1 %v1485_v35  ;;  %983 = vmatprep.mubr.bf16.mxu0 %v1492_v36  ;;  %v1481_v35 = vcombine.low %v42_v24, %v46_v25  ;;  %v1488_v36 = vcombine.high %v49_v30, %v53_v31 }
  0x45   :  { %1080 = vmatprep.mubr.bf16.mxu1 %v1494_v37  ;;  %v1490_v37 = vcombine.high %v50_v32, %v54_v33 }
  0x4b   :  { %984 = vmatmul.mubr.bf16.gmra.mrb[20].mxu0 %v1491_v47  ;;  %v69_v47 = vld [vmem:[%s2466_s0 + $0x1b0] sm:$0xff] }
  0x4c   :  { %1081 = vmatmul.mubr.bf16.gmra.mrb[20].mxu1 %v1493_v49  ;;  %991 = vmatprep.mubr.bf16.mxu0 %v1500_v50  ;;  %v70_v49 = vld [vmem:[%s2466_s0 + $0x1b8] sm:$0xff]  ;;  %v1495_v50 = vcombine.low %v57_v38, %v61_v39 }
  0x4d   :  { %1088 = vmatprep.mubr.bf16.mxu1 %v1502_v52  ;;  %v1504_v52 = vcombine.high %v65_v46, %v69_v47  ;;  %v1506_v53 = vcombine.high %v66_v48, %v70_v49 }
  0x53   :  { %992 = vmatmul.mubr.bf16.gmra.mrb[24].mxu0 %v1499_v58  ;;  %v1503_v58 = vcombine.low %v65_v46, %v69_v47 }
  0x54   :  { %1089 = vmatmul.mubr.bf16.gmra.mrb[24].mxu1 %v1501_v59  ;;  %999 = vmatprep.mubr.bf16.mxu0 %v1508_v60  ;;  %v1505_v59 = vcombine.low %v66_v48, %v70_v49  ;;  %v1512_v60 = vcombine.high %v73_v54, %v77_v55 }
  0x55   :  { %1096 = vmatprep.mubr.bf16.mxu1 %v1510_v61  ;;  %v1514_v61 = vcombine.high %v74_v56, %v78_v57 }
  0x5b   :  { %1000 = vmatmul.mubr.bf16.gmra.mrb[28].mxu0 %v1507_v2 }
  0x5c   :  { %1097 = vmatmul.mubr.bf16.gmra.mrb[28].mxu1 %v1509_v3  ;;  %1137 = vmatprep.mubr.bf16.mxu0 %v1456_v4 }
  0x5d   :  { %1234 = vmatprep.mubr.bf16.mxu1 %v1458_v5 }
  0x63   :  { %1138 = vmatmul.mubr.bf16.vlgmr.msra.gmra.mrb[32].mxu0 %v1455_v10 }
  0x64   :  { %1235 = vmatmul.mubr.bf16.vlgmr.msra.gmra.mrb[32].mxu1 %v1457_v11  ;;  %1145 = vmatprep.mubr.bf16.mxu0 %v1464_v12 }
  0x65   :  { %1242 = vmatprep.mubr.bf16.mxu1 %v1466_v13 }
  0x6b   :  { %1146 = vmatmul.mubr.bf16.gmra.mrb[36].mxu0 %v1463_v18 }
  0x6c   :  { %1243 = vmatmul.mubr.bf16.gmra.mrb[36].mxu1 %v1465_v19  ;;  %1153 = vmatprep.mubr.bf16.mxu0 %v1472_v20 }
  0x6d   :  { %1250 = vmatprep.mubr.bf16.mxu1 %v1474_v21 }
  0x73   :  { %1154 = vmatmul.mubr.bf16.gmra.mrb[40].mxu0 %v1471_v26 }
  0x74   :  { %1251 = vmatmul.mubr.bf16.gmra.mrb[40].mxu1 %v1473_v27  ;;  %1161 = vmatprep.mubr.bf16.mxu0 %v1480_v28 }
  0x75   :  { %1258 = vmatprep.mubr.bf16.mxu1 %v1482_v29 }
  0x7b   :  { %1162 = vmatmul.mubr.bf16.gmra.mrb[44].mxu0 %v1479_v34 }
  0x7c   :  { %1259 = vmatmul.mubr.bf16.gmra.mrb[44].mxu1 %v1481_v35  ;;  %1169 = vmatprep.mubr.bf16.mxu0 %v1488_v36 }
  0x7d   :  { %1266 = vmatprep.mubr.bf16.mxu1 %v1490_v37 }
  0x83   :  { %1170 = vmatmul.mubr.bf16.gmra.mrb[48].mxu0 %v1487_v42 }
  0x84   :  { %1267 = vmatmul.mubr.bf16.gmra.mrb[48].mxu1 %v1489_v43  ;;  %1177 = vmatprep.mubr.bf16.mxu0 %v1496_v44 }
  0x85   :  { %1274 = vmatprep.mubr.bf16.mxu1 %v1498_v45 }
  0x8b   :  { %1178 = vmatmul.mubr.bf16.gmra.mrb[52].mxu0 %v1495_v50 }
  0x8c   :  { %1275 = vmatmul.mubr.bf16.gmra.mrb[52].mxu1 %v1497_v51  ;;  %1185 = vmatprep.mubr.bf16.mxu0 %v1504_v52 }
  0x8d   :  { %1282 = vmatprep.mubr.bf16.mxu1 %v1506_v53 }
  0x93   :  { %1186 = vmatmul.mubr.bf16.gmra.mrb[56].mxu0 %v1503_v58 }
  0x94   :  { %1283 = vmatmul.mubr.bf16.gmra.mrb[56].mxu1 %v1505_v59  ;;  %1193 = vmatprep.mubr.bf16.mxu0 %v1512_v60 }
  0x95   :  { %1290 = vmatprep.mubr.bf16.mxu1 %v1514_v61 }
  0x9b   :  { %1194 = vmatmul.mubr.bf16.gmra.mrb[60].mxu0 %v1511_v62 }
  0x9c   :  { %1291 = vmatmul.mubr.bf16.gmra.mrb[60].mxu1 %v1513_v63 }
  0xf6   :  { %v1674_v0 = vpop.f32.mrb[0].mxu0 }
  0xf7   :  { %v1738_v1 = vpop.f32.mrb[0].mxu1  ;;  %v1675_v2 = vpop.f32.mrb[1].mxu0 }
  0xf8   :  { %v1676_v3 = vadd.f32 %v1675_v2, %v1674_v0  ;;  %v1739_v4 = vpop.f32.mrb[1].mxu1  ;;  %v1677_v5 = vpop.f32.mrb[2].mxu0 }
  0xf9   :  { %v1740_v6 = vadd.f32 %v1739_v4, %v1738_v1  ;;  %v1741_v7 = vpop.f32.mrb[2].mxu1  ;;  %v1678_v8 = vpop.f32.mrb[3].mxu0 }
  0xfa   :  { %v1679_v9 = vadd.f32 %v1678_v8, %v1677_v5  ;;  %v1742_v10 = vpop.f32.mrb[3].mxu1 }
  0xfb   :  { %v2387_v11 = vadd.f32 %v1740_v6, %v1676_v3  ;;  %v1743_v12 = vadd.f32 %v1742_v10, %v1741_v7 }
  0xfd   :  { %v2389_v13 = vadd.f32 %v1743_v12, %v1679_v9 }
  0xfe   :  { %v1680_v14 = vpop.f32.mrb[4].mxu0 }
  0xff   :  { %v1744_v15 = vpop.f32.mrb[4].mxu1  ;;  %v1681_v16 = vpop.f32.mrb[5].mxu0 }
 0x100   :  { %v1682_v17 = vadd.f32 %v1681_v16, %v1680_v14  ;;  %v1745_v18 = vpop.f32.mrb[5].mxu1  ;;  %v1683_v19 = vpop.f32.mrb[6].mxu0 }
 0x101   :  { %v1746_v20 = vadd.f32 %v1745_v18, %v1744_v15  ;;  %v1747_v21 = vpop.f32.mrb[6].mxu1  ;;  %v1684_v22 = vpop.f32.mrb[7].mxu0 }
 0x102   :  { %v1685_v23 = vadd.f32 %v1684_v22, %v1683_v19  ;;  %v1748_v24 = vpop.f32.mrb[7].mxu1 }
 0x103   :  { %v2391_v25 = vadd.f32 %v1746_v20, %v1682_v17  ;;  %v1749_v26 = vadd.f32 %v1748_v24, %v1747_v21 }
 0x105   :  { %v2393_v27 = vadd.f32 %v1749_v26, %v1685_v23 }
 0x106   :  { %v1686_v28 = vpop.f32.mrb[8].mxu0 }
 0x107   :  { %v1750_v29 = vpop.f32.mrb[8].mxu1  ;;  %v1687_v30 = vpop.f32.mrb[9].mxu0 }
 0x108   :  { %v1688_v31 = vadd.f32 %v1687_v30, %v1686_v28  ;;  %v1751_v32 = vpop.f32.mrb[9].mxu1  ;;  %v1689_v33 = vpop.f32.mrb[10].mxu0 }
 0x109   :  { %v1752_v34 = vadd.f32 %v1751_v32, %v1750_v29  ;;  %v1753_v35 = vpop.f32.mrb[10].mxu1  ;;  %v1690_v36 = vpop.f32.mrb[11].mxu0 }
 0x10a   :  { %v1691_v37 = vadd.f32 %v1690_v36, %v1689_v33  ;;  %v1754_v38 = vpop.f32.mrb[11].mxu1 }
 0x10b   :  { %v2395_v39 = vadd.f32 %v1752_v34, %v1688_v31  ;;  %v1755_v40 = vadd.f32 %v1754_v38, %v1753_v35 }
 0x10d   :  { %v2397_v41 = vadd.f32 %v1755_v40, %v1691_v37 }
 0x10e   :  { %v1692_v42 = vpop.f32.mrb[12].mxu0 }
 0x10f   :  { %v1756_v43 = vpop.f32.mrb[12].mxu1  ;;  %v1693_v44 = vpop.f32.mrb[13].mxu0 }
 0x110   :  { %v1694_v45 = vadd.f32 %v1693_v44, %v1692_v42  ;;  %v1757_v46 = vpop.f32.mrb[13].mxu1  ;;  %v1695_v47 = vpop.f32.mrb[14].mxu0 }
 0x111   :  { %v1758_v48 = vadd.f32 %v1757_v46, %v1756_v43  ;;  %v1759_v49 = vpop.f32.mrb[14].mxu1  ;;  %v1696_v50 = vpop.f32.mrb[15].mxu0 }
 0x112   :  { %v1697_v51 = vadd.f32 %v1696_v50, %v1695_v47  ;;  %v1760_v52 = vpop.f32.mrb[15].mxu1 }
 0x113   :  { %v2399_v53 = vadd.f32 %v1758_v48, %v1694_v45  ;;  %v1761_v54 = vadd.f32 %v1760_v52, %v1759_v49 }
 0x115   :  { %v2401_v55 = vadd.f32 %v1761_v54, %v1697_v51 }
 0x116   :  { %v1698_v56 = vpop.f32.mrb[16].mxu0 }
 0x117   :  { %v1762_v57 = vpop.f32.mrb[16].mxu1  ;;  %v1699_v58 = vpop.f32.mrb[17].mxu0 }
 0x118   :  { %v1700_v59 = vadd.f32 %v1699_v58, %v1698_v56  ;;  %v1763_v60 = vpop.f32.mrb[17].mxu1  ;;  %v1701_v61 = vpop.f32.mrb[18].mxu0 }
 0x119   :  { %v1764_v62 = vadd.f32 %v1763_v60, %v1762_v57  ;;  %v1765_v63 = vpop.f32.mrb[18].mxu1  ;;  %v1702_v0 = vpop.f32.mrb[19].mxu0 }
 0x11a   :  { %v1703_v1 = vadd.f32 %v1702_v0, %v1701_v61  ;;  %v1766_v2 = vpop.f32.mrb[19].mxu1 }
 0x11b   :  { %v2403_v3 = vadd.f32 %v1764_v62, %v1700_v59  ;;  %v1767_v4 = vadd.f32 %v1766_v2, %v1765_v63 }
 0x11d   :  { %v2405_v5 = vadd.f32 %v1767_v4, %v1703_v1 }
 0x11e   :  { %v1704_v6 = vpop.f32.mrb[20].mxu0 }
 0x11f   :  { %v1768_v7 = vpop.f32.mrb[20].mxu1  ;;  %v1705_v8 = vpop.f32.mrb[21].mxu0 }
 0x120   :  { %v1706_v9 = vadd.f32 %v1705_v8, %v1704_v6  ;;  %v1769_v10 = vpop.f32.mrb[21].mxu1  ;;  %v1707_v12 = vpop.f32.mrb[22].mxu0 }
 0x121   :  { %v1770_v14 = vadd.f32 %v1769_v10, %v1768_v7  ;;  %v1771_v15 = vpop.f32.mrb[22].mxu1  ;;  %v1708_v16 = vpop.f32.mrb[23].mxu0 }
 0x122   :  { %v1709_v17 = vadd.f32 %v1708_v16, %v1707_v12  ;;  %v1772_v18 = vpop.f32.mrb[23].mxu1 }
 0x123   :  { %v2407_v19 = vadd.f32 %v1770_v14, %v1706_v9  ;;  %v1773_v20 = vadd.f32 %v1772_v18, %v1771_v15 }
 0x125   :  { %v2409_v21 = vadd.f32 %v1773_v20, %v1709_v17 }
 0x126   :  { %v1710_v22 = vpop.f32.mrb[24].mxu0 }
 0x127   :  { %v1774_v23 = vpop.f32.mrb[24].mxu1  ;;  %v1711_v24 = vpop.f32.mrb[25].mxu0 }
 0x128   :  { %v1712_v26 = vadd.f32 %v1711_v24, %v1710_v22  ;;  %v1775_v28 = vpop.f32.mrb[25].mxu1  ;;  %v1713_v29 = vpop.f32.mrb[26].mxu0 }
 0x129   :  { %v1776_v30 = vadd.f32 %v1775_v28, %v1774_v23  ;;  %v1777_v31 = vpop.f32.mrb[26].mxu1  ;;  %v1714_v32 = vpop.f32.mrb[27].mxu0 }
 0x12a   :  { %v1715_v33 = vadd.f32 %v1714_v32, %v1713_v29  ;;  %v1778_v34 = vpop.f32.mrb[27].mxu1 }
 0x12b   :  { %v2411_v35 = vadd.f32 %v1776_v30, %v1712_v26  ;;  %v1779_v36 = vadd.f32 %v1778_v34, %v1777_v31 }
 0x12d   :  { %v2413_v37 = vadd.f32 %v1779_v36, %v1715_v33 }
 0x12e   :  { %v1716_v38 = vpop.f32.mrb[28].mxu0 }
 0x12f   :  { %v1780_v40 = vpop.f32.mrb[28].mxu1  ;;  %v1717_v42 = vpop.f32.mrb[29].mxu0 }
 0x130   :  { %v1718_v43 = vadd.f32 %v1717_v42, %v1716_v38  ;;  %v1781_v44 = vpop.f32.mrb[29].mxu1  ;;  %v1719_v45 = vpop.f32.mrb[30].mxu0 }
 0x131   :  { %v1782_v46 = vadd.f32 %v1781_v44, %v1780_v40  ;;  %v1783_v47 = vpop.f32.mrb[30].mxu1  ;;  %v1720_v48 = vpop.f32.mrb[31].mxu0 }
 0x132   :  { %v1721_v49 = vadd.f32 %v1720_v48, %v1719_v45  ;;  %v1784_v50 = vpop.f32.mrb[31].mxu1 }
 0x133   :  { %v2415_v51 = vadd.f32 %v1782_v46, %v1718_v43  ;;  %v1785_v52 = vadd.f32 %v1784_v50, %v1783_v47 }
 0x135   :  { %v2417_v54 = vadd.f32 %v1785_v52, %v1721_v49 }
 0x136   :  { %v1802_v56 = vpop.f32.mrb[32].mxu0 }
 0x137   :  { %v1866_v57 = vpop.f32.mrb[32].mxu1  ;;  %v1803_v58 = vpop.f32.mrb[33].mxu0 }
 0x138   :  { %v1804_v59 = vadd.f32 %v1803_v58, %v1802_v56  ;;  %v1867_v60 = vpop.f32.mrb[33].mxu1  ;;  %v1805_v61 = vpop.f32.mrb[34].mxu0 }
 0x139   :  { %v1868_v62 = vadd.f32 %v1867_v60, %v1866_v57  ;;  %v1869_v63 = vpop.f32.mrb[34].mxu1  ;;  %v1806_v0 = vpop.f32.mrb[35].mxu0 }
 0x13a   :  { %v1140_v1 = vadd.f32 %v1804_v59, %v2387_v11  ;;  %v1807_v2 = vadd.f32 %v1806_v0, %v1805_v61  ;;  %v1870_v4 = vpop.f32.mrb[35].mxu1 }
 0x13b   :  { %v1871_v6 = vadd.f32 %v1870_v4, %v1869_v63 }
 0x13c   :  { %v1237_v7 = vadd.f32 %v1868_v62, %v1140_v1  ;;  %v1143_v8 = vadd.f32 %v1807_v2, %v2389_v13 }
 0x13e   :  { %v1240_v9 = vadd.f32 %v1871_v6, %v1143_v8  ;;  %v1808_v10 = vpop.f32.mrb[36].mxu0  ;;  %v1400_v12 = vmul.f32 %v1237_v7, %v1237_v7 }
 0x13f   :  { %v1872_v14 = vpop.f32.mrb[36].mxu1  ;;  %v1809_v15 = vpop.f32.mrb[37].mxu0 }
 0x140   :  { %v1614_v16 = vpack.c.bf16 %v1240_v9, %v1237_v7  ;;  %v1379_v17 = vadd.f32 %v1240_v9, %v1237_v7  ;;  %v1401_v18 = vmul.f32 %v1240_v9, %v1240_v9  ;;  %v1810_v20 = vadd.f32 %v1809_v15, %v1808_v10  ;;  %v1873_v22 = vpop.f32.mrb[37].mxu1  ;;  %v1811_v23 = vpop.f32.mrb[38].mxu0 }
 0x141   :  { %v1874_v24 = vadd.f32 %v1873_v22, %v1872_v14  ;;  %v1875_v26 = vpop.f32.mrb[38].mxu1  ;;  %v1812_v11 = vpop.f32.mrb[39].mxu0 }
 0x142   :  { %1615 = vst [vmem:[%s2467_s2] sm:$0xff] %v1614_v16   ;;  %v1416_v28 = vadd.f32 %v1401_v18, %v1400_v12  ;;  %v1148_v13 = vadd.f32 %v1810_v20, %v2391_v25  ;;  %v1813_v29 = vadd.f32 %v1812_v11, %v1811_v23  ;;  %v1876_v30 = vpop.f32.mrb[39].mxu1 }
 0x143   :  { %v1877_v31 = vadd.f32 %v1876_v30, %v1875_v26 }
 0x144   :  { %v1245_v32 = vadd.f32 %v1874_v24, %v1148_v13  ;;  %v1151_v33 = vadd.f32 %v1813_v29, %v2393_v27 }
 0x146   :  { %v1380_v34 = vadd.f32 %v1379_v17, %v1245_v32  ;;  %v1402_v36 = vmul.f32 %v1245_v32, %v1245_v32  ;;  %v1248_v38 = vadd.f32 %v1877_v31, %v1151_v33  ;;  %v1814_v40 = vpop.f32.mrb[40].mxu0 }
 0x147   :  { %v1878_v42 = vpop.f32.mrb[40].mxu1  ;;  %v1815_v43 = vpop.f32.mrb[41].mxu0 }
 0x148   :  { %v1417_v44 = vadd.f32 %v1416_v28, %v1402_v36  ;;  %v1619_v45 = vpack.c.bf16 %v1248_v38, %v1245_v32  ;;  %v1381_v46 = vadd.f32 %v1380_v34, %v1248_v38  ;;  %v1403_v47 = vmul.f32 %v1248_v38, %v1248_v38  ;;  %v1879_v48 = vpop.f32.mrb[41].mxu1  ;;  %v1817_v49 = vpop.f32.mrb[42].mxu0 }
 0x149   :  { %v1816_v50 = vadd.f32 %v1815_v43, %v1814_v40  ;;  %v1880_v25 = vadd.f32 %v1879_v48, %v1878_v42  ;;  %v1881_v52 = vpop.f32.mrb[42].mxu1  ;;  %v1818_v56 = vpop.f32.mrb[43].mxu0 }
 0x14a   :  { %1651 = vst [vmem:[%s2467_s2 + $0x8] sm:$0xff] %v1619_v45   ;;  %v1418_v27 = vadd.f32 %v1417_v44, %v1403_v47  ;;  %v1819_v57 = vadd.f32 %v1818_v56, %v1817_v49  ;;  %v1882_v58 = vpop.f32.mrb[43].mxu1 }
 0x14b   :  { %v1156_v59 = vadd.f32 %v1816_v50, %v2395_v39  ;;  %v1883_v60 = vadd.f32 %v1882_v58, %v1881_v52 }
 0x14c   :  { %v1159_v61 = vadd.f32 %v1819_v57, %v2397_v41 }
 0x14d   :  { %v1253_v62 = vadd.f32 %v1880_v25, %v1156_v59 }
 0x14e   :  { %v1256_v63 = vadd.f32 %v1883_v60, %v1159_v61  ;;  %v1820_v0 = vpop.f32.mrb[44].mxu0 }
 0x14f   :  { %v1382_v1 = vadd.f32 %v1381_v46, %v1253_v62  ;;  %v1404_v2 = vmul.f32 %v1253_v62, %v1253_v62  ;;  %v1884_v4 = vpop.f32.mrb[44].mxu1  ;;  %v1821_v6 = vpop.f32.mrb[45].mxu0 }
 0x150   :  { %v1624_v7 = vpack.c.bf16 %v1256_v63, %v1253_v62  ;;  %v1405_v8 = vmul.f32 %v1256_v63, %v1256_v63  ;;  %v1822_v9 = vadd.f32 %v1821_v6, %v1820_v0  ;;  %v1885_v10 = vpop.f32.mrb[45].mxu1  ;;  %v1823_v12 = vpop.f32.mrb[46].mxu0 }
 0x151   :  { %v1419_v14 = vadd.f32 %v1418_v27, %v1404_v2  ;;  %v1383_v15 = vadd.f32 %v1382_v1, %v1256_v63  ;;  %v1886_v16 = vadd.f32 %v1885_v10, %v1884_v4  ;;  %v1887_v17 = vpop.f32.mrb[46].mxu1  ;;  %v1824_v39 = vpop.f32.mrb[47].mxu0 }
 0x152   :  { %1652 = vst [vmem:[%s2467_s2 + $0x10] sm:$0xff] %v1624_v7   ;;  %v1164_v41 = vadd.f32 %v1822_v9, %v2399_v53  ;;  %v1825_v18 = vadd.f32 %v1824_v39, %v1823_v12  ;;  %v1888_v20 = vpop.f32.mrb[47].mxu1 }
 0x153   :  { %v1420_v22 = vadd.f32 %v1419_v14, %v1405_v8  ;;  %v1889_v23 = vadd.f32 %v1888_v20, %v1887_v17 }
 0x154   :  { %v1261_v24 = vadd.f32 %v1886_v16, %v1164_v41  ;;  %v1167_v26 = vadd.f32 %v1825_v18, %v2401_v55 }
 0x156   :  { %v1384_v11 = vadd.f32 %v1383_v15, %v1261_v24  ;;  %v1406_v28 = vmul.f32 %v1261_v24, %v1261_v24  ;;  %v1264_v13 = vadd.f32 %v1889_v23, %v1167_v26  ;;  %v1826_v29 = vpop.f32.mrb[48].mxu0 }
 0x157   :  { %v1890_v30 = vpop.f32.mrb[48].mxu1  ;;  %v1827_v31 = vpop.f32.mrb[49].mxu0 }
 0x158   :  { %v1421_v32 = vadd.f32 %v1420_v22, %v1406_v28  ;;  %v1629_v33 = vpack.c.bf16 %v1264_v13, %v1261_v24  ;;  %v1385_v34 = vadd.f32 %v1384_v11, %v1264_v13  ;;  %v1407_v36 = vmul.f32 %v1264_v13, %v1264_v13  ;;  %v1891_v38 = vpop.f32.mrb[49].mxu1  ;;  %v1829_v40 = vpop.f32.mrb[50].mxu0 }
 0x159   :  { %v1828_v53 = vadd.f32 %v1827_v31, %v1826_v29  ;;  %v1892_v42 = vadd.f32 %v1891_v38, %v1890_v30  ;;  %v1893_v43 = vpop.f32.mrb[50].mxu1  ;;  %v1830_v44 = vpop.f32.mrb[51].mxu0 }
 0x15a   :  { %1653 = vst [vmem:[%s2467_s2 + $0x18] sm:$0xff] %v1629_v33   ;;  %v1422_v55 = vadd.f32 %v1421_v32, %v1407_v36  ;;  %v1831_v45 = vadd.f32 %v1830_v44, %v1829_v40  ;;  %v1894_v46 = vpop.f32.mrb[51].mxu1 }
 0x15b   :  { %v1172_v47 = vadd.f32 %v1828_v53, %v2403_v3  ;;  %v1895_v48 = vadd.f32 %v1894_v46, %v1893_v43 }
 0x15c   :  { %v1175_v49 = vadd.f32 %v1831_v45, %v2405_v5 }
 0x15d   :  { %v1269_v50 = vadd.f32 %v1892_v42, %v1172_v47 }
 0x15e   :  { %v1272_v25 = vadd.f32 %v1895_v48, %v1175_v49  ;;  %v1832_v52 = vpop.f32.mrb[52].mxu0 }
 0x15f   :  { %v1386_v56 = vadd.f32 %v1385_v34, %v1269_v50  ;;  %v1408_v27 = vmul.f32 %v1269_v50, %v1269_v50  ;;  %v1896_v57 = vpop.f32.mrb[52].mxu1  ;;  %v1833_v58 = vpop.f32.mrb[53].mxu0 }
 0x160   :  { %v1634_v59 = vpack.c.bf16 %v1272_v25, %v1269_v50  ;;  %v1409_v60 = vmul.f32 %v1272_v25, %v1272_v25  ;;  %v1834_v61 = vadd.f32 %v1833_v58, %v1832_v52  ;;  %v1897_v62 = vpop.f32.mrb[53].mxu1  ;;  %v1835_v63 = vpop.f32.mrb[54].mxu0 }
 0x161   :  { %v1423_v0 = vadd.f32 %v1422_v55, %v1408_v27  ;;  %v1387_v1 = vadd.f32 %v1386_v56, %v1272_v25  ;;  %v1898_v2 = vadd.f32 %v1897_v62, %v1896_v57  ;;  %v1899_v4 = vpop.f32.mrb[54].mxu1  ;;  %v1836_v3 = vpop.f32.mrb[55].mxu0 }
 0x162   :  { %1654 = vst [vmem:[%s2467_s2 + $0x20] sm:$0xff] %v1634_v59   ;;  %v1180_v5 = vadd.f32 %v1834_v61, %v2407_v19  ;;  %v1837_v6 = vadd.f32 %v1836_v3, %v1835_v63  ;;  %v1900_v7 = vpop.f32.mrb[55].mxu1 }
 0x163   :  { %v1424_v8 = vadd.f32 %v1423_v0, %v1409_v60  ;;  %v1901_v9 = vadd.f32 %v1900_v7, %v1899_v4 }
 0x164   :  { %v1277_v10 = vadd.f32 %v1898_v2, %v1180_v5  ;;  %v1183_v12 = vadd.f32 %v1837_v6, %v2409_v21 }
 0x166   :  { %v1388_v14 = vadd.f32 %v1387_v1, %v1277_v10  ;;  %v1410_v15 = vmul.f32 %v1277_v10, %v1277_v10  ;;  %v1280_v16 = vadd.f32 %v1901_v9, %v1183_v12  ;;  %v1838_v17 = vpop.f32.mrb[56].mxu0 }
 0x167   :  { %v1902_v39 = vpop.f32.mrb[56].mxu1  ;;  %v1839_v41 = vpop.f32.mrb[57].mxu0 }
 0x168   :  { %v1425_v18 = vadd.f32 %v1424_v8, %v1410_v15  ;;  %v1639_v20 = vpack.c.bf16 %v1280_v16, %v1277_v10  ;;  %v1389_v22 = vadd.f32 %v1388_v14, %v1280_v16  ;;  %v1411_v23 = vmul.f32 %v1280_v16, %v1280_v16  ;;  %v1903_v24 = vpop.f32.mrb[57].mxu1  ;;  %v1841_v26 = vpop.f32.mrb[58].mxu0 }
 0x169   :  { %v1840_v19 = vadd.f32 %v1839_v41, %v1838_v17  ;;  %v1904_v11 = vadd.f32 %v1903_v24, %v1902_v39  ;;  %v1905_v28 = vpop.f32.mrb[58].mxu1  ;;  %v1842_v13 = vpop.f32.mrb[59].mxu0 }
 0x16a   :  { %1655 = vst [vmem:[%s2467_s2 + $0x28] sm:$0xff] %v1639_v20   ;;  %v1426_v21 = vadd.f32 %v1425_v18, %v1411_v23  ;;  %v1843_v29 = vadd.f32 %v1842_v13, %v1841_v26  ;;  %v1906_v30 = vpop.f32.mrb[59].mxu1 }
 0x16b   :  { %v1188_v31 = vadd.f32 %v1840_v19, %v2411_v35  ;;  %v1907_v32 = vadd.f32 %v1906_v30, %v1905_v28 }
 0x16c   :  { %v1191_v33 = vadd.f32 %v1843_v29, %v2413_v37 }
 0x16d   :  { %v1285_v34 = vadd.f32 %v1904_v11, %v1188_v31 }
 0x16e   :  { %v1288_v36 = vadd.f32 %v1907_v32, %v1191_v33  ;;  %v1844_v38 = vpop.f32.mrb[60].mxu0 }
 0x16f   :  { %v1390_v40 = vadd.f32 %v1389_v22, %v1285_v34  ;;  %v1412_v53 = vmul.f32 %v1285_v34, %v1285_v34  ;;  %v1908_v42 = vpop.f32.mrb[60].mxu1  ;;  %v1845_v43 = vpop.f32.mrb[61].mxu0 }
 0x170   :  { %v1644_v44 = vpack.c.bf16 %v1288_v36, %v1285_v34  ;;  %v1413_v55 = vmul.f32 %v1288_v36, %v1288_v36  ;;  %v1846_v45 = vadd.f32 %v1845_v43, %v1844_v38  ;;  %v1909_v46 = vpop.f32.mrb[61].mxu1  ;;  %v1847_v47 = vpop.f32.mrb[62].mxu0 }
 0x171   :  { %v1427_v48 = vadd.f32 %v1426_v21, %v1412_v53  ;;  %v1391_v49 = vadd.f32 %v1390_v40, %v1288_v36  ;;  %v1910_v50 = vadd.f32 %v1909_v46, %v1908_v42  ;;  %v1911_v25 = vpop.f32.mrb[62].mxu1  ;;  %v1848_v35 = vpop.f32.mrb[63].mxu0 }
 0x172   :  { %1656 = vst [vmem:[%s2467_s2 + $0x30] sm:$0xff] %v1644_v44   ;;  %v1196_v37 = vadd.f32 %v1846_v45, %v2415_v51  ;;  %v1849_v52 = vadd.f32 %v1848_v35, %v1847_v47  ;;  %v1912_v56 = vpop.f32.mrb[63].mxu1 }
 0x173   :  { %v1428_v27 = vadd.f32 %v1427_v48, %v1413_v55  ;;  %v1913_v57 = vadd.f32 %v1912_v56, %v1911_v25 }
 0x174   :  { %v1293_v58 = vadd.f32 %v1910_v50, %v1196_v37  ;;  %v1199_v59 = vadd.f32 %v1849_v52, %v2417_v54 }
 0x176   :  { %v1392_v60 = vadd.f32 %v1391_v49, %v1293_v58  ;;  %v1414_v61 = vmul.f32 %v1293_v58, %v1293_v58  ;;  %v1296_v62 = vadd.f32 %v1913_v57, %v1199_v59 }
 0x178   :  { %v1429_v63 = vadd.f32 %v1428_v27, %v1414_v61  ;;  %v1649_v0 = vpack.c.bf16 %v1296_v62, %v1293_v58  ;;  %v1393_v1 = vadd.f32 %v1392_v60, %v1296_v62  ;;  %v1415_v2 = vmul.f32 %v1296_v62, %v1296_v62 }
 0x17a   :  { %1657 = vst [vmem:[%s2467_s2 + $0x38] sm:$0xff] %v1649_v0   ;;  %v1394_v4 = vrot.slane %v1393_v1, 4  ;;  %v1430_v51 = vadd.f32 %v1429_v63, %v1415_v2 }
 0x17c   :  { %v1395_v3 = vadd.f32 %v1394_v4, %v1393_v1  ;;  %v1431_v5 = vrot.slane %v1430_v51, 4 }
 0x17e   :  { %v1396_v6 = vrot.slane %v1395_v3, 2  ;;  %v1432_v7 = vadd.f32 %v1431_v5, %v1430_v51 }
 0x180   :  { %v1397_v8 = vadd.f32 %v1396_v6, %v1395_v3  ;;  %v1433_v9 = vrot.slane %v1432_v7, 2 }
 0x182   :  { %v1398_v54 = vrot.slane %v1397_v8, 1  ;;  %v1434_v10 = vadd.f32 %v1433_v9, %v1432_v7 }
 0x184   :  { %v1399_v12 = vadd.f32 %v1398_v54, %v1397_v8  ;;  %v1435_v14 = vrot.slane %v1434_v10, 1 }
 0x186   :  { %v1436_v15 = vadd.f32 %v1435_v14, %v1434_v10  ;;  %1437 = vst [vmem:[%s2468_s3] sm:$0xff] %v1399_v12 }
 0x188   :  { %1438 = vst [vmem:[%s2469_s4] sm:$0xff] %v1436_v15 }

// kernel: discriminator_forward.12
= control target key start
LH: loop header
LB: loop body
LE: loop exit
PB: predicated region body
PF: predicated region fallthrough
CT: control target
= control target key end

     0   :  { %v28_v0 = vlaneseq  ;;  %s180_s0 = inlined_call_operand.vmem [shape: bf16[32,256], index: 0, kind: input, shape index: {}]   ;;  %s181_s1 = inlined_call_operand.vmem [shape: f32[1,256], index: 1, kind: input, shape index: {}]   ;;  %s182_s2 = inlined_call_operand.vmem [shape: f32[1,256], index: 2, kind: input, shape index: {}]   ;;  %s183_s3 = inlined_call_operand.vmem [shape: bf16[32,256], index: 3, kind: output, shape index: {}]  }
   0x1   :  { %v14_v1 = vld [vmem:[%s180_s0] sm:$0xff]  ;;  %v15_v3 = vld [vmem:[%s180_s0 + $0x8] sm:$0xff]  ;;  %v16_v4 = vld [vmem:[%s180_s0 + $0x10] sm:$0xff] }
   0x2   :  { %v29_v2 = vshrl.u32 %v28_v0, 7  ;;  %v17_v5 = vld [vmem:[%s180_s0 + $0x18] sm:$0xff]  ;;  %v18_v6 = vunpack.c.l.bf16 %v14_v1  ;;  %v19_v7 = vunpack.c.h.bf16 %v14_v1  ;;  %v26_v8 = vld [vmem:[%s181_s1] sm:$0x3]  ;;  %v20_v12 = vunpack.c.l.bf16 %v15_v3 }
   0x3   :  { %v46_v9 = vld [vmem:[%s182_s2] sm:$0x3]  ;;  %v21_v13 = vunpack.c.h.bf16 %v15_v3  ;;  %v22_v14 = vunpack.c.l.bf16 %v16_v4  ;;  %v23_v15 = vunpack.c.h.bf16 %v16_v4  ;;  %v24_v16 = vunpack.c.l.bf16 %v17_v5 }
   0x4   :  { %v30_v10 = vsub.s32 0, %v29_v2  ;;  %v34_v11 = vsub.s32 1, %v29_v2  ;;  %v25_v17 = vunpack.c.h.bf16 %v17_v5 }
   0x6   :  { %v31_v18 = vrot.slane %v26_v8, %v30_v10  ;;  %v35_v19 = vrot.slane %v26_v8, %v34_v11  ;;  %v51_v20 = vrot.slane %v46_v9, %v30_v10  ;;  %v55_v21 = vrot.slane %v46_v9, %v34_v11 }
   0x8   :  { %v38_v22 = vmul.f32 %v31_v18, %v18_v6  ;;  %v39_v23 = vmul.f32 %v35_v19, %v19_v7  ;;  %v40_v24 = vmul.f32 %v31_v18, %v20_v12  ;;  %v41_v25 = vmul.f32 %v35_v19, %v21_v13 }
   0x9   :  { %v42_v26 = vmul.f32 %v31_v18, %v22_v14  ;;  %v43_v27 = vmul.f32 %v35_v19, %v23_v15  ;;  %v44_v28 = vmul.f32 %v31_v18, %v24_v16  ;;  %v45_v29 = vmul.f32 %v35_v19, %v25_v17 }
   0xa   :  { %v58_v30 = vadd.f32 %v51_v20, %v38_v22  ;;  %v59_v31 = vadd.f32 %v55_v21, %v39_v23  ;;  %v60_v32 = vadd.f32 %v51_v20, %v40_v24  ;;  %v61_v33 = vadd.f32 %v55_v21, %v41_v25 }
   0xb   :  { %v62_v34 = vadd.f32 %v51_v20, %v42_v26  ;;  %v63_v35 = vadd.f32 %v55_v21, %v43_v27  ;;  %v64_v36 = vadd.f32 %v51_v20, %v44_v28  ;;  %v65_v37 = vadd.f32 %v55_v21, %v45_v29 }
   0xc   :  { %vm66_vm0 = vcmp.gt.f32.partialorder %v58_v30, 0.0  ;;  %vm67_vm1 = vcmp.gt.f32.partialorder %v59_v31, 0.0  ;;  %v74_v38 = vmul.f32 0.2, %v58_v30  ;;  %v75_v39 = vmul.f32 0.2, %v59_v31 }
   0xd   :  { %vm68_vm2 = vcmp.gt.f32.partialorder %v60_v32, 0.0  ;;  %vm69_vm3 = vcmp.gt.f32.partialorder %v61_v33, 0.0  ;;  %v76_v40 = vmul.f32 0.2, %v60_v32  ;;  %v77_v41 = vmul.f32 0.2, %v61_v33 }
   0xe   :  { %v82_v42 = vsel %vm66_vm0, %v58_v30, %v74_v38  ;;  %v83_v43 = vsel %vm67_vm1, %v59_v31, %v75_v39  ;;  %vm70_vm4 = vcmp.gt.f32.partialorder %v62_v34, 0.0  ;;  %vm71_vm5 = vcmp.gt.f32.partialorder %v63_v35, 0.0 }
   0xf   :  { %v126_v44 = vpack.c.bf16 %v83_v43, %v82_v42  ;;  %v84_v45 = vsel %vm68_vm2, %v60_v32, %v76_v40  ;;  %v85_v46 = vsel %vm69_vm3, %v61_v33, %v77_v41  ;;  %v78_v47 = vmul.f32 0.2, %v62_v34 }
  0x10   :  { %v127_v48 = vpack.c.bf16 %v85_v46, %v84_v45  ;;  %v79_v49 = vmul.f32 0.2, %v63_v35  ;;  %vm72_vm6 = vcmp.gt.f32.partialorder %v64_v36, 0.0  ;;  %vm73_vm7 = vcmp.gt.f32.partialorder %v65_v37, 0.0 }
  0x11   :  { %114 = vst [vmem:[%s183_s3] sm:$0xff] %v126_v44  ;;  %v86_v50 = vsel %vm70_vm4, %v62_v34, %v78_v47  ;;  %v80_v51 = vmul.f32 0.2, %v64_v36  ;;  %v81_v52 = vmul.f32 0.2, %v65_v37 }
  0x12   :  { %115 = vst [vmem:[%s183_s3 + $0x8] sm:$0xff] %v127_v48  ;;  %v87_v53 = vsel %vm71_vm5, %v63_v35, %v79_v49 }
  0x13   :  { %v128_v54 = vpack.c.bf16 %v87_v53, %v86_v50  ;;  %v88_v55 = vsel %vm72_vm6, %v64_v36, %v80_v51  ;;  %v89_v56 = vsel %vm73_vm7, %v65_v37, %v81_v52 }
  0x14   :  { %v129_v57 = vpack.c.bf16 %v89_v56, %v88_v55 }
  0x15   :  { %116 = vst [vmem:[%s183_s3 + $0x10] sm:$0xff] %v128_v54 }
  0x16   :  { %117 = vst [vmem:[%s183_s3 + $0x18] sm:$0xff] %v129_v57 }

// kernel: discriminator_forward.14
= control target key start
LH: loop header
LB: loop body
LE: loop exit
PB: predicated region body
PF: predicated region fallthrough
CT: control target
= control target key end

     0   :  { %v28_v0 = vlaneseq  ;;  %s200_s0 = inlined_call_operand.vmem [shape: bf16[16,512], index: 0, kind: input, shape index: {}]   ;;  %s201_s1 = inlined_call_operand.vmem [shape: f32[1,512], index: 1, kind: input, shape index: {}]   ;;  %s202_s2 = inlined_call_operand.vmem [shape: f32[1,512], index: 2, kind: input, shape index: {}]   ;;  %s203_s3 = inlined_call_operand.vmem [shape: bf16[16,512], index: 3, kind: output, shape index: {}]  }
   0x1   :  { %v14_v1 = vld [vmem:[%s200_s0] sm:$0xff]  ;;  %v15_v3 = vld [vmem:[%s200_s0 + $0x8] sm:$0xff]  ;;  %v16_v4 = vld [vmem:[%s200_s0 + $0x10] sm:$0xff] }
   0x2   :  { %v29_v2 = vshrl.u32 %v28_v0, 7  ;;  %v17_v5 = vld [vmem:[%s200_s0 + $0x18] sm:$0xff]  ;;  %v18_v6 = vunpack.c.l.bf16 %v14_v1  ;;  %v19_v7 = vunpack.c.h.bf16 %v14_v1  ;;  %v26_v8 = vld [vmem:[%s201_s1] sm:$0xf]  ;;  %v22_v10 = vunpack.c.l.bf16 %v16_v4 }
   0x3   :  { %v56_v9 = vld [vmem:[%s202_s2] sm:$0xf]  ;;  %v23_v11 = vunpack.c.h.bf16 %v16_v4  ;;  %v20_v16 = vunpack.c.l.bf16 %v15_v3  ;;  %v21_v17 = vunpack.c.h.bf16 %v15_v3  ;;  %v24_v18 = vunpack.c.l.bf16 %v17_v5 }
   0x4   :  { %v30_v12 = vsub.s32 0, %v29_v2  ;;  %v34_v13 = vsub.s32 1, %v29_v2  ;;  %v38_v14 = vsub.s32 2, %v29_v2  ;;  %v42_v15 = vsub.s32 3, %v29_v2 }
   0x5   :  { %v25_v19 = vunpack.c.h.bf16 %v17_v5 }
   0x6   :  { %v31_v20 = vrot.slane %v26_v8, %v30_v12  ;;  %v35_v21 = vrot.slane %v26_v8, %v34_v13  ;;  %v61_v22 = vrot.slane %v56_v9, %v30_v12  ;;  %v65_v23 = vrot.slane %v56_v9, %v34_v13 }
   0x7   :  { %v39_v24 = vrot.slane %v26_v8, %v38_v14  ;;  %v43_v25 = vrot.slane %v26_v8, %v42_v15  ;;  %v69_v26 = vrot.slane %v56_v9, %v38_v14  ;;  %v73_v27 = vrot.slane %v56_v9, %v42_v15 }
   0x8   :  { %v48_v28 = vmul.f32 %v31_v20, %v18_v6  ;;  %v49_v29 = vmul.f32 %v35_v21, %v19_v7  ;;  %v52_v30 = vmul.f32 %v31_v20, %v22_v10  ;;  %v53_v31 = vmul.f32 %v35_v21, %v23_v11 }
   0x9   :  { %v50_v32 = vmul.f32 %v39_v24, %v20_v16  ;;  %v51_v33 = vmul.f32 %v43_v25, %v21_v17  ;;  %v54_v34 = vmul.f32 %v39_v24, %v24_v18  ;;  %v55_v35 = vmul.f32 %v43_v25, %v25_v19 }
   0xa   :  { %v78_v36 = vadd.f32 %v61_v22, %v48_v28  ;;  %v79_v37 = vadd.f32 %v65_v23, %v49_v29  ;;  %v82_v38 = vadd.f32 %v61_v22, %v52_v30  ;;  %v83_v39 = vadd.f32 %v65_v23, %v53_v31 }
   0xb   :  { %v80_v40 = vadd.f32 %v69_v26, %v50_v32  ;;  %v81_v41 = vadd.f32 %v73_v27, %v51_v33  ;;  %v84_v42 = vadd.f32 %v69_v26, %v54_v34  ;;  %v85_v43 = vadd.f32 %v73_v27, %v55_v35 }
   0xc   :  { %vm86_vm0 = vcmp.gt.f32.partialorder %v78_v36, 0.0  ;;  %vm87_vm1 = vcmp.gt.f32.partialorder %v79_v37, 0.0  ;;  %v94_v44 = vmul.f32 0.2, %v78_v36  ;;  %v95_v45 = vmul.f32 0.2, %v79_v37 }
   0xd   :  { %vm88_vm2 = vcmp.gt.f32.partialorder %v80_v40, 0.0  ;;  %vm89_vm3 = vcmp.gt.f32.partialorder %v81_v41, 0.0  ;;  %v96_v46 = vmul.f32 0.2, %v80_v40  ;;  %v97_v47 = vmul.f32 0.2, %v81_v41 }
   0xe   :  { %v102_v48 = vsel %vm86_vm0, %v78_v36, %v94_v44  ;;  %v103_v49 = vsel %vm87_vm1, %v79_v37, %v95_v45  ;;  %vm90_vm4 = vcmp.gt.f32.partialorder %v82_v38, 0.0  ;;  %vm91_vm5 = vcmp.gt.f32.partialorder %v83_v39, 0.0 }
   0xf   :  { %v146_v50 = vpack.c.bf16 %v103_v49, %v102_v48  ;;  %v104_v51 = vsel %vm88_vm2, %v80_v40, %v96_v46  ;;  %v105_v52 = vsel %vm89_vm3, %v81_v41, %v97_v47  ;;  %v98_v53 = vmul.f32 0.2, %v82_v38 }
  0x10   :  { %v147_v54 = vpack.c.bf16 %v105_v52, %v104_v51  ;;  %v99_v55 = vmul.f32 0.2, %v83_v39  ;;  %vm92_vm6 = vcmp.gt.f32.partialorder %v84_v42, 0.0  ;;  %vm93_vm7 = vcmp.gt.f32.partialorder %v85_v43, 0.0 }
  0x11   :  { %134 = vst [vmem:[%s203_s3] sm:$0xff] %v146_v50  ;;  %v106_v56 = vsel %vm90_vm4, %v82_v38, %v98_v53  ;;  %v100_v57 = vmul.f32 0.2, %v84_v42  ;;  %v101_v58 = vmul.f32 0.2, %v85_v43 }
  0x12   :  { %135 = vst [vmem:[%s203_s3 + $0x8] sm:$0xff] %v147_v54  ;;  %v107_v59 = vsel %vm91_vm5, %v83_v39, %v99_v55 }
  0x13   :  { %v148_v60 = vpack.c.bf16 %v107_v59, %v106_v56  ;;  %v108_v61 = vsel %vm92_vm6, %v84_v42, %v100_v57  ;;  %v109_v62 = vsel %vm93_vm7, %v85_v43, %v101_v58 }
  0x14   :  { %v149_v63 = vpack.c.bf16 %v109_v62, %v108_v61 }
  0x15   :  { %136 = vst [vmem:[%s203_s3 + $0x10] sm:$0xff] %v148_v60 }
  0x16   :  { %137 = vst [vmem:[%s203_s3 + $0x18] sm:$0xff] %v149_v63 }

// kernel: discriminator_forward.11
= control target key start
LH: loop header
LB: loop body
LE: loop exit
PB: predicated region body
PF: predicated region fallthrough
CT: control target
= control target key end

     0   :  { %s3951_s1 = inlined_call_operand.vmem [shape: bf16[2048,256], index: 1, kind: input, shape index: {}]   ;;  %s3952_s0 = inlined_call_operand.vmem [shape: bf16[32,2048], index: 0, kind: input, shape index: {}]   ;;  %s3953_s2 = inlined_call_operand.vmem [shape: bf16[32,256], index: 2, kind: output, shape index: {0}]   ;;  %s3954_s3 = inlined_call_operand.vmem [shape: f32[1,8,256], index: 3, kind: output, shape index: {1}]   ;;  %s3955_s4 = inlined_call_operand.vmem [shape: f32[1,8,256], index: 4, kind: output, shape index: {2}]  }
   0x1   :  { %v2606_v0 = vld [vmem:[%s3951_s1 + $0x4] ss:$8 sps:$4 sm:$0xff]   ;;  %v2610_v2 = vld [vmem:[%s3951_s1] ss:$8 sps:$4 sm:$0xff]   ;;  %v2612_v4 = vld [vmem:[%s3951_s1 + $0x14] ss:$8 sps:$4 sm:$0xff]  }
   0x2   :  { %v2608_v1 = vld [vmem:[%s3951_s1 + $0x404] ss:$8 sps:$4 sm:$0xff]   ;;  %1742 = vmatprep.subr.bf16.mxu1 %v2606_v0  ;;  %v2611_v3 = vld [vmem:[%s3951_s1 + $0x400] ss:$8 sps:$4 sm:$0xff]   ;;  %v2614_v5 = vld [vmem:[%s3951_s1 + $0x414] ss:$8 sps:$4 sm:$0xff]  }
   0x3   :  { %1954 = vmatprep.subr.bf16.mxu0 %v2608_v1  ;;  %1743 = vmatpush1.bf16.msra.mxu1 %v2610_v2  ;;  %v2616_v6 = vld [vmem:[%s3951_s1 + $0x10] ss:$8 sps:$4 sm:$0xff]   ;;  %v2618_v8 = vld [vmem:[%s3951_s1 + $0x24] ss:$8 sps:$4 sm:$0xff]   ;;  %v2622_v10 = vld [vmem:[%s3951_s1 + $0x20] ss:$8 sps:$4 sm:$0xff]  }
   0x4   :  { %1955 = vmatpush1.bf16.msra.mxu0 %v2611_v3  ;;  %1744 = vmatprep.subr.bf16.mxu1 %v2612_v4  ;;  %v2617_v7 = vld [vmem:[%s3951_s1 + $0x410] ss:$8 sps:$4 sm:$0xff]   ;;  %v2620_v9 = vld [vmem:[%s3951_s1 + $0x424] ss:$8 sps:$4 sm:$0xff]   ;;  %v2623_v11 = vld [vmem:[%s3951_s1 + $0x420] ss:$8 sps:$4 sm:$0xff]  }
   0x5   :  { %1956 = vmatprep.subr.bf16.mxu0 %v2614_v5  ;;  %v2624_v12 = vld [vmem:[%s3951_s1 + $0x34] ss:$8 sps:$4 sm:$0xff]   ;;  %v2628_v14 = vld [vmem:[%s3951_s1 + $0x30] ss:$8 sps:$4 sm:$0xff]   ;;  %v2630_v16 = vld [vmem:[%s3951_s1 + $0x44] ss:$8 sps:$4 sm:$0xff]  }
   0x6   :  { %v2626_v13 = vld [vmem:[%s3951_s1 + $0x434] ss:$8 sps:$4 sm:$0xff]   ;;  %v2629_v15 = vld [vmem:[%s3951_s1 + $0x430] ss:$8 sps:$4 sm:$0xff]   ;;  %v2632_v17 = vld [vmem:[%s3951_s1 + $0x444] ss:$8 sps:$4 sm:$0xff]  }
   0x7   :  { %1745 = vmatpush1.bf16.msra.mxu1 %v2616_v6  ;;  %v2634_v18 = vld [vmem:[%s3951_s1 + $0x40] ss:$8 sps:$4 sm:$0xff]   ;;  %v2636_v20 = vld [vmem:[%s3951_s1 + $0x54] ss:$8 sps:$4 sm:$0xff]   ;;  %v2640_v22 = vld [vmem:[%s3951_s1 + $0x50] ss:$8 sps:$4 sm:$0xff]  }
   0x8   :  { %1957 = vmatpush1.bf16.msra.mxu0 %v2617_v7  ;;  %1746 = vmatprep.subr.bf16.mxu1 %v2618_v8  ;;  %v2635_v19 = vld [vmem:[%s3951_s1 + $0x440] ss:$8 sps:$4 sm:$0xff]   ;;  %v2638_v21 = vld [vmem:[%s3951_s1 + $0x454] ss:$8 sps:$4 sm:$0xff]   ;;  %v2641_v23 = vld [vmem:[%s3951_s1 + $0x450] ss:$8 sps:$4 sm:$0xff]  }
   0x9   :  { %1958 = vmatprep.subr.bf16.mxu0 %v2620_v9  ;;  %v2642_v24 = vld [vmem:[%s3951_s1 + $0x64] ss:$8 sps:$4 sm:$0xff]   ;;  %v2646_v26 = vld [vmem:[%s3951_s1 + $0x60] ss:$8 sps:$4 sm:$0xff]   ;;  %v2648_v28 = vld [vmem:[%s3951_s1 + $0x74] ss:$8 sps:$4 sm:$0xff]  }
   0xa   :  { %v2644_v25 = vld [vmem:[%s3951_s1 + $0x464] ss:$8 sps:$4 sm:$0xff]   ;;  %v2647_v27 = vld [vmem:[%s3951_s1 + $0x460] ss:$8 sps:$4 sm:$0xff]   ;;  %v2650_v29 = vld [vmem:[%s3951_s1 + $0x474] ss:$8 sps:$4 sm:$0xff]  }
   0xb   :  { %1747 = vmatpush1.bf16.msra.mxu1 %v2622_v10  ;;  %v2652_v30 = vld [vmem:[%s3951_s1 + $0x70] ss:$8 sps:$4 sm:$0xff]   ;;  %v2654_v32 = vld [vmem:[%s3951_s1 + $0x84] ss:$8 sps:$4 sm:$0xff]   ;;  %v2658_v34 = vld [vmem:[%s3951_s1 + $0x80] ss:$8 sps:$4 sm:$0xff]  }
   0xc   :  { %1959 = vmatpush1.bf16.msra.mxu0 %v2623_v11  ;;  %1748 = vmatprep.subr.bf16.mxu1 %v2624_v12  ;;  %v2653_v31 = vld [vmem:[%s3951_s1 + $0x470] ss:$8 sps:$4 sm:$0xff]   ;;  %v2656_v33 = vld [vmem:[%s3951_s1 + $0x484] ss:$8 sps:$4 sm:$0xff]   ;;  %v2659_v35 = vld [vmem:[%s3951_s1 + $0x480] ss:$8 sps:$4 sm:$0xff]  }
   0xd   :  { %1960 = vmatprep.subr.bf16.mxu0 %v2626_v13  ;;  %v2660_v36 = vld [vmem:[%s3951_s1 + $0x94] ss:$8 sps:$4 sm:$0xff]   ;;  %v2664_v38 = vld [vmem:[%s3951_s1 + $0x90] ss:$8 sps:$4 sm:$0xff]   ;;  %v2666_v40 = vld [vmem:[%s3951_s1 + $0xa4] ss:$8 sps:$4 sm:$0xff]  }
   0xe   :  { %v2662_v37 = vld [vmem:[%s3951_s1 + $0x494] ss:$8 sps:$4 sm:$0xff]   ;;  %v2665_v39 = vld [vmem:[%s3951_s1 + $0x490] ss:$8 sps:$4 sm:$0xff]   ;;  %v2668_v41 = vld [vmem:[%s3951_s1 + $0x4a4] ss:$8 sps:$4 sm:$0xff]  }
   0xf   :  { %1749 = vmatpush1.bf16.msra.mxu1 %v2628_v14  ;;  %v2670_v42 = vld [vmem:[%s3951_s1 + $0xa0] ss:$8 sps:$4 sm:$0xff]   ;;  %v2672_v44 = vld [vmem:[%s3951_s1 + $0xb4] ss:$8 sps:$4 sm:$0xff]   ;;  %v2676_v46 = vld [vmem:[%s3951_s1 + $0xb0] ss:$8 sps:$4 sm:$0xff]  }
  0x10   :  { %1961 = vmatpush1.bf16.msra.mxu0 %v2629_v15  ;;  %1750 = vmatprep.subr.bf16.mxu1 %v2630_v16  ;;  %v2671_v43 = vld [vmem:[%s3951_s1 + $0x4a0] ss:$8 sps:$4 sm:$0xff]   ;;  %v2674_v45 = vld [vmem:[%s3951_s1 + $0x4b4] ss:$8 sps:$4 sm:$0xff]   ;;  %v2677_v47 = vld [vmem:[%s3951_s1 + $0x4b0] ss:$8 sps:$4 sm:$0xff]  }
  0x11   :  { %1962 = vmatprep.subr.bf16.mxu0 %v2632_v17  ;;  %v14_v48 = vld [vmem:[%s3952_s0] sm:$0xff]  ;;  %v2684_v58 = vld [vmem:[%s3951_s1 + $0xd4] ss:$8 sps:$4 sm:$0xff]   ;;  %v2688_v60 = vld [vmem:[%s3951_s1 + $0xd0] ss:$8 sps:$4 sm:$0xff]  }
  0x12   :  { %v22_v49 = vld [vmem:[%s3952_s0 + $0x40] sm:$0xff]  ;;  %v2686_v59 = vld [vmem:[%s3951_s1 + $0x4d4] ss:$8 sps:$4 sm:$0xff]   ;;  %v2689_v61 = vld [vmem:[%s3951_s1 + $0x4d0] ss:$8 sps:$4 sm:$0xff]  }
  0x13   :  { %1751 = vmatpush1.bf16.msra.mxu1 %v2634_v18  ;;  %v2678_v50 = vld [vmem:[%s3951_s1 + $0xc4] ss:$8 sps:$4 sm:$0xff]   ;;  %v2255_v52 = vcombine.high %v14_v48, %v22_v49  ;;  %v2682_v56 = vld [vmem:[%s3951_s1 + $0xc0] ss:$8 sps:$4 sm:$0xff]   ;;  %v2696_v2 = vld [vmem:[%s3951_s1 + $0xf4] ss:$8 sps:$4 sm:$0xff]   ;;  %v2254_v8 = vcombine.low %v14_v48, %v22_v49 }
  0x14   :  { %1963 = vmatpush1.bf16.msra.mxu0 %v2635_v19  ;;  %1752 = vmatprep.subr.bf16.mxu1 %v2636_v20  ;;  %v2680_v51 = vld [vmem:[%s3951_s1 + $0x4c4] ss:$8 sps:$4 sm:$0xff]   ;;  %v2683_v57 = vld [vmem:[%s3951_s1 + $0x4c0] ss:$8 sps:$4 sm:$0xff]   ;;  %v2698_v3 = vld [vmem:[%s3951_s1 + $0x4f4] ss:$8 sps:$4 sm:$0xff]  }
  0x15   :  { %1964 = vmatprep.subr.bf16.mxu0 %v2638_v21  ;;  %v18_v53 = vld [vmem:[%s3952_s0 + $0x20] sm:$0xff]  ;;  %1774 = vmatprep.mubr.bf16.mxu1 %v2255_v52  ;;  %v2700_v4 = vld [vmem:[%s3951_s1 + $0xf0] ss:$8 sps:$4 sm:$0xff]   ;;  %v2710_v12 = vld [vmem:[%s3951_s1 + $0x114] ss:$8 sps:$4 sm:$0xff]  }
  0x16   :  { %v26_v54 = vld [vmem:[%s3952_s0 + $0x60] sm:$0xff]  ;;  %v2701_v5 = vld [vmem:[%s3951_s1 + $0x4f0] ss:$8 sps:$4 sm:$0xff]   ;;  %v2713_v13 = vld [vmem:[%s3951_s1 + $0x514] ss:$8 sps:$4 sm:$0xff]  }
  0x17   :  { %1753 = vmatpush1.bf16.msra.mxu1 %v2640_v22  ;;  %v2263_v55 = vcombine.high %v18_v53, %v26_v54  ;;  %v2690_v62 = vld [vmem:[%s3951_s1 + $0xe4] ss:$8 sps:$4 sm:$0xff]   ;;  %v2694_v0 = vld [vmem:[%s3951_s1 + $0xe0] ss:$8 sps:$4 sm:$0xff]   ;;  %v2262_v10 = vcombine.low %v18_v53, %v26_v54  ;;  %v2708_v14 = vld [vmem:[%s3951_s1 + $0x110] ss:$8 sps:$4 sm:$0xff]  }
  0x18   :  { %1965 = vmatpush1.bf16.msra.mxu0 %v2641_v23  ;;  %1754 = vmatprep.subr.bf16.mxu1 %v2642_v24  ;;  %v2692_v63 = vld [vmem:[%s3951_s1 + $0x4e4] ss:$8 sps:$4 sm:$0xff]   ;;  %v2695_v1 = vld [vmem:[%s3951_s1 + $0x4e0] ss:$8 sps:$4 sm:$0xff]   ;;  %v2711_v15 = vld [vmem:[%s3951_s1 + $0x510] ss:$8 sps:$4 sm:$0xff]  }
  0x19   :  { %1966 = vmatprep.subr.bf16.mxu0 %v2644_v25  ;;  %1986 = vmatprep.mubr.bf16.mxu0 %v2263_v55  ;;  %v2704_v6 = vld [vmem:[%s3951_s1 + $0x104] ss:$8 sps:$4 sm:$0xff]   ;;  %v2702_v9 = vld [vmem:[%s3951_s1 + $0x100] ss:$8 sps:$4 sm:$0xff]   ;;  %v2722_v20 = vld [vmem:[%s3951_s1 + $0x134] ss:$8 sps:$4 sm:$0xff]  }
  0x1a   :  { %v2707_v7 = vld [vmem:[%s3951_s1 + $0x504] ss:$8 sps:$4 sm:$0xff]   ;;  %v2705_v11 = vld [vmem:[%s3951_s1 + $0x500] ss:$8 sps:$4 sm:$0xff]   ;;  %v2725_v21 = vld [vmem:[%s3951_s1 + $0x534] ss:$8 sps:$4 sm:$0xff]  }
  0x1b   :  { %1755 = vmatpush1.bf16.msra.mxu1 %v2646_v26  ;;  %v2716_v16 = vld [vmem:[%s3951_s1 + $0x124] ss:$8 sps:$4 sm:$0xff]   ;;  %v2714_v18 = vld [vmem:[%s3951_s1 + $0x120] ss:$8 sps:$4 sm:$0xff]   ;;  %v2720_v22 = vld [vmem:[%s3951_s1 + $0x130] ss:$8 sps:$4 sm:$0xff]  }
  0x1c   :  { %1967 = vmatpush1.bf16.msra.mxu0 %v2647_v27  ;;  %1756 = vmatprep.subr.bf16.mxu1 %v2648_v28  ;;  %v2719_v17 = vld [vmem:[%s3951_s1 + $0x524] ss:$8 sps:$4 sm:$0xff]   ;;  %v2717_v19 = vld [vmem:[%s3951_s1 + $0x520] ss:$8 sps:$4 sm:$0xff]   ;;  %v2723_v23 = vld [vmem:[%s3951_s1 + $0x530] ss:$8 sps:$4 sm:$0xff]  }
  0x1d   :  { %1968 = vmatprep.subr.bf16.mxu0 %v2650_v29  ;;  %v2728_v24 = vld [vmem:[%s3951_s1 + $0x144] ss:$8 sps:$4 sm:$0xff]   ;;  %v2726_v26 = vld [vmem:[%s3951_s1 + $0x140] ss:$8 sps:$4 sm:$0xff]   ;;  %v2734_v28 = vld [vmem:[%s3951_s1 + $0x154] ss:$8 sps:$4 sm:$0xff]  }
  0x1e   :  { %v2731_v25 = vld [vmem:[%s3951_s1 + $0x544] ss:$8 sps:$4 sm:$0xff]   ;;  %v2729_v27 = vld [vmem:[%s3951_s1 + $0x540] ss:$8 sps:$4 sm:$0xff]   ;;  %v2737_v29 = vld [vmem:[%s3951_s1 + $0x554] ss:$8 sps:$4 sm:$0xff]  }
  0x1f   :  { %1757 = vmatpush1.bf16.msra.mxu1 %v2652_v30  ;;  %v30_v30 = vld [vmem:[%s3952_s0 + $0x80] sm:$0xff]  ;;  %v3336_v49 = vld [vmem:[%s3952_s0 + $0x28] sm:$0xff]  ;;  %v2747_v52 = vld [vmem:[%s3951_s1 + $0x570] ss:$8 sps:$4 sm:$0xff]  }
  0x20   :  { %1969 = vmatpush1.bf16.msra.mxu0 %v2653_v31  ;;  %1758 = vmatprep.subr.bf16.mxu1 %v2654_v32  ;;  %v38_v31 = vld [vmem:[%s3952_s0 + $0xc0] sm:$0xff]  ;;  %v2732_v32 = vld [vmem:[%s3951_s1 + $0x150] ss:$8 sps:$4 sm:$0xff]  }
  0x21   :  { %1970 = vmatprep.subr.bf16.mxu0 %v2656_v33  ;;  %v2271_v33 = vcombine.high %v30_v30, %v38_v31  ;;  %v2752_v54 = vld [vmem:[%s3951_s1 + $0x184] ss:$8 sps:$4 sm:$0xff]  }
  0x22   :  { %v2755_v55 = vld [vmem:[%s3951_s1 + $0x584] ss:$8 sps:$4 sm:$0xff]  }
  0x23   :  { %1759 = vmatpush1.bf16.msra.mxu1 %v2658_v34  ;;  %v2735_v34 = vld [vmem:[%s3951_s1 + $0x550] ss:$8 sps:$4 sm:$0xff]  }
  0x24   :  { %1971 = vmatpush1.bf16.msra.mxu0 %v2659_v35  ;;  %1760 = vmatprep.subr.bf16.mxu1 %v2660_v36  ;;  %v34_v35 = vld [vmem:[%s3952_s0 + $0xa0] sm:$0xff] }
  0x25   :  { %1972 = vmatprep.subr.bf16.mxu0 %v2662_v37  ;;  %v42_v36 = vld [vmem:[%s3952_s0 + $0xe0] sm:$0xff]  ;;  %v2270_v37 = vcombine.low %v30_v30, %v38_v31  ;;  %v2806_v30 = vld [vmem:[%s3951_s1 + $0x214] ss:$8 sps:$4 sm:$0xff]  }
  0x26   :  { %v2809_v31 = vld [vmem:[%s3951_s1 + $0x614] ss:$8 sps:$4 sm:$0xff]  }
  0x27   :  { %1761 = vmatpush1.bf16.msra.mxu1 %v2664_v38  ;;  %v2740_v38 = vld [vmem:[%s3951_s1 + $0x164] ss:$8 sps:$4 sm:$0xff]  }
  0x28   :  { %1973 = vmatpush1.bf16.msra.mxu0 %v2665_v39  ;;  %1762 = vmatprep.subr.bf16.mxu1 %v2666_v40  ;;  %v2279_v39 = vcombine.high %v34_v35, %v42_v36  ;;  %v2278_v40 = vcombine.low %v34_v35, %v42_v36  ;;  %v2804_v36 = vld [vmem:[%s3951_s1 + $0x210] ss:$8 sps:$4 sm:$0xff]  }
  0x29   :  { %1974 = vmatprep.subr.bf16.mxu0 %v2668_v41  ;;  %v2743_v41 = vld [vmem:[%s3951_s1 + $0x564] ss:$8 sps:$4 sm:$0xff]  }
  0x2b   :  { %1763 = vmatpush1.bf16.msra.mxu1 %v2670_v42  ;;  %v2738_v42 = vld [vmem:[%s3951_s1 + $0x160] ss:$8 sps:$4 sm:$0xff]  }
  0x2c   :  { %1975 = vmatpush1.bf16.msra.mxu0 %v2671_v43  ;;  %1764 = vmatprep.subr.bf16.mxu1 %v2672_v44  ;;  %v2741_v43 = vld [vmem:[%s3951_s1 + $0x560] ss:$8 sps:$4 sm:$0xff]  }
  0x2d   :  { %1976 = vmatprep.subr.bf16.mxu0 %v2674_v45  ;;  %v3318_v44 = vld [vmem:[%s3952_s0 + $0x8] sm:$0xff] }
  0x2e   :  { %v3323_v45 = vld [vmem:[%s3952_s0 + $0x48] sm:$0xff] }
  0x2f   :  { %1765 = vmatpush1.bf16.msra.mxu1 %v2676_v46  ;;  %v2746_v46 = vld [vmem:[%s3951_s1 + $0x174] ss:$8 sps:$4 sm:$0xff]   ;;  %v2257_v48 = vcombine.high %v3318_v44, %v3323_v45 }
  0x30   :  { %1977 = vmatpush1.bf16.msra.mxu0 %v2677_v47  ;;  %1766 = vmatprep.subr.bf16.mxu1 %v2678_v50  ;;  %v2749_v47 = vld [vmem:[%s3951_s1 + $0x574] ss:$8 sps:$4 sm:$0xff]   ;;  %v3341_v50 = vld [vmem:[%s3952_s0 + $0x68] sm:$0xff] }
  0x31   :  { %1978 = vmatprep.subr.bf16.mxu0 %v2680_v51  ;;  %v2744_v51 = vld [vmem:[%s3951_s1 + $0x170] ss:$8 sps:$4 sm:$0xff]   ;;  %v2265_v53 = vcombine.high %v3336_v49, %v3341_v50 }
  0x33   :  { %1767 = vmatpush1.bf16.msra.mxu1 %v2682_v56  ;;  %v2750_v56 = vld [vmem:[%s3951_s1 + $0x180] ss:$8 sps:$4 sm:$0xff]  }
  0x34   :  { %1979 = vmatpush1.bf16.msra.mxu0 %v2683_v57  ;;  %1768 = vmatprep.subr.bf16.mxu1 %v2684_v58  ;;  %v2753_v57 = vld [vmem:[%s3951_s1 + $0x580] ss:$8 sps:$4 sm:$0xff]   ;;  %v2758_v58 = vld [vmem:[%s3951_s1 + $0x194] ss:$8 sps:$4 sm:$0xff]  }
  0x35   :  { %1980 = vmatprep.subr.bf16.mxu0 %v2686_v59  ;;  %v2761_v59 = vld [vmem:[%s3951_s1 + $0x594] ss:$8 sps:$4 sm:$0xff]  }
  0x37   :  { %1769 = vmatpush1.bf16.msra.mxu1 %v2688_v60  ;;  %v2756_v60 = vld [vmem:[%s3951_s1 + $0x190] ss:$8 sps:$4 sm:$0xff]  }
  0x38   :  { %1981 = vmatpush1.bf16.msra.mxu0 %v2689_v61  ;;  %1770 = vmatprep.subr.bf16.mxu1 %v2690_v62  ;;  %v2759_v61 = vld [vmem:[%s3951_s1 + $0x590] ss:$8 sps:$4 sm:$0xff]   ;;  %v2764_v62 = vld [vmem:[%s3951_s1 + $0x1a4] ss:$8 sps:$4 sm:$0xff]  }
  0x39   :  { %1982 = vmatprep.subr.bf16.mxu0 %v2692_v63  ;;  %v2767_v63 = vld [vmem:[%s3951_s1 + $0x5a4] ss:$8 sps:$4 sm:$0xff]  }
  0x3b   :  { %1771 = vmatpush1.bf16.msra.mxu1 %v2694_v0  ;;  %v2762_v0 = vld [vmem:[%s3951_s1 + $0x1a0] ss:$8 sps:$4 sm:$0xff]  }
  0x3c   :  { %1983 = vmatpush1.bf16.msra.mxu0 %v2695_v1  ;;  %1772 = vmatprep.subr.bf16.mxu1 %v2696_v2  ;;  %v2765_v1 = vld [vmem:[%s3951_s1 + $0x5a0] ss:$8 sps:$4 sm:$0xff]   ;;  %v2770_v2 = vld [vmem:[%s3951_s1 + $0x1b4] ss:$8 sps:$4 sm:$0xff]  }
  0x3d   :  { %1984 = vmatprep.subr.bf16.mxu0 %v2698_v3  ;;  %v2773_v3 = vld [vmem:[%s3951_s1 + $0x5b4] ss:$8 sps:$4 sm:$0xff]  }
  0x3f   :  { %1773 = vmatpush1.bf16.msra.mxu1 %v2700_v4  ;;  %v2768_v4 = vld [vmem:[%s3951_s1 + $0x1b0] ss:$8 sps:$4 sm:$0xff]  }
  0x40   :  { %1985 = vmatpush1.bf16.msra.mxu0 %v2701_v5  ;;  %1795 = vmatprep.subr.bf16.mxu1 %v2704_v6  ;;  %v2771_v5 = vld [vmem:[%s3951_s1 + $0x5b0] ss:$8 sps:$4 sm:$0xff]   ;;  %v2776_v6 = vld [vmem:[%s3951_s1 + $0x1c4] ss:$8 sps:$4 sm:$0xff]  }
  0x41   :  { %2007 = vmatprep.subr.bf16.mxu0 %v2707_v7  ;;  %v2779_v7 = vld [vmem:[%s3951_s1 + $0x5c4] ss:$8 sps:$4 sm:$0xff]  }
  0x42   :  { %1775 = vmatmul.mubr.bf16.vlgmr.msra.gmra.mrb[0].mxu1 %v2254_v8  ;;  %v2774_v8 = vld [vmem:[%s3951_s1 + $0x1c0] ss:$8 sps:$4 sm:$0xff]  }
  0x43   :  { %1987 = vmatmul.mubr.bf16.vlgmr.msra.gmra.mrb[0].mxu0 %v2262_v10  ;;  %1796 = vmatpush1.bf16.msra.mxu1 %v2702_v9  ;;  %v2777_v9 = vld [vmem:[%s3951_s1 + $0x5c0] ss:$8 sps:$4 sm:$0xff]   ;;  %v2782_v10 = vld [vmem:[%s3951_s1 + $0x1d4] ss:$8 sps:$4 sm:$0xff]  }
  0x44   :  { %2008 = vmatpush1.bf16.msra.mxu0 %v2705_v11  ;;  %1797 = vmatprep.subr.bf16.mxu1 %v2710_v12  ;;  %v2785_v11 = vld [vmem:[%s3951_s1 + $0x5d4] ss:$8 sps:$4 sm:$0xff]   ;;  %v2780_v12 = vld [vmem:[%s3951_s1 + $0x1d0] ss:$8 sps:$4 sm:$0xff]  }
  0x45   :  { %2009 = vmatprep.subr.bf16.mxu0 %v2713_v13  ;;  %1784 = vmatprep.mubr.bf16.mxu1 %v2271_v33  ;;  %v2783_v13 = vld [vmem:[%s3951_s1 + $0x5d0] ss:$8 sps:$4 sm:$0xff]   ;;  %v43_v33 = vld [vmem:[%s3952_s0 + $0xe8] sm:$0xff] }
  0x46   :  { %1996 = vmatprep.mubr.bf16.mxu0 %v2279_v39  ;;  %v2815_v39 = vld [vmem:[%s3951_s1 + $0x624] ss:$8 sps:$4 sm:$0xff]  }
  0x47   :  { %1798 = vmatpush1.bf16.msra.mxu1 %v2708_v14  ;;  %v2788_v14 = vld [vmem:[%s3951_s1 + $0x1e4] ss:$8 sps:$4 sm:$0xff]  }
  0x48   :  { %2010 = vmatpush1.bf16.msra.mxu0 %v2711_v15  ;;  %1799 = vmatprep.subr.bf16.mxu1 %v2716_v16  ;;  %v2791_v15 = vld [vmem:[%s3951_s1 + $0x5e4] ss:$8 sps:$4 sm:$0xff]   ;;  %v2786_v16 = vld [vmem:[%s3951_s1 + $0x1e0] ss:$8 sps:$4 sm:$0xff]  }
  0x49   :  { %2011 = vmatprep.subr.bf16.mxu0 %v2719_v17  ;;  %v2789_v17 = vld [vmem:[%s3951_s1 + $0x5e0] ss:$8 sps:$4 sm:$0xff]  }
  0x4a   :  { %1785 = vmatmul.mubr.bf16.gmra.mrb[4].mxu1 %v2270_v37  ;;  %v2807_v37 = vld [vmem:[%s3951_s1 + $0x610] ss:$8 sps:$4 sm:$0xff]  }
  0x4b   :  { %1800 = vmatpush1.bf16.msra.mxu1 %v2714_v18  ;;  %1997 = vmatmul.mubr.bf16.gmra.mrb[4].mxu0 %v2278_v40  ;;  %v2794_v18 = vld [vmem:[%s3951_s1 + $0x1f4] ss:$8 sps:$4 sm:$0xff]   ;;  %v2810_v40 = vld [vmem:[%s3951_s1 + $0x220] ss:$8 sps:$4 sm:$0xff]  }
  0x4c   :  { %2012 = vmatpush1.bf16.msra.mxu0 %v2717_v19  ;;  %1801 = vmatprep.subr.bf16.mxu1 %v2722_v20  ;;  %v2797_v19 = vld [vmem:[%s3951_s1 + $0x5f4] ss:$8 sps:$4 sm:$0xff]   ;;  %v2792_v20 = vld [vmem:[%s3951_s1 + $0x1f0] ss:$8 sps:$4 sm:$0xff]  }
  0x4d   :  { %2013 = vmatprep.subr.bf16.mxu0 %v2725_v21  ;;  %1827 = vmatprep.mubr.bf16.mxu1 %v2257_v48  ;;  %v2795_v21 = vld [vmem:[%s3951_s1 + $0x5f0] ss:$8 sps:$4 sm:$0xff]   ;;  %v2818_v48 = vld [vmem:[%s3951_s1 + $0x234] ss:$8 sps:$4 sm:$0xff]  }
  0x4e   :  { %2039 = vmatprep.mubr.bf16.mxu0 %v2265_v53  ;;  %v2819_v53 = vld [vmem:[%s3951_s1 + $0x630] ss:$8 sps:$4 sm:$0xff]  }
  0x4f   :  { %1802 = vmatpush1.bf16.msra.mxu1 %v2720_v22  ;;  %v2800_v22 = vld [vmem:[%s3951_s1 + $0x204] ss:$8 sps:$4 sm:$0xff]  }
  0x50   :  { %2014 = vmatpush1.bf16.msra.mxu0 %v2723_v23  ;;  %1803 = vmatprep.subr.bf16.mxu1 %v2728_v24  ;;  %v2803_v23 = vld [vmem:[%s3951_s1 + $0x604] ss:$8 sps:$4 sm:$0xff]   ;;  %v2798_v24 = vld [vmem:[%s3951_s1 + $0x200] ss:$8 sps:$4 sm:$0xff]  }
  0x51   :  { %2015 = vmatprep.subr.bf16.mxu0 %v2731_v25  ;;  %v2801_v25 = vld [vmem:[%s3951_s1 + $0x600] ss:$8 sps:$4 sm:$0xff]  }
  0x53   :  { %1804 = vmatpush1.bf16.msra.mxu1 %v2726_v26  ;;  %v31_v26 = vld [vmem:[%s3952_s0 + $0x88] sm:$0xff] }
  0x54   :  { %2016 = vmatpush1.bf16.msra.mxu0 %v2729_v27  ;;  %1805 = vmatprep.subr.bf16.mxu1 %v2734_v28  ;;  %v2256_v27 = vcombine.low %v3318_v44, %v3323_v45  ;;  %v2264_v28 = vcombine.low %v3336_v49, %v3341_v50  ;;  %v3507_v45 = vld [vmem:[%s3952_s0 + $0x50] sm:$0xff] }
  0x55   :  { %2017 = vmatprep.subr.bf16.mxu0 %v2737_v29  ;;  %v39_v29 = vld [vmem:[%s3952_s0 + $0xc8] sm:$0xff]  ;;  %v2821_v49 = vld [vmem:[%s3951_s1 + $0x634] ss:$8 sps:$4 sm:$0xff]  }
  0x57   :  { %1806 = vmatpush1.bf16.msra.mxu1 %v2732_v32  ;;  %v35_v32 = vld [vmem:[%s3952_s0 + $0xa8] sm:$0xff] }
  0x58   :  { %2018 = vmatpush1.bf16.msra.mxu0 %v2735_v34  ;;  %1807 = vmatprep.subr.bf16.mxu1 %v2740_v38  ;;  %v2273_v34 = vcombine.high %v31_v26, %v39_v29  ;;  %v2281_v35 = vcombine.high %v35_v32, %v43_v33  ;;  %v2812_v38 = vld [vmem:[%s3951_s1 + $0x224] ss:$8 sps:$4 sm:$0xff]   ;;  %v2280_v44 = vcombine.low %v35_v32, %v43_v33  ;;  %v2882_v32 = vld [vmem:[%s3951_s1 + $0x2e0] ss:$8 sps:$4 sm:$0xff]  }
  0x59   :  { %2019 = vmatprep.subr.bf16.mxu0 %v2743_v41  ;;  %v2813_v41 = vld [vmem:[%s3951_s1 + $0x620] ss:$8 sps:$4 sm:$0xff]  }
  0x5a   :  { %v2885_v33 = vld [vmem:[%s3951_s1 + $0x6e0] ss:$8 sps:$4 sm:$0xff]  }
  0x5b   :  { %1808 = vmatpush1.bf16.msra.mxu1 %v2738_v42  ;;  %v3502_v42 = vld [vmem:[%s3952_s0 + $0x10] sm:$0xff] }
  0x5c   :  { %2020 = vmatpush1.bf16.msra.mxu0 %v2741_v43  ;;  %1809 = vmatprep.subr.bf16.mxu1 %v2746_v46  ;;  %v2272_v43 = vcombine.low %v31_v26, %v39_v29  ;;  %v3512_v46 = vld [vmem:[%s3952_s0 + $0x30] sm:$0xff]  ;;  %v2259_v50 = vcombine.high %v3502_v42, %v3507_v45 }
  0x5d   :  { %2021 = vmatprep.subr.bf16.mxu0 %v2749_v47  ;;  %v3517_v47 = vld [vmem:[%s3952_s0 + $0x70] sm:$0xff] }
  0x5e   :  { %v2878_v26 = vld [vmem:[%s3951_s1 + $0x2d4] ss:$8 sps:$4 sm:$0xff]   ;;  %v2879_v29 = vld [vmem:[%s3951_s1 + $0x6d0] ss:$8 sps:$4 sm:$0xff]  }
  0x5f   :  { %1810 = vmatpush1.bf16.msra.mxu1 %v2744_v51  ;;  %v2267_v51 = vcombine.high %v3512_v46, %v3517_v47 }
  0x60   :  { %2022 = vmatpush1.bf16.msra.mxu0 %v2747_v52  ;;  %1811 = vmatprep.subr.bf16.mxu1 %v2752_v54  ;;  %v2816_v52 = vld [vmem:[%s3951_s1 + $0x230] ss:$8 sps:$4 sm:$0xff]   ;;  %v2824_v54 = vld [vmem:[%s3951_s1 + $0x244] ss:$8 sps:$4 sm:$0xff]  }
  0x61   :  { %2023 = vmatprep.subr.bf16.mxu0 %v2755_v55  ;;  %v2827_v55 = vld [vmem:[%s3951_s1 + $0x644] ss:$8 sps:$4 sm:$0xff]  }
  0x63   :  { %1812 = vmatpush1.bf16.msra.mxu1 %v2750_v56  ;;  %v2822_v56 = vld [vmem:[%s3951_s1 + $0x240] ss:$8 sps:$4 sm:$0xff]  }
  0x64   :  { %2024 = vmatpush1.bf16.msra.mxu0 %v2753_v57  ;;  %1813 = vmatprep.subr.bf16.mxu1 %v2758_v58  ;;  %v2825_v57 = vld [vmem:[%s3951_s1 + $0x640] ss:$8 sps:$4 sm:$0xff]   ;;  %v2830_v58 = vld [vmem:[%s3951_s1 + $0x254] ss:$8 sps:$4 sm:$0xff]  }
  0x65   :  { %2025 = vmatprep.subr.bf16.mxu0 %v2761_v59  ;;  %v2833_v59 = vld [vmem:[%s3951_s1 + $0x654] ss:$8 sps:$4 sm:$0xff]  }
  0x67   :  { %1814 = vmatpush1.bf16.msra.mxu1 %v2756_v60  ;;  %v2828_v60 = vld [vmem:[%s3951_s1 + $0x250] ss:$8 sps:$4 sm:$0xff]  }
  0x68   :  { %2026 = vmatpush1.bf16.msra.mxu0 %v2759_v61  ;;  %1815 = vmatprep.subr.bf16.mxu1 %v2764_v62  ;;  %v2831_v61 = vld [vmem:[%s3951_s1 + $0x650] ss:$8 sps:$4 sm:$0xff]   ;;  %v2836_v62 = vld [vmem:[%s3951_s1 + $0x264] ss:$8 sps:$4 sm:$0xff]  }
  0x69   :  { %2027 = vmatprep.subr.bf16.mxu0 %v2767_v63  ;;  %v2839_v63 = vld [vmem:[%s3951_s1 + $0x664] ss:$8 sps:$4 sm:$0xff]  }
  0x6b   :  { %1816 = vmatpush1.bf16.msra.mxu1 %v2762_v0  ;;  %v2834_v0 = vld [vmem:[%s3951_s1 + $0x260] ss:$8 sps:$4 sm:$0xff]  }
  0x6c   :  { %2028 = vmatpush1.bf16.msra.mxu0 %v2765_v1  ;;  %1817 = vmatprep.subr.bf16.mxu1 %v2770_v2  ;;  %v2837_v1 = vld [vmem:[%s3951_s1 + $0x660] ss:$8 sps:$4 sm:$0xff]   ;;  %v2842_v2 = vld [vmem:[%s3951_s1 + $0x274] ss:$8 sps:$4 sm:$0xff]  }
  0x6d   :  { %2029 = vmatprep.subr.bf16.mxu0 %v2773_v3  ;;  %v2845_v3 = vld [vmem:[%s3951_s1 + $0x674] ss:$8 sps:$4 sm:$0xff]  }
  0x6f   :  { %1818 = vmatpush1.bf16.msra.mxu1 %v2768_v4  ;;  %v2840_v4 = vld [vmem:[%s3951_s1 + $0x270] ss:$8 sps:$4 sm:$0xff]  }
  0x70   :  { %2030 = vmatpush1.bf16.msra.mxu0 %v2771_v5  ;;  %1819 = vmatprep.subr.bf16.mxu1 %v2776_v6  ;;  %v2843_v5 = vld [vmem:[%s3951_s1 + $0x670] ss:$8 sps:$4 sm:$0xff]   ;;  %v2848_v6 = vld [vmem:[%s3951_s1 + $0x284] ss:$8 sps:$4 sm:$0xff]  }
  0x71   :  { %2031 = vmatprep.subr.bf16.mxu0 %v2779_v7  ;;  %v2851_v7 = vld [vmem:[%s3951_s1 + $0x684] ss:$8 sps:$4 sm:$0xff]  }
  0x73   :  { %1820 = vmatpush1.bf16.msra.mxu1 %v2774_v8  ;;  %v2846_v8 = vld [vmem:[%s3951_s1 + $0x280] ss:$8 sps:$4 sm:$0xff]  }
  0x74   :  { %2032 = vmatpush1.bf16.msra.mxu0 %v2777_v9  ;;  %1821 = vmatprep.subr.bf16.mxu1 %v2782_v10  ;;  %v2849_v9 = vld [vmem:[%s3951_s1 + $0x680] ss:$8 sps:$4 sm:$0xff]   ;;  %v2854_v10 = vld [vmem:[%s3951_s1 + $0x294] ss:$8 sps:$4 sm:$0xff]  }
  0x75   :  { %2033 = vmatprep.subr.bf16.mxu0 %v2785_v11  ;;  %v2857_v11 = vld [vmem:[%s3951_s1 + $0x694] ss:$8 sps:$4 sm:$0xff]  }
  0x77   :  { %1822 = vmatpush1.bf16.msra.mxu1 %v2780_v12  ;;  %v2852_v12 = vld [vmem:[%s3951_s1 + $0x290] ss:$8 sps:$4 sm:$0xff]  }
  0x78   :  { %2034 = vmatpush1.bf16.msra.mxu0 %v2783_v13  ;;  %1823 = vmatprep.subr.bf16.mxu1 %v2788_v14  ;;  %v2855_v13 = vld [vmem:[%s3951_s1 + $0x690] ss:$8 sps:$4 sm:$0xff]   ;;  %v2860_v14 = vld [vmem:[%s3951_s1 + $0x2a4] ss:$8 sps:$4 sm:$0xff]  }
  0x79   :  { %2035 = vmatprep.subr.bf16.mxu0 %v2791_v15  ;;  %v2863_v15 = vld [vmem:[%s3951_s1 + $0x6a4] ss:$8 sps:$4 sm:$0xff]  }
  0x7b   :  { %1824 = vmatpush1.bf16.msra.mxu1 %v2786_v16  ;;  %v2858_v16 = vld [vmem:[%s3951_s1 + $0x2a0] ss:$8 sps:$4 sm:$0xff]  }
  0x7c   :  { %2036 = vmatpush1.bf16.msra.mxu0 %v2789_v17  ;;  %1825 = vmatprep.subr.bf16.mxu1 %v2794_v18  ;;  %v2861_v17 = vld [vmem:[%s3951_s1 + $0x6a0] ss:$8 sps:$4 sm:$0xff]   ;;  %v2866_v18 = vld [vmem:[%s3951_s1 + $0x2b4] ss:$8 sps:$4 sm:$0xff]  }
  0x7d   :  { %2037 = vmatprep.subr.bf16.mxu0 %v2797_v19  ;;  %v2869_v19 = vld [vmem:[%s3951_s1 + $0x6b4] ss:$8 sps:$4 sm:$0xff]  }
  0x7f   :  { %1826 = vmatpush1.bf16.msra.mxu1 %v2792_v20  ;;  %v2864_v20 = vld [vmem:[%s3951_s1 + $0x2b0] ss:$8 sps:$4 sm:$0xff]  }
  0x80   :  { %2038 = vmatpush1.bf16.msra.mxu0 %v2795_v21  ;;  %1848 = vmatprep.subr.bf16.mxu1 %v2800_v22  ;;  %v2867_v21 = vld [vmem:[%s3951_s1 + $0x6b0] ss:$8 sps:$4 sm:$0xff]   ;;  %v2872_v22 = vld [vmem:[%s3951_s1 + $0x2c4] ss:$8 sps:$4 sm:$0xff]  }
  0x81   :  { %2060 = vmatprep.subr.bf16.mxu0 %v2803_v23  ;;  %v2875_v23 = vld [vmem:[%s3951_s1 + $0x6c4] ss:$8 sps:$4 sm:$0xff]  }
  0x82   :  { %1828 = vmatmul.mubr.bf16.vlgmr.msra.gmra.mrb[0].mxu1 %v2256_v27  ;;  %v2881_v27 = vld [vmem:[%s3951_s1 + $0x6d4] ss:$8 sps:$4 sm:$0xff]  }
  0x83   :  { %2040 = vmatmul.mubr.bf16.vlgmr.msra.gmra.mrb[0].mxu0 %v2264_v28  ;;  %1849 = vmatpush1.bf16.msra.mxu1 %v2798_v24  ;;  %v2870_v24 = vld [vmem:[%s3951_s1 + $0x2c0] ss:$8 sps:$4 sm:$0xff]   ;;  %v2876_v28 = vld [vmem:[%s3951_s1 + $0x2d0] ss:$8 sps:$4 sm:$0xff]  }
  0x84   :  { %2061 = vmatpush1.bf16.msra.mxu0 %v2801_v25  ;;  %1850 = vmatprep.subr.bf16.mxu1 %v2806_v30  ;;  %v2873_v25 = vld [vmem:[%s3951_s1 + $0x6c0] ss:$8 sps:$4 sm:$0xff]   ;;  %v2884_v30 = vld [vmem:[%s3951_s1 + $0x2e4] ss:$8 sps:$4 sm:$0xff]  }
  0x85   :  { %2062 = vmatprep.subr.bf16.mxu0 %v2809_v31  ;;  %1837 = vmatprep.mubr.bf16.mxu1 %v2273_v34  ;;  %v2887_v31 = vld [vmem:[%s3951_s1 + $0x6e4] ss:$8 sps:$4 sm:$0xff]   ;;  %v2890_v34 = vld [vmem:[%s3951_s1 + $0x2f4] ss:$8 sps:$4 sm:$0xff]  }
  0x86   :  { %2049 = vmatprep.mubr.bf16.mxu0 %v2281_v35  ;;  %v2893_v35 = vld [vmem:[%s3951_s1 + $0x6f4] ss:$8 sps:$4 sm:$0xff]  }
  0x87   :  { %1851 = vmatpush1.bf16.msra.mxu1 %v2804_v36  ;;  %v2888_v36 = vld [vmem:[%s3951_s1 + $0x2f0] ss:$8 sps:$4 sm:$0xff]  }
  0x88   :  { %2063 = vmatpush1.bf16.msra.mxu0 %v2807_v37  ;;  %1852 = vmatprep.subr.bf16.mxu1 %v2812_v38  ;;  %v2891_v37 = vld [vmem:[%s3951_s1 + $0x6f0] ss:$8 sps:$4 sm:$0xff]   ;;  %v2896_v38 = vld [vmem:[%s3951_s1 + $0x304] ss:$8 sps:$4 sm:$0xff]  }
  0x89   :  { %2064 = vmatprep.subr.bf16.mxu0 %v2815_v39  ;;  %v2899_v39 = vld [vmem:[%s3951_s1 + $0x704] ss:$8 sps:$4 sm:$0xff]  }
  0x8a   :  { %1838 = vmatmul.mubr.bf16.gmra.mrb[4].mxu1 %v2272_v43  ;;  %v2266_v43 = vcombine.low %v3512_v46, %v3517_v47  ;;  %v2902_v46 = vld [vmem:[%s3951_s1 + $0x314] ss:$8 sps:$4 sm:$0xff]  }
  0x8b   :  { %2050 = vmatmul.mubr.bf16.gmra.mrb[4].mxu0 %v2280_v44  ;;  %1853 = vmatpush1.bf16.msra.mxu1 %v2810_v40  ;;  %v32_v40 = vld [vmem:[%s3952_s0 + $0x90] sm:$0xff] }
  0x8c   :  { %2065 = vmatpush1.bf16.msra.mxu0 %v2813_v41  ;;  %1854 = vmatprep.subr.bf16.mxu1 %v2818_v48  ;;  %v2258_v41 = vcombine.low %v3502_v42, %v3507_v45  ;;  %v40_v44 = vld [vmem:[%s3952_s0 + $0xd0] sm:$0xff]  ;;  %v2894_v42 = vld [vmem:[%s3951_s1 + $0x300] ss:$8 sps:$4 sm:$0xff]  }
  0x8d   :  { %2066 = vmatprep.subr.bf16.mxu0 %v2821_v49  ;;  %1880 = vmatprep.mubr.bf16.mxu1 %v2259_v50  ;;  %v36_v48 = vld [vmem:[%s3952_s0 + $0xb0] sm:$0xff]  ;;  %v2897_v45 = vld [vmem:[%s3951_s1 + $0x700] ss:$8 sps:$4 sm:$0xff]   ;;  %v2275_v50 = vcombine.high %v32_v40, %v40_v44 }
  0x8e   :  { %2092 = vmatprep.mubr.bf16.mxu0 %v2267_v51  ;;  %v44_v49 = vld [vmem:[%s3952_s0 + $0xf0] sm:$0xff] }
  0x8f   :  { %1855 = vmatpush1.bf16.msra.mxu1 %v2816_v52  ;;  %v2905_v47 = vld [vmem:[%s3951_s1 + $0x714] ss:$8 sps:$4 sm:$0xff]   ;;  %v2283_v51 = vcombine.high %v36_v48, %v44_v49  ;;  %v2900_v52 = vld [vmem:[%s3951_s1 + $0x310] ss:$8 sps:$4 sm:$0xff]  }
  0x90   :  { %2067 = vmatpush1.bf16.msra.mxu0 %v2819_v53  ;;  %1856 = vmatprep.subr.bf16.mxu1 %v2824_v54  ;;  %v2903_v53 = vld [vmem:[%s3951_s1 + $0x710] ss:$8 sps:$4 sm:$0xff]   ;;  %v2908_v54 = vld [vmem:[%s3951_s1 + $0x324] ss:$8 sps:$4 sm:$0xff]  }
  0x91   :  { %2068 = vmatprep.subr.bf16.mxu0 %v2827_v55  ;;  %v2911_v55 = vld [vmem:[%s3951_s1 + $0x724] ss:$8 sps:$4 sm:$0xff]  }
  0x93   :  { %1857 = vmatpush1.bf16.msra.mxu1 %v2822_v56  ;;  %v3728_v56 = vld [vmem:[%s3952_s0 + $0x18] sm:$0xff] }
  0x94   :  { %2069 = vmatpush1.bf16.msra.mxu0 %v2825_v57  ;;  %1858 = vmatprep.subr.bf16.mxu1 %v2830_v58  ;;  %v2274_v57 = vcombine.low %v32_v40, %v40_v44  ;;  %v2282_v58 = vcombine.low %v36_v48, %v44_v49  ;;  %v2966_v40 = vld [vmem:[%s3951_s1 + $0x3c0] ss:$8 sps:$4 sm:$0xff]   ;;  %v2977_v44 = vld [vmem:[%s3951_s1 + $0x7d4] ss:$8 sps:$4 sm:$0xff]   ;;  %v2972_v48 = vld [vmem:[%s3951_s1 + $0x3d0] ss:$8 sps:$4 sm:$0xff]  }
  0x95   :  { %2070 = vmatprep.subr.bf16.mxu0 %v2833_v59  ;;  %v3733_v59 = vld [vmem:[%s3952_s0 + $0x58] sm:$0xff] }
  0x96   :  { %v2975_v49 = vld [vmem:[%s3951_s1 + $0x7d0] ss:$8 sps:$4 sm:$0xff]  }
  0x97   :  { %1859 = vmatpush1.bf16.msra.mxu1 %v2828_v60  ;;  %v3738_v60 = vld [vmem:[%s3952_s0 + $0x38] sm:$0xff] }
  0x98   :  { %2071 = vmatpush1.bf16.msra.mxu0 %v2831_v61  ;;  %1860 = vmatprep.subr.bf16.mxu1 %v2836_v62  ;;  %v3743_v61 = vld [vmem:[%s3952_s0 + $0x78] sm:$0xff]  ;;  %v2906_v62 = vld [vmem:[%s3951_s1 + $0x320] ss:$8 sps:$4 sm:$0xff]  }
  0x99   :  { %2072 = vmatprep.subr.bf16.mxu0 %v2839_v63  ;;  %v2909_v63 = vld [vmem:[%s3951_s1 + $0x720] ss:$8 sps:$4 sm:$0xff]  }
  0x9b   :  { %1861 = vmatpush1.bf16.msra.mxu1 %v2834_v0  ;;  %v2914_v0 = vld [vmem:[%s3951_s1 + $0x334] ss:$8 sps:$4 sm:$0xff]  }
  0x9c   :  { %2073 = vmatpush1.bf16.msra.mxu0 %v2837_v1  ;;  %1862 = vmatprep.subr.bf16.mxu1 %v2842_v2  ;;  %v2917_v1 = vld [vmem:[%s3951_s1 + $0x734] ss:$8 sps:$4 sm:$0xff]   ;;  %v2261_v2 = vcombine.high %v3728_v56, %v3733_v59 }
  0x9d   :  { %2074 = vmatprep.subr.bf16.mxu0 %v2845_v3  ;;  %v2269_v3 = vcombine.high %v3738_v60, %v3743_v61 }
  0x9f   :  { %1863 = vmatpush1.bf16.msra.mxu1 %v2840_v4  ;;  %v2912_v4 = vld [vmem:[%s3951_s1 + $0x330] ss:$8 sps:$4 sm:$0xff]  }
  0xa0   :  { %2075 = vmatpush1.bf16.msra.mxu0 %v2843_v5  ;;  %1864 = vmatprep.subr.bf16.mxu1 %v2848_v6  ;;  %v2915_v5 = vld [vmem:[%s3951_s1 + $0x730] ss:$8 sps:$4 sm:$0xff]   ;;  %v2920_v6 = vld [vmem:[%s3951_s1 + $0x344] ss:$8 sps:$4 sm:$0xff]  }
  0xa1   :  { %2076 = vmatprep.subr.bf16.mxu0 %v2851_v7  ;;  %v2923_v7 = vld [vmem:[%s3951_s1 + $0x744] ss:$8 sps:$4 sm:$0xff]  }
  0xa3   :  { %1865 = vmatpush1.bf16.msra.mxu1 %v2846_v8  ;;  %v2918_v8 = vld [vmem:[%s3951_s1 + $0x340] ss:$8 sps:$4 sm:$0xff]  }
  0xa4   :  { %2077 = vmatpush1.bf16.msra.mxu0 %v2849_v9  ;;  %1866 = vmatprep.subr.bf16.mxu1 %v2854_v10  ;;  %v2921_v9 = vld [vmem:[%s3951_s1 + $0x740] ss:$8 sps:$4 sm:$0xff]   ;;  %v2926_v10 = vld [vmem:[%s3951_s1 + $0x354] ss:$8 sps:$4 sm:$0xff]  }
  0xa5   :  { %2078 = vmatprep.subr.bf16.mxu0 %v2857_v11  ;;  %v2929_v11 = vld [vmem:[%s3951_s1 + $0x754] ss:$8 sps:$4 sm:$0xff]  }
  0xa7   :  { %1867 = vmatpush1.bf16.msra.mxu1 %v2852_v12  ;;  %v2924_v12 = vld [vmem:[%s3951_s1 + $0x350] ss:$8 sps:$4 sm:$0xff]  }
  0xa8   :  { %2079 = vmatpush1.bf16.msra.mxu0 %v2855_v13  ;;  %1868 = vmatprep.subr.bf16.mxu1 %v2860_v14  ;;  %v2927_v13 = vld [vmem:[%s3951_s1 + $0x750] ss:$8 sps:$4 sm:$0xff]   ;;  %v2932_v14 = vld [vmem:[%s3951_s1 + $0x364] ss:$8 sps:$4 sm:$0xff]  }
  0xa9   :  { %2080 = vmatprep.subr.bf16.mxu0 %v2863_v15  ;;  %v2935_v15 = vld [vmem:[%s3951_s1 + $0x764] ss:$8 sps:$4 sm:$0xff]  }
  0xab   :  { %1869 = vmatpush1.bf16.msra.mxu1 %v2858_v16  ;;  %v2930_v16 = vld [vmem:[%s3951_s1 + $0x360] ss:$8 sps:$4 sm:$0xff]  }
  0xac   :  { %2081 = vmatpush1.bf16.msra.mxu0 %v2861_v17  ;;  %1870 = vmatprep.subr.bf16.mxu1 %v2866_v18  ;;  %v2933_v17 = vld [vmem:[%s3951_s1 + $0x760] ss:$8 sps:$4 sm:$0xff]   ;;  %v2938_v18 = vld [vmem:[%s3951_s1 + $0x374] ss:$8 sps:$4 sm:$0xff]  }
  0xad   :  { %2082 = vmatprep.subr.bf16.mxu0 %v2869_v19  ;;  %v2941_v19 = vld [vmem:[%s3951_s1 + $0x774] ss:$8 sps:$4 sm:$0xff]  }
  0xaf   :  { %1871 = vmatpush1.bf16.msra.mxu1 %v2864_v20  ;;  %v2936_v20 = vld [vmem:[%s3951_s1 + $0x370] ss:$8 sps:$4 sm:$0xff]  }
  0xb0   :  { %2083 = vmatpush1.bf16.msra.mxu0 %v2867_v21  ;;  %1872 = vmatprep.subr.bf16.mxu1 %v2872_v22  ;;  %v2939_v21 = vld [vmem:[%s3951_s1 + $0x770] ss:$8 sps:$4 sm:$0xff]   ;;  %v2944_v22 = vld [vmem:[%s3951_s1 + $0x384] ss:$8 sps:$4 sm:$0xff]  }
  0xb1   :  { %2084 = vmatprep.subr.bf16.mxu0 %v2875_v23  ;;  %v2947_v23 = vld [vmem:[%s3951_s1 + $0x784] ss:$8 sps:$4 sm:$0xff]  }
  0xb3   :  { %1873 = vmatpush1.bf16.msra.mxu1 %v2870_v24  ;;  %v2942_v24 = vld [vmem:[%s3951_s1 + $0x380] ss:$8 sps:$4 sm:$0xff]  }
  0xb4   :  { %2085 = vmatpush1.bf16.msra.mxu0 %v2873_v25  ;;  %1874 = vmatprep.subr.bf16.mxu1 %v2878_v26  ;;  %v2945_v25 = vld [vmem:[%s3951_s1 + $0x780] ss:$8 sps:$4 sm:$0xff]   ;;  %v2950_v26 = vld [vmem:[%s3951_s1 + $0x394] ss:$8 sps:$4 sm:$0xff]  }
  0xb5   :  { %2086 = vmatprep.subr.bf16.mxu0 %v2881_v27  ;;  %v2953_v27 = vld [vmem:[%s3951_s1 + $0x794] ss:$8 sps:$4 sm:$0xff]  }
  0xb7   :  { %1875 = vmatpush1.bf16.msra.mxu1 %v2876_v28  ;;  %v2948_v28 = vld [vmem:[%s3951_s1 + $0x390] ss:$8 sps:$4 sm:$0xff]  }
  0xb8   :  { %2087 = vmatpush1.bf16.msra.mxu0 %v2879_v29  ;;  %1876 = vmatprep.subr.bf16.mxu1 %v2884_v30  ;;  %v2951_v29 = vld [vmem:[%s3951_s1 + $0x790] ss:$8 sps:$4 sm:$0xff]   ;;  %v2956_v30 = vld [vmem:[%s3951_s1 + $0x3a4] ss:$8 sps:$4 sm:$0xff]  }
  0xb9   :  { %2088 = vmatprep.subr.bf16.mxu0 %v2887_v31  ;;  %v2959_v31 = vld [vmem:[%s3951_s1 + $0x7a4] ss:$8 sps:$4 sm:$0xff]  }
  0xbb   :  { %1877 = vmatpush1.bf16.msra.mxu1 %v2882_v32  ;;  %v2954_v32 = vld [vmem:[%s3951_s1 + $0x3a0] ss:$8 sps:$4 sm:$0xff]  }
  0xbc   :  { %2089 = vmatpush1.bf16.msra.mxu0 %v2885_v33  ;;  %1878 = vmatprep.subr.bf16.mxu1 %v2890_v34  ;;  %v2957_v33 = vld [vmem:[%s3951_s1 + $0x7a0] ss:$8 sps:$4 sm:$0xff]   ;;  %v2962_v34 = vld [vmem:[%s3951_s1 + $0x3b4] ss:$8 sps:$4 sm:$0xff]  }
  0xbd   :  { %2090 = vmatprep.subr.bf16.mxu0 %v2893_v35  ;;  %v2965_v35 = vld [vmem:[%s3951_s1 + $0x7b4] ss:$8 sps:$4 sm:$0xff]  }
  0xbf   :  { %1879 = vmatpush1.bf16.msra.mxu1 %v2888_v36  ;;  %v2960_v36 = vld [vmem:[%s3951_s1 + $0x3b0] ss:$8 sps:$4 sm:$0xff]  }
  0xc0   :  { %2091 = vmatpush1.bf16.msra.mxu0 %v2891_v37  ;;  %1901 = vmatprep.subr.bf16.mxu1 %v2896_v38  ;;  %v2963_v37 = vld [vmem:[%s3951_s1 + $0x7b0] ss:$8 sps:$4 sm:$0xff]   ;;  %v2968_v38 = vld [vmem:[%s3951_s1 + $0x3c4] ss:$8 sps:$4 sm:$0xff]  }
  0xc1   :  { %2113 = vmatprep.subr.bf16.mxu0 %v2899_v39  ;;  %v2971_v39 = vld [vmem:[%s3951_s1 + $0x7c4] ss:$8 sps:$4 sm:$0xff]  }
  0xc2   :  { %1881 = vmatmul.mubr.bf16.vlgmr.msra.gmra.mrb[0].mxu1 %v2258_v41  ;;  %v2969_v41 = vld [vmem:[%s3951_s1 + $0x7c0] ss:$8 sps:$4 sm:$0xff]  }
  0xc3   :  { %2093 = vmatmul.mubr.bf16.vlgmr.msra.gmra.mrb[0].mxu0 %v2266_v43  ;;  %1902 = vmatpush1.bf16.msra.mxu1 %v2894_v42  ;;  %v2974_v43 = vld [vmem:[%s3951_s1 + $0x3d4] ss:$8 sps:$4 sm:$0xff]   ;;  %v2980_v42 = vld [vmem:[%s3951_s1 + $0x3e4] ss:$8 sps:$4 sm:$0xff]  }
  0xc4   :  { %2114 = vmatpush1.bf16.msra.mxu0 %v2897_v45  ;;  %1903 = vmatprep.subr.bf16.mxu1 %v2902_v46  ;;  %v2983_v45 = vld [vmem:[%s3951_s1 + $0x7e4] ss:$8 sps:$4 sm:$0xff]   ;;  %v2978_v46 = vld [vmem:[%s3951_s1 + $0x3e0] ss:$8 sps:$4 sm:$0xff]  }
  0xc5   :  { %2115 = vmatprep.subr.bf16.mxu0 %v2905_v47  ;;  %1890 = vmatprep.mubr.bf16.mxu1 %v2275_v50  ;;  %v2981_v47 = vld [vmem:[%s3951_s1 + $0x7e0] ss:$8 sps:$4 sm:$0xff]   ;;  %v2986_v50 = vld [vmem:[%s3951_s1 + $0x3f4] ss:$8 sps:$4 sm:$0xff]  }
  0xc6   :  { %2102 = vmatprep.mubr.bf16.mxu0 %v2283_v51  ;;  %v2989_v51 = vld [vmem:[%s3951_s1 + $0x7f4] ss:$8 sps:$4 sm:$0xff]  }
  0xc7   :  { %1904 = vmatpush1.bf16.msra.mxu1 %v2900_v52  ;;  %v2984_v52 = vld [vmem:[%s3951_s1 + $0x3f0] ss:$8 sps:$4 sm:$0xff]  }
  0xc8   :  { %2116 = vmatpush1.bf16.msra.mxu0 %v2903_v53  ;;  %1905 = vmatprep.subr.bf16.mxu1 %v2908_v54  ;;  %v2987_v53 = vld [vmem:[%s3951_s1 + $0x7f0] ss:$8 sps:$4 sm:$0xff]  }
  0xc9   :  { %2117 = vmatprep.subr.bf16.mxu0 %v2911_v55  ;;  %v33_v54 = vld [vmem:[%s3952_s0 + $0x98] sm:$0xff] }
  0xca   :  { %1891 = vmatmul.mubr.bf16.gmra.mrb[4].mxu1 %v2274_v57  ;;  %v41_v55 = vld [vmem:[%s3952_s0 + $0xd8] sm:$0xff] }
  0xcb   :  { %2103 = vmatmul.mubr.bf16.gmra.mrb[4].mxu0 %v2282_v58  ;;  %1906 = vmatpush1.bf16.msra.mxu1 %v2906_v62  ;;  %v37_v57 = vld [vmem:[%s3952_s0 + $0xb8] sm:$0xff]  ;;  %v2260_v62 = vcombine.low %v3728_v56, %v3733_v59 }
  0xcc   :  { %2118 = vmatpush1.bf16.msra.mxu0 %v2909_v63  ;;  %1907 = vmatprep.subr.bf16.mxu1 %v2914_v0  ;;  %v45_v58 = vld [vmem:[%s3952_s0 + $0xf8] sm:$0xff]  ;;  %v2268_v63 = vcombine.low %v3738_v60, %v3743_v61  ;;  %v2277_v0 = vcombine.high %v33_v54, %v41_v55 }
  0xcd   :  { %2119 = vmatprep.subr.bf16.mxu0 %v2917_v1  ;;  %1933 = vmatprep.mubr.bf16.mxu1 %v2261_v2  ;;  %v2285_v1 = vcombine.high %v37_v57, %v45_v58  ;;  %v2276_v2 = vcombine.low %v33_v54, %v41_v55 }
  0xce   :  { %2145 = vmatprep.mubr.bf16.mxu0 %v2269_v3  ;;  %v2284_v3 = vcombine.low %v37_v57, %v45_v58 }
  0xcf   :  { %1908 = vmatpush1.bf16.msra.mxu1 %v2912_v4 }
  0xd0   :  { %2120 = vmatpush1.bf16.msra.mxu0 %v2915_v5  ;;  %1909 = vmatprep.subr.bf16.mxu1 %v2920_v6 }
  0xd1   :  { %2121 = vmatprep.subr.bf16.mxu0 %v2923_v7 }
  0xd3   :  { %1910 = vmatpush1.bf16.msra.mxu1 %v2918_v8 }
  0xd4   :  { %2122 = vmatpush1.bf16.msra.mxu0 %v2921_v9  ;;  %1911 = vmatprep.subr.bf16.mxu1 %v2926_v10 }
  0xd5   :  { %2123 = vmatprep.subr.bf16.mxu0 %v2929_v11 }
  0xd7   :  { %1912 = vmatpush1.bf16.msra.mxu1 %v2924_v12 }
  0xd8   :  { %2124 = vmatpush1.bf16.msra.mxu0 %v2927_v13  ;;  %1913 = vmatprep.subr.bf16.mxu1 %v2932_v14 }
  0xd9   :  { %2125 = vmatprep.subr.bf16.mxu0 %v2935_v15 }
  0xdb   :  { %1914 = vmatpush1.bf16.msra.mxu1 %v2930_v16 }
  0xdc   :  { %2126 = vmatpush1.bf16.msra.mxu0 %v2933_v17  ;;  %1915 = vmatprep.subr.bf16.mxu1 %v2938_v18 }
  0xdd   :  { %2127 = vmatprep.subr.bf16.mxu0 %v2941_v19 }
  0xdf   :  { %1916 = vmatpush1.bf16.msra.mxu1 %v2936_v20 }
  0xe0   :  { %2128 = vmatpush1.bf16.msra.mxu0 %v2939_v21  ;;  %1917 = vmatprep.subr.bf16.mxu1 %v2944_v22 }
  0xe1   :  { %2129 = vmatprep.subr.bf16.mxu0 %v2947_v23 }
  0xe3   :  { %1918 = vmatpush1.bf16.msra.mxu1 %v2942_v24 }
  0xe4   :  { %2130 = vmatpush1.bf16.msra.mxu0 %v2945_v25  ;;  %1919 = vmatprep.subr.bf16.mxu1 %v2950_v26 }
  0xe5   :  { %2131 = vmatprep.subr.bf16.mxu0 %v2953_v27 }
  0xe7   :  { %1920 = vmatpush1.bf16.msra.mxu1 %v2948_v28 }
  0xe8   :  { %2132 = vmatpush1.bf16.msra.mxu0 %v2951_v29  ;;  %1921 = vmatprep.subr.bf16.mxu1 %v2956_v30 }
  0xe9   :  { %2133 = vmatprep.subr.bf16.mxu0 %v2959_v31 }
  0xeb   :  { %1922 = vmatpush1.bf16.msra.mxu1 %v2954_v32 }
  0xec   :  { %2134 = vmatpush1.bf16.msra.mxu0 %v2957_v33  ;;  %1923 = vmatprep.subr.bf16.mxu1 %v2962_v34 }
  0xed   :  { %2135 = vmatprep.subr.bf16.mxu0 %v2965_v35 }
  0xef   :  { %1924 = vmatpush1.bf16.msra.mxu1 %v2960_v36 }
  0xf0   :  { %2136 = vmatpush1.bf16.msra.mxu0 %v2963_v37  ;;  %1925 = vmatprep.subr.bf16.mxu1 %v2968_v38 }
  0xf1   :  { %2137 = vmatprep.subr.bf16.mxu0 %v2971_v39 }
  0xf3   :  { %1926 = vmatpush1.bf16.msra.mxu1 %v2966_v40 }
  0xf4   :  { %2138 = vmatpush1.bf16.msra.mxu0 %v2969_v41  ;;  %1927 = vmatprep.subr.bf16.mxu1 %v2974_v43 }
  0xf5   :  { %2139 = vmatprep.subr.bf16.mxu0 %v2977_v44 }
  0xf7   :  { %1928 = vmatpush1.bf16.msra.mxu1 %v2972_v48 }
  0xf8   :  { %2140 = vmatpush1.bf16.msra.mxu0 %v2975_v49  ;;  %1929 = vmatprep.subr.bf16.mxu1 %v2980_v42 }
  0xf9   :  { %2141 = vmatprep.subr.bf16.mxu0 %v2983_v45 }
  0xfb   :  { %1930 = vmatpush1.bf16.msra.mxu1 %v2978_v46 }
  0xfc   :  { %2142 = vmatpush1.bf16.msra.mxu0 %v2981_v47  ;;  %1931 = vmatprep.subr.bf16.mxu1 %v2986_v50 }
  0xfd   :  { %2143 = vmatprep.subr.bf16.mxu0 %v2989_v51 }
  0xff   :  { %1932 = vmatpush1.bf16.msra.mxu1 %v2984_v52 }
 0x100   :  { %2144 = vmatpush1.bf16.msra.mxu0 %v2987_v53 }
 0x102   :  { %1934 = vmatmul.mubr.bf16.vlgmr.msra.gmra.mrb[0].mxu1 %v2260_v62 }
 0x103   :  { %2146 = vmatmul.mubr.bf16.vlgmr.msra.gmra.mrb[0].mxu0 %v2268_v63  ;;  %1943 = vmatprep.mubr.bf16.mxu1 %v2277_v0 }
 0x104   :  { %2155 = vmatprep.mubr.bf16.mxu0 %v2285_v1 }
 0x10a   :  { %1944 = vmatmul.mubr.bf16.gmra.mrb[4].mxu1 %v2276_v2 }
 0x10b   :  { %2156 = vmatmul.mubr.bf16.gmra.mrb[4].mxu0 %v2284_v3 }
 0x1d5   :  { %v1935_v4 = vpop.f32.mrb[0].mxu1 }
 0x1d6   :  { %v2147_v5 = vpop.f32.mrb[0].mxu0  ;;  %v1937_v7 = vpop.f32.mrb[1].mxu1 }
 0x1d7   :  { %v2550_v6 = vadd.f32 %v2147_v5, %v1935_v4  ;;  %v2149_v56 = vpop.f32.mrb[1].mxu0  ;;  %v1939_v8 = vpop.f32.mrb[2].mxu1 }
 0x1d8   :  { %v2551_v59 = vadd.f32 %v2149_v56, %v1937_v7  ;;  %v2151_v60 = vpop.f32.mrb[2].mxu0  ;;  %v1941_v9 = vpop.f32.mrb[3].mxu1 }
 0x1d9   :  { %v2552_v61 = vadd.f32 %v2151_v60, %v1939_v8  ;;  %v2153_v10 = vpop.f32.mrb[3].mxu0  ;;  %v2212_v13 = vmul.f32 %v2550_v6, %v2550_v6 }
 0x1da   :  { %v2546_v11 = vpack.c.bf16 %v2551_v59, %v2550_v6  ;;  %v2553_v12 = vadd.f32 %v2153_v10, %v1941_v9  ;;  %v2213_v16 = vmul.f32 %v2551_v59, %v2551_v59 }
 0x1db   :  { %v2194_v14 = vadd.f32 %v2552_v61, %v2550_v6  ;;  %v2214_v15 = vmul.f32 %v2552_v61, %v2552_v61 }
 0x1dc   :  { %2190 = vst [vmem:[%s3953_s2] sm:$0xff] %v2546_v11  ;;  %v2547_v17 = vpack.c.bf16 %v2553_v12, %v2552_v61  ;;  %v2203_v18 = vadd.f32 %v2553_v12, %v2551_v59  ;;  %v2215_v19 = vmul.f32 %v2553_v12, %v2553_v12 }
 0x1dd   :  { %v2220_v20 = vadd.f32 %v2214_v15, %v2212_v13  ;;  %v1945_v22 = vpop.f32.mrb[4].mxu1 }
 0x1de   :  { %2191 = vst [vmem:[%s3953_s2 + $0x8] sm:$0xff] %v2547_v17  ;;  %v2229_v21 = vadd.f32 %v2215_v19, %v2213_v16  ;;  %v2157_v23 = vpop.f32.mrb[4].mxu0  ;;  %v1947_v25 = vpop.f32.mrb[5].mxu1 }
 0x1df   :  { %v2554_v24 = vadd.f32 %v2157_v23, %v1945_v22  ;;  %v2159_v26 = vpop.f32.mrb[5].mxu0  ;;  %v1949_v28 = vpop.f32.mrb[6].mxu1 }
 0x1e0   :  { %v2555_v27 = vadd.f32 %v2159_v26, %v1947_v25  ;;  %v2161_v29 = vpop.f32.mrb[6].mxu0  ;;  %v1951_v33 = vpop.f32.mrb[7].mxu1 }
 0x1e1   :  { %v2195_v30 = vadd.f32 %v2554_v24, %v2194_v14  ;;  %v2216_v31 = vmul.f32 %v2554_v24, %v2554_v24  ;;  %v2556_v32 = vadd.f32 %v2161_v29, %v1949_v28  ;;  %v2163_v34 = vpop.f32.mrb[7].mxu0 }
 0x1e2   :  { %v2548_v35 = vpack.c.bf16 %v2555_v27, %v2554_v24  ;;  %v2204_v36 = vadd.f32 %v2555_v27, %v2203_v18  ;;  %v2217_v37 = vmul.f32 %v2555_v27, %v2555_v27  ;;  %v2557_v38 = vadd.f32 %v2163_v34, %v1951_v33 }
 0x1e3   :  { %v2221_v39 = vadd.f32 %v2220_v20, %v2216_v31  ;;  %v2196_v40 = vadd.f32 %v2556_v32, %v2195_v30  ;;  %v2218_v41 = vmul.f32 %v2556_v32, %v2556_v32 }
 0x1e4   :  { %2192 = vst [vmem:[%s3953_s2 + $0x10] sm:$0xff] %v2548_v35  ;;  %v2230_v43 = vadd.f32 %v2229_v21, %v2217_v37  ;;  %v2549_v44 = vpack.c.bf16 %v2557_v38, %v2556_v32  ;;  %v2205_v48 = vadd.f32 %v2557_v38, %v2204_v36  ;;  %v2219_v49 = vmul.f32 %v2557_v38, %v2557_v38 }
 0x1e5   :  { %v2197_v42 = vrot.slane %v2196_v40, 4  ;;  %v2222_v45 = vadd.f32 %v2221_v39, %v2218_v41 }
 0x1e6   :  { %2193 = vst [vmem:[%s3953_s2 + $0x18] sm:$0xff] %v2549_v44  ;;  %v2206_v46 = vrot.slane %v2205_v48, 4  ;;  %v2231_v47 = vadd.f32 %v2230_v43, %v2219_v49 }
 0x1e7   :  { %v2198_v50 = vadd.f32 %v2197_v42, %v2196_v40  ;;  %v2223_v51 = vrot.slane %v2222_v45, 4 }
 0x1e8   :  { %v2207_v52 = vadd.f32 %v2206_v46, %v2205_v48  ;;  %v2232_v53 = vrot.slane %v2231_v47, 4 }
 0x1e9   :  { %v2199_v54 = vrot.slane %v2198_v50, 2  ;;  %v2224_v55 = vadd.f32 %v2223_v51, %v2222_v45 }
 0x1ea   :  { %v2208_v57 = vrot.slane %v2207_v52, 2  ;;  %v2233_v58 = vadd.f32 %v2232_v53, %v2231_v47 }
 0x1eb   :  { %v2200_v62 = vadd.f32 %v2199_v54, %v2198_v50  ;;  %v2225_v63 = vrot.slane %v2224_v55, 2 }
 0x1ec   :  { %v2209_v0 = vadd.f32 %v2208_v57, %v2207_v52  ;;  %v2234_v1 = vrot.slane %v2233_v58, 2 }
 0x1ed   :  { %v2201_v2 = vrot.slane %v2200_v62, 1  ;;  %v2226_v3 = vadd.f32 %v2225_v63, %v2224_v55 }
 0x1ee   :  { %v2210_v4 = vrot.slane %v2209_v0, 1  ;;  %v2235_v5 = vadd.f32 %v2234_v1, %v2233_v58 }
 0x1ef   :  { %v2202_v6 = vadd.f32 %v2201_v2, %v2200_v62  ;;  %v2227_v7 = vrot.slane %v2226_v3, 1 }
 0x1f0   :  { %v2211_v56 = vadd.f32 %v2210_v4, %v2209_v0  ;;  %v2236_v59 = vrot.slane %v2235_v5, 1 }
 0x1f1   :  { %v2228_v8 = vadd.f32 %v2227_v7, %v2226_v3  ;;  %2238 = vst [vmem:[%s3954_s3] sm:$0xff] %v2202_v6 }
 0x1f2   :  { %v2237_v60 = vadd.f32 %v2236_v59, %v2235_v5  ;;  %2239 = vst [vmem:[%s3954_s3 + $0x8] sm:$0xff] %v2211_v56 }
 0x1f3   :  { %2240 = vst [vmem:[%s3955_s4] sm:$0xff] %v2228_v8 }
 0x1f4   :  { %2241 = vst [vmem:[%s3955_s4 + $0x8] sm:$0xff] %v2237_v60 }

// kernel: discriminator_forward.13
= control target key start
LH: loop header
LB: loop body
LE: loop exit
PB: predicated region body
PF: predicated region fallthrough
CT: control target
= control target key end

     0   :  { %s13907_s1 = inlined_call_operand.vmem [shape: bf16[4096,512], index: 1, kind: input, shape index: {}]   ;;  %s13908_s0 = inlined_call_operand.vmem [shape: bf16[16,4096], index: 0, kind: input, shape index: {}]   ;;  %s13909_s2 = inlined_call_operand.vmem [shape: bf16[16,512], index: 2, kind: output, shape index: {0}]   ;;  %s13910_s3 = inlined_call_operand.vmem [shape: f32[1,8,512], index: 3, kind: output, shape index: {1}]   ;;  %s13911_s4 = inlined_call_operand.vmem [shape: f32[1,8,512], index: 4, kind: output, shape index: {2}]  }
   0x1   :  { %v9022_v0 = vld [vmem:[%s13907_s1 + $0x4] ss:$16 sps:$4 sm:$0xff]   ;;  %v9024_v1 = vld [vmem:[%s13907_s1 + $0xc] ss:$16 sps:$4 sm:$0xff]   ;;  %v9026_v2 = vld [vmem:[%s13907_s1] ss:$16 sps:$4 sm:$0xff]  }
   0x2   :  { %6350 = vmatprep.subr.bf16.mxu0 %v9022_v0  ;;  %v9027_v3 = vld [vmem:[%s13907_s1 + $0x8] ss:$16 sps:$4 sm:$0xff]   ;;  %7038 = vmatprep.subr.bf16.mxu1 %v9024_v1  ;;  %v9028_v4 = vld [vmem:[%s13907_s1 + $0x24] ss:$16 sps:$4 sm:$0xff]   ;;  %v9030_v5 = vld [vmem:[%s13907_s1 + $0x2c] ss:$16 sps:$4 sm:$0xff]  }
   0x3   :  { %6351 = vmatpush1.bf16.msra.mxu0 %v9026_v2  ;;  %7039 = vmatpush1.bf16.msra.mxu1 %v9027_v3  ;;  %v9032_v6 = vld [vmem:[%s13907_s1 + $0x20] ss:$16 sps:$4 sm:$0xff]   ;;  %v9033_v7 = vld [vmem:[%s13907_s1 + $0x28] ss:$16 sps:$4 sm:$0xff]   ;;  %v9034_v8 = vld [vmem:[%s13907_s1 + $0x44] ss:$16 sps:$4 sm:$0xff]  }
   0x4   :  { %6352 = vmatprep.subr.bf16.mxu0 %v9028_v4  ;;  %7040 = vmatprep.subr.bf16.mxu1 %v9030_v5  ;;  %v9036_v9 = vld [vmem:[%s13907_s1 + $0x4c] ss:$16 sps:$4 sm:$0xff]   ;;  %v9038_v10 = vld [vmem:[%s13907_s1 + $0x40] ss:$16 sps:$4 sm:$0xff]   ;;  %v9039_v11 = vld [vmem:[%s13907_s1 + $0x48] ss:$16 sps:$4 sm:$0xff]  }
   0x5   :  { %v9040_v12 = vld [vmem:[%s13907_s1 + $0x64] ss:$16 sps:$4 sm:$0xff]   ;;  %v9042_v13 = vld [vmem:[%s13907_s1 + $0x6c] ss:$16 sps:$4 sm:$0xff]   ;;  %v9044_v14 = vld [vmem:[%s13907_s1 + $0x60] ss:$16 sps:$4 sm:$0xff]  }
   0x6   :  { %v9045_v15 = vld [vmem:[%s13907_s1 + $0x68] ss:$16 sps:$4 sm:$0xff]   ;;  %v9046_v16 = vld [vmem:[%s13907_s1 + $0x84] ss:$16 sps:$4 sm:$0xff]   ;;  %v9048_v17 = vld [vmem:[%s13907_s1 + $0x8c] ss:$16 sps:$4 sm:$0xff]  }
   0x7   :  { %6353 = vmatpush1.bf16.msra.mxu0 %v9032_v6  ;;  %7041 = vmatpush1.bf16.msra.mxu1 %v9033_v7  ;;  %v9050_v18 = vld [vmem:[%s13907_s1 + $0x80] ss:$16 sps:$4 sm:$0xff]   ;;  %v9051_v19 = vld [vmem:[%s13907_s1 + $0x88] ss:$16 sps:$4 sm:$0xff]   ;;  %v9052_v20 = vld [vmem:[%s13907_s1 + $0xa4] ss:$16 sps:$4 sm:$0xff]  }
   0x8   :  { %6354 = vmatprep.subr.bf16.mxu0 %v9034_v8  ;;  %7042 = vmatprep.subr.bf16.mxu1 %v9036_v9  ;;  %v9054_v21 = vld [vmem:[%s13907_s1 + $0xac] ss:$16 sps:$4 sm:$0xff]   ;;  %v9056_v22 = vld [vmem:[%s13907_s1 + $0xa0] ss:$16 sps:$4 sm:$0xff]   ;;  %v9057_v23 = vld [vmem:[%s13907_s1 + $0xa8] ss:$16 sps:$4 sm:$0xff]  }
   0x9   :  { %v9058_v24 = vld [vmem:[%s13907_s1 + $0xc4] ss:$16 sps:$4 sm:$0xff]   ;;  %v9060_v25 = vld [vmem:[%s13907_s1 + $0xcc] ss:$16 sps:$4 sm:$0xff]   ;;  %v9062_v26 = vld [vmem:[%s13907_s1 + $0xc0] ss:$16 sps:$4 sm:$0xff]  }
   0xa   :  { %v9063_v27 = vld [vmem:[%s13907_s1 + $0xc8] ss:$16 sps:$4 sm:$0xff]   ;;  %v9064_v28 = vld [vmem:[%s13907_s1 + $0xe4] ss:$16 sps:$4 sm:$0xff]   ;;  %v9066_v29 = vld [vmem:[%s13907_s1 + $0xec] ss:$16 sps:$4 sm:$0xff]  }
   0xb   :  { %6355 = vmatpush1.bf16.msra.mxu0 %v9038_v10  ;;  %7043 = vmatpush1.bf16.msra.mxu1 %v9039_v11  ;;  %v9068_v30 = vld [vmem:[%s13907_s1 + $0xe0] ss:$16 sps:$4 sm:$0xff]   ;;  %v9069_v31 = vld [vmem:[%s13907_s1 + $0xe8] ss:$16 sps:$4 sm:$0xff]   ;;  %v9070_v32 = vld [vmem:[%s13907_s1 + $0x104] ss:$16 sps:$4 sm:$0xff]  }
   0xc   :  { %6356 = vmatprep.subr.bf16.mxu0 %v9040_v12  ;;  %7044 = vmatprep.subr.bf16.mxu1 %v9042_v13  ;;  %v9072_v33 = vld [vmem:[%s13907_s1 + $0x10c] ss:$16 sps:$4 sm:$0xff]   ;;  %v9074_v34 = vld [vmem:[%s13907_s1 + $0x100] ss:$16 sps:$4 sm:$0xff]   ;;  %v9075_v35 = vld [vmem:[%s13907_s1 + $0x108] ss:$16 sps:$4 sm:$0xff]  }
   0xd   :  { %v9076_v36 = vld [vmem:[%s13907_s1 + $0x124] ss:$16 sps:$4 sm:$0xff]   ;;  %v9078_v37 = vld [vmem:[%s13907_s1 + $0x12c] ss:$16 sps:$4 sm:$0xff]   ;;  %v9080_v38 = vld [vmem:[%s13907_s1 + $0x120] ss:$16 sps:$4 sm:$0xff]  }
   0xe   :  { %v9081_v39 = vld [vmem:[%s13907_s1 + $0x128] ss:$16 sps:$4 sm:$0xff]   ;;  %v9082_v40 = vld [vmem:[%s13907_s1 + $0x144] ss:$16 sps:$4 sm:$0xff]   ;;  %v9084_v41 = vld [vmem:[%s13907_s1 + $0x14c] ss:$16 sps:$4 sm:$0xff]  }
   0xf   :  { %6357 = vmatpush1.bf16.msra.mxu0 %v9044_v14  ;;  %7045 = vmatpush1.bf16.msra.mxu1 %v9045_v15  ;;  %v9086_v42 = vld [vmem:[%s13907_s1 + $0x140] ss:$16 sps:$4 sm:$0xff]   ;;  %v9087_v43 = vld [vmem:[%s13907_s1 + $0x148] ss:$16 sps:$4 sm:$0xff]   ;;  %v9088_v44 = vld [vmem:[%s13907_s1 + $0x164] ss:$16 sps:$4 sm:$0xff]  }
  0x10   :  { %6358 = vmatprep.subr.bf16.mxu0 %v9046_v16  ;;  %7046 = vmatprep.subr.bf16.mxu1 %v9048_v17  ;;  %v9090_v45 = vld [vmem:[%s13907_s1 + $0x16c] ss:$16 sps:$4 sm:$0xff]   ;;  %v14_v46 = vld [vmem:[%s13908_s0] sm:$0xff]  ;;  %v9093_v49 = vld [vmem:[%s13907_s1 + $0x168] ss:$16 sps:$4 sm:$0xff]  }
  0x11   :  { %v30_v47 = vld [vmem:[%s13908_s0 + $0x80] sm:$0xff]  ;;  %v9096_v52 = vld [vmem:[%s13907_s1 + $0x18c] ss:$16 sps:$4 sm:$0xff]   ;;  %v9099_v54 = vld [vmem:[%s13907_s1 + $0x188] ss:$16 sps:$4 sm:$0xff]  }
  0x12   :  { %v9092_v48 = vld [vmem:[%s13907_s1 + $0x160] ss:$16 sps:$4 sm:$0xff]   ;;  %v7839_v50 = vcombine.high %v14_v46, %v30_v47  ;;  %v9094_v51 = vld [vmem:[%s13907_s1 + $0x184] ss:$16 sps:$4 sm:$0xff]   ;;  %v9102_v56 = vld [vmem:[%s13907_s1 + $0x1ac] ss:$16 sps:$4 sm:$0xff]   ;;  %v7838_v5 = vcombine.low %v14_v46, %v30_v47 }
  0x13   :  { %6359 = vmatpush1.bf16.msra.mxu0 %v9050_v18  ;;  %7047 = vmatpush1.bf16.msra.mxu1 %v9051_v19  ;;  %v9098_v53 = vld [vmem:[%s13907_s1 + $0x180] ss:$16 sps:$4 sm:$0xff]   ;;  %v9100_v55 = vld [vmem:[%s13907_s1 + $0x1a4] ss:$16 sps:$4 sm:$0xff]   ;;  %v9105_v58 = vld [vmem:[%s13907_s1 + $0x1a8] ss:$16 sps:$4 sm:$0xff]  }
  0x14   :  { %6360 = vmatprep.subr.bf16.mxu0 %v9052_v20  ;;  %7048 = vmatprep.subr.bf16.mxu1 %v9054_v21  ;;  %v9104_v57 = vld [vmem:[%s13907_s1 + $0x1a0] ss:$16 sps:$4 sm:$0xff]   ;;  %v9106_v59 = vld [vmem:[%s13907_s1 + $0x1c4] ss:$16 sps:$4 sm:$0xff]   ;;  %v9108_v60 = vld [vmem:[%s13907_s1 + $0x1cc] ss:$16 sps:$4 sm:$0xff]  }
  0x15   :  { %6382 = vmatprep.mubr.bf16.mxu0 %v7839_v50  ;;  %7070 = vmatprep.mubr.bf16.mxu1 %v7839_v50  ;;  %v9110_v61 = vld [vmem:[%s13907_s1 + $0x1c0] ss:$16 sps:$4 sm:$0xff]   ;;  %v9111_v62 = vld [vmem:[%s13907_s1 + $0x1c8] ss:$16 sps:$4 sm:$0xff]   ;;  %v9112_v63 = vld [vmem:[%s13907_s1 + $0x1e4] ss:$16 sps:$4 sm:$0xff]  }
  0x16   :  { %v9114_v0 = vld [vmem:[%s13907_s1 + $0x1ec] ss:$16 sps:$4 sm:$0xff]   ;;  %v9116_v1 = vld [vmem:[%s13907_s1 + $0x1e0] ss:$16 sps:$4 sm:$0xff]   ;;  %v9117_v2 = vld [vmem:[%s13907_s1 + $0x1e8] ss:$16 sps:$4 sm:$0xff]  }
  0x17   :  { %6361 = vmatpush1.bf16.msra.mxu0 %v9056_v22  ;;  %7049 = vmatpush1.bf16.msra.mxu1 %v9057_v23  ;;  %v9120_v3 = vld [vmem:[%s13907_s1 + $0x204] ss:$16 sps:$4 sm:$0xff]   ;;  %v9123_v4 = vld [vmem:[%s13907_s1 + $0x20c] ss:$16 sps:$4 sm:$0xff]   ;;  %v9118_v6 = vld [vmem:[%s13907_s1 + $0x200] ss:$16 sps:$4 sm:$0xff]  }
  0x18   :  { %6362 = vmatprep.subr.bf16.mxu0 %v9058_v24  ;;  %7050 = vmatprep.subr.bf16.mxu1 %v9060_v25  ;;  %v9121_v7 = vld [vmem:[%s13907_s1 + $0x208] ss:$16 sps:$4 sm:$0xff]   ;;  %v9126_v8 = vld [vmem:[%s13907_s1 + $0x224] ss:$16 sps:$4 sm:$0xff]   ;;  %v9129_v9 = vld [vmem:[%s13907_s1 + $0x22c] ss:$16 sps:$4 sm:$0xff]  }
  0x19   :  { %v9124_v10 = vld [vmem:[%s13907_s1 + $0x220] ss:$16 sps:$4 sm:$0xff]   ;;  %v9127_v11 = vld [vmem:[%s13907_s1 + $0x228] ss:$16 sps:$4 sm:$0xff]   ;;  %v9132_v12 = vld [vmem:[%s13907_s1 + $0x244] ss:$16 sps:$4 sm:$0xff]  }
  0x1a   :  { %v9135_v13 = vld [vmem:[%s13907_s1 + $0x24c] ss:$16 sps:$4 sm:$0xff]   ;;  %v9130_v14 = vld [vmem:[%s13907_s1 + $0x240] ss:$16 sps:$4 sm:$0xff]   ;;  %v9133_v15 = vld [vmem:[%s13907_s1 + $0x248] ss:$16 sps:$4 sm:$0xff]  }
  0x1b   :  { %6363 = vmatpush1.bf16.msra.mxu0 %v9062_v26  ;;  %7051 = vmatpush1.bf16.msra.mxu1 %v9063_v27  ;;  %v9138_v16 = vld [vmem:[%s13907_s1 + $0x264] ss:$16 sps:$4 sm:$0xff]   ;;  %v9141_v17 = vld [vmem:[%s13907_s1 + $0x26c] ss:$16 sps:$4 sm:$0xff]   ;;  %v9136_v18 = vld [vmem:[%s13907_s1 + $0x260] ss:$16 sps:$4 sm:$0xff]  }
  0x1c   :  { %6364 = vmatprep.subr.bf16.mxu0 %v9064_v28  ;;  %7052 = vmatprep.subr.bf16.mxu1 %v9066_v29  ;;  %v9139_v19 = vld [vmem:[%s13907_s1 + $0x268] ss:$16 sps:$4 sm:$0xff]   ;;  %v9144_v20 = vld [vmem:[%s13907_s1 + $0x284] ss:$16 sps:$4 sm:$0xff]   ;;  %v9147_v21 = vld [vmem:[%s13907_s1 + $0x28c] ss:$16 sps:$4 sm:$0xff]  }
  0x1d   :  { %v9142_v22 = vld [vmem:[%s13907_s1 + $0x280] ss:$16 sps:$4 sm:$0xff]   ;;  %v9145_v23 = vld [vmem:[%s13907_s1 + $0x288] ss:$16 sps:$4 sm:$0xff]   ;;  %v9150_v24 = vld [vmem:[%s13907_s1 + $0x2a4] ss:$16 sps:$4 sm:$0xff]  }
  0x1e   :  { %v9153_v25 = vld [vmem:[%s13907_s1 + $0x2ac] ss:$16 sps:$4 sm:$0xff]   ;;  %v9148_v26 = vld [vmem:[%s13907_s1 + $0x2a0] ss:$16 sps:$4 sm:$0xff]   ;;  %v9151_v27 = vld [vmem:[%s13907_s1 + $0x2a8] ss:$16 sps:$4 sm:$0xff]  }
  0x1f   :  { %6365 = vmatpush1.bf16.msra.mxu0 %v9068_v30  ;;  %7053 = vmatpush1.bf16.msra.mxu1 %v9069_v31  ;;  %v9156_v28 = vld [vmem:[%s13907_s1 + $0x2c4] ss:$16 sps:$4 sm:$0xff]   ;;  %v9159_v29 = vld [vmem:[%s13907_s1 + $0x2cc] ss:$16 sps:$4 sm:$0xff]   ;;  %v9175_v46 = vld [vmem:[%s13907_s1 + $0x328] ss:$16 sps:$4 sm:$0xff]  }
  0x20   :  { %6366 = vmatprep.subr.bf16.mxu0 %v9070_v32  ;;  %7054 = vmatprep.subr.bf16.mxu1 %v9072_v33  ;;  %v10862_v30 = vld [vmem:[%s13908_s0 + $0x8] sm:$0xff]  ;;  %v9154_v32 = vld [vmem:[%s13907_s1 + $0x2c0] ss:$16 sps:$4 sm:$0xff]   ;;  %v9180_v47 = vld [vmem:[%s13907_s1 + $0x344] ss:$16 sps:$4 sm:$0xff]  }
  0x21   :  { %v10867_v31 = vld [vmem:[%s13908_s0 + $0x88] sm:$0xff] }
  0x22   :  { %v9157_v33 = vld [vmem:[%s13907_s1 + $0x2c8] ss:$16 sps:$4 sm:$0xff]  }
  0x23   :  { %6367 = vmatpush1.bf16.msra.mxu0 %v9074_v34  ;;  %7055 = vmatpush1.bf16.msra.mxu1 %v9075_v35  ;;  %v7841_v34 = vcombine.high %v10862_v30, %v10867_v31  ;;  %v9162_v35 = vld [vmem:[%s13907_s1 + $0x2e4] ss:$16 sps:$4 sm:$0xff]   ;;  %v9181_v50 = vld [vmem:[%s13907_s1 + $0x348] ss:$16 sps:$4 sm:$0xff]  }
  0x24   :  { %6368 = vmatprep.subr.bf16.mxu0 %v9076_v36  ;;  %7056 = vmatprep.subr.bf16.mxu1 %v9078_v37  ;;  %v9165_v36 = vld [vmem:[%s13907_s1 + $0x2ec] ss:$16 sps:$4 sm:$0xff]   ;;  %v9160_v37 = vld [vmem:[%s13907_s1 + $0x2e0] ss:$16 sps:$4 sm:$0xff]  }
  0x27   :  { %6369 = vmatpush1.bf16.msra.mxu0 %v9080_v38  ;;  %7057 = vmatpush1.bf16.msra.mxu1 %v9081_v39  ;;  %v9163_v38 = vld [vmem:[%s13907_s1 + $0x2e8] ss:$16 sps:$4 sm:$0xff]   ;;  %v9168_v39 = vld [vmem:[%s13907_s1 + $0x304] ss:$16 sps:$4 sm:$0xff]  }
  0x28   :  { %6370 = vmatprep.subr.bf16.mxu0 %v9082_v40  ;;  %7058 = vmatprep.subr.bf16.mxu1 %v9084_v41  ;;  %v9171_v40 = vld [vmem:[%s13907_s1 + $0x30c] ss:$16 sps:$4 sm:$0xff]   ;;  %v9166_v41 = vld [vmem:[%s13907_s1 + $0x300] ss:$16 sps:$4 sm:$0xff]  }
  0x2b   :  { %6371 = vmatpush1.bf16.msra.mxu0 %v9086_v42  ;;  %7059 = vmatpush1.bf16.msra.mxu1 %v9087_v43  ;;  %v9169_v42 = vld [vmem:[%s13907_s1 + $0x308] ss:$16 sps:$4 sm:$0xff]   ;;  %v9174_v43 = vld [vmem:[%s13907_s1 + $0x324] ss:$16 sps:$4 sm:$0xff]  }
  0x2c   :  { %6372 = vmatprep.subr.bf16.mxu0 %v9088_v44  ;;  %7060 = vmatprep.subr.bf16.mxu1 %v9090_v45  ;;  %v9177_v44 = vld [vmem:[%s13907_s1 + $0x32c] ss:$16 sps:$4 sm:$0xff]   ;;  %v9172_v45 = vld [vmem:[%s13907_s1 + $0x320] ss:$16 sps:$4 sm:$0xff]  }
  0x2f   :  { %6373 = vmatpush1.bf16.msra.mxu0 %v9092_v48  ;;  %7061 = vmatpush1.bf16.msra.mxu1 %v9093_v49  ;;  %v9183_v48 = vld [vmem:[%s13907_s1 + $0x34c] ss:$16 sps:$4 sm:$0xff]   ;;  %v9178_v49 = vld [vmem:[%s13907_s1 + $0x340] ss:$16 sps:$4 sm:$0xff]  }
  0x30   :  { %6374 = vmatprep.subr.bf16.mxu0 %v9094_v51  ;;  %7062 = vmatprep.subr.bf16.mxu1 %v9096_v52  ;;  %v9186_v51 = vld [vmem:[%s13907_s1 + $0x364] ss:$16 sps:$4 sm:$0xff]   ;;  %v9189_v52 = vld [vmem:[%s13907_s1 + $0x36c] ss:$16 sps:$4 sm:$0xff]  }
  0x33   :  { %6375 = vmatpush1.bf16.msra.mxu0 %v9098_v53  ;;  %7063 = vmatpush1.bf16.msra.mxu1 %v9099_v54  ;;  %v9184_v53 = vld [vmem:[%s13907_s1 + $0x360] ss:$16 sps:$4 sm:$0xff]   ;;  %v9187_v54 = vld [vmem:[%s13907_s1 + $0x368] ss:$16 sps:$4 sm:$0xff]  }
  0x34   :  { %6376 = vmatprep.subr.bf16.mxu0 %v9100_v55  ;;  %7064 = vmatprep.subr.bf16.mxu1 %v9102_v56  ;;  %v9192_v55 = vld [vmem:[%s13907_s1 + $0x384] ss:$16 sps:$4 sm:$0xff]   ;;  %v9195_v56 = vld [vmem:[%s13907_s1 + $0x38c] ss:$16 sps:$4 sm:$0xff]  }
  0x37   :  { %6377 = vmatpush1.bf16.msra.mxu0 %v9104_v57  ;;  %7065 = vmatpush1.bf16.msra.mxu1 %v9105_v58  ;;  %v9190_v57 = vld [vmem:[%s13907_s1 + $0x380] ss:$16 sps:$4 sm:$0xff]   ;;  %v9193_v58 = vld [vmem:[%s13907_s1 + $0x388] ss:$16 sps:$4 sm:$0xff]  }
  0x38   :  { %6378 = vmatprep.subr.bf16.mxu0 %v9106_v59  ;;  %7066 = vmatprep.subr.bf16.mxu1 %v9108_v60  ;;  %v9198_v59 = vld [vmem:[%s13907_s1 + $0x3a4] ss:$16 sps:$4 sm:$0xff]   ;;  %v9201_v60 = vld [vmem:[%s13907_s1 + $0x3ac] ss:$16 sps:$4 sm:$0xff]  }
  0x3b   :  { %6379 = vmatpush1.bf16.msra.mxu0 %v9110_v61  ;;  %7067 = vmatpush1.bf16.msra.mxu1 %v9111_v62  ;;  %v9196_v61 = vld [vmem:[%s13907_s1 + $0x3a0] ss:$16 sps:$4 sm:$0xff]   ;;  %v9199_v62 = vld [vmem:[%s13907_s1 + $0x3a8] ss:$16 sps:$4 sm:$0xff]  }
  0x3c   :  { %6380 = vmatprep.subr.bf16.mxu0 %v9112_v63  ;;  %7068 = vmatprep.subr.bf16.mxu1 %v9114_v0  ;;  %v9204_v63 = vld [vmem:[%s13907_s1 + $0x3c4] ss:$16 sps:$4 sm:$0xff]   ;;  %v9207_v0 = vld [vmem:[%s13907_s1 + $0x3cc] ss:$16 sps:$4 sm:$0xff]  }
  0x3f   :  { %6381 = vmatpush1.bf16.msra.mxu0 %v9116_v1  ;;  %7069 = vmatpush1.bf16.msra.mxu1 %v9117_v2  ;;  %v9202_v1 = vld [vmem:[%s13907_s1 + $0x3c0] ss:$16 sps:$4 sm:$0xff]   ;;  %v9205_v2 = vld [vmem:[%s13907_s1 + $0x3c8] ss:$16 sps:$4 sm:$0xff]  }
  0x40   :  { %6393 = vmatprep.subr.bf16.mxu0 %v9120_v3  ;;  %7081 = vmatprep.subr.bf16.mxu1 %v9123_v4  ;;  %v9210_v3 = vld [vmem:[%s13907_s1 + $0x3e4] ss:$16 sps:$4 sm:$0xff]   ;;  %v9213_v4 = vld [vmem:[%s13907_s1 + $0x3ec] ss:$16 sps:$4 sm:$0xff]  }
  0x42   :  { %6383 = vmatmul.mubr.bf16.vlgmr.msra.gmra.mrb[0].mxu0 %v7838_v5  ;;  %7071 = vmatmul.mubr.bf16.vlgmr.msra.gmra.mrb[0].mxu1 %v7838_v5  ;;  %v9208_v5 = vld [vmem:[%s13907_s1 + $0x3e0] ss:$16 sps:$4 sm:$0xff]  }
  0x43   :  { %6394 = vmatpush1.bf16.msra.mxu0 %v9118_v6  ;;  %7082 = vmatpush1.bf16.msra.mxu1 %v9121_v7  ;;  %v9211_v6 = vld [vmem:[%s13907_s1 + $0x3e8] ss:$16 sps:$4 sm:$0xff]   ;;  %v9216_v7 = vld [vmem:[%s13907_s1 + $0x404] ss:$16 sps:$4 sm:$0xff]  }
  0x44   :  { %6395 = vmatprep.subr.bf16.mxu0 %v9126_v8  ;;  %7083 = vmatprep.subr.bf16.mxu1 %v9129_v9  ;;  %v9219_v8 = vld [vmem:[%s13907_s1 + $0x40c] ss:$16 sps:$4 sm:$0xff]   ;;  %v7840_v9 = vcombine.low %v10862_v30, %v10867_v31  ;;  %v9241_v30 = vld [vmem:[%s13907_s1 + $0x488] ss:$16 sps:$4 sm:$0xff]   ;;  %v9246_v31 = vld [vmem:[%s13907_s1 + $0x4a4] ss:$16 sps:$4 sm:$0xff]  }
  0x45   :  { %6425 = vmatprep.mubr.bf16.mxu0 %v7841_v34  ;;  %7113 = vmatprep.mubr.bf16.mxu1 %v7841_v34  ;;  %v9247_v34 = vld [vmem:[%s13907_s1 + $0x4a8] ss:$16 sps:$4 sm:$0xff]  }
  0x47   :  { %6396 = vmatpush1.bf16.msra.mxu0 %v9124_v10  ;;  %7084 = vmatpush1.bf16.msra.mxu1 %v9127_v11  ;;  %v9214_v10 = vld [vmem:[%s13907_s1 + $0x400] ss:$16 sps:$4 sm:$0xff]   ;;  %v9217_v11 = vld [vmem:[%s13907_s1 + $0x408] ss:$16 sps:$4 sm:$0xff]  }
  0x48   :  { %6397 = vmatprep.subr.bf16.mxu0 %v9132_v12  ;;  %7085 = vmatprep.subr.bf16.mxu1 %v9135_v13  ;;  %v9222_v12 = vld [vmem:[%s13907_s1 + $0x424] ss:$16 sps:$4 sm:$0xff]   ;;  %v9225_v13 = vld [vmem:[%s13907_s1 + $0x42c] ss:$16 sps:$4 sm:$0xff]  }
  0x4b   :  { %6398 = vmatpush1.bf16.msra.mxu0 %v9130_v14  ;;  %7086 = vmatpush1.bf16.msra.mxu1 %v9133_v15  ;;  %v11008_v14 = vld [vmem:[%s13908_s0 + $0x10] sm:$0xff] }
  0x4c   :  { %6399 = vmatprep.subr.bf16.mxu0 %v9138_v16  ;;  %7087 = vmatprep.subr.bf16.mxu1 %v9141_v17  ;;  %v11013_v15 = vld [vmem:[%s13908_s0 + $0x90] sm:$0xff] }
  0x4d   :  { %v7843_v16 = vcombine.high %v11008_v14, %v11013_v15  ;;  %v9220_v17 = vld [vmem:[%s13907_s1 + $0x420] ss:$16 sps:$4 sm:$0xff]  }
  0x4f   :  { %6400 = vmatpush1.bf16.msra.mxu0 %v9136_v18  ;;  %7088 = vmatpush1.bf16.msra.mxu1 %v9139_v19  ;;  %v9223_v18 = vld [vmem:[%s13907_s1 + $0x428] ss:$16 sps:$4 sm:$0xff]   ;;  %v9228_v19 = vld [vmem:[%s13907_s1 + $0x444] ss:$16 sps:$4 sm:$0xff]  }
  0x50   :  { %6401 = vmatprep.subr.bf16.mxu0 %v9144_v20  ;;  %7089 = vmatprep.subr.bf16.mxu1 %v9147_v21  ;;  %v9231_v20 = vld [vmem:[%s13907_s1 + $0x44c] ss:$16 sps:$4 sm:$0xff]   ;;  %v9226_v21 = vld [vmem:[%s13907_s1 + $0x440] ss:$16 sps:$4 sm:$0xff]  }
  0x53   :  { %6402 = vmatpush1.bf16.msra.mxu0 %v9142_v22  ;;  %7090 = vmatpush1.bf16.msra.mxu1 %v9145_v23  ;;  %v9229_v22 = vld [vmem:[%s13907_s1 + $0x448] ss:$16 sps:$4 sm:$0xff]   ;;  %v9234_v23 = vld [vmem:[%s13907_s1 + $0x464] ss:$16 sps:$4 sm:$0xff]  }
  0x54   :  { %6403 = vmatprep.subr.bf16.mxu0 %v9150_v24  ;;  %7091 = vmatprep.subr.bf16.mxu1 %v9153_v25  ;;  %v9237_v24 = vld [vmem:[%s13907_s1 + $0x46c] ss:$16 sps:$4 sm:$0xff]   ;;  %v9232_v25 = vld [vmem:[%s13907_s1 + $0x460] ss:$16 sps:$4 sm:$0xff]  }
  0x57   :  { %6404 = vmatpush1.bf16.msra.mxu0 %v9148_v26  ;;  %7092 = vmatpush1.bf16.msra.mxu1 %v9151_v27  ;;  %v9235_v26 = vld [vmem:[%s13907_s1 + $0x468] ss:$16 sps:$4 sm:$0xff]   ;;  %v9240_v27 = vld [vmem:[%s13907_s1 + $0x484] ss:$16 sps:$4 sm:$0xff]  }
  0x58   :  { %6405 = vmatprep.subr.bf16.mxu0 %v9156_v28  ;;  %7093 = vmatprep.subr.bf16.mxu1 %v9159_v29  ;;  %v9243_v28 = vld [vmem:[%s13907_s1 + $0x48c] ss:$16 sps:$4 sm:$0xff]   ;;  %v9238_v29 = vld [vmem:[%s13907_s1 + $0x480] ss:$16 sps:$4 sm:$0xff]  }
  0x5b   :  { %6406 = vmatpush1.bf16.msra.mxu0 %v9154_v32  ;;  %7094 = vmatpush1.bf16.msra.mxu1 %v9157_v33  ;;  %v9249_v32 = vld [vmem:[%s13907_s1 + $0x4ac] ss:$16 sps:$4 sm:$0xff]   ;;  %v9244_v33 = vld [vmem:[%s13907_s1 + $0x4a0] ss:$16 sps:$4 sm:$0xff]  }
  0x5c   :  { %6407 = vmatprep.subr.bf16.mxu0 %v9162_v35  ;;  %7095 = vmatprep.subr.bf16.mxu1 %v9165_v36  ;;  %v9252_v35 = vld [vmem:[%s13907_s1 + $0x4c4] ss:$16 sps:$4 sm:$0xff]   ;;  %v9255_v36 = vld [vmem:[%s13907_s1 + $0x4cc] ss:$16 sps:$4 sm:$0xff]  }
  0x5f   :  { %6408 = vmatpush1.bf16.msra.mxu0 %v9160_v37  ;;  %7096 = vmatpush1.bf16.msra.mxu1 %v9163_v38  ;;  %v9250_v37 = vld [vmem:[%s13907_s1 + $0x4c0] ss:$16 sps:$4 sm:$0xff]   ;;  %v9253_v38 = vld [vmem:[%s13907_s1 + $0x4c8] ss:$16 sps:$4 sm:$0xff]  }
  0x60   :  { %6409 = vmatprep.subr.bf16.mxu0 %v9168_v39  ;;  %7097 = vmatprep.subr.bf16.mxu1 %v9171_v40  ;;  %v9258_v39 = vld [vmem:[%s13907_s1 + $0x4e4] ss:$16 sps:$4 sm:$0xff]   ;;  %v9261_v40 = vld [vmem:[%s13907_s1 + $0x4ec] ss:$16 sps:$4 sm:$0xff]  }
  0x63   :  { %6410 = vmatpush1.bf16.msra.mxu0 %v9166_v41  ;;  %7098 = vmatpush1.bf16.msra.mxu1 %v9169_v42  ;;  %v9256_v41 = vld [vmem:[%s13907_s1 + $0x4e0] ss:$16 sps:$4 sm:$0xff]   ;;  %v9259_v42 = vld [vmem:[%s13907_s1 + $0x4e8] ss:$16 sps:$4 sm:$0xff]  }
  0x64   :  { %6411 = vmatprep.subr.bf16.mxu0 %v9174_v43  ;;  %7099 = vmatprep.subr.bf16.mxu1 %v9177_v44  ;;  %v9264_v43 = vld [vmem:[%s13907_s1 + $0x504] ss:$16 sps:$4 sm:$0xff]   ;;  %v9267_v44 = vld [vmem:[%s13907_s1 + $0x50c] ss:$16 sps:$4 sm:$0xff]  }
  0x67   :  { %6412 = vmatpush1.bf16.msra.mxu0 %v9172_v45  ;;  %7100 = vmatpush1.bf16.msra.mxu1 %v9175_v46  ;;  %v9262_v45 = vld [vmem:[%s13907_s1 + $0x500] ss:$16 sps:$4 sm:$0xff]   ;;  %v9265_v46 = vld [vmem:[%s13907_s1 + $0x508] ss:$16 sps:$4 sm:$0xff]  }
  0x68   :  { %6413 = vmatprep.subr.bf16.mxu0 %v9180_v47  ;;  %7101 = vmatprep.subr.bf16.mxu1 %v9183_v48  ;;  %v9270_v47 = vld [vmem:[%s13907_s1 + $0x524] ss:$16 sps:$4 sm:$0xff]   ;;  %v9273_v48 = vld [vmem:[%s13907_s1 + $0x52c] ss:$16 sps:$4 sm:$0xff]  }
  0x6b   :  { %6414 = vmatpush1.bf16.msra.mxu0 %v9178_v49  ;;  %7102 = vmatpush1.bf16.msra.mxu1 %v9181_v50  ;;  %v9268_v49 = vld [vmem:[%s13907_s1 + $0x520] ss:$16 sps:$4 sm:$0xff]   ;;  %v9271_v50 = vld [vmem:[%s13907_s1 + $0x528] ss:$16 sps:$4 sm:$0xff]  }
  0x6c   :  { %6415 = vmatprep.subr.bf16.mxu0 %v9186_v51  ;;  %7103 = vmatprep.subr.bf16.mxu1 %v9189_v52  ;;  %v9276_v51 = vld [vmem:[%s13907_s1 + $0x544] ss:$16 sps:$4 sm:$0xff]   ;;  %v9279_v52 = vld [vmem:[%s13907_s1 + $0x54c] ss:$16 sps:$4 sm:$0xff]  }
  0x6f   :  { %6416 = vmatpush1.bf16.msra.mxu0 %v9184_v53  ;;  %7104 = vmatpush1.bf16.msra.mxu1 %v9187_v54  ;;  %v9274_v53 = vld [vmem:[%s13907_s1 + $0x540] ss:$16 sps:$4 sm:$0xff]   ;;  %v9277_v54 = vld [vmem:[%s13907_s1 + $0x548] ss:$16 sps:$4 sm:$0xff]  }
  0x70   :  { %6417 = vmatprep.subr.bf16.mxu0 %v9192_v55  ;;  %7105 = vmatprep.subr.bf16.mxu1 %v9195_v56  ;;  %v9282_v55 = vld [vmem:[%s13907_s1 + $0x564] ss:$16 sps:$4 sm:$0xff]   ;;  %v9285_v56 = vld [vmem:[%s13907_s1 + $0x56c] ss:$16 sps:$4 sm:$0xff]  }
  0x73   :  { %6418 = vmatpush1.bf16.msra.mxu0 %v9190_v57  ;;  %7106 = vmatpush1.bf16.msra.mxu1 %v9193_v58  ;;  %v9280_v57 = vld [vmem:[%s13907_s1 + $0x560] ss:$16 sps:$4 sm:$0xff]   ;;  %v9283_v58 = vld [vmem:[%s13907_s1 + $0x568] ss:$16 sps:$4 sm:$0xff]  }
  0x74   :  { %6419 = vmatprep.subr.bf16.mxu0 %v9198_v59  ;;  %7107 = vmatprep.subr.bf16.mxu1 %v9201_v60  ;;  %v9288_v59 = vld [vmem:[%s13907_s1 + $0x584] ss:$16 sps:$4 sm:$0xff]   ;;  %v9291_v60 = vld [vmem:[%s13907_s1 + $0x58c] ss:$16 sps:$4 sm:$0xff]  }
  0x77   :  { %6420 = vmatpush1.bf16.msra.mxu0 %v9196_v61  ;;  %7108 = vmatpush1.bf16.msra.mxu1 %v9199_v62  ;;  %v9286_v61 = vld [vmem:[%s13907_s1 + $0x580] ss:$16 sps:$4 sm:$0xff]   ;;  %v9289_v62 = vld [vmem:[%s13907_s1 + $0x588] ss:$16 sps:$4 sm:$0xff]  }
  0x78   :  { %6421 = vmatprep.subr.bf16.mxu0 %v9204_v63  ;;  %7109 = vmatprep.subr.bf16.mxu1 %v9207_v0  ;;  %v9294_v63 = vld [vmem:[%s13907_s1 + $0x5a4] ss:$16 sps:$4 sm:$0xff]   ;;  %v9297_v0 = vld [vmem:[%s13907_s1 + $0x5ac] ss:$16 sps:$4 sm:$0xff]  }
  0x7b   :  { %6422 = vmatpush1.bf16.msra.mxu0 %v9202_v1  ;;  %7110 = vmatpush1.bf16.msra.mxu1 %v9205_v2  ;;  %v9292_v1 = vld [vmem:[%s13907_s1 + $0x5a0] ss:$16 sps:$4 sm:$0xff]   ;;  %v9295_v2 = vld [vmem:[%s13907_s1 + $0x5a8] ss:$16 sps:$4 sm:$0xff]  }
  0x7c   :  { %6423 = vmatprep.subr.bf16.mxu0 %v9210_v3  ;;  %7111 = vmatprep.subr.bf16.mxu1 %v9213_v4  ;;  %v9300_v3 = vld [vmem:[%s13907_s1 + $0x5c4] ss:$16 sps:$4 sm:$0xff]   ;;  %v9303_v4 = vld [vmem:[%s13907_s1 + $0x5cc] ss:$16 sps:$4 sm:$0xff]  }
  0x7f   :  { %6424 = vmatpush1.bf16.msra.mxu0 %v9208_v5  ;;  %7112 = vmatpush1.bf16.msra.mxu1 %v9211_v6  ;;  %v9298_v5 = vld [vmem:[%s13907_s1 + $0x5c0] ss:$16 sps:$4 sm:$0xff]   ;;  %v9301_v6 = vld [vmem:[%s13907_s1 + $0x5c8] ss:$16 sps:$4 sm:$0xff]  }
  0x80   :  { %6436 = vmatprep.subr.bf16.mxu0 %v9216_v7  ;;  %7124 = vmatprep.subr.bf16.mxu1 %v9219_v8  ;;  %v9306_v7 = vld [vmem:[%s13907_s1 + $0x5e4] ss:$16 sps:$4 sm:$0xff]   ;;  %v9309_v8 = vld [vmem:[%s13907_s1 + $0x5ec] ss:$16 sps:$4 sm:$0xff]  }
  0x82   :  { %6426 = vmatmul.mubr.bf16.vlgmr.msra.gmra.mrb[0].mxu0 %v7840_v9  ;;  %7114 = vmatmul.mubr.bf16.vlgmr.msra.gmra.mrb[0].mxu1 %v7840_v9  ;;  %v9304_v9 = vld [vmem:[%s13907_s1 + $0x5e0] ss:$16 sps:$4 sm:$0xff]  }
  0x83   :  { %6437 = vmatpush1.bf16.msra.mxu0 %v9214_v10  ;;  %7125 = vmatpush1.bf16.msra.mxu1 %v9217_v11  ;;  %v9307_v10 = vld [vmem:[%s13907_s1 + $0x5e8] ss:$16 sps:$4 sm:$0xff]   ;;  %v9312_v11 = vld [vmem:[%s13907_s1 + $0x604] ss:$16 sps:$4 sm:$0xff]  }
  0x84   :  { %6438 = vmatprep.subr.bf16.mxu0 %v9222_v12  ;;  %7126 = vmatprep.subr.bf16.mxu1 %v9225_v13  ;;  %v9315_v12 = vld [vmem:[%s13907_s1 + $0x60c] ss:$16 sps:$4 sm:$0xff]   ;;  %v9310_v13 = vld [vmem:[%s13907_s1 + $0x600] ss:$16 sps:$4 sm:$0xff]  }
  0x85   :  { %6468 = vmatprep.mubr.bf16.mxu0 %v7843_v16  ;;  %7156 = vmatprep.mubr.bf16.mxu1 %v7843_v16  ;;  %v9313_v16 = vld [vmem:[%s13907_s1 + $0x608] ss:$16 sps:$4 sm:$0xff]  }
  0x87   :  { %6439 = vmatpush1.bf16.msra.mxu0 %v9220_v17  ;;  %7127 = vmatpush1.bf16.msra.mxu1 %v9223_v18  ;;  %v7842_v17 = vcombine.low %v11008_v14, %v11013_v15  ;;  %v11208_v18 = vld [vmem:[%s13908_s0 + $0x18] sm:$0xff] }
  0x88   :  { %6440 = vmatprep.subr.bf16.mxu0 %v9228_v19  ;;  %7128 = vmatprep.subr.bf16.mxu1 %v9231_v20  ;;  %v11213_v19 = vld [vmem:[%s13908_s0 + $0x98] sm:$0xff]  ;;  %v9318_v20 = vld [vmem:[%s13907_s1 + $0x624] ss:$16 sps:$4 sm:$0xff]  }
  0x89   :  { %v9321_v14 = vld [vmem:[%s13907_s1 + $0x62c] ss:$16 sps:$4 sm:$0xff]   ;;  %v7845_v15 = vcombine.high %v11208_v18, %v11213_v19 }
  0x8b   :  { %6441 = vmatpush1.bf16.msra.mxu0 %v9226_v21  ;;  %7129 = vmatpush1.bf16.msra.mxu1 %v9229_v22  ;;  %v9316_v21 = vld [vmem:[%s13907_s1 + $0x620] ss:$16 sps:$4 sm:$0xff]   ;;  %v9319_v22 = vld [vmem:[%s13907_s1 + $0x628] ss:$16 sps:$4 sm:$0xff]  }
  0x8c   :  { %6442 = vmatprep.subr.bf16.mxu0 %v9234_v23  ;;  %7130 = vmatprep.subr.bf16.mxu1 %v9237_v24  ;;  %v9324_v23 = vld [vmem:[%s13907_s1 + $0x644] ss:$16 sps:$4 sm:$0xff]   ;;  %v9327_v24 = vld [vmem:[%s13907_s1 + $0x64c] ss:$16 sps:$4 sm:$0xff]  }
  0x8f   :  { %6443 = vmatpush1.bf16.msra.mxu0 %v9232_v25  ;;  %7131 = vmatpush1.bf16.msra.mxu1 %v9235_v26  ;;  %v9322_v25 = vld [vmem:[%s13907_s1 + $0x640] ss:$16 sps:$4 sm:$0xff]   ;;  %v9325_v26 = vld [vmem:[%s13907_s1 + $0x648] ss:$16 sps:$4 sm:$0xff]  }
  0x90   :  { %6444 = vmatprep.subr.bf16.mxu0 %v9240_v27  ;;  %7132 = vmatprep.subr.bf16.mxu1 %v9243_v28  ;;  %v9330_v27 = vld [vmem:[%s13907_s1 + $0x664] ss:$16 sps:$4 sm:$0xff]   ;;  %v9333_v28 = vld [vmem:[%s13907_s1 + $0x66c] ss:$16 sps:$4 sm:$0xff]  }
  0x93   :  { %6445 = vmatpush1.bf16.msra.mxu0 %v9238_v29  ;;  %7133 = vmatpush1.bf16.msra.mxu1 %v9241_v30  ;;  %v9328_v29 = vld [vmem:[%s13907_s1 + $0x660] ss:$16 sps:$4 sm:$0xff]   ;;  %v9331_v30 = vld [vmem:[%s13907_s1 + $0x668] ss:$16 sps:$4 sm:$0xff]  }
  0x94   :  { %6446 = vmatprep.subr.bf16.mxu0 %v9246_v31  ;;  %7134 = vmatprep.subr.bf16.mxu1 %v9249_v32  ;;  %v9336_v31 = vld [vmem:[%s13907_s1 + $0x684] ss:$16 sps:$4 sm:$0xff]   ;;  %v9339_v32 = vld [vmem:[%s13907_s1 + $0x68c] ss:$16 sps:$4 sm:$0xff]  }
  0x97   :  { %6447 = vmatpush1.bf16.msra.mxu0 %v9244_v33  ;;  %7135 = vmatpush1.bf16.msra.mxu1 %v9247_v34  ;;  %v9334_v33 = vld [vmem:[%s13907_s1 + $0x680] ss:$16 sps:$4 sm:$0xff]   ;;  %v9337_v34 = vld [vmem:[%s13907_s1 + $0x688] ss:$16 sps:$4 sm:$0xff]  }
  0x98   :  { %6448 = vmatprep.subr.bf16.mxu0 %v9252_v35  ;;  %7136 = vmatprep.subr.bf16.mxu1 %v9255_v36  ;;  %v9342_v35 = vld [vmem:[%s13907_s1 + $0x6a4] ss:$16 sps:$4 sm:$0xff]   ;;  %v9345_v36 = vld [vmem:[%s13907_s1 + $0x6ac] ss:$16 sps:$4 sm:$0xff]  }
  0x9b   :  { %6449 = vmatpush1.bf16.msra.mxu0 %v9250_v37  ;;  %7137 = vmatpush1.bf16.msra.mxu1 %v9253_v38  ;;  %v9340_v37 = vld [vmem:[%s13907_s1 + $0x6a0] ss:$16 sps:$4 sm:$0xff]   ;;  %v9343_v38 = vld [vmem:[%s13907_s1 + $0x6a8] ss:$16 sps:$4 sm:$0xff]  }
  0x9c   :  { %6450 = vmatprep.subr.bf16.mxu0 %v9258_v39  ;;  %7138 = vmatprep.subr.bf16.mxu1 %v9261_v40  ;;  %v9348_v39 = vld [vmem:[%s13907_s1 + $0x6c4] ss:$16 sps:$4 sm:$0xff]   ;;  %v9351_v40 = vld [vmem:[%s13907_s1 + $0x6cc] ss:$16 sps:$4 sm:$0xff]  }
  0x9f   :  { %6451 = vmatpush1.bf16.msra.mxu0 %v9256_v41  ;;  %7139 = vmatpush1.bf16.msra.mxu1 %v9259_v42  ;;  %v9346_v41 = vld [vmem:[%s13907_s1 + $0x6c0] ss:$16 sps:$4 sm:$0xff]   ;;  %v9349_v42 = vld [vmem:[%s13907_s1 + $0x6c8] ss:$16 sps:$4 sm:$0xff]  }
  0xa0   :  { %6452 = vmatprep.subr.bf16.mxu0 %v9264_v43  ;;  %7140 = vmatprep.subr.bf16.mxu1 %v9267_v44  ;;  %v9354_v43 = vld [vmem:[%s13907_s1 + $0x6e4] ss:$16 sps:$4 sm:$0xff]   ;;  %v9357_v44 = vld [vmem:[%s13907_s1 + $0x6ec] ss:$16 sps:$4 sm:$0xff]  }
  0xa3   :  { %6453 = vmatpush1.bf16.msra.mxu0 %v9262_v45  ;;  %7141 = vmatpush1.bf16.msra.mxu1 %v9265_v46  ;;  %v9352_v45 = vld [vmem:[%s13907_s1 + $0x6e0] ss:$16 sps:$4 sm:$0xff]   ;;  %v9355_v46 = vld [vmem:[%s13907_s1 + $0x6e8] ss:$16 sps:$4 sm:$0xff]  }
  0xa4   :  { %6454 = vmatprep.subr.bf16.mxu0 %v9270_v47  ;;  %7142 = vmatprep.subr.bf16.mxu1 %v9273_v48  ;;  %v9360_v47 = vld [vmem:[%s13907_s1 + $0x704] ss:$16 sps:$4 sm:$0xff]   ;;  %v9363_v48 = vld [vmem:[%s13907_s1 + $0x70c] ss:$16 sps:$4 sm:$0xff]  }
  0xa7   :  { %6455 = vmatpush1.bf16.msra.mxu0 %v9268_v49  ;;  %7143 = vmatpush1.bf16.msra.mxu1 %v9271_v50  ;;  %v9358_v49 = vld [vmem:[%s13907_s1 + $0x700] ss:$16 sps:$4 sm:$0xff]   ;;  %v9361_v50 = vld [vmem:[%s13907_s1 + $0x708] ss:$16 sps:$4 sm:$0xff]  }
  0xa8   :  { %6456 = vmatprep.subr.bf16.mxu0 %v9276_v51  ;;  %7144 = vmatprep.subr.bf16.mxu1 %v9279_v52  ;;  %v9366_v51 = vld [vmem:[%s13907_s1 + $0x724] ss:$16 sps:$4 sm:$0xff]   ;;  %v9369_v52 = vld [vmem:[%s13907_s1 + $0x72c] ss:$16 sps:$4 sm:$0xff]  }
  0xab   :  { %6457 = vmatpush1.bf16.msra.mxu0 %v9274_v53  ;;  %7145 = vmatpush1.bf16.msra.mxu1 %v9277_v54  ;;  %v9364_v53 = vld [vmem:[%s13907_s1 + $0x720] ss:$16 sps:$4 sm:$0xff]   ;;  %v9367_v54 = vld [vmem:[%s13907_s1 + $0x728] ss:$16 sps:$4 sm:$0xff]  }
  0xac   :  { %6458 = vmatprep.subr.bf16.mxu0 %v9282_v55  ;;  %7146 = vmatprep.subr.bf16.mxu1 %v9285_v56  ;;  %v9372_v55 = vld [vmem:[%s13907_s1 + $0x744] ss:$16 sps:$4 sm:$0xff]   ;;  %v9375_v56 = vld [vmem:[%s13907_s1 + $0x74c] ss:$16 sps:$4 sm:$0xff]  }
  0xaf   :  { %6459 = vmatpush1.bf16.msra.mxu0 %v9280_v57  ;;  %7147 = vmatpush1.bf16.msra.mxu1 %v9283_v58  ;;  %v9370_v57 = vld [vmem:[%s13907_s1 + $0x740] ss:$16 sps:$4 sm:$0xff]   ;;  %v9373_v58 = vld [vmem:[%s13907_s1 + $0x748] ss:$16 sps:$4 sm:$0xff]  }
  0xb0   :  { %6460 = vmatprep.subr.bf16.mxu0 %v9288_v59  ;;  %7148 = vmatprep.subr.bf16.mxu1 %v9291_v60  ;;  %v9378_v59 = vld [vmem:[%s13907_s1 + $0x764] ss:$16 sps:$4 sm:$0xff]   ;;  %v9381_v60 = vld [vmem:[%s13907_s1 + $0x76c] ss:$16 sps:$4 sm:$0xff]  }
  0xb3   :  { %6461 = vmatpush1.bf16.msra.mxu0 %v9286_v61  ;;  %7149 = vmatpush1.bf16.msra.mxu1 %v9289_v62  ;;  %v9376_v61 = vld [vmem:[%s13907_s1 + $0x760] ss:$16 sps:$4 sm:$0xff]   ;;  %v9379_v62 = vld [vmem:[%s13907_s1 + $0x768] ss:$16 sps:$4 sm:$0xff]  }
  0xb4   :  { %6462 = vmatprep.subr.bf16.mxu0 %v9294_v63  ;;  %7150 = vmatprep.subr.bf16.mxu1 %v9297_v0  ;;  %v9384_v63 = vld [vmem:[%s13907_s1 + $0x784] ss:$16 sps:$4 sm:$0xff]   ;;  %v9387_v0 = vld [vmem:[%s13907_s1 + $0x78c] ss:$16 sps:$4 sm:$0xff]  }
  0xb7   :  { %6463 = vmatpush1.bf16.msra.mxu0 %v9292_v1  ;;  %7151 = vmatpush1.bf16.msra.mxu1 %v9295_v2  ;;  %v9382_v1 = vld [vmem:[%s13907_s1 + $0x780] ss:$16 sps:$4 sm:$0xff]   ;;  %v9385_v2 = vld [vmem:[%s13907_s1 + $0x788] ss:$16 sps:$4 sm:$0xff]  }
  0xb8   :  { %6464 = vmatprep.subr.bf16.mxu0 %v9300_v3  ;;  %7152 = vmatprep.subr.bf16.mxu1 %v9303_v4  ;;  %v9390_v3 = vld [vmem:[%s13907_s1 + $0x7a4] ss:$16 sps:$4 sm:$0xff]   ;;  %v9393_v4 = vld [vmem:[%s13907_s1 + $0x7ac] ss:$16 sps:$4 sm:$0xff]  }
  0xbb   :  { %6465 = vmatpush1.bf16.msra.mxu0 %v9298_v5  ;;  %7153 = vmatpush1.bf16.msra.mxu1 %v9301_v6  ;;  %v9388_v5 = vld [vmem:[%s13907_s1 + $0x7a0] ss:$16 sps:$4 sm:$0xff]   ;;  %v9391_v6 = vld [vmem:[%s13907_s1 + $0x7a8] ss:$16 sps:$4 sm:$0xff]  }
  0xbc   :  { %6466 = vmatprep.subr.bf16.mxu0 %v9306_v7  ;;  %7154 = vmatprep.subr.bf16.mxu1 %v9309_v8  ;;  %v9396_v7 = vld [vmem:[%s13907_s1 + $0x7c4] ss:$16 sps:$4 sm:$0xff]   ;;  %v9399_v8 = vld [vmem:[%s13907_s1 + $0x7cc] ss:$16 sps:$4 sm:$0xff]  }
  0xbf   :  { %6467 = vmatpush1.bf16.msra.mxu0 %v9304_v9  ;;  %7155 = vmatpush1.bf16.msra.mxu1 %v9307_v10  ;;  %v9394_v9 = vld [vmem:[%s13907_s1 + $0x7c0] ss:$16 sps:$4 sm:$0xff]   ;;  %v9397_v10 = vld [vmem:[%s13907_s1 + $0x7c8] ss:$16 sps:$4 sm:$0xff]  }
  0xc0   :  { %6479 = vmatprep.subr.bf16.mxu0 %v9312_v11  ;;  %7167 = vmatprep.subr.bf16.mxu1 %v9315_v12  ;;  %v9402_v11 = vld [vmem:[%s13907_s1 + $0x7e4] ss:$16 sps:$4 sm:$0xff]   ;;  %v9405_v12 = vld [vmem:[%s13907_s1 + $0x7ec] ss:$16 sps:$4 sm:$0xff]  }
  0xc2   :  { %6469 = vmatmul.mubr.bf16.vlgmr.msra.gmra.mrb[0].mxu0 %v7842_v17  ;;  %7157 = vmatmul.mubr.bf16.vlgmr.msra.gmra.mrb[0].mxu1 %v7842_v17  ;;  %v9408_v17 = vld [vmem:[%s13907_s1 + $0x804] ss:$16 sps:$4 sm:$0xff]  }
  0xc3   :  { %6480 = vmatpush1.bf16.msra.mxu0 %v9310_v13  ;;  %7168 = vmatpush1.bf16.msra.mxu1 %v9313_v16  ;;  %v9400_v13 = vld [vmem:[%s13907_s1 + $0x7e0] ss:$16 sps:$4 sm:$0xff]   ;;  %v9403_v16 = vld [vmem:[%s13907_s1 + $0x7e8] ss:$16 sps:$4 sm:$0xff]  }
  0xc4   :  { %6481 = vmatprep.subr.bf16.mxu0 %v9318_v20  ;;  %7169 = vmatprep.subr.bf16.mxu1 %v9321_v14  ;;  %v9411_v20 = vld [vmem:[%s13907_s1 + $0x80c] ss:$16 sps:$4 sm:$0xff]   ;;  %v11406_v14 = vld [vmem:[%s13908_s0 + $0x20] sm:$0xff] }
  0xc5   :  { %6511 = vmatprep.mubr.bf16.mxu0 %v7845_v15  ;;  %7199 = vmatprep.mubr.bf16.mxu1 %v7845_v15  ;;  %v7844_v15 = vcombine.low %v11208_v18, %v11213_v19  ;;  %v9414_v18 = vld [vmem:[%s13907_s1 + $0x824] ss:$16 sps:$4 sm:$0xff]   ;;  %v9417_v19 = vld [vmem:[%s13907_s1 + $0x82c] ss:$16 sps:$4 sm:$0xff]  }
  0xc7   :  { %6482 = vmatpush1.bf16.msra.mxu0 %v9316_v21  ;;  %7170 = vmatpush1.bf16.msra.mxu1 %v9319_v22  ;;  %v11413_v21 = vld [vmem:[%s13908_s0 + $0xa0] sm:$0xff] }
  0xc8   :  { %6483 = vmatprep.subr.bf16.mxu0 %v9324_v23  ;;  %7171 = vmatprep.subr.bf16.mxu1 %v9327_v24  ;;  %v9406_v22 = vld [vmem:[%s13907_s1 + $0x800] ss:$16 sps:$4 sm:$0xff]   ;;  %v9409_v23 = vld [vmem:[%s13907_s1 + $0x808] ss:$16 sps:$4 sm:$0xff]   ;;  %v7847_v24 = vcombine.high %v11406_v14, %v11413_v21 }
  0xcb   :  { %6484 = vmatpush1.bf16.msra.mxu0 %v9322_v25  ;;  %7172 = vmatpush1.bf16.msra.mxu1 %v9325_v26  ;;  %v9412_v25 = vld [vmem:[%s13907_s1 + $0x820] ss:$16 sps:$4 sm:$0xff]   ;;  %v9415_v26 = vld [vmem:[%s13907_s1 + $0x828] ss:$16 sps:$4 sm:$0xff]  }
  0xcc   :  { %6485 = vmatprep.subr.bf16.mxu0 %v9330_v27  ;;  %7173 = vmatprep.subr.bf16.mxu1 %v9333_v28  ;;  %v9420_v27 = vld [vmem:[%s13907_s1 + $0x844] ss:$16 sps:$4 sm:$0xff]   ;;  %v9423_v28 = vld [vmem:[%s13907_s1 + $0x84c] ss:$16 sps:$4 sm:$0xff]  }
  0xcf   :  { %6486 = vmatpush1.bf16.msra.mxu0 %v9328_v29  ;;  %7174 = vmatpush1.bf16.msra.mxu1 %v9331_v30  ;;  %v9418_v29 = vld [vmem:[%s13907_s1 + $0x840] ss:$16 sps:$4 sm:$0xff]   ;;  %v9421_v30 = vld [vmem:[%s13907_s1 + $0x848] ss:$16 sps:$4 sm:$0xff]  }
  0xd0   :  { %6487 = vmatprep.subr.bf16.mxu0 %v9336_v31  ;;  %7175 = vmatprep.subr.bf16.mxu1 %v9339_v32  ;;  %v9426_v31 = vld [vmem:[%s13907_s1 + $0x864] ss:$16 sps:$4 sm:$0xff]   ;;  %v9429_v32 = vld [vmem:[%s13907_s1 + $0x86c] ss:$16 sps:$4 sm:$0xff]  }
  0xd3   :  { %6488 = vmatpush1.bf16.msra.mxu0 %v9334_v33  ;;  %7176 = vmatpush1.bf16.msra.mxu1 %v9337_v34  ;;  %v9424_v33 = vld [vmem:[%s13907_s1 + $0x860] ss:$16 sps:$4 sm:$0xff]   ;;  %v9427_v34 = vld [vmem:[%s13907_s1 + $0x868] ss:$16 sps:$4 sm:$0xff]  }
  0xd4   :  { %6489 = vmatprep.subr.bf16.mxu0 %v9342_v35  ;;  %7177 = vmatprep.subr.bf16.mxu1 %v9345_v36  ;;  %v9432_v35 = vld [vmem:[%s13907_s1 + $0x884] ss:$16 sps:$4 sm:$0xff]   ;;  %v9435_v36 = vld [vmem:[%s13907_s1 + $0x88c] ss:$16 sps:$4 sm:$0xff]  }
  0xd7   :  { %6490 = vmatpush1.bf16.msra.mxu0 %v9340_v37  ;;  %7178 = vmatpush1.bf16.msra.mxu1 %v9343_v38  ;;  %v9430_v37 = vld [vmem:[%s13907_s1 + $0x880] ss:$16 sps:$4 sm:$0xff]   ;;  %v9433_v38 = vld [vmem:[%s13907_s1 + $0x888] ss:$16 sps:$4 sm:$0xff]  }
  0xd8   :  { %6491 = vmatprep.subr.bf16.mxu0 %v9348_v39  ;;  %7179 = vmatprep.subr.bf16.mxu1 %v9351_v40  ;;  %v9438_v39 = vld [vmem:[%s13907_s1 + $0x8a4] ss:$16 sps:$4 sm:$0xff]   ;;  %v9441_v40 = vld [vmem:[%s13907_s1 + $0x8ac] ss:$16 sps:$4 sm:$0xff]  }
  0xdb   :  { %6492 = vmatpush1.bf16.msra.mxu0 %v9346_v41  ;;  %7180 = vmatpush1.bf16.msra.mxu1 %v9349_v42  ;;  %v9436_v41 = vld [vmem:[%s13907_s1 + $0x8a0] ss:$16 sps:$4 sm:$0xff]   ;;  %v9439_v42 = vld [vmem:[%s13907_s1 + $0x8a8] ss:$16 sps:$4 sm:$0xff]  }
  0xdc   :  { %6493 = vmatprep.subr.bf16.mxu0 %v9354_v43  ;;  %7181 = vmatprep.subr.bf16.mxu1 %v9357_v44  ;;  %v9444_v43 = vld [vmem:[%s13907_s1 + $0x8c4] ss:$16 sps:$4 sm:$0xff]   ;;  %v9447_v44 = vld [vmem:[%s13907_s1 + $0x8cc] ss:$16 sps:$4 sm:$0xff]  }
  0xdf   :  { %6494 = vmatpush1.bf16.msra.mxu0 %v9352_v45  ;;  %7182 = vmatpush1.bf16.msra.mxu1 %v9355_v46  ;;  %v9442_v45 = vld [vmem:[%s13907_s1 + $0x8c0] ss:$16 sps:$4 sm:$0xff]   ;;  %v9445_v46 = vld [vmem:[%s13907_s1 + $0x8c8] ss:$16 sps:$4 sm:$0xff]  }
  0xe0   :  { %6495 = vmatprep.subr.bf16.mxu0 %v9360_v47  ;;  %7183 = vmatprep.subr.bf16.mxu1 %v9363_v48  ;;  %v9450_v47 = vld [vmem:[%s13907_s1 + $0x8e4] ss:$16 sps:$4 sm:$0xff]   ;;  %v9453_v48 = vld [vmem:[%s13907_s1 + $0x8ec] ss:$16 sps:$4 sm:$0xff]  }
  0xe3   :  { %6496 = vmatpush1.bf16.msra.mxu0 %v9358_v49  ;;  %7184 = vmatpush1.bf16.msra.mxu1 %v9361_v50  ;;  %v9448_v49 = vld [vmem:[%s13907_s1 + $0x8e0] ss:$16 sps:$4 sm:$0xff]   ;;  %v9451_v50 = vld [vmem:[%s13907_s1 + $0x8e8] ss:$16 sps:$4 sm:$0xff]  }
  0xe4   :  { %6497 = vmatprep.subr.bf16.mxu0 %v9366_v51  ;;  %7185 = vmatprep.subr.bf16.mxu1 %v9369_v52  ;;  %v9456_v51 = vld [vmem:[%s13907_s1 + $0x904] ss:$16 sps:$4 sm:$0xff]   ;;  %v9459_v52 = vld [vmem:[%s13907_s1 + $0x90c] ss:$16 sps:$4 sm:$0xff]  }
  0xe7   :  { %6498 = vmatpush1.bf16.msra.mxu0 %v9364_v53  ;;  %7186 = vmatpush1.bf16.msra.mxu1 %v9367_v54  ;;  %v9454_v53 = vld [vmem:[%s13907_s1 + $0x900] ss:$16 sps:$4 sm:$0xff]   ;;  %v9457_v54 = vld [vmem:[%s13907_s1 + $0x908] ss:$16 sps:$4 sm:$0xff]  }
  0xe8   :  { %6499 = vmatprep.subr.bf16.mxu0 %v9372_v55  ;;  %7187 = vmatprep.subr.bf16.mxu1 %v9375_v56  ;;  %v9462_v55 = vld [vmem:[%s13907_s1 + $0x924] ss:$16 sps:$4 sm:$0xff]   ;;  %v9465_v56 = vld [vmem:[%s13907_s1 + $0x92c] ss:$16 sps:$4 sm:$0xff]  }
  0xeb   :  { %6500 = vmatpush1.bf16.msra.mxu0 %v9370_v57  ;;  %7188 = vmatpush1.bf16.msra.mxu1 %v9373_v58  ;;  %v9460_v57 = vld [vmem:[%s13907_s1 + $0x920] ss:$16 sps:$4 sm:$0xff]   ;;  %v9463_v58 = vld [vmem:[%s13907_s1 + $0x928] ss:$16 sps:$4 sm:$0xff]  }
  0xec   :  { %6501 = vmatprep.subr.bf16.mxu0 %v9378_v59  ;;  %7189 = vmatprep.subr.bf16.mxu1 %v9381_v60  ;;  %v9468_v59 = vld [vmem:[%s13907_s1 + $0x944] ss:$16 sps:$4 sm:$0xff]   ;;  %v9471_v60 = vld [vmem:[%s13907_s1 + $0x94c] ss:$16 sps:$4 sm:$0xff]  }
  0xef   :  { %6502 = vmatpush1.bf16.msra.mxu0 %v9376_v61  ;;  %7190 = vmatpush1.bf16.msra.mxu1 %v9379_v62  ;;  %v9466_v61 = vld [vmem:[%s13907_s1 + $0x940] ss:$16 sps:$4 sm:$0xff]   ;;  %v9469_v62 = vld [vmem:[%s13907_s1 + $0x948] ss:$16 sps:$4 sm:$0xff]  }
  0xf0   :  { %6503 = vmatprep.subr.bf16.mxu0 %v9384_v63  ;;  %7191 = vmatprep.subr.bf16.mxu1 %v9387_v0  ;;  %v9474_v63 = vld [vmem:[%s13907_s1 + $0x964] ss:$16 sps:$4 sm:$0xff]   ;;  %v9477_v0 = vld [vmem:[%s13907_s1 + $0x96c] ss:$16 sps:$4 sm:$0xff]  }
  0xf3   :  { %6504 = vmatpush1.bf16.msra.mxu0 %v9382_v1  ;;  %7192 = vmatpush1.bf16.msra.mxu1 %v9385_v2  ;;  %v9472_v1 = vld [vmem:[%s13907_s1 + $0x960] ss:$16 sps:$4 sm:$0xff]   ;;  %v9475_v2 = vld [vmem:[%s13907_s1 + $0x968] ss:$16 sps:$4 sm:$0xff]  }
  0xf4   :  { %6505 = vmatprep.subr.bf16.mxu0 %v9390_v3  ;;  %7193 = vmatprep.subr.bf16.mxu1 %v9393_v4  ;;  %v9480_v3 = vld [vmem:[%s13907_s1 + $0x984] ss:$16 sps:$4 sm:$0xff]   ;;  %v9483_v4 = vld [vmem:[%s13907_s1 + $0x98c] ss:$16 sps:$4 sm:$0xff]  }
  0xf7   :  { %6506 = vmatpush1.bf16.msra.mxu0 %v9388_v5  ;;  %7194 = vmatpush1.bf16.msra.mxu1 %v9391_v6  ;;  %v9478_v5 = vld [vmem:[%s13907_s1 + $0x980] ss:$16 sps:$4 sm:$0xff]   ;;  %v9481_v6 = vld [vmem:[%s13907_s1 + $0x988] ss:$16 sps:$4 sm:$0xff]  }
  0xf8   :  { %6507 = vmatprep.subr.bf16.mxu0 %v9396_v7  ;;  %7195 = vmatprep.subr.bf16.mxu1 %v9399_v8  ;;  %v9486_v7 = vld [vmem:[%s13907_s1 + $0x9a4] ss:$16 sps:$4 sm:$0xff]   ;;  %v9489_v8 = vld [vmem:[%s13907_s1 + $0x9ac] ss:$16 sps:$4 sm:$0xff]  }
  0xfb   :  { %6508 = vmatpush1.bf16.msra.mxu0 %v9394_v9  ;;  %7196 = vmatpush1.bf16.msra.mxu1 %v9397_v10  ;;  %v9484_v9 = vld [vmem:[%s13907_s1 + $0x9a0] ss:$16 sps:$4 sm:$0xff]   ;;  %v9487_v10 = vld [vmem:[%s13907_s1 + $0x9a8] ss:$16 sps:$4 sm:$0xff]  }
  0xfc   :  { %6509 = vmatprep.subr.bf16.mxu0 %v9402_v11  ;;  %7197 = vmatprep.subr.bf16.mxu1 %v9405_v12  ;;  %v9492_v11 = vld [vmem:[%s13907_s1 + $0x9c4] ss:$16 sps:$4 sm:$0xff]   ;;  %v9495_v12 = vld [vmem:[%s13907_s1 + $0x9cc] ss:$16 sps:$4 sm:$0xff]  }
  0xff   :  { %6510 = vmatpush1.bf16.msra.mxu0 %v9400_v13  ;;  %7198 = vmatpush1.bf16.msra.mxu1 %v9403_v16  ;;  %v9490_v13 = vld [vmem:[%s13907_s1 + $0x9c0] ss:$16 sps:$4 sm:$0xff]   ;;  %v9493_v16 = vld [vmem:[%s13907_s1 + $0x9c8] ss:$16 sps:$4 sm:$0xff]  }
 0x100   :  { %6522 = vmatprep.subr.bf16.mxu0 %v9408_v17  ;;  %7210 = vmatprep.subr.bf16.mxu1 %v9411_v20  ;;  %v9498_v17 = vld [vmem:[%s13907_s1 + $0x9e4] ss:$16 sps:$4 sm:$0xff]   ;;  %v9501_v20 = vld [vmem:[%s13907_s1 + $0x9ec] ss:$16 sps:$4 sm:$0xff]  }
 0x102   :  { %6512 = vmatmul.mubr.bf16.vlgmr.msra.gmra.mrb[0].mxu0 %v7844_v15  ;;  %7200 = vmatmul.mubr.bf16.vlgmr.msra.gmra.mrb[0].mxu1 %v7844_v15  ;;  %v9496_v15 = vld [vmem:[%s13907_s1 + $0x9e0] ss:$16 sps:$4 sm:$0xff]  }
 0x103   :  { %6523 = vmatpush1.bf16.msra.mxu0 %v9406_v22  ;;  %7211 = vmatpush1.bf16.msra.mxu1 %v9409_v23  ;;  %v9499_v22 = vld [vmem:[%s13907_s1 + $0x9e8] ss:$16 sps:$4 sm:$0xff]   ;;  %v9504_v23 = vld [vmem:[%s13907_s1 + $0xa04] ss:$16 sps:$4 sm:$0xff]  }
 0x104   :  { %6524 = vmatprep.subr.bf16.mxu0 %v9414_v18  ;;  %7212 = vmatprep.subr.bf16.mxu1 %v9417_v19  ;;  %v9507_v18 = vld [vmem:[%s13907_s1 + $0xa0c] ss:$16 sps:$4 sm:$0xff]  }
 0x105   :  { %6554 = vmatprep.mubr.bf16.mxu0 %v7847_v24  ;;  %7242 = vmatprep.mubr.bf16.mxu1 %v7847_v24  ;;  %v11612_v19 = vld [vmem:[%s13908_s0 + $0x28] sm:$0xff] }
 0x106   :  { %v11617_v24 = vld [vmem:[%s13908_s0 + $0xa8] sm:$0xff] }
 0x107   :  { %6525 = vmatpush1.bf16.msra.mxu0 %v9412_v25  ;;  %7213 = vmatpush1.bf16.msra.mxu1 %v9415_v26  ;;  %v7846_v25 = vcombine.low %v11406_v14, %v11413_v21  ;;  %v9502_v26 = vld [vmem:[%s13907_s1 + $0xa00] ss:$16 sps:$4 sm:$0xff]   ;;  %v9513_v14 = vld [vmem:[%s13907_s1 + $0xa2c] ss:$16 sps:$4 sm:$0xff]   ;;  %v7849_v21 = vcombine.high %v11612_v19, %v11617_v24 }
 0x108   :  { %6526 = vmatprep.subr.bf16.mxu0 %v9420_v27  ;;  %7214 = vmatprep.subr.bf16.mxu1 %v9423_v28  ;;  %v9505_v27 = vld [vmem:[%s13907_s1 + $0xa08] ss:$16 sps:$4 sm:$0xff]   ;;  %v9510_v28 = vld [vmem:[%s13907_s1 + $0xa24] ss:$16 sps:$4 sm:$0xff]  }
 0x10b   :  { %6527 = vmatpush1.bf16.msra.mxu0 %v9418_v29  ;;  %7215 = vmatpush1.bf16.msra.mxu1 %v9421_v30  ;;  %v9508_v29 = vld [vmem:[%s13907_s1 + $0xa20] ss:$16 sps:$4 sm:$0xff]   ;;  %v9511_v30 = vld [vmem:[%s13907_s1 + $0xa28] ss:$16 sps:$4 sm:$0xff]  }
 0x10c   :  { %6528 = vmatprep.subr.bf16.mxu0 %v9426_v31  ;;  %7216 = vmatprep.subr.bf16.mxu1 %v9429_v32  ;;  %v9516_v31 = vld [vmem:[%s13907_s1 + $0xa44] ss:$16 sps:$4 sm:$0xff]   ;;  %v9519_v32 = vld [vmem:[%s13907_s1 + $0xa4c] ss:$16 sps:$4 sm:$0xff]  }
 0x10f   :  { %6529 = vmatpush1.bf16.msra.mxu0 %v9424_v33  ;;  %7217 = vmatpush1.bf16.msra.mxu1 %v9427_v34  ;;  %v9514_v33 = vld [vmem:[%s13907_s1 + $0xa40] ss:$16 sps:$4 sm:$0xff]   ;;  %v9517_v34 = vld [vmem:[%s13907_s1 + $0xa48] ss:$16 sps:$4 sm:$0xff]  }
 0x110   :  { %6530 = vmatprep.subr.bf16.mxu0 %v9432_v35  ;;  %7218 = vmatprep.subr.bf16.mxu1 %v9435_v36  ;;  %v9522_v35 = vld [vmem:[%s13907_s1 + $0xa64] ss:$16 sps:$4 sm:$0xff]   ;;  %v9525_v36 = vld [vmem:[%s13907_s1 + $0xa6c] ss:$16 sps:$4 sm:$0xff]  }
 0x113   :  { %6531 = vmatpush1.bf16.msra.mxu0 %v9430_v37  ;;  %7219 = vmatpush1.bf16.msra.mxu1 %v9433_v38  ;;  %v9520_v37 = vld [vmem:[%s13907_s1 + $0xa60] ss:$16 sps:$4 sm:$0xff]   ;;  %v9523_v38 = vld [vmem:[%s13907_s1 + $0xa68] ss:$16 sps:$4 sm:$0xff]  }
 0x114   :  { %6532 = vmatprep.subr.bf16.mxu0 %v9438_v39  ;;  %7220 = vmatprep.subr.bf16.mxu1 %v9441_v40  ;;  %v9528_v39 = vld [vmem:[%s13907_s1 + $0xa84] ss:$16 sps:$4 sm:$0xff]   ;;  %v9531_v40 = vld [vmem:[%s13907_s1 + $0xa8c] ss:$16 sps:$4 sm:$0xff]  }
 0x117   :  { %6533 = vmatpush1.bf16.msra.mxu0 %v9436_v41  ;;  %7221 = vmatpush1.bf16.msra.mxu1 %v9439_v42  ;;  %v9526_v41 = vld [vmem:[%s13907_s1 + $0xa80] ss:$16 sps:$4 sm:$0xff]   ;;  %v9529_v42 = vld [vmem:[%s13907_s1 + $0xa88] ss:$16 sps:$4 sm:$0xff]  }
 0x118   :  { %6534 = vmatprep.subr.bf16.mxu0 %v9444_v43  ;;  %7222 = vmatprep.subr.bf16.mxu1 %v9447_v44  ;;  %v9534_v43 = vld [vmem:[%s13907_s1 + $0xaa4] ss:$16 sps:$4 sm:$0xff]   ;;  %v9537_v44 = vld [vmem:[%s13907_s1 + $0xaac] ss:$16 sps:$4 sm:$0xff]  }
 0x11b   :  { %6535 = vmatpush1.bf16.msra.mxu0 %v9442_v45  ;;  %7223 = vmatpush1.bf16.msra.mxu1 %v9445_v46  ;;  %v9532_v45 = vld [vmem:[%s13907_s1 + $0xaa0] ss:$16 sps:$4 sm:$0xff]   ;;  %v9535_v46 = vld [vmem:[%s13907_s1 + $0xaa8] ss:$16 sps:$4 sm:$0xff]  }
 0x11c   :  { %6536 = vmatprep.subr.bf16.mxu0 %v9450_v47  ;;  %7224 = vmatprep.subr.bf16.mxu1 %v9453_v48  ;;  %v9540_v47 = vld [vmem:[%s13907_s1 + $0xac4] ss:$16 sps:$4 sm:$0xff]   ;;  %v9543_v48 = vld [vmem:[%s13907_s1 + $0xacc] ss:$16 sps:$4 sm:$0xff]  }
 0x11f   :  { %6537 = vmatpush1.bf16.msra.mxu0 %v9448_v49  ;;  %7225 = vmatpush1.bf16.msra.mxu1 %v9451_v50  ;;  %v9538_v49 = vld [vmem:[%s13907_s1 + $0xac0] ss:$16 sps:$4 sm:$0xff]   ;;  %v9541_v50 = vld [vmem:[%s13907_s1 + $0xac8] ss:$16 sps:$4 sm:$0xff]  }
 0x120   :  { %6538 = vmatprep.subr.bf16.mxu0 %v9456_v51  ;;  %7226 = vmatprep.subr.bf16.mxu1 %v9459_v52  ;;  %v9546_v51 = vld [vmem:[%s13907_s1 + $0xae4] ss:$16 sps:$4 sm:$0xff]   ;;  %v9549_v52 = vld [vmem:[%s13907_s1 + $0xaec] ss:$16 sps:$4 sm:$0xff]  }
 0x123   :  { %6539 = vmatpush1.bf16.msra.mxu0 %v9454_v53  ;;  %7227 = vmatpush1.bf16.msra.mxu1 %v9457_v54  ;;  %v9544_v53 = vld [vmem:[%s13907_s1 + $0xae0] ss:$16 sps:$4 sm:$0xff]   ;;  %v9547_v54 = vld [vmem:[%s13907_s1 + $0xae8] ss:$16 sps:$4 sm:$0xff]  }
 0x124   :  { %6540 = vmatprep.subr.bf16.mxu0 %v9462_v55  ;;  %7228 = vmatprep.subr.bf16.mxu1 %v9465_v56  ;;  %v9552_v55 = vld [vmem:[%s13907_s1 + $0xb04] ss:$16 sps:$4 sm:$0xff]   ;;  %v9555_v56 = vld [vmem:[%s13907_s1 + $0xb0c] ss:$16 sps:$4 sm:$0xff]  }
 0x127   :  { %6541 = vmatpush1.bf16.msra.mxu0 %v9460_v57  ;;  %7229 = vmatpush1.bf16.msra.mxu1 %v9463_v58  ;;  %v9550_v57 = vld [vmem:[%s13907_s1 + $0xb00] ss:$16 sps:$4 sm:$0xff]   ;;  %v9553_v58 = vld [vmem:[%s13907_s1 + $0xb08] ss:$16 sps:$4 sm:$0xff]  }
 0x128   :  { %6542 = vmatprep.subr.bf16.mxu0 %v9468_v59  ;;  %7230 = vmatprep.subr.bf16.mxu1 %v9471_v60  ;;  %v9558_v59 = vld [vmem:[%s13907_s1 + $0xb24] ss:$16 sps:$4 sm:$0xff]   ;;  %v9561_v60 = vld [vmem:[%s13907_s1 + $0xb2c] ss:$16 sps:$4 sm:$0xff]  }
 0x12b   :  { %6543 = vmatpush1.bf16.msra.mxu0 %v9466_v61  ;;  %7231 = vmatpush1.bf16.msra.mxu1 %v9469_v62  ;;  %v9556_v61 = vld [vmem:[%s13907_s1 + $0xb20] ss:$16 sps:$4 sm:$0xff]   ;;  %v9559_v62 = vld [vmem:[%s13907_s1 + $0xb28] ss:$16 sps:$4 sm:$0xff]  }
 0x12c   :  { %6544 = vmatprep.subr.bf16.mxu0 %v9474_v63  ;;  %7232 = vmatprep.subr.bf16.mxu1 %v9477_v0  ;;  %v9564_v63 = vld [vmem:[%s13907_s1 + $0xb44] ss:$16 sps:$4 sm:$0xff]   ;;  %v9567_v0 = vld [vmem:[%s13907_s1 + $0xb4c] ss:$16 sps:$4 sm:$0xff]  }
 0x12f   :  { %6545 = vmatpush1.bf16.msra.mxu0 %v9472_v1  ;;  %7233 = vmatpush1.bf16.msra.mxu1 %v9475_v2  ;;  %v9562_v1 = vld [vmem:[%s13907_s1 + $0xb40] ss:$16 sps:$4 sm:$0xff]   ;;  %v9565_v2 = vld [vmem:[%s13907_s1 + $0xb48] ss:$16 sps:$4 sm:$0xff]  }
 0x130   :  { %6546 = vmatprep.subr.bf16.mxu0 %v9480_v3  ;;  %7234 = vmatprep.subr.bf16.mxu1 %v9483_v4  ;;  %v9570_v3 = vld [vmem:[%s13907_s1 + $0xb64] ss:$16 sps:$4 sm:$0xff]   ;;  %v9573_v4 = vld [vmem:[%s13907_s1 + $0xb6c] ss:$16 sps:$4 sm:$0xff]  }
 0x133   :  { %6547 = vmatpush1.bf16.msra.mxu0 %v9478_v5  ;;  %7235 = vmatpush1.bf16.msra.mxu1 %v9481_v6  ;;  %v9568_v5 = vld [vmem:[%s13907_s1 + $0xb60] ss:$16 sps:$4 sm:$0xff]   ;;  %v9571_v6 = vld [vmem:[%s13907_s1 + $0xb68] ss:$16 sps:$4 sm:$0xff]  }
 0x134   :  { %6548 = vmatprep.subr.bf16.mxu0 %v9486_v7  ;;  %7236 = vmatprep.subr.bf16.mxu1 %v9489_v8  ;;  %v9576_v7 = vld [vmem:[%s13907_s1 + $0xb84] ss:$16 sps:$4 sm:$0xff]   ;;  %v9579_v8 = vld [vmem:[%s13907_s1 + $0xb8c] ss:$16 sps:$4 sm:$0xff]  }
 0x137   :  { %6549 = vmatpush1.bf16.msra.mxu0 %v9484_v9  ;;  %7237 = vmatpush1.bf16.msra.mxu1 %v9487_v10  ;;  %v9574_v9 = vld [vmem:[%s13907_s1 + $0xb80] ss:$16 sps:$4 sm:$0xff]   ;;  %v9577_v10 = vld [vmem:[%s13907_s1 + $0xb88] ss:$16 sps:$4 sm:$0xff]  }
 0x138   :  { %6550 = vmatprep.subr.bf16.mxu0 %v9492_v11  ;;  %7238 = vmatprep.subr.bf16.mxu1 %v9495_v12  ;;  %v9582_v11 = vld [vmem:[%s13907_s1 + $0xba4] ss:$16 sps:$4 sm:$0xff]   ;;  %v9585_v12 = vld [vmem:[%s13907_s1 + $0xbac] ss:$16 sps:$4 sm:$0xff]  }
 0x13b   :  { %6551 = vmatpush1.bf16.msra.mxu0 %v9490_v13  ;;  %7239 = vmatpush1.bf16.msra.mxu1 %v9493_v16  ;;  %v9580_v13 = vld [vmem:[%s13907_s1 + $0xba0] ss:$16 sps:$4 sm:$0xff]   ;;  %v9583_v16 = vld [vmem:[%s13907_s1 + $0xba8] ss:$16 sps:$4 sm:$0xff]  }
 0x13c   :  { %6552 = vmatprep.subr.bf16.mxu0 %v9498_v17  ;;  %7240 = vmatprep.subr.bf16.mxu1 %v9501_v20  ;;  %v9588_v17 = vld [vmem:[%s13907_s1 + $0xbc4] ss:$16 sps:$4 sm:$0xff]   ;;  %v9591_v20 = vld [vmem:[%s13907_s1 + $0xbcc] ss:$16 sps:$4 sm:$0xff]  }
 0x13f   :  { %6553 = vmatpush1.bf16.msra.mxu0 %v9496_v15  ;;  %7241 = vmatpush1.bf16.msra.mxu1 %v9499_v22  ;;  %v9586_v15 = vld [vmem:[%s13907_s1 + $0xbc0] ss:$16 sps:$4 sm:$0xff]   ;;  %v9589_v22 = vld [vmem:[%s13907_s1 + $0xbc8] ss:$16 sps:$4 sm:$0xff]  }
 0x140   :  { %6565 = vmatprep.subr.bf16.mxu0 %v9504_v23  ;;  %7253 = vmatprep.subr.bf16.mxu1 %v9507_v18  ;;  %v9594_v23 = vld [vmem:[%s13907_s1 + $0xbe4] ss:$16 sps:$4 sm:$0xff]   ;;  %v9597_v18 = vld [vmem:[%s13907_s1 + $0xbec] ss:$16 sps:$4 sm:$0xff]  }
 0x142   :  { %6555 = vmatmul.mubr.bf16.vlgmr.msra.gmra.mrb[0].mxu0 %v7846_v25  ;;  %7243 = vmatmul.mubr.bf16.vlgmr.msra.gmra.mrb[0].mxu1 %v7846_v25  ;;  %v9592_v25 = vld [vmem:[%s13907_s1 + $0xbe0] ss:$16 sps:$4 sm:$0xff]  }
 0x143   :  { %6566 = vmatpush1.bf16.msra.mxu0 %v9502_v26  ;;  %7254 = vmatpush1.bf16.msra.mxu1 %v9505_v27  ;;  %v9595_v26 = vld [vmem:[%s13907_s1 + $0xbe8] ss:$16 sps:$4 sm:$0xff]   ;;  %v9600_v27 = vld [vmem:[%s13907_s1 + $0xc04] ss:$16 sps:$4 sm:$0xff]  }
 0x144   :  { %6567 = vmatprep.subr.bf16.mxu0 %v9510_v28  ;;  %7255 = vmatprep.subr.bf16.mxu1 %v9513_v14  ;;  %v9603_v28 = vld [vmem:[%s13907_s1 + $0xc0c] ss:$16 sps:$4 sm:$0xff]   ;;  %v11818_v14 = vld [vmem:[%s13908_s0 + $0x30] sm:$0xff] }
 0x145   :  { %6597 = vmatprep.mubr.bf16.mxu0 %v7849_v21  ;;  %7285 = vmatprep.mubr.bf16.mxu1 %v7849_v21  ;;  %v11823_v21 = vld [vmem:[%s13908_s0 + $0xb0] sm:$0xff] }
 0x147   :  { %6568 = vmatpush1.bf16.msra.mxu0 %v9508_v29  ;;  %7256 = vmatpush1.bf16.msra.mxu1 %v9511_v30  ;;  %v7848_v29 = vcombine.low %v11612_v19, %v11617_v24  ;;  %v9598_v30 = vld [vmem:[%s13907_s1 + $0xc00] ss:$16 sps:$4 sm:$0xff]   ;;  %v9609_v19 = vld [vmem:[%s13907_s1 + $0xc2c] ss:$16 sps:$4 sm:$0xff]   ;;  %v7851_v24 = vcombine.high %v11818_v14, %v11823_v21 }
 0x148   :  { %6569 = vmatprep.subr.bf16.mxu0 %v9516_v31  ;;  %7257 = vmatprep.subr.bf16.mxu1 %v9519_v32  ;;  %v9601_v31 = vld [vmem:[%s13907_s1 + $0xc08] ss:$16 sps:$4 sm:$0xff]   ;;  %v9606_v32 = vld [vmem:[%s13907_s1 + $0xc24] ss:$16 sps:$4 sm:$0xff]  }
 0x14b   :  { %6570 = vmatpush1.bf16.msra.mxu0 %v9514_v33  ;;  %7258 = vmatpush1.bf16.msra.mxu1 %v9517_v34  ;;  %v9604_v33 = vld [vmem:[%s13907_s1 + $0xc20] ss:$16 sps:$4 sm:$0xff]   ;;  %v9607_v34 = vld [vmem:[%s13907_s1 + $0xc28] ss:$16 sps:$4 sm:$0xff]  }
 0x14c   :  { %6571 = vmatprep.subr.bf16.mxu0 %v9522_v35  ;;  %7259 = vmatprep.subr.bf16.mxu1 %v9525_v36  ;;  %v9612_v35 = vld [vmem:[%s13907_s1 + $0xc44] ss:$16 sps:$4 sm:$0xff]   ;;  %v9615_v36 = vld [vmem:[%s13907_s1 + $0xc4c] ss:$16 sps:$4 sm:$0xff]  }
 0x14f   :  { %6572 = vmatpush1.bf16.msra.mxu0 %v9520_v37  ;;  %7260 = vmatpush1.bf16.msra.mxu1 %v9523_v38  ;;  %v9610_v37 = vld [vmem:[%s13907_s1 + $0xc40] ss:$16 sps:$4 sm:$0xff]   ;;  %v9613_v38 = vld [vmem:[%s13907_s1 + $0xc48] ss:$16 sps:$4 sm:$0xff]  }
 0x150   :  { %6573 = vmatprep.subr.bf16.mxu0 %v9528_v39  ;;  %7261 = vmatprep.subr.bf16.mxu1 %v9531_v40  ;;  %v9618_v39 = vld [vmem:[%s13907_s1 + $0xc64] ss:$16 sps:$4 sm:$0xff]   ;;  %v9621_v40 = vld [vmem:[%s13907_s1 + $0xc6c] ss:$16 sps:$4 sm:$0xff]  }
 0x153   :  { %6574 = vmatpush1.bf16.msra.mxu0 %v9526_v41  ;;  %7262 = vmatpush1.bf16.msra.mxu1 %v9529_v42  ;;  %v9616_v41 = vld [vmem:[%s13907_s1 + $0xc60] ss:$16 sps:$4 sm:$0xff]   ;;  %v9619_v42 = vld [vmem:[%s13907_s1 + $0xc68] ss:$16 sps:$4 sm:$0xff]  }
 0x154   :  { %6575 = vmatprep.subr.bf16.mxu0 %v9534_v43  ;;  %7263 = vmatprep.subr.bf16.mxu1 %v9537_v44  ;;  %v9624_v43 = vld [vmem:[%s13907_s1 + $0xc84] ss:$16 sps:$4 sm:$0xff]   ;;  %v9627_v44 = vld [vmem:[%s13907_s1 + $0xc8c] ss:$16 sps:$4 sm:$0xff]  }
 0x157   :  { %6576 = vmatpush1.bf16.msra.mxu0 %v9532_v45  ;;  %7264 = vmatpush1.bf16.msra.mxu1 %v9535_v46  ;;  %v9622_v45 = vld [vmem:[%s13907_s1 + $0xc80] ss:$16 sps:$4 sm:$0xff]   ;;  %v9625_v46 = vld [vmem:[%s13907_s1 + $0xc88] ss:$16 sps:$4 sm:$0xff]  }
 0x158   :  { %6577 = vmatprep.subr.bf16.mxu0 %v9540_v47  ;;  %7265 = vmatprep.subr.bf16.mxu1 %v9543_v48  ;;  %v9630_v47 = vld [vmem:[%s13907_s1 + $0xca4] ss:$16 sps:$4 sm:$0xff]   ;;  %v9633_v48 = vld [vmem:[%s13907_s1 + $0xcac] ss:$16 sps:$4 sm:$0xff]  }
 0x15b   :  { %6578 = vmatpush1.bf16.msra.mxu0 %v9538_v49  ;;  %7266 = vmatpush1.bf16.msra.mxu1 %v9541_v50  ;;  %v9628_v49 = vld [vmem:[%s13907_s1 + $0xca0] ss:$16 sps:$4 sm:$0xff]   ;;  %v9631_v50 = vld [vmem:[%s13907_s1 + $0xca8] ss:$16 sps:$4 sm:$0xff]  }
 0x15c   :  { %6579 = vmatprep.subr.bf16.mxu0 %v9546_v51  ;;  %7267 = vmatprep.subr.bf16.mxu1 %v9549_v52  ;;  %v9636_v51 = vld [vmem:[%s13907_s1 + $0xcc4] ss:$16 sps:$4 sm:$0xff]   ;;  %v9639_v52 = vld [vmem:[%s13907_s1 + $0xccc] ss:$16 sps:$4 sm:$0xff]  }
 0x15f   :  { %6580 = vmatpush1.bf16.msra.mxu0 %v9544_v53  ;;  %7268 = vmatpush1.bf16.msra.mxu1 %v9547_v54  ;;  %v9634_v53 = vld [vmem:[%s13907_s1 + $0xcc0] ss:$16 sps:$4 sm:$0xff]   ;;  %v9637_v54 = vld [vmem:[%s13907_s1 + $0xcc8] ss:$16 sps:$4 sm:$0xff]  }
 0x160   :  { %6581 = vmatprep.subr.bf16.mxu0 %v9552_v55  ;;  %7269 = vmatprep.subr.bf16.mxu1 %v9555_v56  ;;  %v9642_v55 = vld [vmem:[%s13907_s1 + $0xce4] ss:$16 sps:$4 sm:$0xff]   ;;  %v9645_v56 = vld [vmem:[%s13907_s1 + $0xcec] ss:$16 sps:$4 sm:$0xff]  }
 0x163   :  { %6582 = vmatpush1.bf16.msra.mxu0 %v9550_v57  ;;  %7270 = vmatpush1.bf16.msra.mxu1 %v9553_v58  ;;  %v9640_v57 = vld [vmem:[%s13907_s1 + $0xce0] ss:$16 sps:$4 sm:$0xff]   ;;  %v9643_v58 = vld [vmem:[%s13907_s1 + $0xce8] ss:$16 sps:$4 sm:$0xff]  }
 0x164   :  { %6583 = vmatprep.subr.bf16.mxu0 %v9558_v59  ;;  %7271 = vmatprep.subr.bf16.mxu1 %v9561_v60  ;;  %v9648_v59 = vld [vmem:[%s13907_s1 + $0xd04] ss:$16 sps:$4 sm:$0xff]   ;;  %v9651_v60 = vld [vmem:[%s13907_s1 + $0xd0c] ss:$16 sps:$4 sm:$0xff]  }
 0x167   :  { %6584 = vmatpush1.bf16.msra.mxu0 %v9556_v61  ;;  %7272 = vmatpush1.bf16.msra.mxu1 %v9559_v62  ;;  %v9646_v61 = vld [vmem:[%s13907_s1 + $0xd00] ss:$16 sps:$4 sm:$0xff]   ;;  %v9649_v62 = vld [vmem:[%s13907_s1 + $0xd08] ss:$16 sps:$4 sm:$0xff]  }
 0x168   :  { %6585 = vmatprep.subr.bf16.mxu0 %v9564_v63  ;;  %7273 = vmatprep.subr.bf16.mxu1 %v9567_v0  ;;  %v9654_v63 = vld [vmem:[%s13907_s1 + $0xd24] ss:$16 sps:$4 sm:$0xff]   ;;  %v9657_v0 = vld [vmem:[%s13907_s1 + $0xd2c] ss:$16 sps:$4 sm:$0xff]  }
 0x16b   :  { %6586 = vmatpush1.bf16.msra.mxu0 %v9562_v1  ;;  %7274 = vmatpush1.bf16.msra.mxu1 %v9565_v2  ;;  %v9652_v1 = vld [vmem:[%s13907_s1 + $0xd20] ss:$16 sps:$4 sm:$0xff]   ;;  %v9655_v2 = vld [vmem:[%s13907_s1 + $0xd28] ss:$16 sps:$4 sm:$0xff]  }
 0x16c   :  { %6587 = vmatprep.subr.bf16.mxu0 %v9570_v3  ;;  %7275 = vmatprep.subr.bf16.mxu1 %v9573_v4  ;;  %v9660_v3 = vld [vmem:[%s13907_s1 + $0xd44] ss:$16 sps:$4 sm:$0xff]   ;;  %v9663_v4 = vld [vmem:[%s13907_s1 + $0xd4c] ss:$16 sps:$4 sm:$0xff]  }
 0x16f   :  { %6588 = vmatpush1.bf16.msra.mxu0 %v9568_v5  ;;  %7276 = vmatpush1.bf16.msra.mxu1 %v9571_v6  ;;  %v9658_v5 = vld [vmem:[%s13907_s1 + $0xd40] ss:$16 sps:$4 sm:$0xff]   ;;  %v9661_v6 = vld [vmem:[%s13907_s1 + $0xd48] ss:$16 sps:$4 sm:$0xff]  }
 0x170   :  { %6589 = vmatprep.subr.bf16.mxu0 %v9576_v7  ;;  %7277 = vmatprep.subr.bf16.mxu1 %v9579_v8  ;;  %v9666_v7 = vld [vmem:[%s13907_s1 + $0xd64] ss:$16 sps:$4 sm:$0xff]   ;;  %v9669_v8 = vld [vmem:[%s13907_s1 + $0xd6c] ss:$16 sps:$4 sm:$0xff]  }
 0x173   :  { %6590 = vmatpush1.bf16.msra.mxu0 %v9574_v9  ;;  %7278 = vmatpush1.bf16.msra.mxu1 %v9577_v10  ;;  %v9664_v9 = vld [vmem:[%s13907_s1 + $0xd60] ss:$16 sps:$4 sm:$0xff]   ;;  %v9667_v10 = vld [vmem:[%s13907_s1 + $0xd68] ss:$16 sps:$4 sm:$0xff]  }
 0x174   :  { %6591 = vmatprep.subr.bf16.mxu0 %v9582_v11  ;;  %7279 = vmatprep.subr.bf16.mxu1 %v9585_v12  ;;  %v9672_v11 = vld [vmem:[%s13907_s1 + $0xd84] ss:$16 sps:$4 sm:$0xff]   ;;  %v9675_v12 = vld [vmem:[%s13907_s1 + $0xd8c] ss:$16 sps:$4 sm:$0xff]  }
 0x177   :  { %6592 = vmatpush1.bf16.msra.mxu0 %v9580_v13  ;;  %7280 = vmatpush1.bf16.msra.mxu1 %v9583_v16  ;;  %v9670_v13 = vld [vmem:[%s13907_s1 + $0xd80] ss:$16 sps:$4 sm:$0xff]   ;;  %v9673_v16 = vld [vmem:[%s13907_s1 + $0xd88] ss:$16 sps:$4 sm:$0xff]  }
 0x178   :  { %6593 = vmatprep.subr.bf16.mxu0 %v9588_v17  ;;  %7281 = vmatprep.subr.bf16.mxu1 %v9591_v20  ;;  %v9678_v17 = vld [vmem:[%s13907_s1 + $0xda4] ss:$16 sps:$4 sm:$0xff]   ;;  %v9681_v20 = vld [vmem:[%s13907_s1 + $0xdac] ss:$16 sps:$4 sm:$0xff]  }
 0x17b   :  { %6594 = vmatpush1.bf16.msra.mxu0 %v9586_v15  ;;  %7282 = vmatpush1.bf16.msra.mxu1 %v9589_v22  ;;  %v9676_v15 = vld [vmem:[%s13907_s1 + $0xda0] ss:$16 sps:$4 sm:$0xff]   ;;  %v9679_v22 = vld [vmem:[%s13907_s1 + $0xda8] ss:$16 sps:$4 sm:$0xff]  }
 0x17c   :  { %6595 = vmatprep.subr.bf16.mxu0 %v9594_v23  ;;  %7283 = vmatprep.subr.bf16.mxu1 %v9597_v18  ;;  %v9684_v23 = vld [vmem:[%s13907_s1 + $0xdc4] ss:$16 sps:$4 sm:$0xff]   ;;  %v9687_v18 = vld [vmem:[%s13907_s1 + $0xdcc] ss:$16 sps:$4 sm:$0xff]  }
 0x17f   :  { %6596 = vmatpush1.bf16.msra.mxu0 %v9592_v25  ;;  %7284 = vmatpush1.bf16.msra.mxu1 %v9595_v26  ;;  %v9682_v25 = vld [vmem:[%s13907_s1 + $0xdc0] ss:$16 sps:$4 sm:$0xff]   ;;  %v9685_v26 = vld [vmem:[%s13907_s1 + $0xdc8] ss:$16 sps:$4 sm:$0xff]  }
 0x180   :  { %6608 = vmatprep.subr.bf16.mxu0 %v9600_v27  ;;  %7296 = vmatprep.subr.bf16.mxu1 %v9603_v28  ;;  %v9690_v27 = vld [vmem:[%s13907_s1 + $0xde4] ss:$16 sps:$4 sm:$0xff]   ;;  %v9693_v28 = vld [vmem:[%s13907_s1 + $0xdec] ss:$16 sps:$4 sm:$0xff]  }
 0x182   :  { %6598 = vmatmul.mubr.bf16.vlgmr.msra.gmra.mrb[0].mxu0 %v7848_v29  ;;  %7286 = vmatmul.mubr.bf16.vlgmr.msra.gmra.mrb[0].mxu1 %v7848_v29  ;;  %v9688_v29 = vld [vmem:[%s13907_s1 + $0xde0] ss:$16 sps:$4 sm:$0xff]  }
 0x183   :  { %6609 = vmatpush1.bf16.msra.mxu0 %v9598_v30  ;;  %7297 = vmatpush1.bf16.msra.mxu1 %v9601_v31  ;;  %v9691_v30 = vld [vmem:[%s13907_s1 + $0xde8] ss:$16 sps:$4 sm:$0xff]   ;;  %v9696_v31 = vld [vmem:[%s13907_s1 + $0xe04] ss:$16 sps:$4 sm:$0xff]  }
 0x184   :  { %6610 = vmatprep.subr.bf16.mxu0 %v9606_v32  ;;  %7298 = vmatprep.subr.bf16.mxu1 %v9609_v19  ;;  %v9699_v32 = vld [vmem:[%s13907_s1 + $0xe0c] ss:$16 sps:$4 sm:$0xff]  }
 0x185   :  { %6640 = vmatprep.mubr.bf16.mxu0 %v7851_v24  ;;  %7328 = vmatprep.mubr.bf16.mxu1 %v7851_v24  ;;  %v12024_v19 = vld [vmem:[%s13908_s0 + $0x38] sm:$0xff] }
 0x186   :  { %v12029_v24 = vld [vmem:[%s13908_s0 + $0xb8] sm:$0xff] }
 0x187   :  { %6611 = vmatpush1.bf16.msra.mxu0 %v9604_v33  ;;  %7299 = vmatpush1.bf16.msra.mxu1 %v9607_v34  ;;  %v7850_v33 = vcombine.low %v11818_v14, %v11823_v21  ;;  %v9694_v34 = vld [vmem:[%s13907_s1 + $0xe00] ss:$16 sps:$4 sm:$0xff]   ;;  %v9705_v14 = vld [vmem:[%s13907_s1 + $0xe2c] ss:$16 sps:$4 sm:$0xff]   ;;  %v7853_v21 = vcombine.high %v12024_v19, %v12029_v24 }
 0x188   :  { %6612 = vmatprep.subr.bf16.mxu0 %v9612_v35  ;;  %7300 = vmatprep.subr.bf16.mxu1 %v9615_v36  ;;  %v9697_v35 = vld [vmem:[%s13907_s1 + $0xe08] ss:$16 sps:$4 sm:$0xff]   ;;  %v9702_v36 = vld [vmem:[%s13907_s1 + $0xe24] ss:$16 sps:$4 sm:$0xff]  }
 0x18b   :  { %6613 = vmatpush1.bf16.msra.mxu0 %v9610_v37  ;;  %7301 = vmatpush1.bf16.msra.mxu1 %v9613_v38  ;;  %v9700_v37 = vld [vmem:[%s13907_s1 + $0xe20] ss:$16 sps:$4 sm:$0xff]   ;;  %v9703_v38 = vld [vmem:[%s13907_s1 + $0xe28] ss:$16 sps:$4 sm:$0xff]  }
 0x18c   :  { %6614 = vmatprep.subr.bf16.mxu0 %v9618_v39  ;;  %7302 = vmatprep.subr.bf16.mxu1 %v9621_v40  ;;  %v9708_v39 = vld [vmem:[%s13907_s1 + $0xe44] ss:$16 sps:$4 sm:$0xff]   ;;  %v9711_v40 = vld [vmem:[%s13907_s1 + $0xe4c] ss:$16 sps:$4 sm:$0xff]  }
 0x18f   :  { %6615 = vmatpush1.bf16.msra.mxu0 %v9616_v41  ;;  %7303 = vmatpush1.bf16.msra.mxu1 %v9619_v42  ;;  %v9706_v41 = vld [vmem:[%s13907_s1 + $0xe40] ss:$16 sps:$4 sm:$0xff]   ;;  %v9709_v42 = vld [vmem:[%s13907_s1 + $0xe48] ss:$16 sps:$4 sm:$0xff]  }
 0x190   :  { %6616 = vmatprep.subr.bf16.mxu0 %v9624_v43  ;;  %7304 = vmatprep.subr.bf16.mxu1 %v9627_v44  ;;  %v9714_v43 = vld [vmem:[%s13907_s1 + $0xe64] ss:$16 sps:$4 sm:$0xff]   ;;  %v9717_v44 = vld [vmem:[%s13907_s1 + $0xe6c] ss:$16 sps:$4 sm:$0xff]  }
 0x193   :  { %6617 = vmatpush1.bf16.msra.mxu0 %v9622_v45  ;;  %7305 = vmatpush1.bf16.msra.mxu1 %v9625_v46  ;;  %v9712_v45 = vld [vmem:[%s13907_s1 + $0xe60] ss:$16 sps:$4 sm:$0xff]   ;;  %v9715_v46 = vld [vmem:[%s13907_s1 + $0xe68] ss:$16 sps:$4 sm:$0xff]  }
 0x194   :  { %6618 = vmatprep.subr.bf16.mxu0 %v9630_v47  ;;  %7306 = vmatprep.subr.bf16.mxu1 %v9633_v48  ;;  %v9720_v47 = vld [vmem:[%s13907_s1 + $0xe84] ss:$16 sps:$4 sm:$0xff]   ;;  %v9723_v48 = vld [vmem:[%s13907_s1 + $0xe8c] ss:$16 sps:$4 sm:$0xff]  }
 0x197   :  { %6619 = vmatpush1.bf16.msra.mxu0 %v9628_v49  ;;  %7307 = vmatpush1.bf16.msra.mxu1 %v9631_v50  ;;  %v9718_v49 = vld [vmem:[%s13907_s1 + $0xe80] ss:$16 sps:$4 sm:$0xff]   ;;  %v9721_v50 = vld [vmem:[%s13907_s1 + $0xe88] ss:$16 sps:$4 sm:$0xff]  }
 0x198   :  { %6620 = vmatprep.subr.bf16.mxu0 %v9636_v51  ;;  %7308 = vmatprep.subr.bf16.mxu1 %v9639_v52  ;;  %v9726_v51 = vld [vmem:[%s13907_s1 + $0xea4] ss:$16 sps:$4 sm:$0xff]   ;;  %v9729_v52 = vld [vmem:[%s13907_s1 + $0xeac] ss:$16 sps:$4 sm:$0xff]  }
 0x19b   :  { %6621 = vmatpush1.bf16.msra.mxu0 %v9634_v53  ;;  %7309 = vmatpush1.bf16.msra.mxu1 %v9637_v54  ;;  %v9724_v53 = vld [vmem:[%s13907_s1 + $0xea0] ss:$16 sps:$4 sm:$0xff]   ;;  %v9727_v54 = vld [vmem:[%s13907_s1 + $0xea8] ss:$16 sps:$4 sm:$0xff]  }
 0x19c   :  { %6622 = vmatprep.subr.bf16.mxu0 %v9642_v55  ;;  %7310 = vmatprep.subr.bf16.mxu1 %v9645_v56  ;;  %v9732_v55 = vld [vmem:[%s13907_s1 + $0xec4] ss:$16 sps:$4 sm:$0xff]   ;;  %v9735_v56 = vld [vmem:[%s13907_s1 + $0xecc] ss:$16 sps:$4 sm:$0xff]  }
 0x19f   :  { %6623 = vmatpush1.bf16.msra.mxu0 %v9640_v57  ;;  %7311 = vmatpush1.bf16.msra.mxu1 %v9643_v58  ;;  %v9730_v57 = vld [vmem:[%s13907_s1 + $0xec0] ss:$16 sps:$4 sm:$0xff]   ;;  %v9733_v58 = vld [vmem:[%s13907_s1 + $0xec8] ss:$16 sps:$4 sm:$0xff]  }
 0x1a0   :  { %6624 = vmatprep.subr.bf16.mxu0 %v9648_v59  ;;  %7312 = vmatprep.subr.bf16.mxu1 %v9651_v60  ;;  %v9738_v59 = vld [vmem:[%s13907_s1 + $0xee4] ss:$16 sps:$4 sm:$0xff]   ;;  %v9741_v60 = vld [vmem:[%s13907_s1 + $0xeec] ss:$16 sps:$4 sm:$0xff]  }
 0x1a3   :  { %6625 = vmatpush1.bf16.msra.mxu0 %v9646_v61  ;;  %7313 = vmatpush1.bf16.msra.mxu1 %v9649_v62  ;;  %v9736_v61 = vld [vmem:[%s13907_s1 + $0xee0] ss:$16 sps:$4 sm:$0xff]   ;;  %v9739_v62 = vld [vmem:[%s13907_s1 + $0xee8] ss:$16 sps:$4 sm:$0xff]  }
 0x1a4   :  { %6626 = vmatprep.subr.bf16.mxu0 %v9654_v63  ;;  %7314 = vmatprep.subr.bf16.mxu1 %v9657_v0  ;;  %v9744_v63 = vld [vmem:[%s13907_s1 + $0xf04] ss:$16 sps:$4 sm:$0xff]   ;;  %v9747_v0 = vld [vmem:[%s13907_s1 + $0xf0c] ss:$16 sps:$4 sm:$0xff]  }
 0x1a7   :  { %6627 = vmatpush1.bf16.msra.mxu0 %v9652_v1  ;;  %7315 = vmatpush1.bf16.msra.mxu1 %v9655_v2  ;;  %v9742_v1 = vld [vmem:[%s13907_s1 + $0xf00] ss:$16 sps:$4 sm:$0xff]   ;;  %v9745_v2 = vld [vmem:[%s13907_s1 + $0xf08] ss:$16 sps:$4 sm:$0xff]  }
 0x1a8   :  { %6628 = vmatprep.subr.bf16.mxu0 %v9660_v3  ;;  %7316 = vmatprep.subr.bf16.mxu1 %v9663_v4  ;;  %v9750_v3 = vld [vmem:[%s13907_s1 + $0xf24] ss:$16 sps:$4 sm:$0xff]   ;;  %v9753_v4 = vld [vmem:[%s13907_s1 + $0xf2c] ss:$16 sps:$4 sm:$0xff]  }
 0x1ab   :  { %6629 = vmatpush1.bf16.msra.mxu0 %v9658_v5  ;;  %7317 = vmatpush1.bf16.msra.mxu1 %v9661_v6  ;;  %v9748_v5 = vld [vmem:[%s13907_s1 + $0xf20] ss:$16 sps:$4 sm:$0xff]   ;;  %v9751_v6 = vld [vmem:[%s13907_s1 + $0xf28] ss:$16 sps:$4 sm:$0xff]  }
 0x1ac   :  { %6630 = vmatprep.subr.bf16.mxu0 %v9666_v7  ;;  %7318 = vmatprep.subr.bf16.mxu1 %v9669_v8  ;;  %v9756_v7 = vld [vmem:[%s13907_s1 + $0xf44] ss:$16 sps:$4 sm:$0xff]   ;;  %v9759_v8 = vld [vmem:[%s13907_s1 + $0xf4c] ss:$16 sps:$4 sm:$0xff]  }
 0x1af   :  { %6631 = vmatpush1.bf16.msra.mxu0 %v9664_v9  ;;  %7319 = vmatpush1.bf16.msra.mxu1 %v9667_v10  ;;  %v9754_v9 = vld [vmem:[%s13907_s1 + $0xf40] ss:$16 sps:$4 sm:$0xff]   ;;  %v9757_v10 = vld [vmem:[%s13907_s1 + $0xf48] ss:$16 sps:$4 sm:$0xff]  }
 0x1b0   :  { %6632 = vmatprep.subr.bf16.mxu0 %v9672_v11  ;;  %7320 = vmatprep.subr.bf16.mxu1 %v9675_v12  ;;  %v9762_v11 = vld [vmem:[%s13907_s1 + $0xf64] ss:$16 sps:$4 sm:$0xff]   ;;  %v9765_v12 = vld [vmem:[%s13907_s1 + $0xf6c] ss:$16 sps:$4 sm:$0xff]  }
 0x1b3   :  { %6633 = vmatpush1.bf16.msra.mxu0 %v9670_v13  ;;  %7321 = vmatpush1.bf16.msra.mxu1 %v9673_v16  ;;  %v9760_v13 = vld [vmem:[%s13907_s1 + $0xf60] ss:$16 sps:$4 sm:$0xff]   ;;  %v9763_v16 = vld [vmem:[%s13907_s1 + $0xf68] ss:$16 sps:$4 sm:$0xff]  }
 0x1b4   :  { %6634 = vmatprep.subr.bf16.mxu0 %v9678_v17  ;;  %7322 = vmatprep.subr.bf16.mxu1 %v9681_v20  ;;  %v9768_v17 = vld [vmem:[%s13907_s1 + $0xf84] ss:$16 sps:$4 sm:$0xff]   ;;  %v9771_v20 = vld [vmem:[%s13907_s1 + $0xf8c] ss:$16 sps:$4 sm:$0xff]  }
 0x1b7   :  { %6635 = vmatpush1.bf16.msra.mxu0 %v9676_v15  ;;  %7323 = vmatpush1.bf16.msra.mxu1 %v9679_v22  ;;  %v9766_v15 = vld [vmem:[%s13907_s1 + $0xf80] ss:$16 sps:$4 sm:$0xff]   ;;  %v9769_v22 = vld [vmem:[%s13907_s1 + $0xf88] ss:$16 sps:$4 sm:$0xff]  }
 0x1b8   :  { %6636 = vmatprep.subr.bf16.mxu0 %v9684_v23  ;;  %7324 = vmatprep.subr.bf16.mxu1 %v9687_v18  ;;  %v9774_v23 = vld [vmem:[%s13907_s1 + $0xfa4] ss:$16 sps:$4 sm:$0xff]   ;;  %v9777_v18 = vld [vmem:[%s13907_s1 + $0xfac] ss:$16 sps:$4 sm:$0xff]  }
 0x1bb   :  { %6637 = vmatpush1.bf16.msra.mxu0 %v9682_v25  ;;  %7325 = vmatpush1.bf16.msra.mxu1 %v9685_v26  ;;  %v9772_v25 = vld [vmem:[%s13907_s1 + $0xfa0] ss:$16 sps:$4 sm:$0xff]   ;;  %v9775_v26 = vld [vmem:[%s13907_s1 + $0xfa8] ss:$16 sps:$4 sm:$0xff]  }
 0x1bc   :  { %6638 = vmatprep.subr.bf16.mxu0 %v9690_v27  ;;  %7326 = vmatprep.subr.bf16.mxu1 %v9693_v28  ;;  %v9780_v27 = vld [vmem:[%s13907_s1 + $0xfc4] ss:$16 sps:$4 sm:$0xff]   ;;  %v9783_v28 = vld [vmem:[%s13907_s1 + $0xfcc] ss:$16 sps:$4 sm:$0xff]  }
 0x1bf   :  { %6639 = vmatpush1.bf16.msra.mxu0 %v9688_v29  ;;  %7327 = vmatpush1.bf16.msra.mxu1 %v9691_v30  ;;  %v9778_v29 = vld [vmem:[%s13907_s1 + $0xfc0] ss:$16 sps:$4 sm:$0xff]   ;;  %v9781_v30 = vld [vmem:[%s13907_s1 + $0xfc8] ss:$16 sps:$4 sm:$0xff]  }
 0x1c0   :  { %6651 = vmatprep.subr.bf16.mxu0 %v9696_v31  ;;  %7339 = vmatprep.subr.bf16.mxu1 %v9699_v32  ;;  %v9786_v31 = vld [vmem:[%s13907_s1 + $0xfe4] ss:$16 sps:$4 sm:$0xff]   ;;  %v9789_v32 = vld [vmem:[%s13907_s1 + $0xfec] ss:$16 sps:$4 sm:$0xff]  }
 0x1c2   :  { %6641 = vmatmul.mubr.bf16.vlgmr.msra.gmra.mrb[0].mxu0 %v7850_v33  ;;  %7329 = vmatmul.mubr.bf16.vlgmr.msra.gmra.mrb[0].mxu1 %v7850_v33  ;;  %v9784_v33 = vld [vmem:[%s13907_s1 + $0xfe0] ss:$16 sps:$4 sm:$0xff]  }
 0x1c3   :  { %6652 = vmatpush1.bf16.msra.mxu0 %v9694_v34  ;;  %7340 = vmatpush1.bf16.msra.mxu1 %v9697_v35  ;;  %v9787_v34 = vld [vmem:[%s13907_s1 + $0xfe8] ss:$16 sps:$4 sm:$0xff]   ;;  %v9792_v35 = vld [vmem:[%s13907_s1 + $0x1004] ss:$16 sps:$4 sm:$0xff]  }
 0x1c4   :  { %6653 = vmatprep.subr.bf16.mxu0 %v9702_v36  ;;  %7341 = vmatprep.subr.bf16.mxu1 %v9705_v14  ;;  %v9795_v36 = vld [vmem:[%s13907_s1 + $0x100c] ss:$16 sps:$4 sm:$0xff]   ;;  %v12230_v14 = vld [vmem:[%s13908_s0 + $0x40] sm:$0xff] }
 0x1c5   :  { %6683 = vmatprep.mubr.bf16.mxu0 %v7853_v21  ;;  %7371 = vmatprep.mubr.bf16.mxu1 %v7853_v21  ;;  %v12235_v21 = vld [vmem:[%s13908_s0 + $0xc0] sm:$0xff] }
 0x1c7   :  { %6654 = vmatpush1.bf16.msra.mxu0 %v9700_v37  ;;  %7342 = vmatpush1.bf16.msra.mxu1 %v9703_v38  ;;  %v7852_v37 = vcombine.low %v12024_v19, %v12029_v24  ;;  %v9790_v38 = vld [vmem:[%s13907_s1 + $0x1000] ss:$16 sps:$4 sm:$0xff]   ;;  %v9801_v19 = vld [vmem:[%s13907_s1 + $0x102c] ss:$16 sps:$4 sm:$0xff]   ;;  %v7855_v24 = vcombine.high %v12230_v14, %v12235_v21 }
 0x1c8   :  { %6655 = vmatprep.subr.bf16.mxu0 %v9708_v39  ;;  %7343 = vmatprep.subr.bf16.mxu1 %v9711_v40  ;;  %v9793_v39 = vld [vmem:[%s13907_s1 + $0x1008] ss:$16 sps:$4 sm:$0xff]   ;;  %v9798_v40 = vld [vmem:[%s13907_s1 + $0x1024] ss:$16 sps:$4 sm:$0xff]  }
 0x1cb   :  { %6656 = vmatpush1.bf16.msra.mxu0 %v9706_v41  ;;  %7344 = vmatpush1.bf16.msra.mxu1 %v9709_v42  ;;  %v9796_v41 = vld [vmem:[%s13907_s1 + $0x1020] ss:$16 sps:$4 sm:$0xff]   ;;  %v9799_v42 = vld [vmem:[%s13907_s1 + $0x1028] ss:$16 sps:$4 sm:$0xff]  }
 0x1cc   :  { %6657 = vmatprep.subr.bf16.mxu0 %v9714_v43  ;;  %7345 = vmatprep.subr.bf16.mxu1 %v9717_v44  ;;  %v9804_v43 = vld [vmem:[%s13907_s1 + $0x1044] ss:$16 sps:$4 sm:$0xff]   ;;  %v9807_v44 = vld [vmem:[%s13907_s1 + $0x104c] ss:$16 sps:$4 sm:$0xff]  }
 0x1cf   :  { %6658 = vmatpush1.bf16.msra.mxu0 %v9712_v45  ;;  %7346 = vmatpush1.bf16.msra.mxu1 %v9715_v46  ;;  %v9802_v45 = vld [vmem:[%s13907_s1 + $0x1040] ss:$16 sps:$4 sm:$0xff]   ;;  %v9805_v46 = vld [vmem:[%s13907_s1 + $0x1048] ss:$16 sps:$4 sm:$0xff]  }
 0x1d0   :  { %6659 = vmatprep.subr.bf16.mxu0 %v9720_v47  ;;  %7347 = vmatprep.subr.bf16.mxu1 %v9723_v48  ;;  %v9810_v47 = vld [vmem:[%s13907_s1 + $0x1064] ss:$16 sps:$4 sm:$0xff]   ;;  %v9813_v48 = vld [vmem:[%s13907_s1 + $0x106c] ss:$16 sps:$4 sm:$0xff]  }
 0x1d3   :  { %6660 = vmatpush1.bf16.msra.mxu0 %v9718_v49  ;;  %7348 = vmatpush1.bf16.msra.mxu1 %v9721_v50  ;;  %v9808_v49 = vld [vmem:[%s13907_s1 + $0x1060] ss:$16 sps:$4 sm:$0xff]   ;;  %v9811_v50 = vld [vmem:[%s13907_s1 + $0x1068] ss:$16 sps:$4 sm:$0xff]  }
 0x1d4   :  { %6661 = vmatprep.subr.bf16.mxu0 %v9726_v51  ;;  %7349 = vmatprep.subr.bf16.mxu1 %v9729_v52  ;;  %v9816_v51 = vld [vmem:[%s13907_s1 + $0x1084] ss:$16 sps:$4 sm:$0xff]   ;;  %v9819_v52 = vld [vmem:[%s13907_s1 + $0x108c] ss:$16 sps:$4 sm:$0xff]  }
 0x1d7   :  { %6662 = vmatpush1.bf16.msra.mxu0 %v9724_v53  ;;  %7350 = vmatpush1.bf16.msra.mxu1 %v9727_v54  ;;  %v9814_v53 = vld [vmem:[%s13907_s1 + $0x1080] ss:$16 sps:$4 sm:$0xff]   ;;  %v9817_v54 = vld [vmem:[%s13907_s1 + $0x1088] ss:$16 sps:$4 sm:$0xff]  }
 0x1d8   :  { %6663 = vmatprep.subr.bf16.mxu0 %v9732_v55  ;;  %7351 = vmatprep.subr.bf16.mxu1 %v9735_v56  ;;  %v9822_v55 = vld [vmem:[%s13907_s1 + $0x10a4] ss:$16 sps:$4 sm:$0xff]   ;;  %v9825_v56 = vld [vmem:[%s13907_s1 + $0x10ac] ss:$16 sps:$4 sm:$0xff]  }
 0x1db   :  { %6664 = vmatpush1.bf16.msra.mxu0 %v9730_v57  ;;  %7352 = vmatpush1.bf16.msra.mxu1 %v9733_v58  ;;  %v9820_v57 = vld [vmem:[%s13907_s1 + $0x10a0] ss:$16 sps:$4 sm:$0xff]   ;;  %v9823_v58 = vld [vmem:[%s13907_s1 + $0x10a8] ss:$16 sps:$4 sm:$0xff]  }
 0x1dc   :  { %6665 = vmatprep.subr.bf16.mxu0 %v9738_v59  ;;  %7353 = vmatprep.subr.bf16.mxu1 %v9741_v60  ;;  %v9828_v59 = vld [vmem:[%s13907_s1 + $0x10c4] ss:$16 sps:$4 sm:$0xff]   ;;  %v9831_v60 = vld [vmem:[%s13907_s1 + $0x10cc] ss:$16 sps:$4 sm:$0xff]  }
 0x1df   :  { %6666 = vmatpush1.bf16.msra.mxu0 %v9736_v61  ;;  %7354 = vmatpush1.bf16.msra.mxu1 %v9739_v62  ;;  %v9826_v61 = vld [vmem:[%s13907_s1 + $0x10c0] ss:$16 sps:$4 sm:$0xff]   ;;  %v9829_v62 = vld [vmem:[%s13907_s1 + $0x10c8] ss:$16 sps:$4 sm:$0xff]  }
 0x1e0   :  { %6667 = vmatprep.subr.bf16.mxu0 %v9744_v63  ;;  %7355 = vmatprep.subr.bf16.mxu1 %v9747_v0  ;;  %v9834_v63 = vld [vmem:[%s13907_s1 + $0x10e4] ss:$16 sps:$4 sm:$0xff]   ;;  %v9837_v0 = vld [vmem:[%s13907_s1 + $0x10ec] ss:$16 sps:$4 sm:$0xff]  }
 0x1e3   :  { %6668 = vmatpush1.bf16.msra.mxu0 %v9742_v1  ;;  %7356 = vmatpush1.bf16.msra.mxu1 %v9745_v2  ;;  %v9832_v1 = vld [vmem:[%s13907_s1 + $0x10e0] ss:$16 sps:$4 sm:$0xff]   ;;  %v9835_v2 = vld [vmem:[%s13907_s1 + $0x10e8] ss:$16 sps:$4 sm:$0xff]  }
 0x1e4   :  { %6669 = vmatprep.subr.bf16.mxu0 %v9750_v3  ;;  %7357 = vmatprep.subr.bf16.mxu1 %v9753_v4  ;;  %v9840_v3 = vld [vmem:[%s13907_s1 + $0x1104] ss:$16 sps:$4 sm:$0xff]   ;;  %v9843_v4 = vld [vmem:[%s13907_s1 + $0x110c] ss:$16 sps:$4 sm:$0xff]  }
 0x1e7   :  { %6670 = vmatpush1.bf16.msra.mxu0 %v9748_v5  ;;  %7358 = vmatpush1.bf16.msra.mxu1 %v9751_v6  ;;  %v9838_v5 = vld [vmem:[%s13907_s1 + $0x1100] ss:$16 sps:$4 sm:$0xff]   ;;  %v9841_v6 = vld [vmem:[%s13907_s1 + $0x1108] ss:$16 sps:$4 sm:$0xff]  }
 0x1e8   :  { %6671 = vmatprep.subr.bf16.mxu0 %v9756_v7  ;;  %7359 = vmatprep.subr.bf16.mxu1 %v9759_v8  ;;  %v9846_v7 = vld [vmem:[%s13907_s1 + $0x1124] ss:$16 sps:$4 sm:$0xff]   ;;  %v9849_v8 = vld [vmem:[%s13907_s1 + $0x112c] ss:$16 sps:$4 sm:$0xff]  }
 0x1eb   :  { %6672 = vmatpush1.bf16.msra.mxu0 %v9754_v9  ;;  %7360 = vmatpush1.bf16.msra.mxu1 %v9757_v10  ;;  %v9844_v9 = vld [vmem:[%s13907_s1 + $0x1120] ss:$16 sps:$4 sm:$0xff]   ;;  %v9847_v10 = vld [vmem:[%s13907_s1 + $0x1128] ss:$16 sps:$4 sm:$0xff]  }
 0x1ec   :  { %6673 = vmatprep.subr.bf16.mxu0 %v9762_v11  ;;  %7361 = vmatprep.subr.bf16.mxu1 %v9765_v12  ;;  %v9852_v11 = vld [vmem:[%s13907_s1 + $0x1144] ss:$16 sps:$4 sm:$0xff]   ;;  %v9855_v12 = vld [vmem:[%s13907_s1 + $0x114c] ss:$16 sps:$4 sm:$0xff]  }
 0x1ef   :  { %6674 = vmatpush1.bf16.msra.mxu0 %v9760_v13  ;;  %7362 = vmatpush1.bf16.msra.mxu1 %v9763_v16  ;;  %v9850_v13 = vld [vmem:[%s13907_s1 + $0x1140] ss:$16 sps:$4 sm:$0xff]   ;;  %v9853_v16 = vld [vmem:[%s13907_s1 + $0x1148] ss:$16 sps:$4 sm:$0xff]  }
 0x1f0   :  { %6675 = vmatprep.subr.bf16.mxu0 %v9768_v17  ;;  %7363 = vmatprep.subr.bf16.mxu1 %v9771_v20  ;;  %v9858_v17 = vld [vmem:[%s13907_s1 + $0x1164] ss:$16 sps:$4 sm:$0xff]   ;;  %v9861_v20 = vld [vmem:[%s13907_s1 + $0x116c] ss:$16 sps:$4 sm:$0xff]  }
 0x1f3   :  { %6676 = vmatpush1.bf16.msra.mxu0 %v9766_v15  ;;  %7364 = vmatpush1.bf16.msra.mxu1 %v9769_v22  ;;  %v9856_v15 = vld [vmem:[%s13907_s1 + $0x1160] ss:$16 sps:$4 sm:$0xff]   ;;  %v9859_v22 = vld [vmem:[%s13907_s1 + $0x1168] ss:$16 sps:$4 sm:$0xff]  }
 0x1f4   :  { %6677 = vmatprep.subr.bf16.mxu0 %v9774_v23  ;;  %7365 = vmatprep.subr.bf16.mxu1 %v9777_v18  ;;  %v9864_v23 = vld [vmem:[%s13907_s1 + $0x1184] ss:$16 sps:$4 sm:$0xff]   ;;  %v9867_v18 = vld [vmem:[%s13907_s1 + $0x118c] ss:$16 sps:$4 sm:$0xff]  }
 0x1f7   :  { %6678 = vmatpush1.bf16.msra.mxu0 %v9772_v25  ;;  %7366 = vmatpush1.bf16.msra.mxu1 %v9775_v26  ;;  %v9862_v25 = vld [vmem:[%s13907_s1 + $0x1180] ss:$16 sps:$4 sm:$0xff]   ;;  %v9865_v26 = vld [vmem:[%s13907_s1 + $0x1188] ss:$16 sps:$4 sm:$0xff]  }
 0x1f8   :  { %6679 = vmatprep.subr.bf16.mxu0 %v9780_v27  ;;  %7367 = vmatprep.subr.bf16.mxu1 %v9783_v28  ;;  %v9870_v27 = vld [vmem:[%s13907_s1 + $0x11a4] ss:$16 sps:$4 sm:$0xff]   ;;  %v9873_v28 = vld [vmem:[%s13907_s1 + $0x11ac] ss:$16 sps:$4 sm:$0xff]  }
 0x1fb   :  { %6680 = vmatpush1.bf16.msra.mxu0 %v9778_v29  ;;  %7368 = vmatpush1.bf16.msra.mxu1 %v9781_v30  ;;  %v9868_v29 = vld [vmem:[%s13907_s1 + $0x11a0] ss:$16 sps:$4 sm:$0xff]   ;;  %v9871_v30 = vld [vmem:[%s13907_s1 + $0x11a8] ss:$16 sps:$4 sm:$0xff]  }
 0x1fc   :  { %6681 = vmatprep.subr.bf16.mxu0 %v9786_v31  ;;  %7369 = vmatprep.subr.bf16.mxu1 %v9789_v32  ;;  %v9876_v31 = vld [vmem:[%s13907_s1 + $0x11c4] ss:$16 sps:$4 sm:$0xff]   ;;  %v9879_v32 = vld [vmem:[%s13907_s1 + $0x11cc] ss:$16 sps:$4 sm:$0xff]  }
 0x1ff   :  { %6682 = vmatpush1.bf16.msra.mxu0 %v9784_v33  ;;  %7370 = vmatpush1.bf16.msra.mxu1 %v9787_v34  ;;  %v9874_v33 = vld [vmem:[%s13907_s1 + $0x11c0] ss:$16 sps:$4 sm:$0xff]   ;;  %v9877_v34 = vld [vmem:[%s13907_s1 + $0x11c8] ss:$16 sps:$4 sm:$0xff]  }
 0x200   :  { %6694 = vmatprep.subr.bf16.mxu0 %v9792_v35  ;;  %7382 = vmatprep.subr.bf16.mxu1 %v9795_v36  ;;  %v9882_v35 = vld [vmem:[%s13907_s1 + $0x11e4] ss:$16 sps:$4 sm:$0xff]   ;;  %v9885_v36 = vld [vmem:[%s13907_s1 + $0x11ec] ss:$16 sps:$4 sm:$0xff]  }
 0x202   :  { %6684 = vmatmul.mubr.bf16.vlgmr.msra.gmra.mrb[0].mxu0 %v7852_v37  ;;  %7372 = vmatmul.mubr.bf16.vlgmr.msra.gmra.mrb[0].mxu1 %v7852_v37  ;;  %v9880_v37 = vld [vmem:[%s13907_s1 + $0x11e0] ss:$16 sps:$4 sm:$0xff]  }
 0x203   :  { %6695 = vmatpush1.bf16.msra.mxu0 %v9790_v38  ;;  %7383 = vmatpush1.bf16.msra.mxu1 %v9793_v39  ;;  %v9883_v38 = vld [vmem:[%s13907_s1 + $0x11e8] ss:$16 sps:$4 sm:$0xff]   ;;  %v9888_v39 = vld [vmem:[%s13907_s1 + $0x1204] ss:$16 sps:$4 sm:$0xff]  }
 0x204   :  { %6696 = vmatprep.subr.bf16.mxu0 %v9798_v40  ;;  %7384 = vmatprep.subr.bf16.mxu1 %v9801_v19  ;;  %v9891_v40 = vld [vmem:[%s13907_s1 + $0x120c] ss:$16 sps:$4 sm:$0xff]  }
 0x205   :  { %6726 = vmatprep.mubr.bf16.mxu0 %v7855_v24  ;;  %7414 = vmatprep.mubr.bf16.mxu1 %v7855_v24  ;;  %v12436_v19 = vld [vmem:[%s13908_s0 + $0x48] sm:$0xff] }
 0x206   :  { %v12441_v24 = vld [vmem:[%s13908_s0 + $0xc8] sm:$0xff] }
 0x207   :  { %6697 = vmatpush1.bf16.msra.mxu0 %v9796_v41  ;;  %7385 = vmatpush1.bf16.msra.mxu1 %v9799_v42  ;;  %v7854_v41 = vcombine.low %v12230_v14, %v12235_v21  ;;  %v9886_v42 = vld [vmem:[%s13907_s1 + $0x1200] ss:$16 sps:$4 sm:$0xff]   ;;  %v9897_v14 = vld [vmem:[%s13907_s1 + $0x122c] ss:$16 sps:$4 sm:$0xff]   ;;  %v7857_v21 = vcombine.high %v12436_v19, %v12441_v24 }
 0x208   :  { %6698 = vmatprep.subr.bf16.mxu0 %v9804_v43  ;;  %7386 = vmatprep.subr.bf16.mxu1 %v9807_v44  ;;  %v9889_v43 = vld [vmem:[%s13907_s1 + $0x1208] ss:$16 sps:$4 sm:$0xff]   ;;  %v9894_v44 = vld [vmem:[%s13907_s1 + $0x1224] ss:$16 sps:$4 sm:$0xff]  }
 0x20b   :  { %6699 = vmatpush1.bf16.msra.mxu0 %v9802_v45  ;;  %7387 = vmatpush1.bf16.msra.mxu1 %v9805_v46  ;;  %v9892_v45 = vld [vmem:[%s13907_s1 + $0x1220] ss:$16 sps:$4 sm:$0xff]   ;;  %v9895_v46 = vld [vmem:[%s13907_s1 + $0x1228] ss:$16 sps:$4 sm:$0xff]  }
 0x20c   :  { %6700 = vmatprep.subr.bf16.mxu0 %v9810_v47  ;;  %7388 = vmatprep.subr.bf16.mxu1 %v9813_v48  ;;  %v9900_v47 = vld [vmem:[%s13907_s1 + $0x1244] ss:$16 sps:$4 sm:$0xff]   ;;  %v9903_v48 = vld [vmem:[%s13907_s1 + $0x124c] ss:$16 sps:$4 sm:$0xff]  }
 0x20f   :  { %6701 = vmatpush1.bf16.msra.mxu0 %v9808_v49  ;;  %7389 = vmatpush1.bf16.msra.mxu1 %v9811_v50  ;;  %v9898_v49 = vld [vmem:[%s13907_s1 + $0x1240] ss:$16 sps:$4 sm:$0xff]   ;;  %v9901_v50 = vld [vmem:[%s13907_s1 + $0x1248] ss:$16 sps:$4 sm:$0xff]  }
 0x210   :  { %6702 = vmatprep.subr.bf16.mxu0 %v9816_v51  ;;  %7390 = vmatprep.subr.bf16.mxu1 %v9819_v52  ;;  %v9906_v51 = vld [vmem:[%s13907_s1 + $0x1264] ss:$16 sps:$4 sm:$0xff]   ;;  %v9909_v52 = vld [vmem:[%s13907_s1 + $0x126c] ss:$16 sps:$4 sm:$0xff]  }
 0x213   :  { %6703 = vmatpush1.bf16.msra.mxu0 %v9814_v53  ;;  %7391 = vmatpush1.bf16.msra.mxu1 %v9817_v54  ;;  %v9904_v53 = vld [vmem:[%s13907_s1 + $0x1260] ss:$16 sps:$4 sm:$0xff]   ;;  %v9907_v54 = vld [vmem:[%s13907_s1 + $0x1268] ss:$16 sps:$4 sm:$0xff]  }
 0x214   :  { %6704 = vmatprep.subr.bf16.mxu0 %v9822_v55  ;;  %7392 = vmatprep.subr.bf16.mxu1 %v9825_v56  ;;  %v9912_v55 = vld [vmem:[%s13907_s1 + $0x1284] ss:$16 sps:$4 sm:$0xff]   ;;  %v9915_v56 = vld [vmem:[%s13907_s1 + $0x128c] ss:$16 sps:$4 sm:$0xff]  }
 0x217   :  { %6705 = vmatpush1.bf16.msra.mxu0 %v9820_v57  ;;  %7393 = vmatpush1.bf16.msra.mxu1 %v9823_v58  ;;  %v9910_v57 = vld [vmem:[%s13907_s1 + $0x1280] ss:$16 sps:$4 sm:$0xff]   ;;  %v9913_v58 = vld [vmem:[%s13907_s1 + $0x1288] ss:$16 sps:$4 sm:$0xff]  }
 0x218   :  { %6706 = vmatprep.subr.bf16.mxu0 %v9828_v59  ;;  %7394 = vmatprep.subr.bf16.mxu1 %v9831_v60  ;;  %v9918_v59 = vld [vmem:[%s13907_s1 + $0x12a4] ss:$16 sps:$4 sm:$0xff]   ;;  %v9921_v60 = vld [vmem:[%s13907_s1 + $0x12ac] ss:$16 sps:$4 sm:$0xff]  }
 0x21b   :  { %6707 = vmatpush1.bf16.msra.mxu0 %v9826_v61  ;;  %7395 = vmatpush1.bf16.msra.mxu1 %v9829_v62  ;;  %v9916_v61 = vld [vmem:[%s13907_s1 + $0x12a0] ss:$16 sps:$4 sm:$0xff]   ;;  %v9919_v62 = vld [vmem:[%s13907_s1 + $0x12a8] ss:$16 sps:$4 sm:$0xff]  }
 0x21c   :  { %6708 = vmatprep.subr.bf16.mxu0 %v9834_v63  ;;  %7396 = vmatprep.subr.bf16.mxu1 %v9837_v0  ;;  %v9924_v63 = vld [vmem:[%s13907_s1 + $0x12c4] ss:$16 sps:$4 sm:$0xff]   ;;  %v9927_v0 = vld [vmem:[%s13907_s1 + $0x12cc] ss:$16 sps:$4 sm:$0xff]  }
 0x21f   :  { %6709 = vmatpush1.bf16.msra.mxu0 %v9832_v1  ;;  %7397 = vmatpush1.bf16.msra.mxu1 %v9835_v2  ;;  %v9922_v1 = vld [vmem:[%s13907_s1 + $0x12c0] ss:$16 sps:$4 sm:$0xff]   ;;  %v9925_v2 = vld [vmem:[%s13907_s1 + $0x12c8] ss:$16 sps:$4 sm:$0xff]  }
 0x220   :  { %6710 = vmatprep.subr.bf16.mxu0 %v9840_v3  ;;  %7398 = vmatprep.subr.bf16.mxu1 %v9843_v4  ;;  %v9930_v3 = vld [vmem:[%s13907_s1 + $0x12e4] ss:$16 sps:$4 sm:$0xff]   ;;  %v9933_v4 = vld [vmem:[%s13907_s1 + $0x12ec] ss:$16 sps:$4 sm:$0xff]  }
 0x223   :  { %6711 = vmatpush1.bf16.msra.mxu0 %v9838_v5  ;;  %7399 = vmatpush1.bf16.msra.mxu1 %v9841_v6  ;;  %v9928_v5 = vld [vmem:[%s13907_s1 + $0x12e0] ss:$16 sps:$4 sm:$0xff]   ;;  %v9931_v6 = vld [vmem:[%s13907_s1 + $0x12e8] ss:$16 sps:$4 sm:$0xff]  }
 0x224   :  { %6712 = vmatprep.subr.bf16.mxu0 %v9846_v7  ;;  %7400 = vmatprep.subr.bf16.mxu1 %v9849_v8  ;;  %v9936_v7 = vld [vmem:[%s13907_s1 + $0x1304] ss:$16 sps:$4 sm:$0xff]   ;;  %v9939_v8 = vld [vmem:[%s13907_s1 + $0x130c] ss:$16 sps:$4 sm:$0xff]  }
 0x227   :  { %6713 = vmatpush1.bf16.msra.mxu0 %v9844_v9  ;;  %7401 = vmatpush1.bf16.msra.mxu1 %v9847_v10  ;;  %v9934_v9 = vld [vmem:[%s13907_s1 + $0x1300] ss:$16 sps:$4 sm:$0xff]   ;;  %v9937_v10 = vld [vmem:[%s13907_s1 + $0x1308] ss:$16 sps:$4 sm:$0xff]  }
 0x228   :  { %6714 = vmatprep.subr.bf16.mxu0 %v9852_v11  ;;  %7402 = vmatprep.subr.bf16.mxu1 %v9855_v12  ;;  %v9942_v11 = vld [vmem:[%s13907_s1 + $0x1324] ss:$16 sps:$4 sm:$0xff]   ;;  %v9945_v12 = vld [vmem:[%s13907_s1 + $0x132c] ss:$16 sps:$4 sm:$0xff]  }
 0x22b   :  { %6715 = vmatpush1.bf16.msra.mxu0 %v9850_v13  ;;  %7403 = vmatpush1.bf16.msra.mxu1 %v9853_v16  ;;  %v9940_v13 = vld [vmem:[%s13907_s1 + $0x1320] ss:$16 sps:$4 sm:$0xff]   ;;  %v9943_v16 = vld [vmem:[%s13907_s1 + $0x1328] ss:$16 sps:$4 sm:$0xff]  }
 0x22c   :  { %6716 = vmatprep.subr.bf16.mxu0 %v9858_v17  ;;  %7404 = vmatprep.subr.bf16.mxu1 %v9861_v20  ;;  %v9948_v17 = vld [vmem:[%s13907_s1 + $0x1344] ss:$16 sps:$4 sm:$0xff]   ;;  %v9951_v20 = vld [vmem:[%s13907_s1 + $0x134c] ss:$16 sps:$4 sm:$0xff]  }
 0x22f   :  { %6717 = vmatpush1.bf16.msra.mxu0 %v9856_v15  ;;  %7405 = vmatpush1.bf16.msra.mxu1 %v9859_v22  ;;  %v9946_v15 = vld [vmem:[%s13907_s1 + $0x1340] ss:$16 sps:$4 sm:$0xff]   ;;  %v9949_v22 = vld [vmem:[%s13907_s1 + $0x1348] ss:$16 sps:$4 sm:$0xff]  }
 0x230   :  { %6718 = vmatprep.subr.bf16.mxu0 %v9864_v23  ;;  %7406 = vmatprep.subr.bf16.mxu1 %v9867_v18  ;;  %v9954_v23 = vld [vmem:[%s13907_s1 + $0x1364] ss:$16 sps:$4 sm:$0xff]   ;;  %v9957_v18 = vld [vmem:[%s13907_s1 + $0x136c] ss:$16 sps:$4 sm:$0xff]  }
 0x233   :  { %6719 = vmatpush1.bf16.msra.mxu0 %v9862_v25  ;;  %7407 = vmatpush1.bf16.msra.mxu1 %v9865_v26  ;;  %v9952_v25 = vld [vmem:[%s13907_s1 + $0x1360] ss:$16 sps:$4 sm:$0xff]   ;;  %v9955_v26 = vld [vmem:[%s13907_s1 + $0x1368] ss:$16 sps:$4 sm:$0xff]  }
 0x234   :  { %6720 = vmatprep.subr.bf16.mxu0 %v9870_v27  ;;  %7408 = vmatprep.subr.bf16.mxu1 %v9873_v28  ;;  %v9960_v27 = vld [vmem:[%s13907_s1 + $0x1384] ss:$16 sps:$4 sm:$0xff]   ;;  %v9963_v28 = vld [vmem:[%s13907_s1 + $0x138c] ss:$16 sps:$4 sm:$0xff]  }
 0x237   :  { %6721 = vmatpush1.bf16.msra.mxu0 %v9868_v29  ;;  %7409 = vmatpush1.bf16.msra.mxu1 %v9871_v30  ;;  %v9958_v29 = vld [vmem:[%s13907_s1 + $0x1380] ss:$16 sps:$4 sm:$0xff]   ;;  %v9961_v30 = vld [vmem:[%s13907_s1 + $0x1388] ss:$16 sps:$4 sm:$0xff]  }
 0x238   :  { %6722 = vmatprep.subr.bf16.mxu0 %v9876_v31  ;;  %7410 = vmatprep.subr.bf16.mxu1 %v9879_v32  ;;  %v9966_v31 = vld [vmem:[%s13907_s1 + $0x13a4] ss:$16 sps:$4 sm:$0xff]   ;;  %v9969_v32 = vld [vmem:[%s13907_s1 + $0x13ac] ss:$16 sps:$4 sm:$0xff]  }
 0x23b   :  { %6723 = vmatpush1.bf16.msra.mxu0 %v9874_v33  ;;  %7411 = vmatpush1.bf16.msra.mxu1 %v9877_v34  ;;  %v9964_v33 = vld [vmem:[%s13907_s1 + $0x13a0] ss:$16 sps:$4 sm:$0xff]   ;;  %v9967_v34 = vld [vmem:[%s13907_s1 + $0x13a8] ss:$16 sps:$4 sm:$0xff]  }
 0x23c   :  { %6724 = vmatprep.subr.bf16.mxu0 %v9882_v35  ;;  %7412 = vmatprep.subr.bf16.mxu1 %v9885_v36  ;;  %v9972_v35 = vld [vmem:[%s13907_s1 + $0x13c4] ss:$16 sps:$4 sm:$0xff]   ;;  %v9975_v36 = vld [vmem:[%s13907_s1 + $0x13cc] ss:$16 sps:$4 sm:$0xff]  }
 0x23f   :  { %6725 = vmatpush1.bf16.msra.mxu0 %v9880_v37  ;;  %7413 = vmatpush1.bf16.msra.mxu1 %v9883_v38  ;;  %v9970_v37 = vld [vmem:[%s13907_s1 + $0x13c0] ss:$16 sps:$4 sm:$0xff]   ;;  %v9973_v38 = vld [vmem:[%s13907_s1 + $0x13c8] ss:$16 sps:$4 sm:$0xff]  }
 0x240   :  { %6737 = vmatprep.subr.bf16.mxu0 %v9888_v39  ;;  %7425 = vmatprep.subr.bf16.mxu1 %v9891_v40  ;;  %v9978_v39 = vld [vmem:[%s13907_s1 + $0x13e4] ss:$16 sps:$4 sm:$0xff]   ;;  %v9981_v40 = vld [vmem:[%s13907_s1 + $0x13ec] ss:$16 sps:$4 sm:$0xff]  }
 0x242   :  { %6727 = vmatmul.mubr.bf16.vlgmr.msra.gmra.mrb[0].mxu0 %v7854_v41  ;;  %7415 = vmatmul.mubr.bf16.vlgmr.msra.gmra.mrb[0].mxu1 %v7854_v41  ;;  %v9976_v41 = vld [vmem:[%s13907_s1 + $0x13e0] ss:$16 sps:$4 sm:$0xff]  }
 0x243   :  { %6738 = vmatpush1.bf16.msra.mxu0 %v9886_v42  ;;  %7426 = vmatpush1.bf16.msra.mxu1 %v9889_v43  ;;  %v9979_v42 = vld [vmem:[%s13907_s1 + $0x13e8] ss:$16 sps:$4 sm:$0xff]   ;;  %v9984_v43 = vld [vmem:[%s13907_s1 + $0x1404] ss:$16 sps:$4 sm:$0xff]  }
 0x244   :  { %6739 = vmatprep.subr.bf16.mxu0 %v9894_v44  ;;  %7427 = vmatprep.subr.bf16.mxu1 %v9897_v14  ;;  %v9987_v44 = vld [vmem:[%s13907_s1 + $0x140c] ss:$16 sps:$4 sm:$0xff]   ;;  %v7856_v14 = vcombine.low %v12436_v19, %v12441_v24  ;;  %v9985_v19 = vld [vmem:[%s13907_s1 + $0x1408] ss:$16 sps:$4 sm:$0xff]   ;;  %v9990_v24 = vld [vmem:[%s13907_s1 + $0x1424] ss:$16 sps:$4 sm:$0xff]  }
 0x245   :  { %6769 = vmatprep.mubr.bf16.mxu0 %v7857_v21  ;;  %7457 = vmatprep.mubr.bf16.mxu1 %v7857_v21  ;;  %v12644_v21 = vld [vmem:[%s13908_s0 + $0x50] sm:$0xff] }
 0x247   :  { %6740 = vmatpush1.bf16.msra.mxu0 %v9892_v45  ;;  %7428 = vmatpush1.bf16.msra.mxu1 %v9895_v46  ;;  %v12649_v45 = vld [vmem:[%s13908_s0 + $0xd0] sm:$0xff] }
 0x248   :  { %6741 = vmatprep.subr.bf16.mxu0 %v9900_v47  ;;  %7429 = vmatprep.subr.bf16.mxu1 %v9903_v48  ;;  %v9982_v46 = vld [vmem:[%s13907_s1 + $0x1400] ss:$16 sps:$4 sm:$0xff]   ;;  %v9993_v47 = vld [vmem:[%s13907_s1 + $0x142c] ss:$16 sps:$4 sm:$0xff]   ;;  %v7859_v48 = vcombine.high %v12644_v21, %v12649_v45 }
 0x24b   :  { %6742 = vmatpush1.bf16.msra.mxu0 %v9898_v49  ;;  %7430 = vmatpush1.bf16.msra.mxu1 %v9901_v50  ;;  %v9988_v49 = vld [vmem:[%s13907_s1 + $0x1420] ss:$16 sps:$4 sm:$0xff]   ;;  %v9991_v50 = vld [vmem:[%s13907_s1 + $0x1428] ss:$16 sps:$4 sm:$0xff]  }
 0x24c   :  { %6743 = vmatprep.subr.bf16.mxu0 %v9906_v51  ;;  %7431 = vmatprep.subr.bf16.mxu1 %v9909_v52  ;;  %v9996_v51 = vld [vmem:[%s13907_s1 + $0x1444] ss:$16 sps:$4 sm:$0xff]   ;;  %v9999_v52 = vld [vmem:[%s13907_s1 + $0x144c] ss:$16 sps:$4 sm:$0xff]  }
 0x24f   :  { %6744 = vmatpush1.bf16.msra.mxu0 %v9904_v53  ;;  %7432 = vmatpush1.bf16.msra.mxu1 %v9907_v54  ;;  %v9994_v53 = vld [vmem:[%s13907_s1 + $0x1440] ss:$16 sps:$4 sm:$0xff]   ;;  %v9997_v54 = vld [vmem:[%s13907_s1 + $0x1448] ss:$16 sps:$4 sm:$0xff]  }
 0x250   :  { %6745 = vmatprep.subr.bf16.mxu0 %v9912_v55  ;;  %7433 = vmatprep.subr.bf16.mxu1 %v9915_v56  ;;  %v10002_v55 = vld [vmem:[%s13907_s1 + $0x1464] ss:$16 sps:$4 sm:$0xff]   ;;  %v10005_v56 = vld [vmem:[%s13907_s1 + $0x146c] ss:$16 sps:$4 sm:$0xff]  }
 0x253   :  { %6746 = vmatpush1.bf16.msra.mxu0 %v9910_v57  ;;  %7434 = vmatpush1.bf16.msra.mxu1 %v9913_v58  ;;  %v10000_v57 = vld [vmem:[%s13907_s1 + $0x1460] ss:$16 sps:$4 sm:$0xff]   ;;  %v10003_v58 = vld [vmem:[%s13907_s1 + $0x1468] ss:$16 sps:$4 sm:$0xff]  }
 0x254   :  { %6747 = vmatprep.subr.bf16.mxu0 %v9918_v59  ;;  %7435 = vmatprep.subr.bf16.mxu1 %v9921_v60  ;;  %v10008_v59 = vld [vmem:[%s13907_s1 + $0x1484] ss:$16 sps:$4 sm:$0xff]   ;;  %v10011_v60 = vld [vmem:[%s13907_s1 + $0x148c] ss:$16 sps:$4 sm:$0xff]  }
 0x257   :  { %6748 = vmatpush1.bf16.msra.mxu0 %v9916_v61  ;;  %7436 = vmatpush1.bf16.msra.mxu1 %v9919_v62  ;;  %v10006_v61 = vld [vmem:[%s13907_s1 + $0x1480] ss:$16 sps:$4 sm:$0xff]   ;;  %v10009_v62 = vld [vmem:[%s13907_s1 + $0x1488] ss:$16 sps:$4 sm:$0xff]  }
 0x258   :  { %6749 = vmatprep.subr.bf16.mxu0 %v9924_v63  ;;  %7437 = vmatprep.subr.bf16.mxu1 %v9927_v0  ;;  %v10014_v63 = vld [vmem:[%s13907_s1 + $0x14a4] ss:$16 sps:$4 sm:$0xff]   ;;  %v10017_v0 = vld [vmem:[%s13907_s1 + $0x14ac] ss:$16 sps:$4 sm:$0xff]  }
 0x25b   :  { %6750 = vmatpush1.bf16.msra.mxu0 %v9922_v1  ;;  %7438 = vmatpush1.bf16.msra.mxu1 %v9925_v2  ;;  %v10012_v1 = vld [vmem:[%s13907_s1 + $0x14a0] ss:$16 sps:$4 sm:$0xff]   ;;  %v10015_v2 = vld [vmem:[%s13907_s1 + $0x14a8] ss:$16 sps:$4 sm:$0xff]  }
 0x25c   :  { %6751 = vmatprep.subr.bf16.mxu0 %v9930_v3  ;;  %7439 = vmatprep.subr.bf16.mxu1 %v9933_v4  ;;  %v10020_v3 = vld [vmem:[%s13907_s1 + $0x14c4] ss:$16 sps:$4 sm:$0xff]   ;;  %v10023_v4 = vld [vmem:[%s13907_s1 + $0x14cc] ss:$16 sps:$4 sm:$0xff]  }
 0x25f   :  { %6752 = vmatpush1.bf16.msra.mxu0 %v9928_v5  ;;  %7440 = vmatpush1.bf16.msra.mxu1 %v9931_v6  ;;  %v10018_v5 = vld [vmem:[%s13907_s1 + $0x14c0] ss:$16 sps:$4 sm:$0xff]   ;;  %v10021_v6 = vld [vmem:[%s13907_s1 + $0x14c8] ss:$16 sps:$4 sm:$0xff]  }
 0x260   :  { %6753 = vmatprep.subr.bf16.mxu0 %v9936_v7  ;;  %7441 = vmatprep.subr.bf16.mxu1 %v9939_v8  ;;  %v10026_v7 = vld [vmem:[%s13907_s1 + $0x14e4] ss:$16 sps:$4 sm:$0xff]   ;;  %v10029_v8 = vld [vmem:[%s13907_s1 + $0x14ec] ss:$16 sps:$4 sm:$0xff]  }
 0x263   :  { %6754 = vmatpush1.bf16.msra.mxu0 %v9934_v9  ;;  %7442 = vmatpush1.bf16.msra.mxu1 %v9937_v10  ;;  %v10024_v9 = vld [vmem:[%s13907_s1 + $0x14e0] ss:$16 sps:$4 sm:$0xff]   ;;  %v10027_v10 = vld [vmem:[%s13907_s1 + $0x14e8] ss:$16 sps:$4 sm:$0xff]  }
 0x264   :  { %6755 = vmatprep.subr.bf16.mxu0 %v9942_v11  ;;  %7443 = vmatprep.subr.bf16.mxu1 %v9945_v12  ;;  %v10032_v11 = vld [vmem:[%s13907_s1 + $0x1504] ss:$16 sps:$4 sm:$0xff]   ;;  %v10035_v12 = vld [vmem:[%s13907_s1 + $0x150c] ss:$16 sps:$4 sm:$0xff]  }
 0x267   :  { %6756 = vmatpush1.bf16.msra.mxu0 %v9940_v13  ;;  %7444 = vmatpush1.bf16.msra.mxu1 %v9943_v16  ;;  %v10030_v13 = vld [vmem:[%s13907_s1 + $0x1500] ss:$16 sps:$4 sm:$0xff]   ;;  %v10033_v16 = vld [vmem:[%s13907_s1 + $0x1508] ss:$16 sps:$4 sm:$0xff]  }
 0x268   :  { %6757 = vmatprep.subr.bf16.mxu0 %v9948_v17  ;;  %7445 = vmatprep.subr.bf16.mxu1 %v9951_v20  ;;  %v10038_v17 = vld [vmem:[%s13907_s1 + $0x1524] ss:$16 sps:$4 sm:$0xff]   ;;  %v10041_v20 = vld [vmem:[%s13907_s1 + $0x152c] ss:$16 sps:$4 sm:$0xff]  }
 0x26b   :  { %6758 = vmatpush1.bf16.msra.mxu0 %v9946_v15  ;;  %7446 = vmatpush1.bf16.msra.mxu1 %v9949_v22  ;;  %v10036_v15 = vld [vmem:[%s13907_s1 + $0x1520] ss:$16 sps:$4 sm:$0xff]   ;;  %v10039_v22 = vld [vmem:[%s13907_s1 + $0x1528] ss:$16 sps:$4 sm:$0xff]  }
 0x26c   :  { %6759 = vmatprep.subr.bf16.mxu0 %v9954_v23  ;;  %7447 = vmatprep.subr.bf16.mxu1 %v9957_v18  ;;  %v10044_v23 = vld [vmem:[%s13907_s1 + $0x1544] ss:$16 sps:$4 sm:$0xff]   ;;  %v10047_v18 = vld [vmem:[%s13907_s1 + $0x154c] ss:$16 sps:$4 sm:$0xff]  }
 0x26f   :  { %6760 = vmatpush1.bf16.msra.mxu0 %v9952_v25  ;;  %7448 = vmatpush1.bf16.msra.mxu1 %v9955_v26  ;;  %v10042_v25 = vld [vmem:[%s13907_s1 + $0x1540] ss:$16 sps:$4 sm:$0xff]   ;;  %v10045_v26 = vld [vmem:[%s13907_s1 + $0x1548] ss:$16 sps:$4 sm:$0xff]  }
 0x270   :  { %6761 = vmatprep.subr.bf16.mxu0 %v9960_v27  ;;  %7449 = vmatprep.subr.bf16.mxu1 %v9963_v28  ;;  %v10050_v27 = vld [vmem:[%s13907_s1 + $0x1564] ss:$16 sps:$4 sm:$0xff]   ;;  %v10053_v28 = vld [vmem:[%s13907_s1 + $0x156c] ss:$16 sps:$4 sm:$0xff]  }
 0x273   :  { %6762 = vmatpush1.bf16.msra.mxu0 %v9958_v29  ;;  %7450 = vmatpush1.bf16.msra.mxu1 %v9961_v30  ;;  %v10048_v29 = vld [vmem:[%s13907_s1 + $0x1560] ss:$16 sps:$4 sm:$0xff]   ;;  %v10051_v30 = vld [vmem:[%s13907_s1 + $0x1568] ss:$16 sps:$4 sm:$0xff]  }
 0x274   :  { %6763 = vmatprep.subr.bf16.mxu0 %v9966_v31  ;;  %7451 = vmatprep.subr.bf16.mxu1 %v9969_v32  ;;  %v10056_v31 = vld [vmem:[%s13907_s1 + $0x1584] ss:$16 sps:$4 sm:$0xff]   ;;  %v10059_v32 = vld [vmem:[%s13907_s1 + $0x158c] ss:$16 sps:$4 sm:$0xff]  }
 0x277   :  { %6764 = vmatpush1.bf16.msra.mxu0 %v9964_v33  ;;  %7452 = vmatpush1.bf16.msra.mxu1 %v9967_v34  ;;  %v10054_v33 = vld [vmem:[%s13907_s1 + $0x1580] ss:$16 sps:$4 sm:$0xff]   ;;  %v10057_v34 = vld [vmem:[%s13907_s1 + $0x1588] ss:$16 sps:$4 sm:$0xff]  }
 0x278   :  { %6765 = vmatprep.subr.bf16.mxu0 %v9972_v35  ;;  %7453 = vmatprep.subr.bf16.mxu1 %v9975_v36  ;;  %v10062_v35 = vld [vmem:[%s13907_s1 + $0x15a4] ss:$16 sps:$4 sm:$0xff]   ;;  %v10065_v36 = vld [vmem:[%s13907_s1 + $0x15ac] ss:$16 sps:$4 sm:$0xff]  }
 0x27b   :  { %6766 = vmatpush1.bf16.msra.mxu0 %v9970_v37  ;;  %7454 = vmatpush1.bf16.msra.mxu1 %v9973_v38  ;;  %v10060_v37 = vld [vmem:[%s13907_s1 + $0x15a0] ss:$16 sps:$4 sm:$0xff]   ;;  %v10063_v38 = vld [vmem:[%s13907_s1 + $0x15a8] ss:$16 sps:$4 sm:$0xff]  }
 0x27c   :  { %6767 = vmatprep.subr.bf16.mxu0 %v9978_v39  ;;  %7455 = vmatprep.subr.bf16.mxu1 %v9981_v40  ;;  %v10068_v39 = vld [vmem:[%s13907_s1 + $0x15c4] ss:$16 sps:$4 sm:$0xff]   ;;  %v10071_v40 = vld [vmem:[%s13907_s1 + $0x15cc] ss:$16 sps:$4 sm:$0xff]  }
 0x27f   :  { %6768 = vmatpush1.bf16.msra.mxu0 %v9976_v41  ;;  %7456 = vmatpush1.bf16.msra.mxu1 %v9979_v42  ;;  %v10066_v41 = vld [vmem:[%s13907_s1 + $0x15c0] ss:$16 sps:$4 sm:$0xff]   ;;  %v10069_v42 = vld [vmem:[%s13907_s1 + $0x15c8] ss:$16 sps:$4 sm:$0xff]  }
 0x280   :  { %6780 = vmatprep.subr.bf16.mxu0 %v9984_v43  ;;  %7468 = vmatprep.subr.bf16.mxu1 %v9987_v44  ;;  %v10074_v43 = vld [vmem:[%s13907_s1 + $0x15e4] ss:$16 sps:$4 sm:$0xff]   ;;  %v10077_v44 = vld [vmem:[%s13907_s1 + $0x15ec] ss:$16 sps:$4 sm:$0xff]  }
 0x282   :  { %6770 = vmatmul.mubr.bf16.vlgmr.msra.gmra.mrb[0].mxu0 %v7856_v14  ;;  %7458 = vmatmul.mubr.bf16.vlgmr.msra.gmra.mrb[0].mxu1 %v7856_v14  ;;  %v10072_v14 = vld [vmem:[%s13907_s1 + $0x15e0] ss:$16 sps:$4 sm:$0xff]  }
 0x283   :  { %6781 = vmatpush1.bf16.msra.mxu0 %v9982_v46  ;;  %7469 = vmatpush1.bf16.msra.mxu1 %v9985_v19  ;;  %v10075_v46 = vld [vmem:[%s13907_s1 + $0x15e8] ss:$16 sps:$4 sm:$0xff]   ;;  %v10080_v19 = vld [vmem:[%s13907_s1 + $0x1604] ss:$16 sps:$4 sm:$0xff]  }
 0x284   :  { %6782 = vmatprep.subr.bf16.mxu0 %v9990_v24  ;;  %7470 = vmatprep.subr.bf16.mxu1 %v9993_v47  ;;  %v10083_v24 = vld [vmem:[%s13907_s1 + $0x160c] ss:$16 sps:$4 sm:$0xff]   ;;  %v7858_v47 = vcombine.low %v12644_v21, %v12649_v45  ;;  %v10081_v21 = vld [vmem:[%s13907_s1 + $0x1608] ss:$16 sps:$4 sm:$0xff]   ;;  %v10086_v45 = vld [vmem:[%s13907_s1 + $0x1624] ss:$16 sps:$4 sm:$0xff]  }
 0x285   :  { %6812 = vmatprep.mubr.bf16.mxu0 %v7859_v48  ;;  %7500 = vmatprep.mubr.bf16.mxu1 %v7859_v48  ;;  %v12850_v48 = vld [vmem:[%s13908_s0 + $0x58] sm:$0xff] }
 0x287   :  { %6783 = vmatpush1.bf16.msra.mxu0 %v9988_v49  ;;  %7471 = vmatpush1.bf16.msra.mxu1 %v9991_v50  ;;  %v12855_v49 = vld [vmem:[%s13908_s0 + $0xd8] sm:$0xff]  ;;  %v10078_v50 = vld [vmem:[%s13907_s1 + $0x1600] ss:$16 sps:$4 sm:$0xff]  }
 0x288   :  { %6784 = vmatprep.subr.bf16.mxu0 %v9996_v51  ;;  %7472 = vmatprep.subr.bf16.mxu1 %v9999_v52  ;;  %v10089_v51 = vld [vmem:[%s13907_s1 + $0x162c] ss:$16 sps:$4 sm:$0xff]   ;;  %v7861_v52 = vcombine.high %v12850_v48, %v12855_v49 }
 0x28b   :  { %6785 = vmatpush1.bf16.msra.mxu0 %v9994_v53  ;;  %7473 = vmatpush1.bf16.msra.mxu1 %v9997_v54  ;;  %v10084_v53 = vld [vmem:[%s13907_s1 + $0x1620] ss:$16 sps:$4 sm:$0xff]   ;;  %v10087_v54 = vld [vmem:[%s13907_s1 + $0x1628] ss:$16 sps:$4 sm:$0xff]  }
 0x28c   :  { %6786 = vmatprep.subr.bf16.mxu0 %v10002_v55  ;;  %7474 = vmatprep.subr.bf16.mxu1 %v10005_v56  ;;  %v10092_v55 = vld [vmem:[%s13907_s1 + $0x1644] ss:$16 sps:$4 sm:$0xff]   ;;  %v10095_v56 = vld [vmem:[%s13907_s1 + $0x164c] ss:$16 sps:$4 sm:$0xff]  }
 0x28f   :  { %6787 = vmatpush1.bf16.msra.mxu0 %v10000_v57  ;;  %7475 = vmatpush1.bf16.msra.mxu1 %v10003_v58  ;;  %v10090_v57 = vld [vmem:[%s13907_s1 + $0x1640] ss:$16 sps:$4 sm:$0xff]   ;;  %v10093_v58 = vld [vmem:[%s13907_s1 + $0x1648] ss:$16 sps:$4 sm:$0xff]  }
 0x290   :  { %6788 = vmatprep.subr.bf16.mxu0 %v10008_v59  ;;  %7476 = vmatprep.subr.bf16.mxu1 %v10011_v60  ;;  %v10098_v59 = vld [vmem:[%s13907_s1 + $0x1664] ss:$16 sps:$4 sm:$0xff]   ;;  %v10101_v60 = vld [vmem:[%s13907_s1 + $0x166c] ss:$16 sps:$4 sm:$0xff]  }
 0x293   :  { %6789 = vmatpush1.bf16.msra.mxu0 %v10006_v61  ;;  %7477 = vmatpush1.bf16.msra.mxu1 %v10009_v62  ;;  %v10096_v61 = vld [vmem:[%s13907_s1 + $0x1660] ss:$16 sps:$4 sm:$0xff]   ;;  %v10099_v62 = vld [vmem:[%s13907_s1 + $0x1668] ss:$16 sps:$4 sm:$0xff]  }
 0x294   :  { %6790 = vmatprep.subr.bf16.mxu0 %v10014_v63  ;;  %7478 = vmatprep.subr.bf16.mxu1 %v10017_v0  ;;  %v10104_v63 = vld [vmem:[%s13907_s1 + $0x1684] ss:$16 sps:$4 sm:$0xff]   ;;  %v10107_v0 = vld [vmem:[%s13907_s1 + $0x168c] ss:$16 sps:$4 sm:$0xff]  }
 0x297   :  { %6791 = vmatpush1.bf16.msra.mxu0 %v10012_v1  ;;  %7479 = vmatpush1.bf16.msra.mxu1 %v10015_v2  ;;  %v10102_v1 = vld [vmem:[%s13907_s1 + $0x1680] ss:$16 sps:$4 sm:$0xff]   ;;  %v10105_v2 = vld [vmem:[%s13907_s1 + $0x1688] ss:$16 sps:$4 sm:$0xff]  }
 0x298   :  { %6792 = vmatprep.subr.bf16.mxu0 %v10020_v3  ;;  %7480 = vmatprep.subr.bf16.mxu1 %v10023_v4  ;;  %v10110_v3 = vld [vmem:[%s13907_s1 + $0x16a4] ss:$16 sps:$4 sm:$0xff]   ;;  %v10113_v4 = vld [vmem:[%s13907_s1 + $0x16ac] ss:$16 sps:$4 sm:$0xff]  }
 0x29b   :  { %6793 = vmatpush1.bf16.msra.mxu0 %v10018_v5  ;;  %7481 = vmatpush1.bf16.msra.mxu1 %v10021_v6  ;;  %v10108_v5 = vld [vmem:[%s13907_s1 + $0x16a0] ss:$16 sps:$4 sm:$0xff]   ;;  %v10111_v6 = vld [vmem:[%s13907_s1 + $0x16a8] ss:$16 sps:$4 sm:$0xff]  }
 0x29c   :  { %6794 = vmatprep.subr.bf16.mxu0 %v10026_v7  ;;  %7482 = vmatprep.subr.bf16.mxu1 %v10029_v8  ;;  %v10116_v7 = vld [vmem:[%s13907_s1 + $0x16c4] ss:$16 sps:$4 sm:$0xff]   ;;  %v10119_v8 = vld [vmem:[%s13907_s1 + $0x16cc] ss:$16 sps:$4 sm:$0xff]  }
 0x29f   :  { %6795 = vmatpush1.bf16.msra.mxu0 %v10024_v9  ;;  %7483 = vmatpush1.bf16.msra.mxu1 %v10027_v10  ;;  %v10114_v9 = vld [vmem:[%s13907_s1 + $0x16c0] ss:$16 sps:$4 sm:$0xff]   ;;  %v10117_v10 = vld [vmem:[%s13907_s1 + $0x16c8] ss:$16 sps:$4 sm:$0xff]  }
 0x2a0   :  { %6796 = vmatprep.subr.bf16.mxu0 %v10032_v11  ;;  %7484 = vmatprep.subr.bf16.mxu1 %v10035_v12  ;;  %v10122_v11 = vld [vmem:[%s13907_s1 + $0x16e4] ss:$16 sps:$4 sm:$0xff]   ;;  %v10125_v12 = vld [vmem:[%s13907_s1 + $0x16ec] ss:$16 sps:$4 sm:$0xff]  }
 0x2a3   :  { %6797 = vmatpush1.bf16.msra.mxu0 %v10030_v13  ;;  %7485 = vmatpush1.bf16.msra.mxu1 %v10033_v16  ;;  %v10120_v13 = vld [vmem:[%s13907_s1 + $0x16e0] ss:$16 sps:$4 sm:$0xff]   ;;  %v10123_v16 = vld [vmem:[%s13907_s1 + $0x16e8] ss:$16 sps:$4 sm:$0xff]  }
 0x2a4   :  { %6798 = vmatprep.subr.bf16.mxu0 %v10038_v17  ;;  %7486 = vmatprep.subr.bf16.mxu1 %v10041_v20  ;;  %v10128_v17 = vld [vmem:[%s13907_s1 + $0x1704] ss:$16 sps:$4 sm:$0xff]   ;;  %v10131_v20 = vld [vmem:[%s13907_s1 + $0x170c] ss:$16 sps:$4 sm:$0xff]  }
 0x2a7   :  { %6799 = vmatpush1.bf16.msra.mxu0 %v10036_v15  ;;  %7487 = vmatpush1.bf16.msra.mxu1 %v10039_v22  ;;  %v10126_v15 = vld [vmem:[%s13907_s1 + $0x1700] ss:$16 sps:$4 sm:$0xff]   ;;  %v10129_v22 = vld [vmem:[%s13907_s1 + $0x1708] ss:$16 sps:$4 sm:$0xff]  }
 0x2a8   :  { %6800 = vmatprep.subr.bf16.mxu0 %v10044_v23  ;;  %7488 = vmatprep.subr.bf16.mxu1 %v10047_v18  ;;  %v10134_v23 = vld [vmem:[%s13907_s1 + $0x1724] ss:$16 sps:$4 sm:$0xff]   ;;  %v10137_v18 = vld [vmem:[%s13907_s1 + $0x172c] ss:$16 sps:$4 sm:$0xff]  }
 0x2ab   :  { %6801 = vmatpush1.bf16.msra.mxu0 %v10042_v25  ;;  %7489 = vmatpush1.bf16.msra.mxu1 %v10045_v26  ;;  %v10132_v25 = vld [vmem:[%s13907_s1 + $0x1720] ss:$16 sps:$4 sm:$0xff]   ;;  %v10135_v26 = vld [vmem:[%s13907_s1 + $0x1728] ss:$16 sps:$4 sm:$0xff]  }
 0x2ac   :  { %6802 = vmatprep.subr.bf16.mxu0 %v10050_v27  ;;  %7490 = vmatprep.subr.bf16.mxu1 %v10053_v28  ;;  %v10140_v27 = vld [vmem:[%s13907_s1 + $0x1744] ss:$16 sps:$4 sm:$0xff]   ;;  %v10143_v28 = vld [vmem:[%s13907_s1 + $0x174c] ss:$16 sps:$4 sm:$0xff]  }
 0x2af   :  { %6803 = vmatpush1.bf16.msra.mxu0 %v10048_v29  ;;  %7491 = vmatpush1.bf16.msra.mxu1 %v10051_v30  ;;  %v10138_v29 = vld [vmem:[%s13907_s1 + $0x1740] ss:$16 sps:$4 sm:$0xff]   ;;  %v10141_v30 = vld [vmem:[%s13907_s1 + $0x1748] ss:$16 sps:$4 sm:$0xff]  }
 0x2b0   :  { %6804 = vmatprep.subr.bf16.mxu0 %v10056_v31  ;;  %7492 = vmatprep.subr.bf16.mxu1 %v10059_v32  ;;  %v10146_v31 = vld [vmem:[%s13907_s1 + $0x1764] ss:$16 sps:$4 sm:$0xff]   ;;  %v10149_v32 = vld [vmem:[%s13907_s1 + $0x176c] ss:$16 sps:$4 sm:$0xff]  }
 0x2b3   :  { %6805 = vmatpush1.bf16.msra.mxu0 %v10054_v33  ;;  %7493 = vmatpush1.bf16.msra.mxu1 %v10057_v34  ;;  %v10144_v33 = vld [vmem:[%s13907_s1 + $0x1760] ss:$16 sps:$4 sm:$0xff]   ;;  %v10147_v34 = vld [vmem:[%s13907_s1 + $0x1768] ss:$16 sps:$4 sm:$0xff]  }
 0x2b4   :  { %6806 = vmatprep.subr.bf16.mxu0 %v10062_v35  ;;  %7494 = vmatprep.subr.bf16.mxu1 %v10065_v36  ;;  %v10152_v35 = vld [vmem:[%s13907_s1 + $0x1784] ss:$16 sps:$4 sm:$0xff]   ;;  %v10155_v36 = vld [vmem:[%s13907_s1 + $0x178c] ss:$16 sps:$4 sm:$0xff]  }
 0x2b7   :  { %6807 = vmatpush1.bf16.msra.mxu0 %v10060_v37  ;;  %7495 = vmatpush1.bf16.msra.mxu1 %v10063_v38  ;;  %v10150_v37 = vld [vmem:[%s13907_s1 + $0x1780] ss:$16 sps:$4 sm:$0xff]   ;;  %v10153_v38 = vld [vmem:[%s13907_s1 + $0x1788] ss:$16 sps:$4 sm:$0xff]  }
 0x2b8   :  { %6808 = vmatprep.subr.bf16.mxu0 %v10068_v39  ;;  %7496 = vmatprep.subr.bf16.mxu1 %v10071_v40  ;;  %v10158_v39 = vld [vmem:[%s13907_s1 + $0x17a4] ss:$16 sps:$4 sm:$0xff]   ;;  %v10161_v40 = vld [vmem:[%s13907_s1 + $0x17ac] ss:$16 sps:$4 sm:$0xff]  }
 0x2bb   :  { %6809 = vmatpush1.bf16.msra.mxu0 %v10066_v41  ;;  %7497 = vmatpush1.bf16.msra.mxu1 %v10069_v42  ;;  %v10156_v41 = vld [vmem:[%s13907_s1 + $0x17a0] ss:$16 sps:$4 sm:$0xff]   ;;  %v10159_v42 = vld [vmem:[%s13907_s1 + $0x17a8] ss:$16 sps:$4 sm:$0xff]  }
 0x2bc   :  { %6810 = vmatprep.subr.bf16.mxu0 %v10074_v43  ;;  %7498 = vmatprep.subr.bf16.mxu1 %v10077_v44  ;;  %v10164_v43 = vld [vmem:[%s13907_s1 + $0x17c4] ss:$16 sps:$4 sm:$0xff]   ;;  %v10167_v44 = vld [vmem:[%s13907_s1 + $0x17cc] ss:$16 sps:$4 sm:$0xff]  }
 0x2bf   :  { %6811 = vmatpush1.bf16.msra.mxu0 %v10072_v14  ;;  %7499 = vmatpush1.bf16.msra.mxu1 %v10075_v46  ;;  %v10162_v14 = vld [vmem:[%s13907_s1 + $0x17c0] ss:$16 sps:$4 sm:$0xff]   ;;  %v10165_v46 = vld [vmem:[%s13907_s1 + $0x17c8] ss:$16 sps:$4 sm:$0xff]  }
 0x2c0   :  { %6823 = vmatprep.subr.bf16.mxu0 %v10080_v19  ;;  %7511 = vmatprep.subr.bf16.mxu1 %v10083_v24  ;;  %v10170_v19 = vld [vmem:[%s13907_s1 + $0x17e4] ss:$16 sps:$4 sm:$0xff]   ;;  %v10173_v24 = vld [vmem:[%s13907_s1 + $0x17ec] ss:$16 sps:$4 sm:$0xff]  }
 0x2c2   :  { %6813 = vmatmul.mubr.bf16.vlgmr.msra.gmra.mrb[0].mxu0 %v7858_v47  ;;  %7501 = vmatmul.mubr.bf16.vlgmr.msra.gmra.mrb[0].mxu1 %v7858_v47  ;;  %v10168_v47 = vld [vmem:[%s13907_s1 + $0x17e0] ss:$16 sps:$4 sm:$0xff]  }
 0x2c3   :  { %6824 = vmatpush1.bf16.msra.mxu0 %v10078_v50  ;;  %7512 = vmatpush1.bf16.msra.mxu1 %v10081_v21  ;;  %v10171_v50 = vld [vmem:[%s13907_s1 + $0x17e8] ss:$16 sps:$4 sm:$0xff]   ;;  %v10176_v21 = vld [vmem:[%s13907_s1 + $0x1804] ss:$16 sps:$4 sm:$0xff]  }
 0x2c4   :  { %6825 = vmatprep.subr.bf16.mxu0 %v10086_v45  ;;  %7513 = vmatprep.subr.bf16.mxu1 %v10089_v51  ;;  %v10179_v45 = vld [vmem:[%s13907_s1 + $0x180c] ss:$16 sps:$4 sm:$0xff]   ;;  %v7860_v51 = vcombine.low %v12850_v48, %v12855_v49  ;;  %v10177_v48 = vld [vmem:[%s13907_s1 + $0x1808] ss:$16 sps:$4 sm:$0xff]   ;;  %v10182_v49 = vld [vmem:[%s13907_s1 + $0x1824] ss:$16 sps:$4 sm:$0xff]  }
 0x2c5   :  { %6855 = vmatprep.mubr.bf16.mxu0 %v7861_v52  ;;  %7543 = vmatprep.mubr.bf16.mxu1 %v7861_v52  ;;  %v13056_v52 = vld [vmem:[%s13908_s0 + $0x60] sm:$0xff] }
 0x2c7   :  { %6826 = vmatpush1.bf16.msra.mxu0 %v10084_v53  ;;  %7514 = vmatpush1.bf16.msra.mxu1 %v10087_v54  ;;  %v13061_v53 = vld [vmem:[%s13908_s0 + $0xe0] sm:$0xff] }
 0x2c8   :  { %6827 = vmatprep.subr.bf16.mxu0 %v10092_v55  ;;  %7515 = vmatprep.subr.bf16.mxu1 %v10095_v56  ;;  %v10174_v54 = vld [vmem:[%s13907_s1 + $0x1800] ss:$16 sps:$4 sm:$0xff]   ;;  %v10185_v55 = vld [vmem:[%s13907_s1 + $0x182c] ss:$16 sps:$4 sm:$0xff]   ;;  %v7863_v56 = vcombine.high %v13056_v52, %v13061_v53 }
 0x2cb   :  { %6828 = vmatpush1.bf16.msra.mxu0 %v10090_v57  ;;  %7516 = vmatpush1.bf16.msra.mxu1 %v10093_v58  ;;  %v10180_v57 = vld [vmem:[%s13907_s1 + $0x1820] ss:$16 sps:$4 sm:$0xff]   ;;  %v10183_v58 = vld [vmem:[%s13907_s1 + $0x1828] ss:$16 sps:$4 sm:$0xff]  }
 0x2cc   :  { %6829 = vmatprep.subr.bf16.mxu0 %v10098_v59  ;;  %7517 = vmatprep.subr.bf16.mxu1 %v10101_v60  ;;  %v10188_v59 = vld [vmem:[%s13907_s1 + $0x1844] ss:$16 sps:$4 sm:$0xff]   ;;  %v10191_v60 = vld [vmem:[%s13907_s1 + $0x184c] ss:$16 sps:$4 sm:$0xff]  }
 0x2cf   :  { %6830 = vmatpush1.bf16.msra.mxu0 %v10096_v61  ;;  %7518 = vmatpush1.bf16.msra.mxu1 %v10099_v62  ;;  %v10186_v61 = vld [vmem:[%s13907_s1 + $0x1840] ss:$16 sps:$4 sm:$0xff]   ;;  %v10189_v62 = vld [vmem:[%s13907_s1 + $0x1848] ss:$16 sps:$4 sm:$0xff]  }
 0x2d0   :  { %6831 = vmatprep.subr.bf16.mxu0 %v10104_v63  ;;  %7519 = vmatprep.subr.bf16.mxu1 %v10107_v0  ;;  %v10194_v63 = vld [vmem:[%s13907_s1 + $0x1864] ss:$16 sps:$4 sm:$0xff]   ;;  %v10197_v0 = vld [vmem:[%s13907_s1 + $0x186c] ss:$16 sps:$4 sm:$0xff]  }
 0x2d3   :  { %6832 = vmatpush1.bf16.msra.mxu0 %v10102_v1  ;;  %7520 = vmatpush1.bf16.msra.mxu1 %v10105_v2  ;;  %v10192_v1 = vld [vmem:[%s13907_s1 + $0x1860] ss:$16 sps:$4 sm:$0xff]   ;;  %v10195_v2 = vld [vmem:[%s13907_s1 + $0x1868] ss:$16 sps:$4 sm:$0xff]  }
 0x2d4   :  { %6833 = vmatprep.subr.bf16.mxu0 %v10110_v3  ;;  %7521 = vmatprep.subr.bf16.mxu1 %v10113_v4  ;;  %v10200_v3 = vld [vmem:[%s13907_s1 + $0x1884] ss:$16 sps:$4 sm:$0xff]   ;;  %v10203_v4 = vld [vmem:[%s13907_s1 + $0x188c] ss:$16 sps:$4 sm:$0xff]  }
 0x2d7   :  { %6834 = vmatpush1.bf16.msra.mxu0 %v10108_v5  ;;  %7522 = vmatpush1.bf16.msra.mxu1 %v10111_v6  ;;  %v10198_v5 = vld [vmem:[%s13907_s1 + $0x1880] ss:$16 sps:$4 sm:$0xff]   ;;  %v10201_v6 = vld [vmem:[%s13907_s1 + $0x1888] ss:$16 sps:$4 sm:$0xff]  }
 0x2d8   :  { %6835 = vmatprep.subr.bf16.mxu0 %v10116_v7  ;;  %7523 = vmatprep.subr.bf16.mxu1 %v10119_v8  ;;  %v10206_v7 = vld [vmem:[%s13907_s1 + $0x18a4] ss:$16 sps:$4 sm:$0xff]   ;;  %v10209_v8 = vld [vmem:[%s13907_s1 + $0x18ac] ss:$16 sps:$4 sm:$0xff]  }
 0x2db   :  { %6836 = vmatpush1.bf16.msra.mxu0 %v10114_v9  ;;  %7524 = vmatpush1.bf16.msra.mxu1 %v10117_v10  ;;  %v10204_v9 = vld [vmem:[%s13907_s1 + $0x18a0] ss:$16 sps:$4 sm:$0xff]   ;;  %v10207_v10 = vld [vmem:[%s13907_s1 + $0x18a8] ss:$16 sps:$4 sm:$0xff]  }
 0x2dc   :  { %6837 = vmatprep.subr.bf16.mxu0 %v10122_v11  ;;  %7525 = vmatprep.subr.bf16.mxu1 %v10125_v12  ;;  %v10212_v11 = vld [vmem:[%s13907_s1 + $0x18c4] ss:$16 sps:$4 sm:$0xff]   ;;  %v10215_v12 = vld [vmem:[%s13907_s1 + $0x18cc] ss:$16 sps:$4 sm:$0xff]  }
 0x2df   :  { %6838 = vmatpush1.bf16.msra.mxu0 %v10120_v13  ;;  %7526 = vmatpush1.bf16.msra.mxu1 %v10123_v16  ;;  %v10210_v13 = vld [vmem:[%s13907_s1 + $0x18c0] ss:$16 sps:$4 sm:$0xff]   ;;  %v10213_v16 = vld [vmem:[%s13907_s1 + $0x18c8] ss:$16 sps:$4 sm:$0xff]  }
 0x2e0   :  { %6839 = vmatprep.subr.bf16.mxu0 %v10128_v17  ;;  %7527 = vmatprep.subr.bf16.mxu1 %v10131_v20  ;;  %v10218_v17 = vld [vmem:[%s13907_s1 + $0x18e4] ss:$16 sps:$4 sm:$0xff]   ;;  %v10221_v20 = vld [vmem:[%s13907_s1 + $0x18ec] ss:$16 sps:$4 sm:$0xff]  }
 0x2e3   :  { %6840 = vmatpush1.bf16.msra.mxu0 %v10126_v15  ;;  %7528 = vmatpush1.bf16.msra.mxu1 %v10129_v22  ;;  %v10216_v15 = vld [vmem:[%s13907_s1 + $0x18e0] ss:$16 sps:$4 sm:$0xff]   ;;  %v10219_v22 = vld [vmem:[%s13907_s1 + $0x18e8] ss:$16 sps:$4 sm:$0xff]  }
 0x2e4   :  { %6841 = vmatprep.subr.bf16.mxu0 %v10134_v23  ;;  %7529 = vmatprep.subr.bf16.mxu1 %v10137_v18  ;;  %v10224_v23 = vld [vmem:[%s13907_s1 + $0x1904] ss:$16 sps:$4 sm:$0xff]   ;;  %v10227_v18 = vld [vmem:[%s13907_s1 + $0x190c] ss:$16 sps:$4 sm:$0xff]  }
 0x2e7   :  { %6842 = vmatpush1.bf16.msra.mxu0 %v10132_v25  ;;  %7530 = vmatpush1.bf16.msra.mxu1 %v10135_v26  ;;  %v10222_v25 = vld [vmem:[%s13907_s1 + $0x1900] ss:$16 sps:$4 sm:$0xff]   ;;  %v10225_v26 = vld [vmem:[%s13907_s1 + $0x1908] ss:$16 sps:$4 sm:$0xff]  }
 0x2e8   :  { %6843 = vmatprep.subr.bf16.mxu0 %v10140_v27  ;;  %7531 = vmatprep.subr.bf16.mxu1 %v10143_v28  ;;  %v10230_v27 = vld [vmem:[%s13907_s1 + $0x1924] ss:$16 sps:$4 sm:$0xff]   ;;  %v10233_v28 = vld [vmem:[%s13907_s1 + $0x192c] ss:$16 sps:$4 sm:$0xff]  }
 0x2eb   :  { %6844 = vmatpush1.bf16.msra.mxu0 %v10138_v29  ;;  %7532 = vmatpush1.bf16.msra.mxu1 %v10141_v30  ;;  %v10228_v29 = vld [vmem:[%s13907_s1 + $0x1920] ss:$16 sps:$4 sm:$0xff]   ;;  %v10231_v30 = vld [vmem:[%s13907_s1 + $0x1928] ss:$16 sps:$4 sm:$0xff]  }
 0x2ec   :  { %6845 = vmatprep.subr.bf16.mxu0 %v10146_v31  ;;  %7533 = vmatprep.subr.bf16.mxu1 %v10149_v32  ;;  %v10236_v31 = vld [vmem:[%s13907_s1 + $0x1944] ss:$16 sps:$4 sm:$0xff]   ;;  %v10239_v32 = vld [vmem:[%s13907_s1 + $0x194c] ss:$16 sps:$4 sm:$0xff]  }
 0x2ef   :  { %6846 = vmatpush1.bf16.msra.mxu0 %v10144_v33  ;;  %7534 = vmatpush1.bf16.msra.mxu1 %v10147_v34  ;;  %v10234_v33 = vld [vmem:[%s13907_s1 + $0x1940] ss:$16 sps:$4 sm:$0xff]   ;;  %v10237_v34 = vld [vmem:[%s13907_s1 + $0x1948] ss:$16 sps:$4 sm:$0xff]  }
 0x2f0   :  { %6847 = vmatprep.subr.bf16.mxu0 %v10152_v35  ;;  %7535 = vmatprep.subr.bf16.mxu1 %v10155_v36  ;;  %v10242_v35 = vld [vmem:[%s13907_s1 + $0x1964] ss:$16 sps:$4 sm:$0xff]   ;;  %v10245_v36 = vld [vmem:[%s13907_s1 + $0x196c] ss:$16 sps:$4 sm:$0xff]  }
 0x2f3   :  { %6848 = vmatpush1.bf16.msra.mxu0 %v10150_v37  ;;  %7536 = vmatpush1.bf16.msra.mxu1 %v10153_v38  ;;  %v10240_v37 = vld [vmem:[%s13907_s1 + $0x1960] ss:$16 sps:$4 sm:$0xff]   ;;  %v10243_v38 = vld [vmem:[%s13907_s1 + $0x1968] ss:$16 sps:$4 sm:$0xff]  }
 0x2f4   :  { %6849 = vmatprep.subr.bf16.mxu0 %v10158_v39  ;;  %7537 = vmatprep.subr.bf16.mxu1 %v10161_v40  ;;  %v10248_v39 = vld [vmem:[%s13907_s1 + $0x1984] ss:$16 sps:$4 sm:$0xff]   ;;  %v10251_v40 = vld [vmem:[%s13907_s1 + $0x198c] ss:$16 sps:$4 sm:$0xff]  }
 0x2f7   :  { %6850 = vmatpush1.bf16.msra.mxu0 %v10156_v41  ;;  %7538 = vmatpush1.bf16.msra.mxu1 %v10159_v42  ;;  %v10246_v41 = vld [vmem:[%s13907_s1 + $0x1980] ss:$16 sps:$4 sm:$0xff]   ;;  %v10249_v42 = vld [vmem:[%s13907_s1 + $0x1988] ss:$16 sps:$4 sm:$0xff]  }
 0x2f8   :  { %6851 = vmatprep.subr.bf16.mxu0 %v10164_v43  ;;  %7539 = vmatprep.subr.bf16.mxu1 %v10167_v44  ;;  %v10254_v43 = vld [vmem:[%s13907_s1 + $0x19a4] ss:$16 sps:$4 sm:$0xff]   ;;  %v10257_v44 = vld [vmem:[%s13907_s1 + $0x19ac] ss:$16 sps:$4 sm:$0xff]  }
 0x2fb   :  { %6852 = vmatpush1.bf16.msra.mxu0 %v10162_v14  ;;  %7540 = vmatpush1.bf16.msra.mxu1 %v10165_v46  ;;  %v10252_v14 = vld [vmem:[%s13907_s1 + $0x19a0] ss:$16 sps:$4 sm:$0xff]   ;;  %v10255_v46 = vld [vmem:[%s13907_s1 + $0x19a8] ss:$16 sps:$4 sm:$0xff]  }
 0x2fc   :  { %6853 = vmatprep.subr.bf16.mxu0 %v10170_v19  ;;  %7541 = vmatprep.subr.bf16.mxu1 %v10173_v24  ;;  %v10260_v19 = vld [vmem:[%s13907_s1 + $0x19c4] ss:$16 sps:$4 sm:$0xff]   ;;  %v10263_v24 = vld [vmem:[%s13907_s1 + $0x19cc] ss:$16 sps:$4 sm:$0xff]  }
 0x2ff   :  { %6854 = vmatpush1.bf16.msra.mxu0 %v10168_v47  ;;  %7542 = vmatpush1.bf16.msra.mxu1 %v10171_v50  ;;  %v10258_v47 = vld [vmem:[%s13907_s1 + $0x19c0] ss:$16 sps:$4 sm:$0xff]   ;;  %v10261_v50 = vld [vmem:[%s13907_s1 + $0x19c8] ss:$16 sps:$4 sm:$0xff]  }
 0x300   :  { %6866 = vmatprep.subr.bf16.mxu0 %v10176_v21  ;;  %7554 = vmatprep.subr.bf16.mxu1 %v10179_v45  ;;  %v10266_v21 = vld [vmem:[%s13907_s1 + $0x19e4] ss:$16 sps:$4 sm:$0xff]   ;;  %v10269_v45 = vld [vmem:[%s13907_s1 + $0x19ec] ss:$16 sps:$4 sm:$0xff]  }
 0x302   :  { %6856 = vmatmul.mubr.bf16.vlgmr.msra.gmra.mrb[0].mxu0 %v7860_v51  ;;  %7544 = vmatmul.mubr.bf16.vlgmr.msra.gmra.mrb[0].mxu1 %v7860_v51  ;;  %v10264_v51 = vld [vmem:[%s13907_s1 + $0x19e0] ss:$16 sps:$4 sm:$0xff]  }
 0x303   :  { %6867 = vmatpush1.bf16.msra.mxu0 %v10174_v54  ;;  %7555 = vmatpush1.bf16.msra.mxu1 %v10177_v48  ;;  %v10267_v54 = vld [vmem:[%s13907_s1 + $0x19e8] ss:$16 sps:$4 sm:$0xff]   ;;  %v10272_v48 = vld [vmem:[%s13907_s1 + $0x1a04] ss:$16 sps:$4 sm:$0xff]  }
 0x304   :  { %6868 = vmatprep.subr.bf16.mxu0 %v10182_v49  ;;  %7556 = vmatprep.subr.bf16.mxu1 %v10185_v55  ;;  %v10275_v49 = vld [vmem:[%s13907_s1 + $0x1a0c] ss:$16 sps:$4 sm:$0xff]   ;;  %v7862_v55 = vcombine.low %v13056_v52, %v13061_v53  ;;  %v10273_v52 = vld [vmem:[%s13907_s1 + $0x1a08] ss:$16 sps:$4 sm:$0xff]   ;;  %v10278_v53 = vld [vmem:[%s13907_s1 + $0x1a24] ss:$16 sps:$4 sm:$0xff]  }
 0x305   :  { %6898 = vmatprep.mubr.bf16.mxu0 %v7863_v56  ;;  %7586 = vmatprep.mubr.bf16.mxu1 %v7863_v56  ;;  %v13262_v56 = vld [vmem:[%s13908_s0 + $0x68] sm:$0xff] }
 0x307   :  { %6869 = vmatpush1.bf16.msra.mxu0 %v10180_v57  ;;  %7557 = vmatpush1.bf16.msra.mxu1 %v10183_v58  ;;  %v13267_v57 = vld [vmem:[%s13908_s0 + $0xe8] sm:$0xff]  ;;  %v10270_v58 = vld [vmem:[%s13907_s1 + $0x1a00] ss:$16 sps:$4 sm:$0xff]  }
 0x308   :  { %6870 = vmatprep.subr.bf16.mxu0 %v10188_v59  ;;  %7558 = vmatprep.subr.bf16.mxu1 %v10191_v60  ;;  %v10281_v59 = vld [vmem:[%s13907_s1 + $0x1a2c] ss:$16 sps:$4 sm:$0xff]   ;;  %v7865_v60 = vcombine.high %v13262_v56, %v13267_v57 }
 0x30b   :  { %6871 = vmatpush1.bf16.msra.mxu0 %v10186_v61  ;;  %7559 = vmatpush1.bf16.msra.mxu1 %v10189_v62  ;;  %v10276_v61 = vld [vmem:[%s13907_s1 + $0x1a20] ss:$16 sps:$4 sm:$0xff]   ;;  %v10279_v62 = vld [vmem:[%s13907_s1 + $0x1a28] ss:$16 sps:$4 sm:$0xff]  }
 0x30c   :  { %6872 = vmatprep.subr.bf16.mxu0 %v10194_v63  ;;  %7560 = vmatprep.subr.bf16.mxu1 %v10197_v0  ;;  %v10284_v63 = vld [vmem:[%s13907_s1 + $0x1a44] ss:$16 sps:$4 sm:$0xff]   ;;  %v10287_v0 = vld [vmem:[%s13907_s1 + $0x1a4c] ss:$16 sps:$4 sm:$0xff]  }
 0x30f   :  { %6873 = vmatpush1.bf16.msra.mxu0 %v10192_v1  ;;  %7561 = vmatpush1.bf16.msra.mxu1 %v10195_v2  ;;  %v10282_v1 = vld [vmem:[%s13907_s1 + $0x1a40] ss:$16 sps:$4 sm:$0xff]   ;;  %v10285_v2 = vld [vmem:[%s13907_s1 + $0x1a48] ss:$16 sps:$4 sm:$0xff]  }
 0x310   :  { %6874 = vmatprep.subr.bf16.mxu0 %v10200_v3  ;;  %7562 = vmatprep.subr.bf16.mxu1 %v10203_v4  ;;  %v10290_v3 = vld [vmem:[%s13907_s1 + $0x1a64] ss:$16 sps:$4 sm:$0xff]   ;;  %v10293_v4 = vld [vmem:[%s13907_s1 + $0x1a6c] ss:$16 sps:$4 sm:$0xff]  }
 0x313   :  { %6875 = vmatpush1.bf16.msra.mxu0 %v10198_v5  ;;  %7563 = vmatpush1.bf16.msra.mxu1 %v10201_v6  ;;  %v10288_v5 = vld [vmem:[%s13907_s1 + $0x1a60] ss:$16 sps:$4 sm:$0xff]   ;;  %v10291_v6 = vld [vmem:[%s13907_s1 + $0x1a68] ss:$16 sps:$4 sm:$0xff]  }
 0x314   :  { %6876 = vmatprep.subr.bf16.mxu0 %v10206_v7  ;;  %7564 = vmatprep.subr.bf16.mxu1 %v10209_v8  ;;  %v10296_v7 = vld [vmem:[%s13907_s1 + $0x1a84] ss:$16 sps:$4 sm:$0xff]   ;;  %v10299_v8 = vld [vmem:[%s13907_s1 + $0x1a8c] ss:$16 sps:$4 sm:$0xff]  }
 0x317   :  { %6877 = vmatpush1.bf16.msra.mxu0 %v10204_v9  ;;  %7565 = vmatpush1.bf16.msra.mxu1 %v10207_v10  ;;  %v10294_v9 = vld [vmem:[%s13907_s1 + $0x1a80] ss:$16 sps:$4 sm:$0xff]   ;;  %v10297_v10 = vld [vmem:[%s13907_s1 + $0x1a88] ss:$16 sps:$4 sm:$0xff]  }
 0x318   :  { %6878 = vmatprep.subr.bf16.mxu0 %v10212_v11  ;;  %7566 = vmatprep.subr.bf16.mxu1 %v10215_v12  ;;  %v10302_v11 = vld [vmem:[%s13907_s1 + $0x1aa4] ss:$16 sps:$4 sm:$0xff]   ;;  %v10305_v12 = vld [vmem:[%s13907_s1 + $0x1aac] ss:$16 sps:$4 sm:$0xff]  }
 0x31b   :  { %6879 = vmatpush1.bf16.msra.mxu0 %v10210_v13  ;;  %7567 = vmatpush1.bf16.msra.mxu1 %v10213_v16  ;;  %v10300_v13 = vld [vmem:[%s13907_s1 + $0x1aa0] ss:$16 sps:$4 sm:$0xff]   ;;  %v10303_v16 = vld [vmem:[%s13907_s1 + $0x1aa8] ss:$16 sps:$4 sm:$0xff]  }
 0x31c   :  { %6880 = vmatprep.subr.bf16.mxu0 %v10218_v17  ;;  %7568 = vmatprep.subr.bf16.mxu1 %v10221_v20  ;;  %v10308_v17 = vld [vmem:[%s13907_s1 + $0x1ac4] ss:$16 sps:$4 sm:$0xff]   ;;  %v10311_v20 = vld [vmem:[%s13907_s1 + $0x1acc] ss:$16 sps:$4 sm:$0xff]  }
 0x31f   :  { %6881 = vmatpush1.bf16.msra.mxu0 %v10216_v15  ;;  %7569 = vmatpush1.bf16.msra.mxu1 %v10219_v22  ;;  %v10306_v15 = vld [vmem:[%s13907_s1 + $0x1ac0] ss:$16 sps:$4 sm:$0xff]   ;;  %v10309_v22 = vld [vmem:[%s13907_s1 + $0x1ac8] ss:$16 sps:$4 sm:$0xff]  }
 0x320   :  { %6882 = vmatprep.subr.bf16.mxu0 %v10224_v23  ;;  %7570 = vmatprep.subr.bf16.mxu1 %v10227_v18  ;;  %v10314_v23 = vld [vmem:[%s13907_s1 + $0x1ae4] ss:$16 sps:$4 sm:$0xff]   ;;  %v10317_v18 = vld [vmem:[%s13907_s1 + $0x1aec] ss:$16 sps:$4 sm:$0xff]  }
 0x323   :  { %6883 = vmatpush1.bf16.msra.mxu0 %v10222_v25  ;;  %7571 = vmatpush1.bf16.msra.mxu1 %v10225_v26  ;;  %v10312_v25 = vld [vmem:[%s13907_s1 + $0x1ae0] ss:$16 sps:$4 sm:$0xff]   ;;  %v10315_v26 = vld [vmem:[%s13907_s1 + $0x1ae8] ss:$16 sps:$4 sm:$0xff]  }
 0x324   :  { %6884 = vmatprep.subr.bf16.mxu0 %v10230_v27  ;;  %7572 = vmatprep.subr.bf16.mxu1 %v10233_v28  ;;  %v10320_v27 = vld [vmem:[%s13907_s1 + $0x1b04] ss:$16 sps:$4 sm:$0xff]   ;;  %v10323_v28 = vld [vmem:[%s13907_s1 + $0x1b0c] ss:$16 sps:$4 sm:$0xff]  }
 0x327   :  { %6885 = vmatpush1.bf16.msra.mxu0 %v10228_v29  ;;  %7573 = vmatpush1.bf16.msra.mxu1 %v10231_v30  ;;  %v10318_v29 = vld [vmem:[%s13907_s1 + $0x1b00] ss:$16 sps:$4 sm:$0xff]   ;;  %v10321_v30 = vld [vmem:[%s13907_s1 + $0x1b08] ss:$16 sps:$4 sm:$0xff]  }
 0x328   :  { %6886 = vmatprep.subr.bf16.mxu0 %v10236_v31  ;;  %7574 = vmatprep.subr.bf16.mxu1 %v10239_v32  ;;  %v10326_v31 = vld [vmem:[%s13907_s1 + $0x1b24] ss:$16 sps:$4 sm:$0xff]   ;;  %v10329_v32 = vld [vmem:[%s13907_s1 + $0x1b2c] ss:$16 sps:$4 sm:$0xff]  }
 0x32b   :  { %6887 = vmatpush1.bf16.msra.mxu0 %v10234_v33  ;;  %7575 = vmatpush1.bf16.msra.mxu1 %v10237_v34  ;;  %v10324_v33 = vld [vmem:[%s13907_s1 + $0x1b20] ss:$16 sps:$4 sm:$0xff]   ;;  %v10327_v34 = vld [vmem:[%s13907_s1 + $0x1b28] ss:$16 sps:$4 sm:$0xff]  }
 0x32c   :  { %6888 = vmatprep.subr.bf16.mxu0 %v10242_v35  ;;  %7576 = vmatprep.subr.bf16.mxu1 %v10245_v36  ;;  %v10332_v35 = vld [vmem:[%s13907_s1 + $0x1b44] ss:$16 sps:$4 sm:$0xff]   ;;  %v10335_v36 = vld [vmem:[%s13907_s1 + $0x1b4c] ss:$16 sps:$4 sm:$0xff]  }
 0x32f   :  { %6889 = vmatpush1.bf16.msra.mxu0 %v10240_v37  ;;  %7577 = vmatpush1.bf16.msra.mxu1 %v10243_v38  ;;  %v10330_v37 = vld [vmem:[%s13907_s1 + $0x1b40] ss:$16 sps:$4 sm:$0xff]   ;;  %v10333_v38 = vld [vmem:[%s13907_s1 + $0x1b48] ss:$16 sps:$4 sm:$0xff]  }
 0x330   :  { %6890 = vmatprep.subr.bf16.mxu0 %v10248_v39  ;;  %7578 = vmatprep.subr.bf16.mxu1 %v10251_v40  ;;  %v10338_v39 = vld [vmem:[%s13907_s1 + $0x1b64] ss:$16 sps:$4 sm:$0xff]   ;;  %v10341_v40 = vld [vmem:[%s13907_s1 + $0x1b6c] ss:$16 sps:$4 sm:$0xff]  }
 0x333   :  { %6891 = vmatpush1.bf16.msra.mxu0 %v10246_v41  ;;  %7579 = vmatpush1.bf16.msra.mxu1 %v10249_v42  ;;  %v10336_v41 = vld [vmem:[%s13907_s1 + $0x1b60] ss:$16 sps:$4 sm:$0xff]   ;;  %v10339_v42 = vld [vmem:[%s13907_s1 + $0x1b68] ss:$16 sps:$4 sm:$0xff]  }
 0x334   :  { %6892 = vmatprep.subr.bf16.mxu0 %v10254_v43  ;;  %7580 = vmatprep.subr.bf16.mxu1 %v10257_v44  ;;  %v10344_v43 = vld [vmem:[%s13907_s1 + $0x1b84] ss:$16 sps:$4 sm:$0xff]   ;;  %v10347_v44 = vld [vmem:[%s13907_s1 + $0x1b8c] ss:$16 sps:$4 sm:$0xff]  }
 0x337   :  { %6893 = vmatpush1.bf16.msra.mxu0 %v10252_v14  ;;  %7581 = vmatpush1.bf16.msra.mxu1 %v10255_v46  ;;  %v10342_v14 = vld [vmem:[%s13907_s1 + $0x1b80] ss:$16 sps:$4 sm:$0xff]   ;;  %v10345_v46 = vld [vmem:[%s13907_s1 + $0x1b88] ss:$16 sps:$4 sm:$0xff]  }
 0x338   :  { %6894 = vmatprep.subr.bf16.mxu0 %v10260_v19  ;;  %7582 = vmatprep.subr.bf16.mxu1 %v10263_v24  ;;  %v10350_v19 = vld [vmem:[%s13907_s1 + $0x1ba4] ss:$16 sps:$4 sm:$0xff]   ;;  %v10353_v24 = vld [vmem:[%s13907_s1 + $0x1bac] ss:$16 sps:$4 sm:$0xff]  }
 0x33b   :  { %6895 = vmatpush1.bf16.msra.mxu0 %v10258_v47  ;;  %7583 = vmatpush1.bf16.msra.mxu1 %v10261_v50  ;;  %v10348_v47 = vld [vmem:[%s13907_s1 + $0x1ba0] ss:$16 sps:$4 sm:$0xff]   ;;  %v10351_v50 = vld [vmem:[%s13907_s1 + $0x1ba8] ss:$16 sps:$4 sm:$0xff]  }
 0x33c   :  { %6896 = vmatprep.subr.bf16.mxu0 %v10266_v21  ;;  %7584 = vmatprep.subr.bf16.mxu1 %v10269_v45  ;;  %v10356_v21 = vld [vmem:[%s13907_s1 + $0x1bc4] ss:$16 sps:$4 sm:$0xff]   ;;  %v10359_v45 = vld [vmem:[%s13907_s1 + $0x1bcc] ss:$16 sps:$4 sm:$0xff]  }
 0x33f   :  { %6897 = vmatpush1.bf16.msra.mxu0 %v10264_v51  ;;  %7585 = vmatpush1.bf16.msra.mxu1 %v10267_v54  ;;  %v10354_v51 = vld [vmem:[%s13907_s1 + $0x1bc0] ss:$16 sps:$4 sm:$0xff]   ;;  %v10357_v54 = vld [vmem:[%s13907_s1 + $0x1bc8] ss:$16 sps:$4 sm:$0xff]  }
 0x340   :  { %6909 = vmatprep.subr.bf16.mxu0 %v10272_v48  ;;  %7597 = vmatprep.subr.bf16.mxu1 %v10275_v49  ;;  %v10362_v48 = vld [vmem:[%s13907_s1 + $0x1be4] ss:$16 sps:$4 sm:$0xff]   ;;  %v10365_v49 = vld [vmem:[%s13907_s1 + $0x1bec] ss:$16 sps:$4 sm:$0xff]  }
 0x342   :  { %6899 = vmatmul.mubr.bf16.vlgmr.msra.gmra.mrb[0].mxu0 %v7862_v55  ;;  %7587 = vmatmul.mubr.bf16.vlgmr.msra.gmra.mrb[0].mxu1 %v7862_v55  ;;  %v10360_v55 = vld [vmem:[%s13907_s1 + $0x1be0] ss:$16 sps:$4 sm:$0xff]  }
 0x343   :  { %6910 = vmatpush1.bf16.msra.mxu0 %v10270_v58  ;;  %7598 = vmatpush1.bf16.msra.mxu1 %v10273_v52  ;;  %v10363_v58 = vld [vmem:[%s13907_s1 + $0x1be8] ss:$16 sps:$4 sm:$0xff]   ;;  %v10368_v52 = vld [vmem:[%s13907_s1 + $0x1c04] ss:$16 sps:$4 sm:$0xff]  }
 0x344   :  { %6911 = vmatprep.subr.bf16.mxu0 %v10278_v53  ;;  %7599 = vmatprep.subr.bf16.mxu1 %v10281_v59  ;;  %v10371_v53 = vld [vmem:[%s13907_s1 + $0x1c0c] ss:$16 sps:$4 sm:$0xff]   ;;  %v7864_v59 = vcombine.low %v13262_v56, %v13267_v57  ;;  %v10369_v56 = vld [vmem:[%s13907_s1 + $0x1c08] ss:$16 sps:$4 sm:$0xff]   ;;  %v10374_v57 = vld [vmem:[%s13907_s1 + $0x1c24] ss:$16 sps:$4 sm:$0xff]  }
 0x345   :  { %6941 = vmatprep.mubr.bf16.mxu0 %v7865_v60  ;;  %7629 = vmatprep.mubr.bf16.mxu1 %v7865_v60  ;;  %v13468_v60 = vld [vmem:[%s13908_s0 + $0x70] sm:$0xff] }
 0x347   :  { %6912 = vmatpush1.bf16.msra.mxu0 %v10276_v61  ;;  %7600 = vmatpush1.bf16.msra.mxu1 %v10279_v62  ;;  %v13473_v61 = vld [vmem:[%s13908_s0 + $0xf0] sm:$0xff] }
 0x348   :  { %6913 = vmatprep.subr.bf16.mxu0 %v10284_v63  ;;  %7601 = vmatprep.subr.bf16.mxu1 %v10287_v0  ;;  %v10366_v62 = vld [vmem:[%s13907_s1 + $0x1c00] ss:$16 sps:$4 sm:$0xff]   ;;  %v10377_v63 = vld [vmem:[%s13907_s1 + $0x1c2c] ss:$16 sps:$4 sm:$0xff]   ;;  %v7867_v0 = vcombine.high %v13468_v60, %v13473_v61 }
 0x34b   :  { %6914 = vmatpush1.bf16.msra.mxu0 %v10282_v1  ;;  %7602 = vmatpush1.bf16.msra.mxu1 %v10285_v2  ;;  %v10372_v1 = vld [vmem:[%s13907_s1 + $0x1c20] ss:$16 sps:$4 sm:$0xff]   ;;  %v10375_v2 = vld [vmem:[%s13907_s1 + $0x1c28] ss:$16 sps:$4 sm:$0xff]  }
 0x34c   :  { %6915 = vmatprep.subr.bf16.mxu0 %v10290_v3  ;;  %7603 = vmatprep.subr.bf16.mxu1 %v10293_v4  ;;  %v10380_v3 = vld [vmem:[%s13907_s1 + $0x1c44] ss:$16 sps:$4 sm:$0xff]   ;;  %v10383_v4 = vld [vmem:[%s13907_s1 + $0x1c4c] ss:$16 sps:$4 sm:$0xff]  }
 0x34f   :  { %6916 = vmatpush1.bf16.msra.mxu0 %v10288_v5  ;;  %7604 = vmatpush1.bf16.msra.mxu1 %v10291_v6  ;;  %v10378_v5 = vld [vmem:[%s13907_s1 + $0x1c40] ss:$16 sps:$4 sm:$0xff]   ;;  %v10381_v6 = vld [vmem:[%s13907_s1 + $0x1c48] ss:$16 sps:$4 sm:$0xff]  }
 0x350   :  { %6917 = vmatprep.subr.bf16.mxu0 %v10296_v7  ;;  %7605 = vmatprep.subr.bf16.mxu1 %v10299_v8  ;;  %v10386_v7 = vld [vmem:[%s13907_s1 + $0x1c64] ss:$16 sps:$4 sm:$0xff]   ;;  %v10389_v8 = vld [vmem:[%s13907_s1 + $0x1c6c] ss:$16 sps:$4 sm:$0xff]  }
 0x353   :  { %6918 = vmatpush1.bf16.msra.mxu0 %v10294_v9  ;;  %7606 = vmatpush1.bf16.msra.mxu1 %v10297_v10  ;;  %v10384_v9 = vld [vmem:[%s13907_s1 + $0x1c60] ss:$16 sps:$4 sm:$0xff]   ;;  %v10387_v10 = vld [vmem:[%s13907_s1 + $0x1c68] ss:$16 sps:$4 sm:$0xff]  }
 0x354   :  { %6919 = vmatprep.subr.bf16.mxu0 %v10302_v11  ;;  %7607 = vmatprep.subr.bf16.mxu1 %v10305_v12  ;;  %v10392_v11 = vld [vmem:[%s13907_s1 + $0x1c84] ss:$16 sps:$4 sm:$0xff]   ;;  %v10395_v12 = vld [vmem:[%s13907_s1 + $0x1c8c] ss:$16 sps:$4 sm:$0xff]  }
 0x357   :  { %6920 = vmatpush1.bf16.msra.mxu0 %v10300_v13  ;;  %7608 = vmatpush1.bf16.msra.mxu1 %v10303_v16  ;;  %v10390_v13 = vld [vmem:[%s13907_s1 + $0x1c80] ss:$16 sps:$4 sm:$0xff]   ;;  %v10393_v16 = vld [vmem:[%s13907_s1 + $0x1c88] ss:$16 sps:$4 sm:$0xff]  }
 0x358   :  { %6921 = vmatprep.subr.bf16.mxu0 %v10308_v17  ;;  %7609 = vmatprep.subr.bf16.mxu1 %v10311_v20  ;;  %v10398_v17 = vld [vmem:[%s13907_s1 + $0x1ca4] ss:$16 sps:$4 sm:$0xff]   ;;  %v10401_v20 = vld [vmem:[%s13907_s1 + $0x1cac] ss:$16 sps:$4 sm:$0xff]  }
 0x35b   :  { %6922 = vmatpush1.bf16.msra.mxu0 %v10306_v15  ;;  %7610 = vmatpush1.bf16.msra.mxu1 %v10309_v22  ;;  %v10396_v15 = vld [vmem:[%s13907_s1 + $0x1ca0] ss:$16 sps:$4 sm:$0xff]   ;;  %v10399_v22 = vld [vmem:[%s13907_s1 + $0x1ca8] ss:$16 sps:$4 sm:$0xff]  }
 0x35c   :  { %6923 = vmatprep.subr.bf16.mxu0 %v10314_v23  ;;  %7611 = vmatprep.subr.bf16.mxu1 %v10317_v18  ;;  %v10404_v23 = vld [vmem:[%s13907_s1 + $0x1cc4] ss:$16 sps:$4 sm:$0xff]   ;;  %v10407_v18 = vld [vmem:[%s13907_s1 + $0x1ccc] ss:$16 sps:$4 sm:$0xff]  }
 0x35f   :  { %6924 = vmatpush1.bf16.msra.mxu0 %v10312_v25  ;;  %7612 = vmatpush1.bf16.msra.mxu1 %v10315_v26  ;;  %v10402_v25 = vld [vmem:[%s13907_s1 + $0x1cc0] ss:$16 sps:$4 sm:$0xff]   ;;  %v10405_v26 = vld [vmem:[%s13907_s1 + $0x1cc8] ss:$16 sps:$4 sm:$0xff]  }
 0x360   :  { %6925 = vmatprep.subr.bf16.mxu0 %v10320_v27  ;;  %7613 = vmatprep.subr.bf16.mxu1 %v10323_v28  ;;  %v10410_v27 = vld [vmem:[%s13907_s1 + $0x1ce4] ss:$16 sps:$4 sm:$0xff]   ;;  %v10413_v28 = vld [vmem:[%s13907_s1 + $0x1cec] ss:$16 sps:$4 sm:$0xff]  }
 0x363   :  { %6926 = vmatpush1.bf16.msra.mxu0 %v10318_v29  ;;  %7614 = vmatpush1.bf16.msra.mxu1 %v10321_v30  ;;  %v10408_v29 = vld [vmem:[%s13907_s1 + $0x1ce0] ss:$16 sps:$4 sm:$0xff]   ;;  %v10411_v30 = vld [vmem:[%s13907_s1 + $0x1ce8] ss:$16 sps:$4 sm:$0xff]  }
 0x364   :  { %6927 = vmatprep.subr.bf16.mxu0 %v10326_v31  ;;  %7615 = vmatprep.subr.bf16.mxu1 %v10329_v32  ;;  %v10416_v31 = vld [vmem:[%s13907_s1 + $0x1d04] ss:$16 sps:$4 sm:$0xff]   ;;  %v10419_v32 = vld [vmem:[%s13907_s1 + $0x1d0c] ss:$16 sps:$4 sm:$0xff]  }
 0x367   :  { %6928 = vmatpush1.bf16.msra.mxu0 %v10324_v33  ;;  %7616 = vmatpush1.bf16.msra.mxu1 %v10327_v34  ;;  %v10414_v33 = vld [vmem:[%s13907_s1 + $0x1d00] ss:$16 sps:$4 sm:$0xff]   ;;  %v10417_v34 = vld [vmem:[%s13907_s1 + $0x1d08] ss:$16 sps:$4 sm:$0xff]  }
 0x368   :  { %6929 = vmatprep.subr.bf16.mxu0 %v10332_v35  ;;  %7617 = vmatprep.subr.bf16.mxu1 %v10335_v36  ;;  %v10422_v35 = vld [vmem:[%s13907_s1 + $0x1d24] ss:$16 sps:$4 sm:$0xff]   ;;  %v10425_v36 = vld [vmem:[%s13907_s1 + $0x1d2c] ss:$16 sps:$4 sm:$0xff]  }
 0x36b   :  { %6930 = vmatpush1.bf16.msra.mxu0 %v10330_v37  ;;  %7618 = vmatpush1.bf16.msra.mxu1 %v10333_v38  ;;  %v10420_v37 = vld [vmem:[%s13907_s1 + $0x1d20] ss:$16 sps:$4 sm:$0xff]   ;;  %v10423_v38 = vld [vmem:[%s13907_s1 + $0x1d28] ss:$16 sps:$4 sm:$0xff]  }
 0x36c   :  { %6931 = vmatprep.subr.bf16.mxu0 %v10338_v39  ;;  %7619 = vmatprep.subr.bf16.mxu1 %v10341_v40  ;;  %v10428_v39 = vld [vmem:[%s13907_s1 + $0x1d44] ss:$16 sps:$4 sm:$0xff]   ;;  %v10431_v40 = vld [vmem:[%s13907_s1 + $0x1d4c] ss:$16 sps:$4 sm:$0xff]  }
 0x36f   :  { %6932 = vmatpush1.bf16.msra.mxu0 %v10336_v41  ;;  %7620 = vmatpush1.bf16.msra.mxu1 %v10339_v42  ;;  %v10426_v41 = vld [vmem:[%s13907_s1 + $0x1d40] ss:$16 sps:$4 sm:$0xff]   ;;  %v10429_v42 = vld [vmem:[%s13907_s1 + $0x1d48] ss:$16 sps:$4 sm:$0xff]  }
 0x370   :  { %6933 = vmatprep.subr.bf16.mxu0 %v10344_v43  ;;  %7621 = vmatprep.subr.bf16.mxu1 %v10347_v44  ;;  %v10434_v43 = vld [vmem:[%s13907_s1 + $0x1d64] ss:$16 sps:$4 sm:$0xff]   ;;  %v10437_v44 = vld [vmem:[%s13907_s1 + $0x1d6c] ss:$16 sps:$4 sm:$0xff]  }
 0x373   :  { %6934 = vmatpush1.bf16.msra.mxu0 %v10342_v14  ;;  %7622 = vmatpush1.bf16.msra.mxu1 %v10345_v46  ;;  %v10432_v14 = vld [vmem:[%s13907_s1 + $0x1d60] ss:$16 sps:$4 sm:$0xff]   ;;  %v10435_v46 = vld [vmem:[%s13907_s1 + $0x1d68] ss:$16 sps:$4 sm:$0xff]  }
 0x374   :  { %6935 = vmatprep.subr.bf16.mxu0 %v10350_v19  ;;  %7623 = vmatprep.subr.bf16.mxu1 %v10353_v24  ;;  %v10440_v19 = vld [vmem:[%s13907_s1 + $0x1d84] ss:$16 sps:$4 sm:$0xff]   ;;  %v10443_v24 = vld [vmem:[%s13907_s1 + $0x1d8c] ss:$16 sps:$4 sm:$0xff]  }
 0x377   :  { %6936 = vmatpush1.bf16.msra.mxu0 %v10348_v47  ;;  %7624 = vmatpush1.bf16.msra.mxu1 %v10351_v50  ;;  %v10438_v47 = vld [vmem:[%s13907_s1 + $0x1d80] ss:$16 sps:$4 sm:$0xff]   ;;  %v10441_v50 = vld [vmem:[%s13907_s1 + $0x1d88] ss:$16 sps:$4 sm:$0xff]  }
 0x378   :  { %6937 = vmatprep.subr.bf16.mxu0 %v10356_v21  ;;  %7625 = vmatprep.subr.bf16.mxu1 %v10359_v45  ;;  %v10446_v21 = vld [vmem:[%s13907_s1 + $0x1da4] ss:$16 sps:$4 sm:$0xff]   ;;  %v10449_v45 = vld [vmem:[%s13907_s1 + $0x1dac] ss:$16 sps:$4 sm:$0xff]  }
 0x37b   :  { %6938 = vmatpush1.bf16.msra.mxu0 %v10354_v51  ;;  %7626 = vmatpush1.bf16.msra.mxu1 %v10357_v54  ;;  %v10444_v51 = vld [vmem:[%s13907_s1 + $0x1da0] ss:$16 sps:$4 sm:$0xff]   ;;  %v10447_v54 = vld [vmem:[%s13907_s1 + $0x1da8] ss:$16 sps:$4 sm:$0xff]  }
 0x37c   :  { %6939 = vmatprep.subr.bf16.mxu0 %v10362_v48  ;;  %7627 = vmatprep.subr.bf16.mxu1 %v10365_v49  ;;  %v10452_v48 = vld [vmem:[%s13907_s1 + $0x1dc4] ss:$16 sps:$4 sm:$0xff]   ;;  %v10455_v49 = vld [vmem:[%s13907_s1 + $0x1dcc] ss:$16 sps:$4 sm:$0xff]  }
 0x37f   :  { %6940 = vmatpush1.bf16.msra.mxu0 %v10360_v55  ;;  %7628 = vmatpush1.bf16.msra.mxu1 %v10363_v58  ;;  %v10450_v55 = vld [vmem:[%s13907_s1 + $0x1dc0] ss:$16 sps:$4 sm:$0xff]   ;;  %v10453_v58 = vld [vmem:[%s13907_s1 + $0x1dc8] ss:$16 sps:$4 sm:$0xff]  }
 0x380   :  { %6952 = vmatprep.subr.bf16.mxu0 %v10368_v52  ;;  %7640 = vmatprep.subr.bf16.mxu1 %v10371_v53  ;;  %v10458_v52 = vld [vmem:[%s13907_s1 + $0x1de4] ss:$16 sps:$4 sm:$0xff]   ;;  %v10461_v53 = vld [vmem:[%s13907_s1 + $0x1dec] ss:$16 sps:$4 sm:$0xff]  }
 0x382   :  { %6942 = vmatmul.mubr.bf16.vlgmr.msra.gmra.mrb[0].mxu0 %v7864_v59  ;;  %7630 = vmatmul.mubr.bf16.vlgmr.msra.gmra.mrb[0].mxu1 %v7864_v59  ;;  %v10456_v59 = vld [vmem:[%s13907_s1 + $0x1de0] ss:$16 sps:$4 sm:$0xff]  }
 0x383   :  { %6953 = vmatpush1.bf16.msra.mxu0 %v10366_v62  ;;  %7641 = vmatpush1.bf16.msra.mxu1 %v10369_v56  ;;  %v10459_v62 = vld [vmem:[%s13907_s1 + $0x1de8] ss:$16 sps:$4 sm:$0xff]   ;;  %v10464_v56 = vld [vmem:[%s13907_s1 + $0x1e04] ss:$16 sps:$4 sm:$0xff]  }
 0x384   :  { %6954 = vmatprep.subr.bf16.mxu0 %v10374_v57  ;;  %7642 = vmatprep.subr.bf16.mxu1 %v10377_v63  ;;  %v10467_v57 = vld [vmem:[%s13907_s1 + $0x1e0c] ss:$16 sps:$4 sm:$0xff]   ;;  %v7866_v63 = vcombine.low %v13468_v60, %v13473_v61  ;;  %v10465_v60 = vld [vmem:[%s13907_s1 + $0x1e08] ss:$16 sps:$4 sm:$0xff]   ;;  %v10470_v61 = vld [vmem:[%s13907_s1 + $0x1e24] ss:$16 sps:$4 sm:$0xff]  }
 0x385   :  { %6984 = vmatprep.mubr.bf16.mxu0 %v7867_v0  ;;  %7672 = vmatprep.mubr.bf16.mxu1 %v7867_v0  ;;  %v13674_v0 = vld [vmem:[%s13908_s0 + $0x78] sm:$0xff] }
 0x387   :  { %6955 = vmatpush1.bf16.msra.mxu0 %v10372_v1  ;;  %7643 = vmatpush1.bf16.msra.mxu1 %v10375_v2  ;;  %v13679_v1 = vld [vmem:[%s13908_s0 + $0xf8] sm:$0xff]  ;;  %v10462_v2 = vld [vmem:[%s13907_s1 + $0x1e00] ss:$16 sps:$4 sm:$0xff]  }
 0x388   :  { %6956 = vmatprep.subr.bf16.mxu0 %v10380_v3  ;;  %7644 = vmatprep.subr.bf16.mxu1 %v10383_v4  ;;  %v10473_v3 = vld [vmem:[%s13907_s1 + $0x1e2c] ss:$16 sps:$4 sm:$0xff]   ;;  %v7869_v4 = vcombine.high %v13674_v0, %v13679_v1 }
 0x38b   :  { %6957 = vmatpush1.bf16.msra.mxu0 %v10378_v5  ;;  %7645 = vmatpush1.bf16.msra.mxu1 %v10381_v6  ;;  %v10468_v5 = vld [vmem:[%s13907_s1 + $0x1e20] ss:$16 sps:$4 sm:$0xff]   ;;  %v10471_v6 = vld [vmem:[%s13907_s1 + $0x1e28] ss:$16 sps:$4 sm:$0xff]  }
 0x38c   :  { %6958 = vmatprep.subr.bf16.mxu0 %v10386_v7  ;;  %7646 = vmatprep.subr.bf16.mxu1 %v10389_v8  ;;  %v10476_v7 = vld [vmem:[%s13907_s1 + $0x1e44] ss:$16 sps:$4 sm:$0xff]   ;;  %v10479_v8 = vld [vmem:[%s13907_s1 + $0x1e4c] ss:$16 sps:$4 sm:$0xff]  }
 0x38f   :  { %6959 = vmatpush1.bf16.msra.mxu0 %v10384_v9  ;;  %7647 = vmatpush1.bf16.msra.mxu1 %v10387_v10  ;;  %v10474_v9 = vld [vmem:[%s13907_s1 + $0x1e40] ss:$16 sps:$4 sm:$0xff]   ;;  %v10477_v10 = vld [vmem:[%s13907_s1 + $0x1e48] ss:$16 sps:$4 sm:$0xff]  }
 0x390   :  { %6960 = vmatprep.subr.bf16.mxu0 %v10392_v11  ;;  %7648 = vmatprep.subr.bf16.mxu1 %v10395_v12  ;;  %v10482_v11 = vld [vmem:[%s13907_s1 + $0x1e64] ss:$16 sps:$4 sm:$0xff]   ;;  %v10485_v12 = vld [vmem:[%s13907_s1 + $0x1e6c] ss:$16 sps:$4 sm:$0xff]  }
 0x393   :  { %6961 = vmatpush1.bf16.msra.mxu0 %v10390_v13  ;;  %7649 = vmatpush1.bf16.msra.mxu1 %v10393_v16  ;;  %v10480_v13 = vld [vmem:[%s13907_s1 + $0x1e60] ss:$16 sps:$4 sm:$0xff]   ;;  %v10483_v16 = vld [vmem:[%s13907_s1 + $0x1e68] ss:$16 sps:$4 sm:$0xff]  }
 0x394   :  { %6962 = vmatprep.subr.bf16.mxu0 %v10398_v17  ;;  %7650 = vmatprep.subr.bf16.mxu1 %v10401_v20  ;;  %v10488_v17 = vld [vmem:[%s13907_s1 + $0x1e84] ss:$16 sps:$4 sm:$0xff]   ;;  %v10491_v20 = vld [vmem:[%s13907_s1 + $0x1e8c] ss:$16 sps:$4 sm:$0xff]  }
 0x397   :  { %6963 = vmatpush1.bf16.msra.mxu0 %v10396_v15  ;;  %7651 = vmatpush1.bf16.msra.mxu1 %v10399_v22  ;;  %v10486_v15 = vld [vmem:[%s13907_s1 + $0x1e80] ss:$16 sps:$4 sm:$0xff]   ;;  %v10489_v22 = vld [vmem:[%s13907_s1 + $0x1e88] ss:$16 sps:$4 sm:$0xff]  }
 0x398   :  { %6964 = vmatprep.subr.bf16.mxu0 %v10404_v23  ;;  %7652 = vmatprep.subr.bf16.mxu1 %v10407_v18  ;;  %v10494_v23 = vld [vmem:[%s13907_s1 + $0x1ea4] ss:$16 sps:$4 sm:$0xff]   ;;  %v10497_v18 = vld [vmem:[%s13907_s1 + $0x1eac] ss:$16 sps:$4 sm:$0xff]  }
 0x39b   :  { %6965 = vmatpush1.bf16.msra.mxu0 %v10402_v25  ;;  %7653 = vmatpush1.bf16.msra.mxu1 %v10405_v26  ;;  %v10492_v25 = vld [vmem:[%s13907_s1 + $0x1ea0] ss:$16 sps:$4 sm:$0xff]   ;;  %v10495_v26 = vld [vmem:[%s13907_s1 + $0x1ea8] ss:$16 sps:$4 sm:$0xff]  }
 0x39c   :  { %6966 = vmatprep.subr.bf16.mxu0 %v10410_v27  ;;  %7654 = vmatprep.subr.bf16.mxu1 %v10413_v28  ;;  %v10500_v27 = vld [vmem:[%s13907_s1 + $0x1ec4] ss:$16 sps:$4 sm:$0xff]   ;;  %v10503_v28 = vld [vmem:[%s13907_s1 + $0x1ecc] ss:$16 sps:$4 sm:$0xff]  }
 0x39f   :  { %6967 = vmatpush1.bf16.msra.mxu0 %v10408_v29  ;;  %7655 = vmatpush1.bf16.msra.mxu1 %v10411_v30  ;;  %v10498_v29 = vld [vmem:[%s13907_s1 + $0x1ec0] ss:$16 sps:$4 sm:$0xff]   ;;  %v10501_v30 = vld [vmem:[%s13907_s1 + $0x1ec8] ss:$16 sps:$4 sm:$0xff]  }
 0x3a0   :  { %6968 = vmatprep.subr.bf16.mxu0 %v10416_v31  ;;  %7656 = vmatprep.subr.bf16.mxu1 %v10419_v32  ;;  %v10506_v31 = vld [vmem:[%s13907_s1 + $0x1ee4] ss:$16 sps:$4 sm:$0xff]   ;;  %v10509_v32 = vld [vmem:[%s13907_s1 + $0x1eec] ss:$16 sps:$4 sm:$0xff]  }
 0x3a3   :  { %6969 = vmatpush1.bf16.msra.mxu0 %v10414_v33  ;;  %7657 = vmatpush1.bf16.msra.mxu1 %v10417_v34  ;;  %v10504_v33 = vld [vmem:[%s13907_s1 + $0x1ee0] ss:$16 sps:$4 sm:$0xff]   ;;  %v10507_v34 = vld [vmem:[%s13907_s1 + $0x1ee8] ss:$16 sps:$4 sm:$0xff]  }
 0x3a4   :  { %6970 = vmatprep.subr.bf16.mxu0 %v10422_v35  ;;  %7658 = vmatprep.subr.bf16.mxu1 %v10425_v36  ;;  %v10512_v35 = vld [vmem:[%s13907_s1 + $0x1f04] ss:$16 sps:$4 sm:$0xff]   ;;  %v10515_v36 = vld [vmem:[%s13907_s1 + $0x1f0c] ss:$16 sps:$4 sm:$0xff]  }
 0x3a7   :  { %6971 = vmatpush1.bf16.msra.mxu0 %v10420_v37  ;;  %7659 = vmatpush1.bf16.msra.mxu1 %v10423_v38  ;;  %v10510_v37 = vld [vmem:[%s13907_s1 + $0x1f00] ss:$16 sps:$4 sm:$0xff]   ;;  %v10513_v38 = vld [vmem:[%s13907_s1 + $0x1f08] ss:$16 sps:$4 sm:$0xff]  }
 0x3a8   :  { %6972 = vmatprep.subr.bf16.mxu0 %v10428_v39  ;;  %7660 = vmatprep.subr.bf16.mxu1 %v10431_v40  ;;  %v10518_v39 = vld [vmem:[%s13907_s1 + $0x1f24] ss:$16 sps:$4 sm:$0xff]   ;;  %v10521_v40 = vld [vmem:[%s13907_s1 + $0x1f2c] ss:$16 sps:$4 sm:$0xff]  }
 0x3ab   :  { %6973 = vmatpush1.bf16.msra.mxu0 %v10426_v41  ;;  %7661 = vmatpush1.bf16.msra.mxu1 %v10429_v42  ;;  %v10516_v41 = vld [vmem:[%s13907_s1 + $0x1f20] ss:$16 sps:$4 sm:$0xff]   ;;  %v10519_v42 = vld [vmem:[%s13907_s1 + $0x1f28] ss:$16 sps:$4 sm:$0xff]  }
 0x3ac   :  { %6974 = vmatprep.subr.bf16.mxu0 %v10434_v43  ;;  %7662 = vmatprep.subr.bf16.mxu1 %v10437_v44  ;;  %v10524_v43 = vld [vmem:[%s13907_s1 + $0x1f44] ss:$16 sps:$4 sm:$0xff]   ;;  %v10527_v44 = vld [vmem:[%s13907_s1 + $0x1f4c] ss:$16 sps:$4 sm:$0xff]  }
 0x3af   :  { %6975 = vmatpush1.bf16.msra.mxu0 %v10432_v14  ;;  %7663 = vmatpush1.bf16.msra.mxu1 %v10435_v46  ;;  %v10522_v14 = vld [vmem:[%s13907_s1 + $0x1f40] ss:$16 sps:$4 sm:$0xff]   ;;  %v10525_v46 = vld [vmem:[%s13907_s1 + $0x1f48] ss:$16 sps:$4 sm:$0xff]  }
 0x3b0   :  { %6976 = vmatprep.subr.bf16.mxu0 %v10440_v19  ;;  %7664 = vmatprep.subr.bf16.mxu1 %v10443_v24  ;;  %v10530_v19 = vld [vmem:[%s13907_s1 + $0x1f64] ss:$16 sps:$4 sm:$0xff]   ;;  %v10533_v24 = vld [vmem:[%s13907_s1 + $0x1f6c] ss:$16 sps:$4 sm:$0xff]  }
 0x3b3   :  { %6977 = vmatpush1.bf16.msra.mxu0 %v10438_v47  ;;  %7665 = vmatpush1.bf16.msra.mxu1 %v10441_v50  ;;  %v10528_v47 = vld [vmem:[%s13907_s1 + $0x1f60] ss:$16 sps:$4 sm:$0xff]   ;;  %v10531_v50 = vld [vmem:[%s13907_s1 + $0x1f68] ss:$16 sps:$4 sm:$0xff]  }
 0x3b4   :  { %6978 = vmatprep.subr.bf16.mxu0 %v10446_v21  ;;  %7666 = vmatprep.subr.bf16.mxu1 %v10449_v45  ;;  %v10536_v21 = vld [vmem:[%s13907_s1 + $0x1f84] ss:$16 sps:$4 sm:$0xff]   ;;  %v10539_v45 = vld [vmem:[%s13907_s1 + $0x1f8c] ss:$16 sps:$4 sm:$0xff]  }
 0x3b7   :  { %6979 = vmatpush1.bf16.msra.mxu0 %v10444_v51  ;;  %7667 = vmatpush1.bf16.msra.mxu1 %v10447_v54  ;;  %v10534_v51 = vld [vmem:[%s13907_s1 + $0x1f80] ss:$16 sps:$4 sm:$0xff]   ;;  %v10537_v54 = vld [vmem:[%s13907_s1 + $0x1f88] ss:$16 sps:$4 sm:$0xff]  }
 0x3b8   :  { %6980 = vmatprep.subr.bf16.mxu0 %v10452_v48  ;;  %7668 = vmatprep.subr.bf16.mxu1 %v10455_v49  ;;  %v10542_v48 = vld [vmem:[%s13907_s1 + $0x1fa4] ss:$16 sps:$4 sm:$0xff]   ;;  %v10545_v49 = vld [vmem:[%s13907_s1 + $0x1fac] ss:$16 sps:$4 sm:$0xff]  }
 0x3bb   :  { %6981 = vmatpush1.bf16.msra.mxu0 %v10450_v55  ;;  %7669 = vmatpush1.bf16.msra.mxu1 %v10453_v58  ;;  %v10540_v55 = vld [vmem:[%s13907_s1 + $0x1fa0] ss:$16 sps:$4 sm:$0xff]   ;;  %v10543_v58 = vld [vmem:[%s13907_s1 + $0x1fa8] ss:$16 sps:$4 sm:$0xff]  }
 0x3bc   :  { %6982 = vmatprep.subr.bf16.mxu0 %v10458_v52  ;;  %7670 = vmatprep.subr.bf16.mxu1 %v10461_v53  ;;  %v10548_v52 = vld [vmem:[%s13907_s1 + $0x1fc4] ss:$16 sps:$4 sm:$0xff]   ;;  %v10551_v53 = vld [vmem:[%s13907_s1 + $0x1fcc] ss:$16 sps:$4 sm:$0xff]  }
 0x3bf   :  { %6983 = vmatpush1.bf16.msra.mxu0 %v10456_v59  ;;  %7671 = vmatpush1.bf16.msra.mxu1 %v10459_v62  ;;  %v10546_v59 = vld [vmem:[%s13907_s1 + $0x1fc0] ss:$16 sps:$4 sm:$0xff]   ;;  %v10549_v62 = vld [vmem:[%s13907_s1 + $0x1fc8] ss:$16 sps:$4 sm:$0xff]  }
 0x3c0   :  { %6995 = vmatprep.subr.bf16.mxu0 %v10464_v56  ;;  %7683 = vmatprep.subr.bf16.mxu1 %v10467_v57  ;;  %v10554_v56 = vld [vmem:[%s13907_s1 + $0x1fe4] ss:$16 sps:$4 sm:$0xff]   ;;  %v10557_v57 = vld [vmem:[%s13907_s1 + $0x1fec] ss:$16 sps:$4 sm:$0xff]  }
 0x3c2   :  { %6985 = vmatmul.mubr.bf16.vlgmr.msra.gmra.mrb[0].mxu0 %v7866_v63  ;;  %7673 = vmatmul.mubr.bf16.vlgmr.msra.gmra.mrb[0].mxu1 %v7866_v63  ;;  %v10552_v63 = vld [vmem:[%s13907_s1 + $0x1fe0] ss:$16 sps:$4 sm:$0xff]  }
 0x3c3   :  { %6996 = vmatpush1.bf16.msra.mxu0 %v10462_v2  ;;  %7684 = vmatpush1.bf16.msra.mxu1 %v10465_v60  ;;  %v10555_v2 = vld [vmem:[%s13907_s1 + $0x1fe8] ss:$16 sps:$4 sm:$0xff]   ;;  %v7868_v60 = vcombine.low %v13674_v0, %v13679_v1 }
 0x3c4   :  { %6997 = vmatprep.subr.bf16.mxu0 %v10470_v61  ;;  %7685 = vmatprep.subr.bf16.mxu1 %v10473_v3 }
 0x3c5   :  { %7027 = vmatprep.mubr.bf16.mxu0 %v7869_v4  ;;  %7715 = vmatprep.mubr.bf16.mxu1 %v7869_v4 }
 0x3c7   :  { %6998 = vmatpush1.bf16.msra.mxu0 %v10468_v5  ;;  %7686 = vmatpush1.bf16.msra.mxu1 %v10471_v6 }
 0x3c8   :  { %6999 = vmatprep.subr.bf16.mxu0 %v10476_v7  ;;  %7687 = vmatprep.subr.bf16.mxu1 %v10479_v8 }
 0x3cb   :  { %7000 = vmatpush1.bf16.msra.mxu0 %v10474_v9  ;;  %7688 = vmatpush1.bf16.msra.mxu1 %v10477_v10 }
 0x3cc   :  { %7001 = vmatprep.subr.bf16.mxu0 %v10482_v11  ;;  %7689 = vmatprep.subr.bf16.mxu1 %v10485_v12 }
 0x3cf   :  { %7002 = vmatpush1.bf16.msra.mxu0 %v10480_v13  ;;  %7690 = vmatpush1.bf16.msra.mxu1 %v10483_v16 }
 0x3d0   :  { %7003 = vmatprep.subr.bf16.mxu0 %v10488_v17  ;;  %7691 = vmatprep.subr.bf16.mxu1 %v10491_v20 }
 0x3d3   :  { %7004 = vmatpush1.bf16.msra.mxu0 %v10486_v15  ;;  %7692 = vmatpush1.bf16.msra.mxu1 %v10489_v22 }
 0x3d4   :  { %7005 = vmatprep.subr.bf16.mxu0 %v10494_v23  ;;  %7693 = vmatprep.subr.bf16.mxu1 %v10497_v18 }
 0x3d7   :  { %7006 = vmatpush1.bf16.msra.mxu0 %v10492_v25  ;;  %7694 = vmatpush1.bf16.msra.mxu1 %v10495_v26 }
 0x3d8   :  { %7007 = vmatprep.subr.bf16.mxu0 %v10500_v27  ;;  %7695 = vmatprep.subr.bf16.mxu1 %v10503_v28 }
 0x3db   :  { %7008 = vmatpush1.bf16.msra.mxu0 %v10498_v29  ;;  %7696 = vmatpush1.bf16.msra.mxu1 %v10501_v30 }
 0x3dc   :  { %7009 = vmatprep.subr.bf16.mxu0 %v10506_v31  ;;  %7697 = vmatprep.subr.bf16.mxu1 %v10509_v32 }
 0x3df   :  { %7010 = vmatpush1.bf16.msra.mxu0 %v10504_v33  ;;  %7698 = vmatpush1.bf16.msra.mxu1 %v10507_v34 }
 0x3e0   :  { %7011 = vmatprep.subr.bf16.mxu0 %v10512_v35  ;;  %7699 = vmatprep.subr.bf16.mxu1 %v10515_v36 }
 0x3e3   :  { %7012 = vmatpush1.bf16.msra.mxu0 %v10510_v37  ;;  %7700 = vmatpush1.bf16.msra.mxu1 %v10513_v38 }
 0x3e4   :  { %7013 = vmatprep.subr.bf16.mxu0 %v10518_v39  ;;  %7701 = vmatprep.subr.bf16.mxu1 %v10521_v40 }
 0x3e7   :  { %7014 = vmatpush1.bf16.msra.mxu0 %v10516_v41  ;;  %7702 = vmatpush1.bf16.msra.mxu1 %v10519_v42 }
 0x3e8   :  { %7015 = vmatprep.subr.bf16.mxu0 %v10524_v43  ;;  %7703 = vmatprep.subr.bf16.mxu1 %v10527_v44 }
 0x3eb   :  { %7016 = vmatpush1.bf16.msra.mxu0 %v10522_v14  ;;  %7704 = vmatpush1.bf16.msra.mxu1 %v10525_v46 }
 0x3ec   :  { %7017 = vmatprep.subr.bf16.mxu0 %v10530_v19  ;;  %7705 = vmatprep.subr.bf16.mxu1 %v10533_v24 }
 0x3ef   :  { %7018 = vmatpush1.bf16.msra.mxu0 %v10528_v47  ;;  %7706 = vmatpush1.bf16.msra.mxu1 %v10531_v50 }
 0x3f0   :  { %7019 = vmatprep.subr.bf16.mxu0 %v10536_v21  ;;  %7707 = vmatprep.subr.bf16.mxu1 %v10539_v45 }
 0x3f3   :  { %7020 = vmatpush1.bf16.msra.mxu0 %v10534_v51  ;;  %7708 = vmatpush1.bf16.msra.mxu1 %v10537_v54 }
 0x3f4   :  { %7021 = vmatprep.subr.bf16.mxu0 %v10542_v48  ;;  %7709 = vmatprep.subr.bf16.mxu1 %v10545_v49 }
 0x3f7   :  { %7022 = vmatpush1.bf16.msra.mxu0 %v10540_v55  ;;  %7710 = vmatpush1.bf16.msra.mxu1 %v10543_v58 }
 0x3f8   :  { %7023 = vmatprep.subr.bf16.mxu0 %v10548_v52  ;;  %7711 = vmatprep.subr.bf16.mxu1 %v10551_v53 }
 0x3fb   :  { %7024 = vmatpush1.bf16.msra.mxu0 %v10546_v59  ;;  %7712 = vmatpush1.bf16.msra.mxu1 %v10549_v62 }
 0x3fc   :  { %7025 = vmatprep.subr.bf16.mxu0 %v10554_v56  ;;  %7713 = vmatprep.subr.bf16.mxu1 %v10557_v57 }
 0x3ff   :  { %7026 = vmatpush1.bf16.msra.mxu0 %v10552_v63  ;;  %7714 = vmatpush1.bf16.msra.mxu1 %v10555_v2 }
 0x402   :  { %7028 = vmatmul.mubr.bf16.vlgmr.msra.gmra.mrb[0].mxu0 %v7868_v60  ;;  %7716 = vmatmul.mubr.bf16.vlgmr.msra.gmra.mrb[0].mxu1 %v7868_v60 }
 0x4d5   :  { %v7029_v61 = vpop.f32.mrb[0].mxu0  ;;  %v7717_v3 = vpop.f32.mrb[0].mxu1 }
 0x4d6   :  { %v7782_v4 = vmul.f32 %v7029_v61, %v7029_v61  ;;  %v7784_v5 = vmul.f32 %v7717_v3, %v7717_v3  ;;  %v7031_v6 = vpop.f32.mrb[1].mxu0  ;;  %v7719_v7 = vpop.f32.mrb[1].mxu1 }
 0x4d7   :  { %v8898_v8 = vpack.c.bf16 %v7031_v6, %v7029_v61  ;;  %v7783_v9 = vmul.f32 %v7031_v6, %v7031_v6  ;;  %v8899_v10 = vpack.c.bf16 %v7719_v7, %v7717_v3  ;;  %v7785_v11 = vmul.f32 %v7719_v7, %v7719_v7  ;;  %v7033_v12 = vpop.f32.mrb[2].mxu0  ;;  %v7721_v13 = vpop.f32.mrb[2].mxu1 }
 0x4d8   :  { %v7754_v16 = vadd.f32 %v7033_v12, %v7029_v61  ;;  %v7786_v17 = vmul.f32 %v7033_v12, %v7033_v12  ;;  %v7768_v20 = vadd.f32 %v7721_v13, %v7717_v3  ;;  %v7788_v0 = vmul.f32 %v7721_v13, %v7721_v13  ;;  %v7035_v1 = vpop.f32.mrb[3].mxu0  ;;  %v7723_v15 = vpop.f32.mrb[3].mxu1 }
 0x4d9   :  { %7750 = vst [vmem:[%s13909_s2] sm:$0xff] %v8898_v8  ;;  %7751 = vst [vmem:[%s13909_s2 + $0x8] sm:$0xff] %v8899_v10  ;;  %v8900_v22 = vpack.c.bf16 %v7035_v1, %v7033_v12  ;;  %v7761_v23 = vadd.f32 %v7035_v1, %v7031_v6  ;;  %v7787_v18 = vmul.f32 %v7035_v1, %v7035_v1 }
 0x4da   :  { %v8901_v25 = vpack.c.bf16 %v7723_v15, %v7721_v13  ;;  %v7755_v26 = vrot.slane %v7754_v16, 4  ;;  %v7790_v27 = vadd.f32 %v7786_v17, %v7782_v4  ;;  %v7769_v28 = vrot.slane %v7768_v20, 4 }
 0x4db   :  { %v7804_v29 = vadd.f32 %v7788_v0, %v7784_v5  ;;  %7752 = vst [vmem:[%s13909_s2 + $0x10] sm:$0xff] %v8900_v22  ;;  %v7762_v30 = vrot.slane %v7761_v23, 4  ;;  %v7797_v31 = vadd.f32 %v7787_v18, %v7783_v9  ;;  %v7775_v32 = vadd.f32 %v7723_v15, %v7719_v7 }
 0x4dc   :  { %7753 = vst [vmem:[%s13909_s2 + $0x18] sm:$0xff] %v8901_v25  ;;  %v7789_v33 = vmul.f32 %v7723_v15, %v7723_v15  ;;  %v7756_v34 = vadd.f32 %v7755_v26, %v7754_v16  ;;  %v7791_v35 = vrot.slane %v7790_v27, 4  ;;  %v7770_v36 = vadd.f32 %v7769_v28, %v7768_v20 }
 0x4dd   :  { %v7805_v37 = vrot.slane %v7804_v29, 4  ;;  %v7763_v38 = vadd.f32 %v7762_v30, %v7761_v23  ;;  %v7798_v39 = vrot.slane %v7797_v31, 4  ;;  %v7776_v40 = vrot.slane %v7775_v32, 4 }
 0x4de   :  { %v7811_v41 = vadd.f32 %v7789_v33, %v7785_v11  ;;  %v7757_v42 = vrot.slane %v7756_v34, 2  ;;  %v7792_v43 = vadd.f32 %v7791_v35, %v7790_v27  ;;  %v7771_v44 = vrot.slane %v7770_v36, 2 }
 0x4df   :  { %v7806_v14 = vadd.f32 %v7805_v37, %v7804_v29  ;;  %v7764_v46 = vrot.slane %v7763_v38, 2  ;;  %v7799_v19 = vadd.f32 %v7798_v39, %v7797_v31  ;;  %v7777_v24 = vadd.f32 %v7776_v40, %v7775_v32 }
 0x4e0   :  { %v7812_v47 = vrot.slane %v7811_v41, 4  ;;  %v7758_v50 = vadd.f32 %v7757_v42, %v7756_v34  ;;  %v7793_v21 = vrot.slane %v7792_v43, 2  ;;  %v7772_v45 = vadd.f32 %v7771_v44, %v7770_v36 }
 0x4e1   :  { %v7807_v51 = vrot.slane %v7806_v14, 2  ;;  %v7765_v54 = vadd.f32 %v7764_v46, %v7763_v38  ;;  %v7800_v48 = vrot.slane %v7799_v19, 2  ;;  %v7778_v49 = vrot.slane %v7777_v24, 2 }
 0x4e2   :  { %v7813_v55 = vadd.f32 %v7812_v47, %v7811_v41  ;;  %v7759_v58 = vrot.slane %v7758_v50, 1  ;;  %v7794_v52 = vadd.f32 %v7793_v21, %v7792_v43  ;;  %v7773_v53 = vrot.slane %v7772_v45, 1 }
 0x4e3   :  { %v7808_v59 = vadd.f32 %v7807_v51, %v7806_v14  ;;  %v7766_v62 = vrot.slane %v7765_v54, 1  ;;  %v7801_v56 = vadd.f32 %v7800_v48, %v7799_v19  ;;  %v7779_v57 = vadd.f32 %v7778_v49, %v7777_v24 }
 0x4e4   :  { %v7814_v63 = vrot.slane %v7813_v55, 2  ;;  %v7760_v2 = vadd.f32 %v7759_v58, %v7758_v50  ;;  %v7795_v60 = vrot.slane %v7794_v52, 1  ;;  %v7774_v61 = vadd.f32 %v7773_v53, %v7772_v45 }
 0x4e5   :  { %v7809_v3 = vrot.slane %v7808_v59, 1  ;;  %v7767_v4 = vadd.f32 %v7766_v62, %v7765_v54  ;;  %v7802_v5 = vrot.slane %v7801_v56, 1  ;;  %v7780_v6 = vrot.slane %v7779_v57, 1 }
 0x4e6   :  { %v7815_v7 = vadd.f32 %v7814_v63, %v7813_v55  ;;  %v7796_v8 = vadd.f32 %v7795_v60, %v7794_v52  ;;  %7818 = vst [vmem:[%s13910_s3] sm:$0xff] %v7760_v2  ;;  %7820 = vst [vmem:[%s13910_s3 + $0x10] sm:$0xff] %v7774_v61 }
 0x4e7   :  { %v7810_v9 = vadd.f32 %v7809_v3, %v7808_v59  ;;  %v7803_v10 = vadd.f32 %v7802_v5, %v7801_v56  ;;  %7819 = vst [vmem:[%s13910_s3 + $0x8] sm:$0xff] %v7767_v4  ;;  %v7781_v11 = vadd.f32 %v7780_v6, %v7779_v57 }
 0x4e8   :  { %v7816_v12 = vrot.slane %v7815_v7, 1  ;;  %7822 = vst [vmem:[%s13911_s4] sm:$0xff] %v7796_v8 }
 0x4e9   :  { %7824 = vst [vmem:[%s13911_s4 + $0x10] sm:$0xff] %v7810_v9  ;;  %7823 = vst [vmem:[%s13911_s4 + $0x8] sm:$0xff] %v7803_v10 }
 0x4ea   :  { %v7817_v13 = vadd.f32 %v7816_v12, %v7815_v7  ;;  %7821 = vst [vmem:[%s13910_s3 + $0x18] sm:$0xff] %v7781_v11 }
 0x4ec   :  { %7825 = vst [vmem:[%s13911_s4 + $0x18] sm:$0xff] %v7817_v13 }

// kernel: discriminator_forward.15
= control target key start
LH: loop header
LB: loop body
LE: loop exit
PB: predicated region body
PF: predicated region fallthrough
CT: control target
= control target key end

     0   :  { %vm5816_vm0 = vcmask 7168   ;;  %s9422_s1 = inlined_call_operand.vmem [shape: bf16[8192,128], index: 1, kind: input, shape index: {}]   ;;  %s9423_s0 = inlined_call_operand.vmem [shape: bf16[16,8192], index: 0, kind: input, shape index: {}]   ;;  %s9424_s2 = inlined_call_operand.vmem [shape: f32[16,1], index: 2, kind: output, shape index: {}]  }
   0x1   :  { %v7105_v0 = vld [vmem:[%s9422_s1 + $0x40] sm:$0xff]   ;;  %v7109_v4 = vld [vmem:[%s9422_s1 + $0x48] sm:$0xff]   ;;  %v7113_v8 = vld [vmem:[%s9422_s1 + $0x50] sm:$0xff]  }
   0x2   :  { %v7106_v1 = vld [vmem:[%s9422_s1 + $0xc0] sm:$0xff]   ;;  %6401 = vmatprep.subr.bf16.mxu0 %v7105_v0  ;;  %v7110_v5 = vld [vmem:[%s9422_s1 + $0xc8] sm:$0xff]   ;;  %v7114_v9 = vld [vmem:[%s9422_s1 + $0xd0] sm:$0xff]  }
   0x3   :  { %v7107_v2 = vld [vmem:[%s9422_s1] sm:$0xff]   ;;  %6423 = vmatprep.subr.bf16.mxu1 %v7106_v1  ;;  %v7111_v6 = vld [vmem:[%s9422_s1 + $0x8] sm:$0xff]   ;;  %v7115_v10 = vld [vmem:[%s9422_s1 + $0x10] sm:$0xff]  }
   0x4   :  { %v7108_v3 = vld [vmem:[%s9422_s1 + $0x80] sm:$0xff]   ;;  %6402 = vmatpush3.bf16.msra.mxu0 %v7107_v2  ;;  %v7112_v7 = vld [vmem:[%s9422_s1 + $0x88] sm:$0xff]   ;;  %v7116_v11 = vld [vmem:[%s9422_s1 + $0x90] sm:$0xff]  }
   0x5   :  { %6424 = vmatpush3.bf16.msra.mxu1 %v7108_v3  ;;  %6403 = vmatprep.subr.bf16.mxu0 %v7109_v4  ;;  %v7117_v12 = vld [vmem:[%s9422_s1 + $0x58] sm:$0xff]   ;;  %v7121_v16 = vld [vmem:[%s9422_s1 + $0x60] sm:$0xff]   ;;  %v7125_v20 = vld [vmem:[%s9422_s1 + $0x68] sm:$0xff]  }
   0x6   :  { %6425 = vmatprep.subr.bf16.mxu1 %v7110_v5  ;;  %v7118_v13 = vld [vmem:[%s9422_s1 + $0xd8] sm:$0xff]   ;;  %v7122_v17 = vld [vmem:[%s9422_s1 + $0xe0] sm:$0xff]   ;;  %v7126_v21 = vld [vmem:[%s9422_s1 + $0xe8] sm:$0xff]  }
   0x7   :  { %v7119_v14 = vld [vmem:[%s9422_s1 + $0x18] sm:$0xff]   ;;  %v7123_v18 = vld [vmem:[%s9422_s1 + $0x20] sm:$0xff]   ;;  %v7127_v22 = vld [vmem:[%s9422_s1 + $0x28] sm:$0xff]  }
   0x8   :  { %6404 = vmatpush3.bf16.msra.mxu0 %v7111_v6  ;;  %v7120_v15 = vld [vmem:[%s9422_s1 + $0x98] sm:$0xff]   ;;  %v7124_v19 = vld [vmem:[%s9422_s1 + $0xa0] sm:$0xff]   ;;  %v7128_v23 = vld [vmem:[%s9422_s1 + $0xa8] sm:$0xff]  }
   0x9   :  { %6426 = vmatpush3.bf16.msra.mxu1 %v7112_v7  ;;  %6405 = vmatprep.subr.bf16.mxu0 %v7113_v8  ;;  %v7129_v24 = vld [vmem:[%s9422_s1 + $0x70] sm:$0xff]   ;;  %v7133_v28 = vld [vmem:[%s9422_s1 + $0x78] sm:$0xff]   ;;  %v12_v32 = vld [vmem:[%s9423_s0] sm:$0xff] }
   0xa   :  { %6427 = vmatprep.subr.bf16.mxu1 %v7114_v9  ;;  %v7130_v25 = vld [vmem:[%s9422_s1 + $0xf0] sm:$0xff]   ;;  %v7134_v29 = vld [vmem:[%s9422_s1 + $0xf8] sm:$0xff]   ;;  %v44_v33 = vld [vmem:[%s9423_s0 + $0x100] sm:$0xff] }
   0xb   :  { %v7131_v26 = vld [vmem:[%s9422_s1 + $0x30] sm:$0xff]   ;;  %v7135_v30 = vld [vmem:[%s9422_s1 + $0x38] sm:$0xff]   ;;  %v13_v34 = vld [vmem:[%s9423_s0 + $0x8] sm:$0xff]  ;;  %v5823_v35 = vcombine.low %v12_v32, %v44_v33  ;;  %v5824_v36 = vcombine.high %v12_v32, %v44_v33 }
   0xc   :  { %6406 = vmatpush3.bf16.msra.mxu0 %v7115_v10  ;;  %v7132_v27 = vld [vmem:[%s9422_s1 + $0xb0] sm:$0xff]   ;;  %v7136_v31 = vld [vmem:[%s9422_s1 + $0xb8] sm:$0xff]   ;;  %v45_v37 = vld [vmem:[%s9423_s0 + $0x108] sm:$0xff] }
   0xd   :  { %6428 = vmatpush3.bf16.msra.mxu1 %v7116_v11  ;;  %6407 = vmatprep.subr.bf16.mxu0 %v7117_v12  ;;  %v5825_v38 = vcombine.low %v13_v34, %v45_v37  ;;  %v5826_v39 = vcombine.high %v13_v34, %v45_v37  ;;  %v7137_v40 = vld [vmem:[%s9422_s1 + $0x140] sm:$0xff]   ;;  %v7141_v44 = vld [vmem:[%s9422_s1 + $0x148] sm:$0xff]   ;;  %v7145_v48 = vld [vmem:[%s9422_s1 + $0x150] sm:$0xff]  }
   0xe   :  { %6429 = vmatprep.subr.bf16.mxu1 %v7118_v13  ;;  %4524 = vmatprep.mubr.bf16.mxu0 %v5824_v36  ;;  %v7138_v41 = vld [vmem:[%s9422_s1 + $0x1c0] sm:$0xff]   ;;  %v7142_v45 = vld [vmem:[%s9422_s1 + $0x1c8] sm:$0xff]   ;;  %v7146_v49 = vld [vmem:[%s9422_s1 + $0x1d0] sm:$0xff]  }
   0xf   :  { %4565 = vmatprep.mubr.bf16.mxu1 %v5826_v39  ;;  %v7139_v42 = vld [vmem:[%s9422_s1 + $0x100] sm:$0xff]   ;;  %v7143_v46 = vld [vmem:[%s9422_s1 + $0x108] sm:$0xff]   ;;  %v7147_v50 = vld [vmem:[%s9422_s1 + $0x110] sm:$0xff]  }
  0x10   :  { %6408 = vmatpush3.bf16.msra.mxu0 %v7119_v14  ;;  %v7140_v43 = vld [vmem:[%s9422_s1 + $0x180] sm:$0xff]   ;;  %v7144_v47 = vld [vmem:[%s9422_s1 + $0x188] sm:$0xff]   ;;  %v7148_v51 = vld [vmem:[%s9422_s1 + $0x190] sm:$0xff]  }
  0x11   :  { %6430 = vmatpush3.bf16.msra.mxu1 %v7120_v15  ;;  %6409 = vmatprep.subr.bf16.mxu0 %v7121_v16  ;;  %v7149_v52 = vld [vmem:[%s9422_s1 + $0x158] sm:$0xff]   ;;  %v7153_v56 = vld [vmem:[%s9422_s1 + $0x160] sm:$0xff]   ;;  %v7157_v60 = vld [vmem:[%s9422_s1 + $0x168] sm:$0xff]  }
  0x12   :  { %6431 = vmatprep.subr.bf16.mxu1 %v7122_v17  ;;  %v7150_v53 = vld [vmem:[%s9422_s1 + $0x1d8] sm:$0xff]   ;;  %v7154_v57 = vld [vmem:[%s9422_s1 + $0x1e0] sm:$0xff]   ;;  %v7158_v61 = vld [vmem:[%s9422_s1 + $0x1e8] sm:$0xff]  }
  0x13   :  { %v7151_v54 = vld [vmem:[%s9422_s1 + $0x118] sm:$0xff]   ;;  %v7155_v58 = vld [vmem:[%s9422_s1 + $0x120] sm:$0xff]   ;;  %v7159_v62 = vld [vmem:[%s9422_s1 + $0x128] sm:$0xff]  }
  0x14   :  { %6410 = vmatpush3.bf16.msra.mxu0 %v7123_v18  ;;  %v7152_v55 = vld [vmem:[%s9422_s1 + $0x198] sm:$0xff]   ;;  %v7156_v59 = vld [vmem:[%s9422_s1 + $0x1a0] sm:$0xff]   ;;  %v7160_v63 = vld [vmem:[%s9422_s1 + $0x1a8] sm:$0xff]  }
  0x15   :  { %6432 = vmatpush3.bf16.msra.mxu1 %v7124_v19  ;;  %6411 = vmatprep.subr.bf16.mxu0 %v7125_v20  ;;  %v7161_v0 = vld [vmem:[%s9422_s1 + $0x170] sm:$0xff]   ;;  %v7165_v4 = vld [vmem:[%s9422_s1 + $0x178] sm:$0xff]   ;;  %v7169_v16 = vld [vmem:[%s9422_s1 + $0x240] sm:$0xff]  }
  0x16   :  { %6433 = vmatprep.subr.bf16.mxu1 %v7126_v21  ;;  %v7162_v1 = vld [vmem:[%s9422_s1 + $0x1f0] sm:$0xff]   ;;  %v7166_v5 = vld [vmem:[%s9422_s1 + $0x1f8] sm:$0xff]   ;;  %v7170_v17 = vld [vmem:[%s9422_s1 + $0x2c0] sm:$0xff]  }
  0x17   :  { %v7163_v2 = vld [vmem:[%s9422_s1 + $0x130] sm:$0xff]   ;;  %v7167_v6 = vld [vmem:[%s9422_s1 + $0x138] sm:$0xff]   ;;  %v7171_v18 = vld [vmem:[%s9422_s1 + $0x200] sm:$0xff]  }
  0x18   :  { %6412 = vmatpush3.bf16.msra.mxu0 %v7127_v22  ;;  %v7164_v3 = vld [vmem:[%s9422_s1 + $0x1b0] sm:$0xff]   ;;  %v7168_v7 = vld [vmem:[%s9422_s1 + $0x1b8] sm:$0xff]   ;;  %v7172_v19 = vld [vmem:[%s9422_s1 + $0x280] sm:$0xff]  }
  0x19   :  { %6434 = vmatpush3.bf16.msra.mxu1 %v7128_v23  ;;  %6413 = vmatprep.subr.bf16.mxu0 %v7129_v24  ;;  %v14_v8 = vld [vmem:[%s9423_s0 + $0x10] sm:$0xff]  ;;  %v15_v12 = vld [vmem:[%s9423_s0 + $0x18] sm:$0xff]  ;;  %v7173_v20 = vld [vmem:[%s9422_s1 + $0x248] sm:$0xff]  }
  0x1a   :  { %6435 = vmatprep.subr.bf16.mxu1 %v7130_v25  ;;  %v46_v9 = vld [vmem:[%s9423_s0 + $0x110] sm:$0xff]  ;;  %v47_v13 = vld [vmem:[%s9423_s0 + $0x118] sm:$0xff]  ;;  %v7174_v21 = vld [vmem:[%s9422_s1 + $0x2c8] sm:$0xff]  }
  0x1b   :  { %v5827_v10 = vcombine.low %v14_v8, %v46_v9  ;;  %v5828_v11 = vcombine.high %v14_v8, %v46_v9  ;;  %v5829_v14 = vcombine.low %v15_v12, %v47_v13  ;;  %v5830_v15 = vcombine.high %v15_v12, %v47_v13  ;;  %v7175_v22 = vld [vmem:[%s9422_s1 + $0x208] sm:$0xff]   ;;  %v7177_v24 = vld [vmem:[%s9422_s1 + $0x250] sm:$0xff]   ;;  %v7185_v32 = vld [vmem:[%s9422_s1 + $0x260] sm:$0xff]  }
  0x1c   :  { %6414 = vmatpush3.bf16.msra.mxu0 %v7131_v26  ;;  %v7176_v23 = vld [vmem:[%s9422_s1 + $0x288] sm:$0xff]   ;;  %v7178_v25 = vld [vmem:[%s9422_s1 + $0x2d0] sm:$0xff]   ;;  %v7186_v33 = vld [vmem:[%s9422_s1 + $0x2e0] sm:$0xff]  }
  0x1d   :  { %6436 = vmatpush3.bf16.msra.mxu1 %v7132_v27  ;;  %6415 = vmatprep.subr.bf16.mxu0 %v7133_v28  ;;  %v7179_v26 = vld [vmem:[%s9422_s1 + $0x210] sm:$0xff]   ;;  %v7181_v28 = vld [vmem:[%s9422_s1 + $0x258] sm:$0xff]   ;;  %v7187_v34 = vld [vmem:[%s9422_s1 + $0x220] sm:$0xff]  }
  0x1e   :  { %6437 = vmatprep.subr.bf16.mxu1 %v7134_v29  ;;  %v7180_v27 = vld [vmem:[%s9422_s1 + $0x290] sm:$0xff]   ;;  %v7182_v29 = vld [vmem:[%s9422_s1 + $0x2d8] sm:$0xff]   ;;  %v7189_v36 = vld [vmem:[%s9422_s1 + $0x268] sm:$0xff]  }
  0x1f   :  { %v7190_v37 = vld [vmem:[%s9422_s1 + $0x2e8] sm:$0xff]   ;;  %v7217_v8 = vld [vmem:[%s9422_s1 + $0x360] sm:$0xff]  }
  0x20   :  { %6416 = vmatpush3.bf16.msra.mxu0 %v7135_v30  ;;  %v7183_v30 = vld [vmem:[%s9422_s1 + $0x218] sm:$0xff]   ;;  %v7192_v39 = vld [vmem:[%s9422_s1 + $0x2a8] sm:$0xff]   ;;  %v7218_v9 = vld [vmem:[%s9422_s1 + $0x3e0] sm:$0xff]  }
  0x21   :  { %6438 = vmatpush3.bf16.msra.mxu1 %v7136_v31  ;;  %6445 = vmatprep.subr.bf16.mxu0 %v7137_v40  ;;  %v7184_v31 = vld [vmem:[%s9422_s1 + $0x298] sm:$0xff]   ;;  %v7193_v40 = vld [vmem:[%s9422_s1 + $0x270] sm:$0xff]   ;;  %v7221_v12 = vld [vmem:[%s9422_s1 + $0x368] sm:$0xff]  }
  0x22   :  { %6467 = vmatprep.subr.bf16.mxu1 %v7138_v41  ;;  %v7194_v41 = vld [vmem:[%s9422_s1 + $0x2f0] sm:$0xff]   ;;  %v7222_v13 = vld [vmem:[%s9422_s1 + $0x3e8] sm:$0xff]  }
  0x23   :  { %4525 = vmatmul.mubr.bf16.vlgmr.msra.gmra.mrb[0].mxu0 %v5823_v35  ;;  %v7188_v35 = vld [vmem:[%s9422_s1 + $0x2a0] sm:$0xff]  }
  0x24   :  { %4566 = vmatmul.mubr.bf16.vlgmr.msra.gmra.mrb[0].mxu1 %v5825_v38  ;;  %6446 = vmatpush3.bf16.msra.mxu0 %v7139_v42  ;;  %v7191_v38 = vld [vmem:[%s9422_s1 + $0x228] sm:$0xff]   ;;  %v7195_v42 = vld [vmem:[%s9422_s1 + $0x230] sm:$0xff]  }
  0x25   :  { %6468 = vmatpush3.bf16.msra.mxu1 %v7140_v43  ;;  %6447 = vmatprep.subr.bf16.mxu0 %v7141_v44  ;;  %v7196_v43 = vld [vmem:[%s9422_s1 + $0x2b0] sm:$0xff]   ;;  %v7197_v44 = vld [vmem:[%s9422_s1 + $0x278] sm:$0xff]  }
  0x26   :  { %6469 = vmatprep.subr.bf16.mxu1 %v7142_v45  ;;  %4606 = vmatprep.mubr.bf16.mxu0 %v5828_v11  ;;  %v7198_v45 = vld [vmem:[%s9422_s1 + $0x2f8] sm:$0xff]   ;;  %v7220_v11 = vld [vmem:[%s9422_s1 + $0x3a0] sm:$0xff]  }
  0x27   :  { %4647 = vmatprep.mubr.bf16.mxu1 %v5830_v15  ;;  %v7224_v15 = vld [vmem:[%s9422_s1 + $0x3a8] sm:$0xff]  }
  0x28   :  { %6448 = vmatpush3.bf16.msra.mxu0 %v7143_v46  ;;  %v7199_v46 = vld [vmem:[%s9422_s1 + $0x238] sm:$0xff]  }
  0x29   :  { %6470 = vmatpush3.bf16.msra.mxu1 %v7144_v47  ;;  %6449 = vmatprep.subr.bf16.mxu0 %v7145_v48  ;;  %v7200_v47 = vld [vmem:[%s9422_s1 + $0x2b8] sm:$0xff]   ;;  %v16_v48 = vld [vmem:[%s9423_s0 + $0x20] sm:$0xff] }
  0x2a   :  { %6471 = vmatprep.subr.bf16.mxu1 %v7146_v49  ;;  %v48_v49 = vld [vmem:[%s9423_s0 + $0x120] sm:$0xff] }
  0x2c   :  { %6450 = vmatpush3.bf16.msra.mxu0 %v7147_v50  ;;  %v17_v50 = vld [vmem:[%s9423_s0 + $0x28] sm:$0xff] }
  0x2d   :  { %6472 = vmatpush3.bf16.msra.mxu1 %v7148_v51  ;;  %6451 = vmatprep.subr.bf16.mxu0 %v7149_v52  ;;  %v49_v51 = vld [vmem:[%s9423_s0 + $0x128] sm:$0xff]  ;;  %v5831_v52 = vcombine.low %v16_v48, %v48_v49 }
  0x2e   :  { %6473 = vmatprep.subr.bf16.mxu1 %v7150_v53  ;;  %v5832_v53 = vcombine.high %v16_v48, %v48_v49  ;;  %v7249_v48 = vld [vmem:[%s9422_s1 + $0x460] sm:$0xff]  }
  0x2f   :  { %v7250_v49 = vld [vmem:[%s9422_s1 + $0x4e0] sm:$0xff]  }
  0x30   :  { %6452 = vmatpush3.bf16.msra.mxu0 %v7151_v54  ;;  %v5833_v54 = vcombine.low %v17_v50, %v49_v51 }
  0x31   :  { %6474 = vmatpush3.bf16.msra.mxu1 %v7152_v55  ;;  %6453 = vmatprep.subr.bf16.mxu0 %v7153_v56  ;;  %v5834_v55 = vcombine.high %v17_v50, %v49_v51  ;;  %v7201_v56 = vld [vmem:[%s9422_s1 + $0x340] sm:$0xff]  }
  0x32   :  { %6475 = vmatprep.subr.bf16.mxu1 %v7154_v57  ;;  %v7202_v57 = vld [vmem:[%s9422_s1 + $0x3c0] sm:$0xff]  }
  0x33   :  { %v7251_v50 = vld [vmem:[%s9422_s1 + $0x420] sm:$0xff]  }
  0x34   :  { %6454 = vmatpush3.bf16.msra.mxu0 %v7155_v58  ;;  %v7203_v58 = vld [vmem:[%s9422_s1 + $0x300] sm:$0xff]  }
  0x35   :  { %6476 = vmatpush3.bf16.msra.mxu1 %v7156_v59  ;;  %6455 = vmatprep.subr.bf16.mxu0 %v7157_v60  ;;  %v7204_v59 = vld [vmem:[%s9422_s1 + $0x380] sm:$0xff]   ;;  %v7205_v60 = vld [vmem:[%s9422_s1 + $0x348] sm:$0xff]  }
  0x36   :  { %6477 = vmatprep.subr.bf16.mxu1 %v7158_v61  ;;  %v7206_v61 = vld [vmem:[%s9422_s1 + $0x3c8] sm:$0xff]   ;;  %v7252_v51 = vld [vmem:[%s9422_s1 + $0x4a0] sm:$0xff]  }
  0x38   :  { %6456 = vmatpush3.bf16.msra.mxu0 %v7159_v62  ;;  %v7207_v62 = vld [vmem:[%s9422_s1 + $0x308] sm:$0xff]  }
  0x39   :  { %6478 = vmatpush3.bf16.msra.mxu1 %v7160_v63  ;;  %6457 = vmatprep.subr.bf16.mxu0 %v7161_v0  ;;  %v7208_v63 = vld [vmem:[%s9422_s1 + $0x388] sm:$0xff]   ;;  %v7209_v0 = vld [vmem:[%s9422_s1 + $0x350] sm:$0xff]  }
  0x3a   :  { %6479 = vmatprep.subr.bf16.mxu1 %v7162_v1  ;;  %v7210_v1 = vld [vmem:[%s9422_s1 + $0x3d0] sm:$0xff]  }
  0x3c   :  { %6458 = vmatpush3.bf16.msra.mxu0 %v7163_v2  ;;  %v7211_v2 = vld [vmem:[%s9422_s1 + $0x310] sm:$0xff]  }
  0x3d   :  { %6480 = vmatpush3.bf16.msra.mxu1 %v7164_v3  ;;  %6459 = vmatprep.subr.bf16.mxu0 %v7165_v4  ;;  %v7212_v3 = vld [vmem:[%s9422_s1 + $0x390] sm:$0xff]   ;;  %v7213_v4 = vld [vmem:[%s9422_s1 + $0x358] sm:$0xff]  }
  0x3e   :  { %6481 = vmatprep.subr.bf16.mxu1 %v7166_v5  ;;  %v7214_v5 = vld [vmem:[%s9422_s1 + $0x3d8] sm:$0xff]  }
  0x40   :  { %6460 = vmatpush3.bf16.msra.mxu0 %v7167_v6  ;;  %v7215_v6 = vld [vmem:[%s9422_s1 + $0x318] sm:$0xff]  }
  0x41   :  { %6482 = vmatpush3.bf16.msra.mxu1 %v7168_v7  ;;  %6489 = vmatprep.subr.bf16.mxu0 %v7169_v16  ;;  %v7216_v7 = vld [vmem:[%s9422_s1 + $0x398] sm:$0xff]   ;;  %v7225_v16 = vld [vmem:[%s9422_s1 + $0x370] sm:$0xff]  }
  0x42   :  { %6511 = vmatprep.subr.bf16.mxu1 %v7170_v17  ;;  %v7226_v17 = vld [vmem:[%s9422_s1 + $0x3f0] sm:$0xff]  }
  0x43   :  { %4607 = vmatmul.mubr.bf16.vlgmr.msra.gmra.mrb[4].mxu0 %v5827_v10  ;;  %v7219_v10 = vld [vmem:[%s9422_s1 + $0x320] sm:$0xff]  }
  0x44   :  { %4648 = vmatmul.mubr.bf16.vlgmr.msra.gmra.mrb[4].mxu1 %v5829_v14  ;;  %6490 = vmatpush3.bf16.msra.mxu0 %v7171_v18  ;;  %v7223_v14 = vld [vmem:[%s9422_s1 + $0x328] sm:$0xff]   ;;  %v7227_v18 = vld [vmem:[%s9422_s1 + $0x330] sm:$0xff]  }
  0x45   :  { %6512 = vmatpush3.bf16.msra.mxu1 %v7172_v19  ;;  %6491 = vmatprep.subr.bf16.mxu0 %v7173_v20  ;;  %v7228_v19 = vld [vmem:[%s9422_s1 + $0x3b0] sm:$0xff]   ;;  %v7229_v20 = vld [vmem:[%s9422_s1 + $0x378] sm:$0xff]  }
  0x46   :  { %6513 = vmatprep.subr.bf16.mxu1 %v7174_v21  ;;  %4688 = vmatprep.mubr.bf16.mxu0 %v5832_v53  ;;  %v7230_v21 = vld [vmem:[%s9422_s1 + $0x3f8] sm:$0xff]   ;;  %v7254_v53 = vld [vmem:[%s9422_s1 + $0x4e8] sm:$0xff]  }
  0x47   :  { %4729 = vmatprep.mubr.bf16.mxu1 %v5834_v55  ;;  %v7256_v55 = vld [vmem:[%s9422_s1 + $0x4a8] sm:$0xff]  }
  0x48   :  { %6492 = vmatpush3.bf16.msra.mxu0 %v7175_v22  ;;  %v7231_v22 = vld [vmem:[%s9422_s1 + $0x338] sm:$0xff]  }
  0x49   :  { %6514 = vmatpush3.bf16.msra.mxu1 %v7176_v23  ;;  %6493 = vmatprep.subr.bf16.mxu0 %v7177_v24  ;;  %v7232_v23 = vld [vmem:[%s9422_s1 + $0x3b8] sm:$0xff]   ;;  %v18_v24 = vld [vmem:[%s9423_s0 + $0x30] sm:$0xff] }
  0x4a   :  { %6515 = vmatprep.subr.bf16.mxu1 %v7178_v25  ;;  %v50_v25 = vld [vmem:[%s9423_s0 + $0x130] sm:$0xff] }
  0x4c   :  { %6494 = vmatpush3.bf16.msra.mxu0 %v7179_v26  ;;  %v19_v26 = vld [vmem:[%s9423_s0 + $0x38] sm:$0xff] }
  0x4d   :  { %6516 = vmatpush3.bf16.msra.mxu1 %v7180_v27  ;;  %6495 = vmatprep.subr.bf16.mxu0 %v7181_v28  ;;  %v5835_v27 = vcombine.low %v18_v24, %v50_v25  ;;  %v5836_v28 = vcombine.high %v18_v24, %v50_v25  ;;  %v7281_v24 = vld [vmem:[%s9422_s1 + $0x560] sm:$0xff]  }
  0x4e   :  { %6517 = vmatprep.subr.bf16.mxu1 %v7182_v29  ;;  %v51_v29 = vld [vmem:[%s9423_s0 + $0x138] sm:$0xff]  ;;  %v7282_v25 = vld [vmem:[%s9422_s1 + $0x5e0] sm:$0xff]  }
  0x50   :  { %6496 = vmatpush3.bf16.msra.mxu0 %v7183_v30  ;;  %v5837_v30 = vcombine.low %v19_v26, %v51_v29 }
  0x51   :  { %6518 = vmatpush3.bf16.msra.mxu1 %v7184_v31  ;;  %6497 = vmatprep.subr.bf16.mxu0 %v7185_v32  ;;  %v5838_v31 = vcombine.high %v19_v26, %v51_v29  ;;  %v7233_v32 = vld [vmem:[%s9422_s1 + $0x440] sm:$0xff]   ;;  %v7286_v29 = vld [vmem:[%s9422_s1 + $0x5e8] sm:$0xff]  }
  0x52   :  { %6519 = vmatprep.subr.bf16.mxu1 %v7186_v33  ;;  %v7234_v33 = vld [vmem:[%s9422_s1 + $0x4c0] sm:$0xff]  }
  0x53   :  { %v7283_v26 = vld [vmem:[%s9422_s1 + $0x520] sm:$0xff]  }
  0x54   :  { %6498 = vmatpush3.bf16.msra.mxu0 %v7187_v34  ;;  %v7235_v34 = vld [vmem:[%s9422_s1 + $0x400] sm:$0xff]  }
  0x55   :  { %6520 = vmatpush3.bf16.msra.mxu1 %v7188_v35  ;;  %6499 = vmatprep.subr.bf16.mxu0 %v7189_v36  ;;  %v7236_v35 = vld [vmem:[%s9422_s1 + $0x480] sm:$0xff]   ;;  %v7237_v36 = vld [vmem:[%s9422_s1 + $0x448] sm:$0xff]  }
  0x56   :  { %6521 = vmatprep.subr.bf16.mxu1 %v7190_v37  ;;  %v7238_v37 = vld [vmem:[%s9422_s1 + $0x4c8] sm:$0xff]  }
  0x58   :  { %6500 = vmatpush3.bf16.msra.mxu0 %v7191_v38  ;;  %v7239_v38 = vld [vmem:[%s9422_s1 + $0x408] sm:$0xff]  }
  0x59   :  { %6522 = vmatpush3.bf16.msra.mxu1 %v7192_v39  ;;  %6501 = vmatprep.subr.bf16.mxu0 %v7193_v40  ;;  %v7240_v39 = vld [vmem:[%s9422_s1 + $0x488] sm:$0xff]   ;;  %v7241_v40 = vld [vmem:[%s9422_s1 + $0x450] sm:$0xff]  }
  0x5a   :  { %6523 = vmatprep.subr.bf16.mxu1 %v7194_v41  ;;  %v7242_v41 = vld [vmem:[%s9422_s1 + $0x4d0] sm:$0xff]  }
  0x5c   :  { %6502 = vmatpush3.bf16.msra.mxu0 %v7195_v42  ;;  %v7243_v42 = vld [vmem:[%s9422_s1 + $0x410] sm:$0xff]  }
  0x5d   :  { %6524 = vmatpush3.bf16.msra.mxu1 %v7196_v43  ;;  %6503 = vmatprep.subr.bf16.mxu0 %v7197_v44  ;;  %v7244_v43 = vld [vmem:[%s9422_s1 + $0x490] sm:$0xff]   ;;  %v7245_v44 = vld [vmem:[%s9422_s1 + $0x458] sm:$0xff]  }
  0x5e   :  { %6525 = vmatprep.subr.bf16.mxu1 %v7198_v45  ;;  %v7246_v45 = vld [vmem:[%s9422_s1 + $0x4d8] sm:$0xff]  }
  0x60   :  { %6504 = vmatpush3.bf16.msra.mxu0 %v7199_v46  ;;  %v7247_v46 = vld [vmem:[%s9422_s1 + $0x418] sm:$0xff]  }
  0x61   :  { %6526 = vmatpush3.bf16.msra.mxu1 %v7200_v47  ;;  %6533 = vmatprep.subr.bf16.mxu0 %v7201_v56  ;;  %v7248_v47 = vld [vmem:[%s9422_s1 + $0x498] sm:$0xff]   ;;  %v7257_v56 = vld [vmem:[%s9422_s1 + $0x470] sm:$0xff]  }
  0x62   :  { %6555 = vmatprep.subr.bf16.mxu1 %v7202_v57  ;;  %v7258_v57 = vld [vmem:[%s9422_s1 + $0x4f0] sm:$0xff]  }
  0x63   :  { %4689 = vmatmul.mubr.bf16.vlgmr.msra.gmra.mrb[8].mxu0 %v5831_v52  ;;  %v7253_v52 = vld [vmem:[%s9422_s1 + $0x468] sm:$0xff]  }
  0x64   :  { %4730 = vmatmul.mubr.bf16.vlgmr.msra.gmra.mrb[8].mxu1 %v5833_v54  ;;  %6534 = vmatpush3.bf16.msra.mxu0 %v7203_v58  ;;  %v7255_v54 = vld [vmem:[%s9422_s1 + $0x428] sm:$0xff]   ;;  %v7259_v58 = vld [vmem:[%s9422_s1 + $0x430] sm:$0xff]  }
  0x65   :  { %6556 = vmatpush3.bf16.msra.mxu1 %v7204_v59  ;;  %6535 = vmatprep.subr.bf16.mxu0 %v7205_v60  ;;  %v7260_v59 = vld [vmem:[%s9422_s1 + $0x4b0] sm:$0xff]   ;;  %v7261_v60 = vld [vmem:[%s9422_s1 + $0x478] sm:$0xff]  }
  0x66   :  { %6557 = vmatprep.subr.bf16.mxu1 %v7206_v61  ;;  %4770 = vmatprep.mubr.bf16.mxu0 %v5836_v28  ;;  %v7262_v61 = vld [vmem:[%s9422_s1 + $0x4f8] sm:$0xff]   ;;  %v7285_v28 = vld [vmem:[%s9422_s1 + $0x568] sm:$0xff]  }
  0x67   :  { %4811 = vmatprep.mubr.bf16.mxu1 %v5838_v31  ;;  %v7288_v31 = vld [vmem:[%s9422_s1 + $0x5a8] sm:$0xff]  }
  0x68   :  { %6536 = vmatpush3.bf16.msra.mxu0 %v7207_v62  ;;  %v7263_v62 = vld [vmem:[%s9422_s1 + $0x438] sm:$0xff]  }
  0x69   :  { %6558 = vmatpush3.bf16.msra.mxu1 %v7208_v63  ;;  %6537 = vmatprep.subr.bf16.mxu0 %v7209_v0  ;;  %v7264_v63 = vld [vmem:[%s9422_s1 + $0x4b8] sm:$0xff]   ;;  %v20_v0 = vld [vmem:[%s9423_s0 + $0x40] sm:$0xff] }
  0x6a   :  { %6559 = vmatprep.subr.bf16.mxu1 %v7210_v1  ;;  %v52_v1 = vld [vmem:[%s9423_s0 + $0x140] sm:$0xff] }
  0x6c   :  { %6538 = vmatpush3.bf16.msra.mxu0 %v7211_v2  ;;  %v5839_v2 = vcombine.low %v20_v0, %v52_v1 }
  0x6d   :  { %6560 = vmatpush3.bf16.msra.mxu1 %v7212_v3  ;;  %6539 = vmatprep.subr.bf16.mxu0 %v7213_v4  ;;  %v5840_v3 = vcombine.high %v20_v0, %v52_v1  ;;  %v21_v4 = vld [vmem:[%s9423_s0 + $0x48] sm:$0xff]  ;;  %v7313_v0 = vld [vmem:[%s9422_s1 + $0x660] sm:$0xff]  }
  0x6e   :  { %6561 = vmatprep.subr.bf16.mxu1 %v7214_v5  ;;  %v53_v5 = vld [vmem:[%s9423_s0 + $0x148] sm:$0xff]  ;;  %v7314_v1 = vld [vmem:[%s9422_s1 + $0x6e0] sm:$0xff]  }
  0x70   :  { %6540 = vmatpush3.bf16.msra.mxu0 %v7215_v6  ;;  %v5841_v6 = vcombine.low %v21_v4, %v53_v5 }
  0x71   :  { %6562 = vmatpush3.bf16.msra.mxu1 %v7216_v7  ;;  %6541 = vmatprep.subr.bf16.mxu0 %v7217_v8  ;;  %v5842_v7 = vcombine.high %v21_v4, %v53_v5  ;;  %v7265_v8 = vld [vmem:[%s9422_s1 + $0x540] sm:$0xff]   ;;  %v7317_v4 = vld [vmem:[%s9422_s1 + $0x668] sm:$0xff]  }
  0x72   :  { %6563 = vmatprep.subr.bf16.mxu1 %v7218_v9  ;;  %v7266_v9 = vld [vmem:[%s9422_s1 + $0x5c0] sm:$0xff]   ;;  %v7318_v5 = vld [vmem:[%s9422_s1 + $0x6e8] sm:$0xff]  }
  0x74   :  { %6542 = vmatpush3.bf16.msra.mxu0 %v7219_v10  ;;  %v7267_v10 = vld [vmem:[%s9422_s1 + $0x500] sm:$0xff]  }
  0x75   :  { %6564 = vmatpush3.bf16.msra.mxu1 %v7220_v11  ;;  %6543 = vmatprep.subr.bf16.mxu0 %v7221_v12  ;;  %v7268_v11 = vld [vmem:[%s9422_s1 + $0x580] sm:$0xff]   ;;  %v7269_v12 = vld [vmem:[%s9422_s1 + $0x548] sm:$0xff]  }
  0x76   :  { %6565 = vmatprep.subr.bf16.mxu1 %v7222_v13  ;;  %v7270_v13 = vld [vmem:[%s9422_s1 + $0x5c8] sm:$0xff]  }
  0x78   :  { %6544 = vmatpush3.bf16.msra.mxu0 %v7223_v14  ;;  %v7271_v14 = vld [vmem:[%s9422_s1 + $0x508] sm:$0xff]  }
  0x79   :  { %6566 = vmatpush3.bf16.msra.mxu1 %v7224_v15  ;;  %6545 = vmatprep.subr.bf16.mxu0 %v7225_v16  ;;  %v7272_v15 = vld [vmem:[%s9422_s1 + $0x588] sm:$0xff]   ;;  %v7273_v16 = vld [vmem:[%s9422_s1 + $0x550] sm:$0xff]  }
  0x7a   :  { %6567 = vmatprep.subr.bf16.mxu1 %v7226_v17  ;;  %v7274_v17 = vld [vmem:[%s9422_s1 + $0x5d0] sm:$0xff]  }
  0x7c   :  { %6546 = vmatpush3.bf16.msra.mxu0 %v7227_v18  ;;  %v7275_v18 = vld [vmem:[%s9422_s1 + $0x510] sm:$0xff]  }
  0x7d   :  { %6568 = vmatpush3.bf16.msra.mxu1 %v7228_v19  ;;  %6547 = vmatprep.subr.bf16.mxu0 %v7229_v20  ;;  %v7276_v19 = vld [vmem:[%s9422_s1 + $0x590] sm:$0xff]   ;;  %v7277_v20 = vld [vmem:[%s9422_s1 + $0x558] sm:$0xff]  }
  0x7e   :  { %6569 = vmatprep.subr.bf16.mxu1 %v7230_v21  ;;  %v7278_v21 = vld [vmem:[%s9422_s1 + $0x5d8] sm:$0xff]  }
  0x80   :  { %6548 = vmatpush3.bf16.msra.mxu0 %v7231_v22  ;;  %v7279_v22 = vld [vmem:[%s9422_s1 + $0x518] sm:$0xff]  }
  0x81   :  { %6570 = vmatpush3.bf16.msra.mxu1 %v7232_v23  ;;  %6577 = vmatprep.subr.bf16.mxu0 %v7233_v32  ;;  %v7280_v23 = vld [vmem:[%s9422_s1 + $0x598] sm:$0xff]   ;;  %v7289_v32 = vld [vmem:[%s9422_s1 + $0x570] sm:$0xff]  }
  0x82   :  { %6599 = vmatprep.subr.bf16.mxu1 %v7234_v33  ;;  %v7290_v33 = vld [vmem:[%s9422_s1 + $0x5f0] sm:$0xff]  }
  0x83   :  { %4771 = vmatmul.mubr.bf16.vlgmr.msra.gmra.mrb[12].mxu0 %v5835_v27  ;;  %v7284_v27 = vld [vmem:[%s9422_s1 + $0x5a0] sm:$0xff]  }
  0x84   :  { %4812 = vmatmul.mubr.bf16.vlgmr.msra.gmra.mrb[12].mxu1 %v5837_v30  ;;  %6578 = vmatpush3.bf16.msra.mxu0 %v7235_v34  ;;  %v7287_v30 = vld [vmem:[%s9422_s1 + $0x528] sm:$0xff]   ;;  %v7291_v34 = vld [vmem:[%s9422_s1 + $0x530] sm:$0xff]  }
  0x85   :  { %6600 = vmatpush3.bf16.msra.mxu1 %v7236_v35  ;;  %6579 = vmatprep.subr.bf16.mxu0 %v7237_v36  ;;  %v7292_v35 = vld [vmem:[%s9422_s1 + $0x5b0] sm:$0xff]   ;;  %v7293_v36 = vld [vmem:[%s9422_s1 + $0x578] sm:$0xff]  }
  0x86   :  { %6601 = vmatprep.subr.bf16.mxu1 %v7238_v37  ;;  %4852 = vmatprep.mubr.bf16.mxu0 %v5840_v3  ;;  %v7294_v37 = vld [vmem:[%s9422_s1 + $0x5f8] sm:$0xff]   ;;  %v7316_v3 = vld [vmem:[%s9422_s1 + $0x6a0] sm:$0xff]  }
  0x87   :  { %4893 = vmatprep.mubr.bf16.mxu1 %v5842_v7  ;;  %v7320_v7 = vld [vmem:[%s9422_s1 + $0x6a8] sm:$0xff]  }
  0x88   :  { %6580 = vmatpush3.bf16.msra.mxu0 %v7239_v38  ;;  %v7295_v38 = vld [vmem:[%s9422_s1 + $0x538] sm:$0xff]  }
  0x89   :  { %6602 = vmatpush3.bf16.msra.mxu1 %v7240_v39  ;;  %6581 = vmatprep.subr.bf16.mxu0 %v7241_v40  ;;  %v7296_v39 = vld [vmem:[%s9422_s1 + $0x5b8] sm:$0xff]   ;;  %v22_v40 = vld [vmem:[%s9423_s0 + $0x50] sm:$0xff] }
  0x8a   :  { %6603 = vmatprep.subr.bf16.mxu1 %v7242_v41  ;;  %v54_v41 = vld [vmem:[%s9423_s0 + $0x150] sm:$0xff] }
  0x8c   :  { %6582 = vmatpush3.bf16.msra.mxu0 %v7243_v42  ;;  %v23_v42 = vld [vmem:[%s9423_s0 + $0x58] sm:$0xff] }
  0x8d   :  { %6604 = vmatpush3.bf16.msra.mxu1 %v7244_v43  ;;  %6583 = vmatprep.subr.bf16.mxu0 %v7245_v44  ;;  %v55_v43 = vld [vmem:[%s9423_s0 + $0x158] sm:$0xff]  ;;  %v5843_v44 = vcombine.low %v22_v40, %v54_v41 }
  0x8e   :  { %6605 = vmatprep.subr.bf16.mxu1 %v7246_v45  ;;  %v5844_v45 = vcombine.high %v22_v40, %v54_v41  ;;  %v7344_v41 = vld [vmem:[%s9422_s1 + $0x798] sm:$0xff]  }
  0x90   :  { %6584 = vmatpush3.bf16.msra.mxu0 %v7247_v46  ;;  %v5845_v46 = vcombine.low %v23_v42, %v55_v43 }
  0x91   :  { %6606 = vmatpush3.bf16.msra.mxu1 %v7248_v47  ;;  %6585 = vmatprep.subr.bf16.mxu0 %v7249_v48  ;;  %v5846_v47 = vcombine.high %v23_v42, %v55_v43  ;;  %v7297_v48 = vld [vmem:[%s9422_s1 + $0x640] sm:$0xff]  }
  0x92   :  { %6607 = vmatprep.subr.bf16.mxu1 %v7250_v49  ;;  %v7298_v49 = vld [vmem:[%s9422_s1 + $0x6c0] sm:$0xff]  }
  0x93   :  { %v7345_v43 = vld [vmem:[%s9422_s1 + $0x760] sm:$0xff]  }
  0x94   :  { %6586 = vmatpush3.bf16.msra.mxu0 %v7251_v50  ;;  %v7299_v50 = vld [vmem:[%s9422_s1 + $0x600] sm:$0xff]  }
  0x95   :  { %6608 = vmatpush3.bf16.msra.mxu1 %v7252_v51  ;;  %6587 = vmatprep.subr.bf16.mxu0 %v7253_v52  ;;  %v7300_v51 = vld [vmem:[%s9422_s1 + $0x680] sm:$0xff]   ;;  %v7301_v52 = vld [vmem:[%s9422_s1 + $0x648] sm:$0xff]  }
  0x96   :  { %6609 = vmatprep.subr.bf16.mxu1 %v7254_v53  ;;  %v7302_v53 = vld [vmem:[%s9422_s1 + $0x6c8] sm:$0xff]  }
  0x98   :  { %6588 = vmatpush3.bf16.msra.mxu0 %v7255_v54  ;;  %v7303_v54 = vld [vmem:[%s9422_s1 + $0x608] sm:$0xff]  }
  0x99   :  { %6610 = vmatpush3.bf16.msra.mxu1 %v7256_v55  ;;  %6589 = vmatprep.subr.bf16.mxu0 %v7257_v56  ;;  %v7304_v55 = vld [vmem:[%s9422_s1 + $0x688] sm:$0xff]   ;;  %v7305_v56 = vld [vmem:[%s9422_s1 + $0x650] sm:$0xff]  }
  0x9a   :  { %6611 = vmatprep.subr.bf16.mxu1 %v7258_v57  ;;  %v7306_v57 = vld [vmem:[%s9422_s1 + $0x6d0] sm:$0xff]  }
  0x9c   :  { %6590 = vmatpush3.bf16.msra.mxu0 %v7259_v58  ;;  %v7307_v58 = vld [vmem:[%s9422_s1 + $0x610] sm:$0xff]  }
  0x9d   :  { %6612 = vmatpush3.bf16.msra.mxu1 %v7260_v59  ;;  %6591 = vmatprep.subr.bf16.mxu0 %v7261_v60  ;;  %v7308_v59 = vld [vmem:[%s9422_s1 + $0x690] sm:$0xff]   ;;  %v7309_v60 = vld [vmem:[%s9422_s1 + $0x658] sm:$0xff]  }
  0x9e   :  { %6613 = vmatprep.subr.bf16.mxu1 %v7262_v61  ;;  %v7310_v61 = vld [vmem:[%s9422_s1 + $0x6d8] sm:$0xff]  }
  0xa0   :  { %6592 = vmatpush3.bf16.msra.mxu0 %v7263_v62  ;;  %v7311_v62 = vld [vmem:[%s9422_s1 + $0x618] sm:$0xff]  }
  0xa1   :  { %6614 = vmatpush3.bf16.msra.mxu1 %v7264_v63  ;;  %6621 = vmatprep.subr.bf16.mxu0 %v7265_v8  ;;  %v7312_v63 = vld [vmem:[%s9422_s1 + $0x698] sm:$0xff]   ;;  %v7321_v8 = vld [vmem:[%s9422_s1 + $0x670] sm:$0xff]  }
  0xa2   :  { %6643 = vmatprep.subr.bf16.mxu1 %v7266_v9  ;;  %v7322_v9 = vld [vmem:[%s9422_s1 + $0x6f0] sm:$0xff]  }
  0xa3   :  { %4853 = vmatmul.mubr.bf16.vlgmr.msra.gmra.mrb[16].mxu0 %v5839_v2  ;;  %v7315_v2 = vld [vmem:[%s9422_s1 + $0x620] sm:$0xff]  }
  0xa4   :  { %4894 = vmatmul.mubr.bf16.vlgmr.msra.gmra.mrb[16].mxu1 %v5841_v6  ;;  %6622 = vmatpush3.bf16.msra.mxu0 %v7267_v10  ;;  %v7319_v6 = vld [vmem:[%s9422_s1 + $0x628] sm:$0xff]   ;;  %v7323_v10 = vld [vmem:[%s9422_s1 + $0x630] sm:$0xff]  }
  0xa5   :  { %6644 = vmatpush3.bf16.msra.mxu1 %v7268_v11  ;;  %6623 = vmatprep.subr.bf16.mxu0 %v7269_v12  ;;  %v7324_v11 = vld [vmem:[%s9422_s1 + $0x6b0] sm:$0xff]   ;;  %v7325_v12 = vld [vmem:[%s9422_s1 + $0x678] sm:$0xff]  }
  0xa6   :  { %6645 = vmatprep.subr.bf16.mxu1 %v7270_v13  ;;  %4934 = vmatprep.mubr.bf16.mxu0 %v5844_v45  ;;  %v7326_v13 = vld [vmem:[%s9422_s1 + $0x6f8] sm:$0xff]  }
  0xa7   :  { %4975 = vmatprep.mubr.bf16.mxu1 %v5846_v47 }
  0xa8   :  { %6624 = vmatpush3.bf16.msra.mxu0 %v7271_v14  ;;  %v7327_v14 = vld [vmem:[%s9422_s1 + $0x638] sm:$0xff]  }
  0xa9   :  { %6646 = vmatpush3.bf16.msra.mxu1 %v7272_v15  ;;  %6625 = vmatprep.subr.bf16.mxu0 %v7273_v16  ;;  %v7328_v15 = vld [vmem:[%s9422_s1 + $0x6b8] sm:$0xff]   ;;  %v24_v16 = vld [vmem:[%s9423_s0 + $0x60] sm:$0xff] }
  0xaa   :  { %6647 = vmatprep.subr.bf16.mxu1 %v7274_v17  ;;  %v56_v17 = vld [vmem:[%s9423_s0 + $0x160] sm:$0xff] }
  0xac   :  { %6626 = vmatpush3.bf16.msra.mxu0 %v7275_v18  ;;  %v25_v18 = vld [vmem:[%s9423_s0 + $0x68] sm:$0xff] }
  0xad   :  { %6648 = vmatpush3.bf16.msra.mxu1 %v7276_v19  ;;  %6627 = vmatprep.subr.bf16.mxu0 %v7277_v20  ;;  %v5847_v19 = vcombine.low %v24_v16, %v56_v17  ;;  %v5848_v20 = vcombine.high %v24_v16, %v56_v17  ;;  %v7363_v16 = vld [vmem:[%s9422_s1 + $0x800] sm:$0xff]  }
  0xae   :  { %6649 = vmatprep.subr.bf16.mxu1 %v7278_v21  ;;  %v57_v21 = vld [vmem:[%s9423_s0 + $0x168] sm:$0xff]  ;;  %v7364_v17 = vld [vmem:[%s9422_s1 + $0x880] sm:$0xff]  }
  0xb0   :  { %6628 = vmatpush3.bf16.msra.mxu0 %v7279_v22  ;;  %v5849_v22 = vcombine.low %v25_v18, %v57_v21 }
  0xb1   :  { %6650 = vmatpush3.bf16.msra.mxu1 %v7280_v23  ;;  %6629 = vmatprep.subr.bf16.mxu0 %v7281_v24  ;;  %v5850_v23 = vcombine.high %v25_v18, %v57_v21  ;;  %v7329_v24 = vld [vmem:[%s9422_s1 + $0x740] sm:$0xff]   ;;  %v7365_v18 = vld [vmem:[%s9422_s1 + $0x848] sm:$0xff]  }
  0xb2   :  { %6651 = vmatprep.subr.bf16.mxu1 %v7282_v25  ;;  %v7330_v25 = vld [vmem:[%s9422_s1 + $0x7c0] sm:$0xff]   ;;  %v7368_v21 = vld [vmem:[%s9422_s1 + $0x888] sm:$0xff]  }
  0xb4   :  { %6630 = vmatpush3.bf16.msra.mxu0 %v7283_v26  ;;  %v7331_v26 = vld [vmem:[%s9422_s1 + $0x700] sm:$0xff]  }
  0xb5   :  { %6652 = vmatpush3.bf16.msra.mxu1 %v7284_v27  ;;  %6631 = vmatprep.subr.bf16.mxu0 %v7285_v28  ;;  %v7332_v27 = vld [vmem:[%s9422_s1 + $0x780] sm:$0xff]   ;;  %v7333_v28 = vld [vmem:[%s9422_s1 + $0x748] sm:$0xff]  }
  0xb6   :  { %6653 = vmatprep.subr.bf16.mxu1 %v7286_v29  ;;  %v7334_v29 = vld [vmem:[%s9422_s1 + $0x7c8] sm:$0xff]  }
  0xb8   :  { %6632 = vmatpush3.bf16.msra.mxu0 %v7287_v30  ;;  %v7335_v30 = vld [vmem:[%s9422_s1 + $0x708] sm:$0xff]  }
  0xb9   :  { %6654 = vmatpush3.bf16.msra.mxu1 %v7288_v31  ;;  %6633 = vmatprep.subr.bf16.mxu0 %v7289_v32  ;;  %v7336_v31 = vld [vmem:[%s9422_s1 + $0x788] sm:$0xff]   ;;  %v7337_v32 = vld [vmem:[%s9422_s1 + $0x750] sm:$0xff]  }
  0xba   :  { %6655 = vmatprep.subr.bf16.mxu1 %v7290_v33  ;;  %v7338_v33 = vld [vmem:[%s9422_s1 + $0x7d0] sm:$0xff]  }
  0xbc   :  { %6634 = vmatpush3.bf16.msra.mxu0 %v7291_v34  ;;  %v7339_v34 = vld [vmem:[%s9422_s1 + $0x710] sm:$0xff]  }
  0xbd   :  { %6656 = vmatpush3.bf16.msra.mxu1 %v7292_v35  ;;  %6635 = vmatprep.subr.bf16.mxu0 %v7293_v36  ;;  %v7340_v35 = vld [vmem:[%s9422_s1 + $0x790] sm:$0xff]   ;;  %v7341_v36 = vld [vmem:[%s9422_s1 + $0x758] sm:$0xff]  }
  0xbe   :  { %6657 = vmatprep.subr.bf16.mxu1 %v7294_v37  ;;  %v7342_v37 = vld [vmem:[%s9422_s1 + $0x7d8] sm:$0xff]  }
  0xc0   :  { %6636 = vmatpush3.bf16.msra.mxu0 %v7295_v38 }
  0xc1   :  { %6658 = vmatpush3.bf16.msra.mxu1 %v7296_v39  ;;  %6665 = vmatprep.subr.bf16.mxu0 %v7297_v48  ;;  %v7343_v39 = vld [vmem:[%s9422_s1 + $0x718] sm:$0xff]  }
  0xc2   :  { %6687 = vmatprep.subr.bf16.mxu1 %v7298_v49  ;;  %v7347_v49 = vld [vmem:[%s9422_s1 + $0x720] sm:$0xff]  }
  0xc3   :  { %4935 = vmatmul.mubr.bf16.vlgmr.msra.gmra.mrb[20].mxu0 %v5843_v44 }
  0xc4   :  { %4976 = vmatmul.mubr.bf16.vlgmr.msra.gmra.mrb[20].mxu1 %v5845_v46  ;;  %6666 = vmatpush3.bf16.msra.mxu0 %v7299_v50  ;;  %v7346_v46 = vld [vmem:[%s9422_s1 + $0x7e0] sm:$0xff]  }
  0xc5   :  { %6688 = vmatpush3.bf16.msra.mxu1 %v7300_v51  ;;  %6667 = vmatprep.subr.bf16.mxu0 %v7301_v52  ;;  %v7348_v51 = vld [vmem:[%s9422_s1 + $0x7a0] sm:$0xff]  }
  0xc6   :  { %6689 = vmatprep.subr.bf16.mxu1 %v7302_v53  ;;  %5016 = vmatprep.mubr.bf16.mxu0 %v5848_v20  ;;  %v7367_v20 = vld [vmem:[%s9422_s1 + $0x808] sm:$0xff]  }
  0xc7   :  { %5057 = vmatprep.mubr.bf16.mxu1 %v5850_v23  ;;  %v7370_v23 = vld [vmem:[%s9422_s1 + $0x8d0] sm:$0xff]  }
  0xc8   :  { %6668 = vmatpush3.bf16.msra.mxu0 %v7303_v54  ;;  %v7349_v54 = vld [vmem:[%s9422_s1 + $0x768] sm:$0xff]  }
  0xc9   :  { %6690 = vmatpush3.bf16.msra.mxu1 %v7304_v55  ;;  %6669 = vmatprep.subr.bf16.mxu0 %v7305_v56 }
  0xca   :  { %6691 = vmatprep.subr.bf16.mxu1 %v7306_v57  ;;  %v7350_v57 = vld [vmem:[%s9422_s1 + $0x7e8] sm:$0xff]  }
  0xcc   :  { %6670 = vmatpush3.bf16.msra.mxu0 %v7307_v58 }
  0xcd   :  { %6692 = vmatpush3.bf16.msra.mxu1 %v7308_v59  ;;  %6671 = vmatprep.subr.bf16.mxu0 %v7309_v60  ;;  %v7351_v59 = vld [vmem:[%s9422_s1 + $0x728] sm:$0xff]  }
  0xce   :  { %6693 = vmatprep.subr.bf16.mxu1 %v7310_v61  ;;  %v7352_v60 = vld [vmem:[%s9422_s1 + $0x7a8] sm:$0xff]  }
  0xd0   :  { %6672 = vmatpush3.bf16.msra.mxu0 %v7311_v62  ;;  %v7353_v62 = vld [vmem:[%s9422_s1 + $0x770] sm:$0xff]  }
  0xd1   :  { %6694 = vmatpush3.bf16.msra.mxu1 %v7312_v63  ;;  %6673 = vmatprep.subr.bf16.mxu0 %v7313_v0  ;;  %v7354_v63 = vld [vmem:[%s9422_s1 + $0x7f0] sm:$0xff]  }
  0xd2   :  { %6695 = vmatprep.subr.bf16.mxu1 %v7314_v1  ;;  %v7355_v0 = vld [vmem:[%s9422_s1 + $0x730] sm:$0xff]  }
  0xd3   :  { %v7356_v1 = vld [vmem:[%s9422_s1 + $0x7b0] sm:$0xff]  }
  0xd4   :  { %6674 = vmatpush3.bf16.msra.mxu0 %v7315_v2  ;;  %v7357_v2 = vld [vmem:[%s9422_s1 + $0x778] sm:$0xff]  }
  0xd5   :  { %6696 = vmatpush3.bf16.msra.mxu1 %v7316_v3  ;;  %6675 = vmatprep.subr.bf16.mxu0 %v7317_v4  ;;  %v7358_v3 = vld [vmem:[%s9422_s1 + $0x7f8] sm:$0xff]  }
  0xd6   :  { %6697 = vmatprep.subr.bf16.mxu1 %v7318_v5  ;;  %v7359_v4 = vld [vmem:[%s9422_s1 + $0x738] sm:$0xff]  }
  0xd7   :  { %v7360_v5 = vld [vmem:[%s9422_s1 + $0x7b8] sm:$0xff]  }
  0xd8   :  { %6676 = vmatpush3.bf16.msra.mxu0 %v7319_v6  ;;  %v26_v6 = vld [vmem:[%s9423_s0 + $0x70] sm:$0xff] }
  0xd9   :  { %6698 = vmatpush3.bf16.msra.mxu1 %v7320_v7  ;;  %6677 = vmatprep.subr.bf16.mxu0 %v7321_v8  ;;  %v58_v7 = vld [vmem:[%s9423_s0 + $0x170] sm:$0xff] }
  0xda   :  { %6699 = vmatprep.subr.bf16.mxu1 %v7322_v9  ;;  %v5851_v8 = vcombine.low %v26_v6, %v58_v7  ;;  %v5852_v9 = vcombine.high %v26_v6, %v58_v7  ;;  %v7393_v6 = vld [vmem:[%s9422_s1 + $0x940] sm:$0xff]  }
  0xdb   :  { %v7394_v7 = vld [vmem:[%s9422_s1 + $0x9c0] sm:$0xff]  }
  0xdc   :  { %6678 = vmatpush3.bf16.msra.mxu0 %v7323_v10  ;;  %v27_v10 = vld [vmem:[%s9423_s0 + $0x78] sm:$0xff] }
  0xdd   :  { %6700 = vmatpush3.bf16.msra.mxu1 %v7324_v11  ;;  %6679 = vmatprep.subr.bf16.mxu0 %v7325_v12  ;;  %v59_v11 = vld [vmem:[%s9423_s0 + $0x178] sm:$0xff] }
  0xde   :  { %6701 = vmatprep.subr.bf16.mxu1 %v7326_v13  ;;  %v5853_v12 = vcombine.low %v27_v10, %v59_v11  ;;  %v5854_v13 = vcombine.high %v27_v10, %v59_v11  ;;  %v7397_v10 = vld [vmem:[%s9422_s1 + $0x948] sm:$0xff]  }
  0xdf   :  { %v7398_v11 = vld [vmem:[%s9422_s1 + $0x9c8] sm:$0xff]  }
  0xe0   :  { %6680 = vmatpush3.bf16.msra.mxu0 %v7327_v14  ;;  %v7361_v14 = vld [vmem:[%s9422_s1 + $0x840] sm:$0xff]  }
  0xe1   :  { %6702 = vmatpush3.bf16.msra.mxu1 %v7328_v15  ;;  %6709 = vmatprep.subr.bf16.mxu0 %v7329_v24  ;;  %v7362_v15 = vld [vmem:[%s9422_s1 + $0x8c0] sm:$0xff]   ;;  %v7371_v24 = vld [vmem:[%s9422_s1 + $0x810] sm:$0xff]  }
  0xe2   :  { %6731 = vmatprep.subr.bf16.mxu1 %v7330_v25  ;;  %v7372_v25 = vld [vmem:[%s9422_s1 + $0x890] sm:$0xff]  }
  0xe3   :  { %5017 = vmatmul.mubr.bf16.vlgmr.msra.gmra.mrb[24].mxu0 %v5847_v19  ;;  %v7366_v19 = vld [vmem:[%s9422_s1 + $0x8c8] sm:$0xff]  }
  0xe4   :  { %5058 = vmatmul.mubr.bf16.vlgmr.msra.gmra.mrb[24].mxu1 %v5849_v22  ;;  %6710 = vmatpush3.bf16.msra.mxu0 %v7331_v26  ;;  %v7369_v22 = vld [vmem:[%s9422_s1 + $0x850] sm:$0xff]   ;;  %v7373_v26 = vld [vmem:[%s9422_s1 + $0x858] sm:$0xff]  }
  0xe5   :  { %6732 = vmatpush3.bf16.msra.mxu1 %v7332_v27  ;;  %6711 = vmatprep.subr.bf16.mxu0 %v7333_v28  ;;  %v7374_v27 = vld [vmem:[%s9422_s1 + $0x8d8] sm:$0xff]  }
  0xe6   :  { %6733 = vmatprep.subr.bf16.mxu1 %v7334_v29  ;;  %5098 = vmatprep.mubr.bf16.mxu0 %v5852_v9  ;;  %v7375_v29 = vld [vmem:[%s9422_s1 + $0x818] sm:$0xff]   ;;  %v7396_v9 = vld [vmem:[%s9422_s1 + $0x980] sm:$0xff]  }
  0xe7   :  { %5139 = vmatprep.mubr.bf16.mxu1 %v5854_v13  ;;  %v7400_v13 = vld [vmem:[%s9422_s1 + $0x988] sm:$0xff]  }
  0xe8   :  { %6712 = vmatpush3.bf16.msra.mxu0 %v7335_v30 }
  0xe9   :  { %6734 = vmatpush3.bf16.msra.mxu1 %v7336_v31  ;;  %6713 = vmatprep.subr.bf16.mxu0 %v7337_v32  ;;  %v7376_v31 = vld [vmem:[%s9422_s1 + $0x898] sm:$0xff]  }
  0xea   :  { %6735 = vmatprep.subr.bf16.mxu1 %v7338_v33  ;;  %v7377_v33 = vld [vmem:[%s9422_s1 + $0x860] sm:$0xff]  }
  0xec   :  { %6714 = vmatpush3.bf16.msra.mxu0 %v7339_v34 }
  0xed   :  { %6736 = vmatpush3.bf16.msra.mxu1 %v7340_v35  ;;  %6715 = vmatprep.subr.bf16.mxu0 %v7341_v36  ;;  %v7378_v36 = vld [vmem:[%s9422_s1 + $0x8e0] sm:$0xff]  }
  0xee   :  { %6737 = vmatprep.subr.bf16.mxu1 %v7342_v37 }
  0xf0   :  { %6716 = vmatpush3.bf16.msra.mxu0 %v7343_v39  ;;  %v7379_v39 = vld [vmem:[%s9422_s1 + $0x820] sm:$0xff]  }
  0xf1   :  { %6738 = vmatpush3.bf16.msra.mxu1 %v7344_v41  ;;  %6717 = vmatprep.subr.bf16.mxu0 %v7345_v43 }
  0xf2   :  { %6739 = vmatprep.subr.bf16.mxu1 %v7346_v46 }
  0xf4   :  { %6718 = vmatpush3.bf16.msra.mxu0 %v7347_v49 }
  0xf5   :  { %6740 = vmatpush3.bf16.msra.mxu1 %v7348_v51  ;;  %6719 = vmatprep.subr.bf16.mxu0 %v7349_v54  ;;  %v7385_v54 = vld [vmem:[%s9422_s1 + $0x870] sm:$0xff]  }
  0xf6   :  { %v6417_v38 = vpop.f32.mrb[0].mxu0  ;;  %6741 = vmatprep.subr.bf16.mxu1 %v7350_v57  ;;  %v7388_v57 = vld [vmem:[%s9422_s1 + $0x8b0] sm:$0xff]  }
  0xf7   :  { %v6439_v40 = vpop.f32.mrb[0].mxu1  ;;  %v6418_v42 = vpop.f32.mrb[1].mxu0 }
  0xf8   :  { %v6419_v44 = vadd.f32 %v6418_v42, %v6417_v38  ;;  %v6440_v45 = vpop.f32.mrb[1].mxu1  ;;  %v6420_v48 = vpop.f32.mrb[2].mxu0  ;;  %6720 = vmatpush3.bf16.msra.mxu0 %v7351_v59  ;;  %v7380_v42 = vld [vmem:[%s9422_s1 + $0x8a0] sm:$0xff]   ;;  %v7390_v59 = vld [vmem:[%s9422_s1 + $0x8f8] sm:$0xff]  }
  0xf9   :  { %v6441_v47 = vadd.f32 %v6440_v45, %v6439_v40  ;;  %v6442_v50 = vpop.f32.mrb[2].mxu1  ;;  %v6421_v53 = vpop.f32.mrb[3].mxu0  ;;  %6742 = vmatpush3.bf16.msra.mxu1 %v7352_v60  ;;  %6721 = vmatprep.subr.bf16.mxu0 %v7353_v62  ;;  %v7381_v45 = vld [vmem:[%s9422_s1 + $0x868] sm:$0xff]   ;;  %v7391_v60 = vld [vmem:[%s9422_s1 + $0x838] sm:$0xff]   ;;  %v28_v62 = vld [vmem:[%s9423_s0 + $0x80] sm:$0xff] }
  0xfa   :  { %v6422_v55 = vadd.f32 %v6421_v53, %v6420_v48  ;;  %v6443_v56 = vpop.f32.mrb[3].mxu1  ;;  %6743 = vmatprep.subr.bf16.mxu1 %v7354_v63  ;;  %v7382_v48 = vld [vmem:[%s9422_s1 + $0x8e8] sm:$0xff]   ;;  %v60_v63 = vld [vmem:[%s9423_s0 + $0x180] sm:$0xff] }
  0xfb   :  { %v8456_v52 = vadd.f32 %v6441_v47, %v6419_v44  ;;  %v6444_v58 = vadd.f32 %v6443_v56, %v6442_v50  ;;  %v7383_v50 = vld [vmem:[%s9422_s1 + $0x828] sm:$0xff]   ;;  %v7387_v56 = vld [vmem:[%s9422_s1 + $0x830] sm:$0xff]  }
  0xfc   :  { %6722 = vmatpush3.bf16.msra.mxu0 %v7355_v0  ;;  %v29_v0 = vld [vmem:[%s9423_s0 + $0x88] sm:$0xff] }
  0xfd   :  { %v8470_v61 = vadd.f32 %v6444_v58, %v6422_v55  ;;  %6744 = vmatpush3.bf16.msra.mxu1 %v7356_v1  ;;  %6723 = vmatprep.subr.bf16.mxu0 %v7357_v2  ;;  %v7386_v55 = vld [vmem:[%s9422_s1 + $0x8f0] sm:$0xff]   ;;  %v7389_v58 = vld [vmem:[%s9422_s1 + $0x878] sm:$0xff]   ;;  %v61_v1 = vld [vmem:[%s9423_s0 + $0x188] sm:$0xff]  ;;  %v5855_v2 = vcombine.low %v28_v62, %v60_v63 }
  0xfe   :  { %6745 = vmatprep.subr.bf16.mxu1 %v7358_v3  ;;  %v5856_v3 = vcombine.high %v28_v62, %v60_v63  ;;  %v7425_v62 = vld [vmem:[%s9422_s1 + $0xa40] sm:$0xff]  }
  0xff   :  { %v7426_v63 = vld [vmem:[%s9422_s1 + $0xac0] sm:$0xff]  }
 0x100   :  { %6724 = vmatpush3.bf16.msra.mxu0 %v7359_v4  ;;  %v5857_v4 = vcombine.low %v29_v0, %v61_v1 }
 0x101   :  { %6746 = vmatpush3.bf16.msra.mxu1 %v7360_v5  ;;  %6753 = vmatprep.subr.bf16.mxu0 %v7361_v14  ;;  %v5858_v5 = vcombine.high %v29_v0, %v61_v1  ;;  %v7401_v14 = vld [vmem:[%s9422_s1 + $0x950] sm:$0xff]   ;;  %v7427_v0 = vld [vmem:[%s9422_s1 + $0xa00] sm:$0xff]  }
 0x102   :  { %6775 = vmatprep.subr.bf16.mxu1 %v7362_v15  ;;  %v7402_v15 = vld [vmem:[%s9422_s1 + $0x9d0] sm:$0xff]   ;;  %v7428_v1 = vld [vmem:[%s9422_s1 + $0xa80] sm:$0xff]  }
 0x103   :  { %5099 = vmatmul.mubr.bf16.vlgmr.msra.gmra.mrb[28].mxu0 %v5851_v8  ;;  %v7395_v8 = vld [vmem:[%s9422_s1 + $0x900] sm:$0xff]  }
 0x104   :  { %5140 = vmatmul.mubr.bf16.vlgmr.msra.gmra.mrb[28].mxu1 %v5853_v12  ;;  %6754 = vmatpush3.bf16.msra.mxu0 %v7363_v16  ;;  %v7399_v12 = vld [vmem:[%s9422_s1 + $0x908] sm:$0xff]   ;;  %v7403_v16 = vld [vmem:[%s9422_s1 + $0x910] sm:$0xff]  }
 0x105   :  { %6776 = vmatpush3.bf16.msra.mxu1 %v7364_v17  ;;  %6755 = vmatprep.subr.bf16.mxu0 %v7365_v18  ;;  %v7404_v17 = vld [vmem:[%s9422_s1 + $0x990] sm:$0xff]   ;;  %v7405_v18 = vld [vmem:[%s9422_s1 + $0x958] sm:$0xff]  }
 0x106   :  { %6777 = vmatprep.subr.bf16.mxu1 %v7366_v19  ;;  %5180 = vmatprep.mubr.bf16.mxu0 %v5856_v3  ;;  %v7406_v19 = vld [vmem:[%s9422_s1 + $0x9d8] sm:$0xff]   ;;  %v7430_v3 = vld [vmem:[%s9422_s1 + $0xac8] sm:$0xff]  }
 0x107   :  { %5221 = vmatprep.mubr.bf16.mxu1 %v5858_v5  ;;  %v7432_v5 = vld [vmem:[%s9422_s1 + $0xa88] sm:$0xff]  }
 0x108   :  { %6756 = vmatpush3.bf16.msra.mxu0 %v7367_v20  ;;  %v7407_v20 = vld [vmem:[%s9422_s1 + $0x918] sm:$0xff]  }
 0x109   :  { %6778 = vmatpush3.bf16.msra.mxu1 %v7368_v21  ;;  %6757 = vmatprep.subr.bf16.mxu0 %v7369_v22  ;;  %v7408_v22 = vld [vmem:[%s9422_s1 + $0x998] sm:$0xff]  }
 0x10a   :  { %6779 = vmatprep.subr.bf16.mxu1 %v7370_v23 }
 0x10c   :  { %6758 = vmatpush3.bf16.msra.mxu0 %v7371_v24  ;;  %v7409_v24 = vld [vmem:[%s9422_s1 + $0x960] sm:$0xff]  }
 0x10d   :  { %6780 = vmatpush3.bf16.msra.mxu1 %v7372_v25  ;;  %6759 = vmatprep.subr.bf16.mxu0 %v7373_v26  ;;  %v7410_v26 = vld [vmem:[%s9422_s1 + $0x9e0] sm:$0xff]  }
 0x10e   :  { %6781 = vmatprep.subr.bf16.mxu1 %v7374_v27 }
 0x110   :  { %6760 = vmatpush3.bf16.msra.mxu0 %v7375_v29  ;;  %v7411_v29 = vld [vmem:[%s9422_s1 + $0x920] sm:$0xff]  }
 0x111   :  { %6782 = vmatpush3.bf16.msra.mxu1 %v7376_v31  ;;  %6761 = vmatprep.subr.bf16.mxu0 %v7377_v33 }
 0x112   :  { %6783 = vmatprep.subr.bf16.mxu1 %v7378_v36 }
 0x114   :  { %6762 = vmatpush3.bf16.msra.mxu0 %v7379_v39 }
 0x115   :  { %6784 = vmatpush3.bf16.msra.mxu1 %v7380_v42  ;;  %6763 = vmatprep.subr.bf16.mxu0 %v7381_v45  ;;  %v7417_v45 = vld [vmem:[%s9422_s1 + $0x970] sm:$0xff]  }
 0x116   :  { %v6461_v28 = vpop.f32.mrb[4].mxu0  ;;  %6785 = vmatprep.subr.bf16.mxu1 %v7382_v48  ;;  %v7419_v48 = vld [vmem:[%s9422_s1 + $0x930] sm:$0xff]  }
 0x117   :  { %v6483_v30 = vpop.f32.mrb[4].mxu1  ;;  %v6462_v32 = vpop.f32.mrb[5].mxu0 }
 0x118   :  { %v6463_v34 = vadd.f32 %v6462_v32, %v6461_v28  ;;  %v6484_v35 = vpop.f32.mrb[5].mxu1  ;;  %v6464_v38 = vpop.f32.mrb[6].mxu0  ;;  %6764 = vmatpush3.bf16.msra.mxu0 %v7383_v50  ;;  %v7412_v32 = vld [vmem:[%s9422_s1 + $0x9a0] sm:$0xff]   ;;  %v7421_v50 = vld [vmem:[%s9422_s1 + $0x978] sm:$0xff]  }
 0x119   :  { %v6485_v37 = vadd.f32 %v6484_v35, %v6483_v30  ;;  %v6486_v41 = vpop.f32.mrb[6].mxu1  ;;  %v6465_v43 = vpop.f32.mrb[7].mxu0  ;;  %6765 = vmatprep.subr.bf16.mxu0 %v7385_v54  ;;  %v7413_v35 = vld [vmem:[%s9422_s1 + $0x968] sm:$0xff]   ;;  %v30_v54 = vld [vmem:[%s9423_s0 + $0x90] sm:$0xff] }
 0x11a   :  { %v4609_v40 = vadd.f32 %v6463_v34, %v8456_v52  ;;  %v6466_v46 = vadd.f32 %v6465_v43, %v6464_v38  ;;  %v6487_v47 = vpop.f32.mrb[7].mxu1  ;;  %v7384_v52 = vld [vmem:[%s9422_s1 + $0x8a8] sm:$0xff]  }
 0x11b   :  { %v6488_v49 = vadd.f32 %v6487_v47, %v6486_v41  ;;  %6786 = vmatpush3.bf16.msra.mxu1 %v7384_v52  ;;  %v7414_v38 = vld [vmem:[%s9422_s1 + $0x9e8] sm:$0xff]   ;;  %v7418_v47 = vld [vmem:[%s9422_s1 + $0x9f0] sm:$0xff]   ;;  %v7423_v52 = vld [vmem:[%s9422_s1 + $0x938] sm:$0xff]  }
 0x11c   :  { %v8569_v44 = vadd.f32 %v6485_v37, %v4609_v40  ;;  %v4612_v51 = vadd.f32 %v6466_v46, %v8470_v61  ;;  %6787 = vmatprep.subr.bf16.mxu1 %v7386_v55  ;;  %6766 = vmatpush3.bf16.msra.mxu0 %v7387_v56  ;;  %v7392_v61 = vld [vmem:[%s9422_s1 + $0x8b8] sm:$0xff]   ;;  %v7415_v41 = vld [vmem:[%s9422_s1 + $0x928] sm:$0xff]   ;;  %v62_v55 = vld [vmem:[%s9423_s0 + $0x190] sm:$0xff] }
 0x11d   :  { %6767 = vmatprep.subr.bf16.mxu0 %v7389_v58  ;;  %v7416_v43 = vld [vmem:[%s9422_s1 + $0x9a8] sm:$0xff]   ;;  %v31_v56 = vld [vmem:[%s9423_s0 + $0x98] sm:$0xff]  ;;  %v5860_v58 = vcombine.high %v30_v54, %v62_v55 }
 0x11e   :  { %v8584_v53 = vadd.f32 %v6488_v49, %v4612_v51  ;;  %v7420_v49 = vld [vmem:[%s9422_s1 + $0x9b0] sm:$0xff]   ;;  %v7422_v51 = vld [vmem:[%s9422_s1 + $0x9f8] sm:$0xff]  }
 0x11f   :  { %6788 = vmatpush3.bf16.msra.mxu1 %v7388_v57  ;;  %v5859_v57 = vcombine.low %v30_v54, %v62_v55  ;;  %v7457_v54 = vld [vmem:[%s9422_s1 + $0xb40] sm:$0xff]  }
 0x120   :  { %6789 = vmatprep.subr.bf16.mxu1 %v7390_v59  ;;  %6768 = vmatpush3.bf16.msra.mxu0 %v7391_v60  ;;  %v63_v59 = vld [vmem:[%s9423_s0 + $0x198] sm:$0xff]  ;;  %v7458_v55 = vld [vmem:[%s9422_s1 + $0xbc0] sm:$0xff]  }
 0x121   :  { %6797 = vmatprep.subr.bf16.mxu0 %v7393_v6  ;;  %v5861_v60 = vcombine.low %v31_v56, %v63_v59  ;;  %v7433_v6 = vld [vmem:[%s9422_s1 + $0xa50] sm:$0xff]  }
 0x123   :  { %6790 = vmatpush3.bf16.msra.mxu1 %v7392_v61  ;;  %5181 = vmatmul.mubr.bf16.vlgmr.msra.gmra.mrb[32].mxu0 %v5855_v2  ;;  %v5862_v61 = vcombine.high %v31_v56, %v63_v59  ;;  %v7429_v2 = vld [vmem:[%s9422_s1 + $0xa48] sm:$0xff]   ;;  %v7459_v56 = vld [vmem:[%s9422_s1 + $0xb00] sm:$0xff]  }
 0x124   :  { %6819 = vmatprep.subr.bf16.mxu1 %v7394_v7  ;;  %6798 = vmatpush3.bf16.msra.mxu0 %v7395_v8  ;;  %v7434_v7 = vld [vmem:[%s9422_s1 + $0xad0] sm:$0xff]   ;;  %v7462_v59 = vld [vmem:[%s9422_s1 + $0xbc8] sm:$0xff]  }
 0x125   :  { %6799 = vmatprep.subr.bf16.mxu0 %v7397_v10  ;;  %5262 = vmatprep.mubr.bf16.mxu0 %v5860_v58  ;;  %v7435_v8 = vld [vmem:[%s9422_s1 + $0xa10] sm:$0xff]   ;;  %v7437_v10 = vld [vmem:[%s9422_s1 + $0xa58] sm:$0xff]   ;;  %v7461_v58 = vld [vmem:[%s9422_s1 + $0xb48] sm:$0xff]  }
 0x126   :  { %5222 = vmatmul.mubr.bf16.vlgmr.msra.gmra.mrb[32].mxu1 %v5857_v4  ;;  %v7431_v4 = vld [vmem:[%s9422_s1 + $0xa08] sm:$0xff]  }
 0x127   :  { %6820 = vmatpush3.bf16.msra.mxu1 %v7396_v9  ;;  %5303 = vmatprep.mubr.bf16.mxu1 %v5862_v61  ;;  %v7436_v9 = vld [vmem:[%s9422_s1 + $0xa90] sm:$0xff]   ;;  %v7464_v61 = vld [vmem:[%s9422_s1 + $0xb88] sm:$0xff]  }
 0x128   :  { %6821 = vmatprep.subr.bf16.mxu1 %v7398_v11  ;;  %6800 = vmatpush3.bf16.msra.mxu0 %v7399_v12  ;;  %v7438_v11 = vld [vmem:[%s9422_s1 + $0xad8] sm:$0xff]  }
 0x129   :  { %6801 = vmatprep.subr.bf16.mxu0 %v7401_v14 }
 0x12b   :  { %6822 = vmatpush3.bf16.msra.mxu1 %v7400_v13  ;;  %v7439_v13 = vld [vmem:[%s9422_s1 + $0xa18] sm:$0xff]  }
 0x12c   :  { %6823 = vmatprep.subr.bf16.mxu1 %v7402_v15  ;;  %6802 = vmatpush3.bf16.msra.mxu0 %v7403_v16  ;;  %v7440_v15 = vld [vmem:[%s9422_s1 + $0xa98] sm:$0xff]  }
 0x12d   :  { %6803 = vmatprep.subr.bf16.mxu0 %v7405_v18 }
 0x12f   :  { %6824 = vmatpush3.bf16.msra.mxu1 %v7404_v17  ;;  %v7441_v17 = vld [vmem:[%s9422_s1 + $0xa60] sm:$0xff]  }
 0x130   :  { %6825 = vmatprep.subr.bf16.mxu1 %v7406_v19  ;;  %6804 = vmatpush3.bf16.msra.mxu0 %v7407_v20  ;;  %v7442_v20 = vld [vmem:[%s9422_s1 + $0xae0] sm:$0xff]  }
 0x131   :  { %6805 = vmatprep.subr.bf16.mxu0 %v7409_v24 }
 0x133   :  { %6826 = vmatpush3.bf16.msra.mxu1 %v7408_v22 }
 0x134   :  { %6827 = vmatprep.subr.bf16.mxu1 %v7410_v26  ;;  %6806 = vmatpush3.bf16.msra.mxu0 %v7411_v29  ;;  %v7444_v26 = vld [vmem:[%s9422_s1 + $0xaa0] sm:$0xff]   ;;  %v7445_v29 = vld [vmem:[%s9422_s1 + $0xa68] sm:$0xff]  }
 0x135   :  { %6807 = vmatprep.subr.bf16.mxu0 %v7413_v35 }
 0x136   :  { %v6505_v21 = vpop.f32.mrb[8].mxu0 }
 0x137   :  { %v6527_v23 = vpop.f32.mrb[8].mxu1  ;;  %v6506_v25 = vpop.f32.mrb[9].mxu0  ;;  %6828 = vmatpush3.bf16.msra.mxu1 %v7412_v32  ;;  %v7446_v32 = vld [vmem:[%s9422_s1 + $0xae8] sm:$0xff]  }
 0x138   :  { %v6507_v27 = vadd.f32 %v6506_v25, %v6505_v21  ;;  %v6528_v28 = vpop.f32.mrb[9].mxu1  ;;  %v6508_v31 = vpop.f32.mrb[10].mxu0  ;;  %6829 = vmatprep.subr.bf16.mxu1 %v7414_v38  ;;  %6808 = vmatpush3.bf16.msra.mxu0 %v7415_v41  ;;  %v7449_v38 = vld [vmem:[%s9422_s1 + $0xa70] sm:$0xff]  }
 0x139   :  { %v6529_v30 = vadd.f32 %v6528_v28, %v6527_v23  ;;  %v6530_v34 = vpop.f32.mrb[10].mxu1  ;;  %v6509_v36 = vpop.f32.mrb[11].mxu0  ;;  %6809 = vmatprep.subr.bf16.mxu0 %v7417_v45  ;;  %v7443_v23 = vld [vmem:[%s9422_s1 + $0xa20] sm:$0xff]   ;;  %v7452_v41 = vld [vmem:[%s9422_s1 + $0xab0] sm:$0xff]   ;;  %v7456_v45 = vld [vmem:[%s9422_s1 + $0xab8] sm:$0xff]  }
 0x13a   :  { %v4691_v33 = vadd.f32 %v6507_v27, %v8569_v44  ;;  %v6510_v39 = vadd.f32 %v6509_v36, %v6508_v31  ;;  %v6531_v40 = vpop.f32.mrb[11].mxu1  ;;  %v7448_v36 = vld [vmem:[%s9422_s1 + $0xaa8] sm:$0xff]  }
 0x13b   :  { %v6532_v42 = vadd.f32 %v6531_v40, %v6530_v34  ;;  %6830 = vmatpush3.bf16.msra.mxu1 %v7416_v43  ;;  %v7447_v34 = vld [vmem:[%s9422_s1 + $0xa28] sm:$0xff]   ;;  %v7451_v40 = vld [vmem:[%s9422_s1 + $0xa30] sm:$0xff]   ;;  %v7454_v43 = vld [vmem:[%s9422_s1 + $0xaf8] sm:$0xff]  }
 0x13c   :  { %v8686_v37 = vadd.f32 %v6529_v30, %v4691_v33  ;;  %v4694_v44 = vadd.f32 %v6510_v39, %v8584_v53  ;;  %6831 = vmatprep.subr.bf16.mxu1 %v7418_v47  ;;  %6810 = vmatpush3.bf16.msra.mxu0 %v7419_v48  ;;  %v7424_v53 = vld [vmem:[%s9422_s1 + $0x9b8] sm:$0xff]   ;;  %v7450_v39 = vld [vmem:[%s9422_s1 + $0xaf0] sm:$0xff]   ;;  %v64_v47 = vld [vmem:[%s9423_s0 + $0x1a0] sm:$0xff] }
 0x13d   :  { %6811 = vmatprep.subr.bf16.mxu0 %v7421_v50  ;;  %v33_v50 = vld [vmem:[%s9423_s0 + $0xa8] sm:$0xff] }
 0x13e   :  { %v8701_v46 = vadd.f32 %v6532_v42, %v4694_v44  ;;  %v7453_v42 = vld [vmem:[%s9422_s1 + $0xa78] sm:$0xff]  }
 0x13f   :  { %6832 = vmatpush3.bf16.msra.mxu1 %v7420_v49  ;;  %v7455_v44 = vld [vmem:[%s9422_s1 + $0xa38] sm:$0xff]  }
 0x140   :  { %6833 = vmatprep.subr.bf16.mxu1 %v7422_v51  ;;  %6812 = vmatpush3.bf16.msra.mxu0 %v7423_v52  ;;  %v65_v51 = vld [vmem:[%s9423_s0 + $0x1a8] sm:$0xff] }
 0x141   :  { %6841 = vmatprep.subr.bf16.mxu0 %v7425_v62  ;;  %v5865_v52 = vcombine.low %v33_v50, %v65_v51  ;;  %v7465_v62 = vld [vmem:[%s9422_s1 + $0xb50] sm:$0xff]  }
 0x143   :  { %6834 = vmatpush3.bf16.msra.mxu1 %v7424_v53  ;;  %5263 = vmatmul.mubr.bf16.vlgmr.msra.gmra.mrb[36].mxu0 %v5859_v57  ;;  %v5866_v53 = vcombine.high %v33_v50, %v65_v51  ;;  %v7460_v57 = vld [vmem:[%s9422_s1 + $0xb80] sm:$0xff]   ;;  %v7493_v50 = vld [vmem:[%s9422_s1 + $0xc48] sm:$0xff]  }
 0x144   :  { %6863 = vmatprep.subr.bf16.mxu1 %v7426_v63  ;;  %6842 = vmatpush3.bf16.msra.mxu0 %v7427_v0  ;;  %v7466_v63 = vld [vmem:[%s9422_s1 + $0xbd0] sm:$0xff]   ;;  %v7494_v51 = vld [vmem:[%s9422_s1 + $0xcc8] sm:$0xff]  }
 0x145   :  { %6843 = vmatprep.subr.bf16.mxu0 %v7429_v2  ;;  %v7467_v0 = vld [vmem:[%s9422_s1 + $0xb10] sm:$0xff]   ;;  %v7469_v2 = vld [vmem:[%s9422_s1 + $0xb58] sm:$0xff]  }
 0x146   :  { %5304 = vmatmul.mubr.bf16.vlgmr.msra.gmra.mrb[36].mxu1 %v5861_v60  ;;  %v7463_v60 = vld [vmem:[%s9422_s1 + $0xb08] sm:$0xff]  }
 0x147   :  { %6864 = vmatpush3.bf16.msra.mxu1 %v7428_v1  ;;  %5385 = vmatprep.mubr.bf16.mxu1 %v5866_v53  ;;  %v7468_v1 = vld [vmem:[%s9422_s1 + $0xb90] sm:$0xff]   ;;  %v7496_v53 = vld [vmem:[%s9422_s1 + $0xc88] sm:$0xff]  }
 0x148   :  { %6865 = vmatprep.subr.bf16.mxu1 %v7430_v3  ;;  %6844 = vmatpush3.bf16.msra.mxu0 %v7431_v4  ;;  %v7470_v3 = vld [vmem:[%s9422_s1 + $0xbd8] sm:$0xff]  }
 0x149   :  { %6845 = vmatprep.subr.bf16.mxu0 %v7433_v6 }
 0x14b   :  { %6866 = vmatpush3.bf16.msra.mxu1 %v7432_v5  ;;  %v7471_v5 = vld [vmem:[%s9422_s1 + $0xb18] sm:$0xff]  }
 0x14c   :  { %6867 = vmatprep.subr.bf16.mxu1 %v7434_v7  ;;  %6846 = vmatpush3.bf16.msra.mxu0 %v7435_v8  ;;  %v7472_v7 = vld [vmem:[%s9422_s1 + $0xb98] sm:$0xff]  }
 0x14d   :  { %6847 = vmatprep.subr.bf16.mxu0 %v7437_v10 }
 0x14f   :  { %6868 = vmatpush3.bf16.msra.mxu1 %v7436_v9  ;;  %v7473_v9 = vld [vmem:[%s9422_s1 + $0xb60] sm:$0xff]  }
 0x150   :  { %6869 = vmatprep.subr.bf16.mxu1 %v7438_v11  ;;  %6848 = vmatpush3.bf16.msra.mxu0 %v7439_v13 }
 0x151   :  { %6849 = vmatprep.subr.bf16.mxu0 %v7441_v17 }
 0x153   :  { %6870 = vmatpush3.bf16.msra.mxu1 %v7440_v15  ;;  %v7475_v15 = vld [vmem:[%s9422_s1 + $0xb20] sm:$0xff]  }
 0x154   :  { %6871 = vmatprep.subr.bf16.mxu1 %v7442_v20  ;;  %6850 = vmatpush3.bf16.msra.mxu0 %v7443_v23 }
 0x155   :  { %6851 = vmatprep.subr.bf16.mxu0 %v7445_v29 }
 0x156   :  { %v6549_v12 = vpop.f32.mrb[12].mxu0 }
 0x157   :  { %v6571_v14 = vpop.f32.mrb[12].mxu1  ;;  %v6550_v16 = vpop.f32.mrb[13].mxu0  ;;  %6872 = vmatpush3.bf16.msra.mxu1 %v7444_v26  ;;  %v7479_v26 = vld [vmem:[%s9422_s1 + $0xb28] sm:$0xff]  }
 0x158   :  { %v6551_v18 = vadd.f32 %v6550_v16, %v6549_v12  ;;  %v6572_v19 = vpop.f32.mrb[13].mxu1  ;;  %v6552_v22 = vpop.f32.mrb[14].mxu0  ;;  %6873 = vmatprep.subr.bf16.mxu1 %v7446_v32  ;;  %6852 = vmatpush3.bf16.msra.mxu0 %v7447_v34  ;;  %v7474_v12 = vld [vmem:[%s9422_s1 + $0xbe0] sm:$0xff]   ;;  %v7483_v32 = vld [vmem:[%s9422_s1 + $0xb30] sm:$0xff]   ;;  %v7485_v34 = vld [vmem:[%s9422_s1 + $0xb78] sm:$0xff]  }
 0x159   :  { %v6573_v21 = vadd.f32 %v6572_v19, %v6571_v14  ;;  %v6574_v25 = vpop.f32.mrb[14].mxu1  ;;  %v6553_v27 = vpop.f32.mrb[15].mxu0  ;;  %6853 = vmatprep.subr.bf16.mxu0 %v7449_v38  ;;  %v34_v38 = vld [vmem:[%s9423_s0 + $0xb0] sm:$0xff] }
 0x15a   :  { %v4773_v24 = vadd.f32 %v6551_v18, %v8686_v37  ;;  %v6554_v30 = vadd.f32 %v6553_v27, %v6552_v22  ;;  %v6575_v31 = vpop.f32.mrb[15].mxu1  ;;  %v7476_v18 = vld [vmem:[%s9422_s1 + $0xba0] sm:$0xff]  }
 0x15b   :  { %v6576_v33 = vadd.f32 %v6575_v31, %v6574_v25  ;;  %6874 = vmatpush3.bf16.msra.mxu1 %v7448_v36  ;;  %v7482_v31 = vld [vmem:[%s9422_s1 + $0xbf0] sm:$0xff]   ;;  %v7487_v36 = vld [vmem:[%s9422_s1 + $0xb38] sm:$0xff]  }
 0x15c   :  { %v8797_v28 = vadd.f32 %v6573_v21, %v4773_v24  ;;  %v4776_v35 = vadd.f32 %v6554_v30, %v8701_v46  ;;  %6875 = vmatprep.subr.bf16.mxu1 %v7450_v39  ;;  %6854 = vmatpush3.bf16.msra.mxu0 %v7451_v40  ;;  %v32_v46 = vld [vmem:[%s9423_s0 + $0xa0] sm:$0xff]  ;;  %v7477_v21 = vld [vmem:[%s9422_s1 + $0xb68] sm:$0xff]   ;;  %v7481_v30 = vld [vmem:[%s9422_s1 + $0xb70] sm:$0xff]  }
 0x15d   :  { %6855 = vmatprep.subr.bf16.mxu0 %v7453_v42  ;;  %v5863_v48 = vcombine.low %v32_v46, %v64_v47  ;;  %v5864_v49 = vcombine.high %v32_v46, %v64_v47  ;;  %v7478_v24 = vld [vmem:[%s9422_s1 + $0xbe8] sm:$0xff]   ;;  %v66_v39 = vld [vmem:[%s9423_s0 + $0x1b0] sm:$0xff]  ;;  %v35_v40 = vld [vmem:[%s9423_s0 + $0xb8] sm:$0xff] }
 0x15e   :  { %v8812_v37 = vadd.f32 %v6576_v33, %v4776_v35  ;;  %v7484_v33 = vld [vmem:[%s9422_s1 + $0xbb0] sm:$0xff]   ;;  %v7486_v35 = vld [vmem:[%s9422_s1 + $0xbf8] sm:$0xff]   ;;  %v5867_v42 = vcombine.low %v34_v38, %v66_v39  ;;  %v7489_v46 = vld [vmem:[%s9422_s1 + $0xc40] sm:$0xff]  }
 0x15f   :  { %6876 = vmatpush3.bf16.msra.mxu1 %v7452_v41  ;;  %5344 = vmatprep.mubr.bf16.mxu0 %v5864_v49  ;;  %v67_v41 = vld [vmem:[%s9423_s0 + $0x1b8] sm:$0xff]  ;;  %v7490_v47 = vld [vmem:[%s9422_s1 + $0xcc0] sm:$0xff]  }
 0x160   :  { %6877 = vmatprep.subr.bf16.mxu1 %v7454_v43  ;;  %6856 = vmatpush3.bf16.msra.mxu0 %v7455_v44  ;;  %v5868_v43 = vcombine.high %v34_v38, %v66_v39  ;;  %v5869_v44 = vcombine.low %v35_v40, %v67_v41  ;;  %v7492_v49 = vld [vmem:[%s9422_s1 + $0xc80] sm:$0xff]  }
 0x161   :  { %6885 = vmatprep.subr.bf16.mxu0 %v7457_v54  ;;  %v7497_v54 = vld [vmem:[%s9422_s1 + $0xc50] sm:$0xff]   ;;  %v7521_v38 = vld [vmem:[%s9422_s1 + $0xd40] sm:$0xff]  }
 0x162   :  { %v7522_v39 = vld [vmem:[%s9422_s1 + $0xdc0] sm:$0xff]  }
 0x163   :  { %6878 = vmatpush3.bf16.msra.mxu1 %v7456_v45  ;;  %5345 = vmatmul.mubr.bf16.vlgmr.msra.gmra.mrb[40].mxu0 %v5863_v48  ;;  %v5870_v45 = vcombine.high %v35_v40, %v67_v41  ;;  %v7491_v48 = vld [vmem:[%s9422_s1 + $0xc00] sm:$0xff]  }
 0x164   :  { %6907 = vmatprep.subr.bf16.mxu1 %v7458_v55  ;;  %6886 = vmatpush3.bf16.msra.mxu0 %v7459_v56  ;;  %v7498_v55 = vld [vmem:[%s9422_s1 + $0xcd0] sm:$0xff]   ;;  %v7523_v40 = vld [vmem:[%s9422_s1 + $0xd00] sm:$0xff]  }
 0x165   :  { %6887 = vmatprep.subr.bf16.mxu0 %v7461_v58  ;;  %5426 = vmatprep.mubr.bf16.mxu0 %v5868_v43  ;;  %v7499_v56 = vld [vmem:[%s9422_s1 + $0xc10] sm:$0xff]   ;;  %v7501_v58 = vld [vmem:[%s9422_s1 + $0xc58] sm:$0xff]   ;;  %v7524_v41 = vld [vmem:[%s9422_s1 + $0xd80] sm:$0xff]  }
 0x166   :  { %5386 = vmatmul.mubr.bf16.vlgmr.msra.gmra.mrb[40].mxu1 %v5865_v52  ;;  %v7495_v52 = vld [vmem:[%s9422_s1 + $0xc08] sm:$0xff]  }
 0x167   :  { %6908 = vmatpush3.bf16.msra.mxu1 %v7460_v57  ;;  %5467 = vmatprep.mubr.bf16.mxu1 %v5870_v45  ;;  %v7500_v57 = vld [vmem:[%s9422_s1 + $0xc90] sm:$0xff]   ;;  %v7526_v43 = vld [vmem:[%s9422_s1 + $0xdc8] sm:$0xff]  }
 0x168   :  { %6909 = vmatprep.subr.bf16.mxu1 %v7462_v59  ;;  %6888 = vmatpush3.bf16.msra.mxu0 %v7463_v60  ;;  %v7502_v59 = vld [vmem:[%s9422_s1 + $0xcd8] sm:$0xff]   ;;  %v7528_v45 = vld [vmem:[%s9422_s1 + $0xd88] sm:$0xff]  }
 0x169   :  { %6889 = vmatprep.subr.bf16.mxu0 %v7465_v62  ;;  %v7503_v60 = vld [vmem:[%s9422_s1 + $0xc18] sm:$0xff]  }
 0x16a   :  { %v7504_v62 = vld [vmem:[%s9422_s1 + $0xc98] sm:$0xff]  }
 0x16b   :  { %6910 = vmatpush3.bf16.msra.mxu1 %v7464_v61 }
 0x16c   :  { %6911 = vmatprep.subr.bf16.mxu1 %v7466_v63  ;;  %6890 = vmatpush3.bf16.msra.mxu0 %v7467_v0  ;;  %v7505_v0 = vld [vmem:[%s9422_s1 + $0xc60] sm:$0xff]  }
 0x16d   :  { %6891 = vmatprep.subr.bf16.mxu0 %v7469_v2  ;;  %v7506_v2 = vld [vmem:[%s9422_s1 + $0xce0] sm:$0xff]  }
 0x16f   :  { %6912 = vmatpush3.bf16.msra.mxu1 %v7468_v1 }
 0x170   :  { %6913 = vmatprep.subr.bf16.mxu1 %v7470_v3  ;;  %6892 = vmatpush3.bf16.msra.mxu0 %v7471_v5  ;;  %v7507_v5 = vld [vmem:[%s9422_s1 + $0xc20] sm:$0xff]  }
 0x171   :  { %6893 = vmatprep.subr.bf16.mxu0 %v7473_v9 }
 0x173   :  { %6914 = vmatpush3.bf16.msra.mxu1 %v7472_v7 }
 0x174   :  { %6915 = vmatprep.subr.bf16.mxu1 %v7474_v12  ;;  %6894 = vmatpush3.bf16.msra.mxu0 %v7475_v15 }
 0x175   :  { %6895 = vmatprep.subr.bf16.mxu0 %v7477_v21  ;;  %v7513_v21 = vld [vmem:[%s9422_s1 + $0xc70] sm:$0xff]  }
 0x176   :  { %v6593_v4 = vpop.f32.mrb[16].mxu0 }
 0x177   :  { %v6615_v6 = vpop.f32.mrb[16].mxu1  ;;  %v6594_v8 = vpop.f32.mrb[17].mxu0  ;;  %6916 = vmatpush3.bf16.msra.mxu1 %v7476_v18 }
 0x178   :  { %v6595_v10 = vadd.f32 %v6594_v8, %v6593_v4  ;;  %v6616_v11 = vpop.f32.mrb[17].mxu1  ;;  %v6596_v14 = vpop.f32.mrb[18].mxu0  ;;  %6917 = vmatprep.subr.bf16.mxu1 %v7478_v24  ;;  %6896 = vmatpush3.bf16.msra.mxu0 %v7479_v26  ;;  %v7508_v8 = vld [vmem:[%s9422_s1 + $0xca0] sm:$0xff]   ;;  %v7515_v24 = vld [vmem:[%s9422_s1 + $0xc30] sm:$0xff]   ;;  %v7517_v26 = vld [vmem:[%s9422_s1 + $0xc78] sm:$0xff]  }
 0x179   :  { %v6617_v13 = vadd.f32 %v6616_v11, %v6615_v6  ;;  %v6618_v17 = vpop.f32.mrb[18].mxu1  ;;  %v6597_v19 = vpop.f32.mrb[19].mxu0  ;;  %6897 = vmatprep.subr.bf16.mxu0 %v7481_v30  ;;  %v7509_v11 = vld [vmem:[%s9422_s1 + $0xc68] sm:$0xff]   ;;  %v36_v30 = vld [vmem:[%s9423_s0 + $0xc0] sm:$0xff] }
 0x17a   :  { %v4855_v16 = vadd.f32 %v6595_v10, %v8797_v28  ;;  %v6598_v22 = vadd.f32 %v6597_v19, %v6596_v14  ;;  %v6619_v23 = vpop.f32.mrb[19].mxu1  ;;  %v7480_v28 = vld [vmem:[%s9422_s1 + $0xba8] sm:$0xff]  }
 0x17b   :  { %v6620_v25 = vadd.f32 %v6619_v23, %v6618_v17  ;;  %6918 = vmatpush3.bf16.msra.mxu1 %v7480_v28  ;;  %v7510_v14 = vld [vmem:[%s9422_s1 + $0xce8] sm:$0xff]   ;;  %v7514_v23 = vld [vmem:[%s9422_s1 + $0xcf0] sm:$0xff]   ;;  %v7519_v28 = vld [vmem:[%s9422_s1 + $0xc38] sm:$0xff]  }
 0x17c   :  { %v8911_v20 = vadd.f32 %v6617_v13, %v4855_v16  ;;  %v4858_v27 = vadd.f32 %v6598_v22, %v8812_v37  ;;  %6919 = vmatprep.subr.bf16.mxu1 %v7482_v31  ;;  %6898 = vmatpush3.bf16.msra.mxu0 %v7483_v32  ;;  %v7488_v37 = vld [vmem:[%s9422_s1 + $0xbb8] sm:$0xff]   ;;  %v7511_v17 = vld [vmem:[%s9422_s1 + $0xc28] sm:$0xff]   ;;  %v68_v31 = vld [vmem:[%s9423_s0 + $0x1c0] sm:$0xff] }
 0x17d   :  { %6899 = vmatprep.subr.bf16.mxu0 %v7485_v34  ;;  %v7512_v19 = vld [vmem:[%s9422_s1 + $0xca8] sm:$0xff]   ;;  %v5872_v34 = vcombine.high %v36_v30, %v68_v31 }
 0x17e   :  { %v8926_v29 = vadd.f32 %v6620_v25, %v4858_v27  ;;  %v7516_v25 = vld [vmem:[%s9422_s1 + $0xcb0] sm:$0xff]   ;;  %v7518_v27 = vld [vmem:[%s9422_s1 + $0xcf8] sm:$0xff]   ;;  %v37_v32 = vld [vmem:[%s9423_s0 + $0xc8] sm:$0xff] }
 0x17f   :  { %6920 = vmatpush3.bf16.msra.mxu1 %v7484_v33  ;;  %v5871_v33 = vcombine.low %v36_v30, %v68_v31  ;;  %v7553_v30 = vld [vmem:[%s9422_s1 + $0xe40] sm:$0xff]  }
 0x180   :  { %6921 = vmatprep.subr.bf16.mxu1 %v7486_v35  ;;  %6900 = vmatpush3.bf16.msra.mxu0 %v7487_v36  ;;  %v69_v35 = vld [vmem:[%s9423_s0 + $0x1c8] sm:$0xff]  ;;  %v7554_v31 = vld [vmem:[%s9422_s1 + $0xec0] sm:$0xff]  }
 0x181   :  { %6929 = vmatprep.subr.bf16.mxu0 %v7489_v46  ;;  %v5873_v36 = vcombine.low %v37_v32, %v69_v35  ;;  %v7529_v46 = vld [vmem:[%s9422_s1 + $0xd50] sm:$0xff]  }
 0x183   :  { %6922 = vmatpush3.bf16.msra.mxu1 %v7488_v37  ;;  %5427 = vmatmul.mubr.bf16.vlgmr.msra.gmra.mrb[44].mxu0 %v5867_v42  ;;  %v5874_v37 = vcombine.high %v37_v32, %v69_v35  ;;  %v7525_v42 = vld [vmem:[%s9422_s1 + $0xd48] sm:$0xff]   ;;  %v7555_v32 = vld [vmem:[%s9422_s1 + $0xe00] sm:$0xff]  }
 0x184   :  { %6951 = vmatprep.subr.bf16.mxu1 %v7490_v47  ;;  %6930 = vmatpush3.bf16.msra.mxu0 %v7491_v48  ;;  %v7530_v47 = vld [vmem:[%s9422_s1 + $0xdd0] sm:$0xff]   ;;  %v7558_v35 = vld [vmem:[%s9422_s1 + $0xec8] sm:$0xff]  }
 0x185   :  { %6931 = vmatprep.subr.bf16.mxu0 %v7493_v50  ;;  %5508 = vmatprep.mubr.bf16.mxu0 %v5872_v34  ;;  %v7531_v48 = vld [vmem:[%s9422_s1 + $0xd10] sm:$0xff]   ;;  %v7533_v50 = vld [vmem:[%s9422_s1 + $0xd58] sm:$0xff]   ;;  %v7557_v34 = vld [vmem:[%s9422_s1 + $0xe48] sm:$0xff]  }
 0x186   :  { %5468 = vmatmul.mubr.bf16.vlgmr.msra.gmra.mrb[44].mxu1 %v5869_v44  ;;  %v7527_v44 = vld [vmem:[%s9422_s1 + $0xd08] sm:$0xff]  }
 0x187   :  { %6952 = vmatpush3.bf16.msra.mxu1 %v7492_v49  ;;  %5549 = vmatprep.mubr.bf16.mxu1 %v5874_v37  ;;  %v7532_v49 = vld [vmem:[%s9422_s1 + $0xd90] sm:$0xff]   ;;  %v7560_v37 = vld [vmem:[%s9422_s1 + $0xe88] sm:$0xff]  }
 0x188   :  { %6953 = vmatprep.subr.bf16.mxu1 %v7494_v51  ;;  %6932 = vmatpush3.bf16.msra.mxu0 %v7495_v52  ;;  %v7534_v51 = vld [vmem:[%s9422_s1 + $0xdd8] sm:$0xff]  }
 0x189   :  { %6933 = vmatprep.subr.bf16.mxu0 %v7497_v54 }
 0x18b   :  { %6954 = vmatpush3.bf16.msra.mxu1 %v7496_v53  ;;  %v7535_v53 = vld [vmem:[%s9422_s1 + $0xd18] sm:$0xff]  }
 0x18c   :  { %6955 = vmatprep.subr.bf16.mxu1 %v7498_v55  ;;  %6934 = vmatpush3.bf16.msra.mxu0 %v7499_v56  ;;  %v7536_v55 = vld [vmem:[%s9422_s1 + $0xd98] sm:$0xff]  }
 0x18d   :  { %6935 = vmatprep.subr.bf16.mxu0 %v7501_v58 }
 0x18f   :  { %6956 = vmatpush3.bf16.msra.mxu1 %v7500_v57  ;;  %v7537_v57 = vld [vmem:[%s9422_s1 + $0xd60] sm:$0xff]  }
 0x190   :  { %6957 = vmatprep.subr.bf16.mxu1 %v7502_v59  ;;  %6936 = vmatpush3.bf16.msra.mxu0 %v7503_v60  ;;  %v7538_v60 = vld [vmem:[%s9422_s1 + $0xde0] sm:$0xff]  }
 0x191   :  { %6937 = vmatprep.subr.bf16.mxu0 %v7505_v0 }
 0x193   :  { %6958 = vmatpush3.bf16.msra.mxu1 %v7504_v62 }
 0x194   :  { %6959 = vmatprep.subr.bf16.mxu1 %v7506_v2  ;;  %6938 = vmatpush3.bf16.msra.mxu0 %v7507_v5  ;;  %v7540_v2 = vld [vmem:[%s9422_s1 + $0xda0] sm:$0xff]   ;;  %v7541_v5 = vld [vmem:[%s9422_s1 + $0xd68] sm:$0xff]  }
 0x195   :  { %6939 = vmatprep.subr.bf16.mxu0 %v7509_v11 }
 0x196   :  { %v6637_v61 = vpop.f32.mrb[20].mxu0 }
 0x197   :  { %v6659_v63 = vpop.f32.mrb[20].mxu1  ;;  %v6638_v1 = vpop.f32.mrb[21].mxu0  ;;  %6960 = vmatpush3.bf16.msra.mxu1 %v7508_v8  ;;  %v7542_v8 = vld [vmem:[%s9422_s1 + $0xde8] sm:$0xff]  }
 0x198   :  { %v6639_v3 = vadd.f32 %v6638_v1, %v6637_v61  ;;  %v6660_v4 = vpop.f32.mrb[21].mxu1  ;;  %v6640_v7 = vpop.f32.mrb[22].mxu0  ;;  %6961 = vmatprep.subr.bf16.mxu1 %v7510_v14  ;;  %6940 = vmatpush3.bf16.msra.mxu0 %v7511_v17  ;;  %v7545_v14 = vld [vmem:[%s9422_s1 + $0xd70] sm:$0xff]  }
 0x199   :  { %v6661_v6 = vadd.f32 %v6660_v4, %v6659_v63  ;;  %v6662_v10 = vpop.f32.mrb[22].mxu1  ;;  %v6641_v12 = vpop.f32.mrb[23].mxu0  ;;  %6941 = vmatprep.subr.bf16.mxu0 %v7513_v21  ;;  %v7539_v63 = vld [vmem:[%s9422_s1 + $0xd20] sm:$0xff]   ;;  %v7548_v17 = vld [vmem:[%s9422_s1 + $0xdb0] sm:$0xff]   ;;  %v7552_v21 = vld [vmem:[%s9422_s1 + $0xdb8] sm:$0xff]  }
 0x19a   :  { %v4937_v9 = vadd.f32 %v6639_v3, %v8911_v20  ;;  %v6642_v15 = vadd.f32 %v6641_v12, %v6640_v7  ;;  %v6663_v16 = vpop.f32.mrb[23].mxu1  ;;  %v7544_v12 = vld [vmem:[%s9422_s1 + $0xda8] sm:$0xff]  }
 0x19b   :  { %v6664_v18 = vadd.f32 %v6663_v16, %v6662_v10  ;;  %6962 = vmatpush3.bf16.msra.mxu1 %v7512_v19  ;;  %v7543_v10 = vld [vmem:[%s9422_s1 + $0xd28] sm:$0xff]   ;;  %v7547_v16 = vld [vmem:[%s9422_s1 + $0xd30] sm:$0xff]   ;;  %v7550_v19 = vld [vmem:[%s9422_s1 + $0xdf8] sm:$0xff]  }
 0x19c   :  { %v9028_v13 = vadd.f32 %v6661_v6, %v4937_v9  ;;  %v4940_v20 = vadd.f32 %v6642_v15, %v8926_v29  ;;  %6963 = vmatprep.subr.bf16.mxu1 %v7514_v23  ;;  %6942 = vmatpush3.bf16.msra.mxu0 %v7515_v24  ;;  %v7520_v29 = vld [vmem:[%s9422_s1 + $0xcb8] sm:$0xff]   ;;  %v7546_v15 = vld [vmem:[%s9422_s1 + $0xdf0] sm:$0xff]  }
 0x19d   :  { %6943 = vmatprep.subr.bf16.mxu0 %v7517_v26  ;;  %v70_v23 = vld [vmem:[%s9423_s0 + $0x1d0] sm:$0xff]  ;;  %v39_v26 = vld [vmem:[%s9423_s0 + $0xd8] sm:$0xff] }
 0x19e   :  { %v9043_v22 = vadd.f32 %v6664_v18, %v4940_v20  ;;  %v7549_v18 = vld [vmem:[%s9422_s1 + $0xd78] sm:$0xff]  }
 0x19f   :  { %6964 = vmatpush3.bf16.msra.mxu1 %v7516_v25  ;;  %v7551_v20 = vld [vmem:[%s9422_s1 + $0xd38] sm:$0xff]  }
 0x1a0   :  { %6965 = vmatprep.subr.bf16.mxu1 %v7518_v27  ;;  %6944 = vmatpush3.bf16.msra.mxu0 %v7519_v28  ;;  %v71_v27 = vld [vmem:[%s9423_s0 + $0x1d8] sm:$0xff] }
 0x1a1   :  { %6973 = vmatprep.subr.bf16.mxu0 %v7521_v38  ;;  %v5877_v28 = vcombine.low %v39_v26, %v71_v27  ;;  %v7561_v38 = vld [vmem:[%s9422_s1 + $0xe50] sm:$0xff]  }
 0x1a3   :  { %6966 = vmatpush3.bf16.msra.mxu1 %v7520_v29  ;;  %5509 = vmatmul.mubr.bf16.vlgmr.msra.gmra.mrb[48].mxu0 %v5871_v33  ;;  %v5878_v29 = vcombine.high %v39_v26, %v71_v27  ;;  %v7556_v33 = vld [vmem:[%s9422_s1 + $0xe80] sm:$0xff]   ;;  %v7589_v26 = vld [vmem:[%s9422_s1 + $0xf48] sm:$0xff]  }
 0x1a4   :  { %6995 = vmatprep.subr.bf16.mxu1 %v7522_v39  ;;  %6974 = vmatpush3.bf16.msra.mxu0 %v7523_v40  ;;  %v7562_v39 = vld [vmem:[%s9422_s1 + $0xed0] sm:$0xff]   ;;  %v7590_v27 = vld [vmem:[%s9422_s1 + $0xfc8] sm:$0xff]  }
 0x1a5   :  { %6975 = vmatprep.subr.bf16.mxu0 %v7525_v42  ;;  %v7563_v40 = vld [vmem:[%s9422_s1 + $0xe10] sm:$0xff]   ;;  %v7565_v42 = vld [vmem:[%s9422_s1 + $0xe58] sm:$0xff]  }
 0x1a6   :  { %5550 = vmatmul.mubr.bf16.vlgmr.msra.gmra.mrb[48].mxu1 %v5873_v36  ;;  %v7559_v36 = vld [vmem:[%s9422_s1 + $0xe08] sm:$0xff]  }
 0x1a7   :  { %6996 = vmatpush3.bf16.msra.mxu1 %v7524_v41  ;;  %5631 = vmatprep.mubr.bf16.mxu1 %v5878_v29  ;;  %v7564_v41 = vld [vmem:[%s9422_s1 + $0xe90] sm:$0xff]   ;;  %v7592_v29 = vld [vmem:[%s9422_s1 + $0xf88] sm:$0xff]  }
 0x1a8   :  { %6997 = vmatprep.subr.bf16.mxu1 %v7526_v43  ;;  %6976 = vmatpush3.bf16.msra.mxu0 %v7527_v44  ;;  %v7566_v43 = vld [vmem:[%s9422_s1 + $0xed8] sm:$0xff]  }
 0x1a9   :  { %6977 = vmatprep.subr.bf16.mxu0 %v7529_v46 }
 0x1ab   :  { %6998 = vmatpush3.bf16.msra.mxu1 %v7528_v45  ;;  %v7567_v45 = vld [vmem:[%s9422_s1 + $0xe18] sm:$0xff]  }
 0x1ac   :  { %6999 = vmatprep.subr.bf16.mxu1 %v7530_v47  ;;  %6978 = vmatpush3.bf16.msra.mxu0 %v7531_v48  ;;  %v7568_v47 = vld [vmem:[%s9422_s1 + $0xe98] sm:$0xff]  }
 0x1ad   :  { %6979 = vmatprep.subr.bf16.mxu0 %v7533_v50 }
 0x1af   :  { %7000 = vmatpush3.bf16.msra.mxu1 %v7532_v49  ;;  %v7569_v49 = vld [vmem:[%s9422_s1 + $0xe60] sm:$0xff]  }
 0x1b0   :  { %7001 = vmatprep.subr.bf16.mxu1 %v7534_v51  ;;  %6980 = vmatpush3.bf16.msra.mxu0 %v7535_v53 }
 0x1b1   :  { %6981 = vmatprep.subr.bf16.mxu0 %v7537_v57 }
 0x1b3   :  { %7002 = vmatpush3.bf16.msra.mxu1 %v7536_v55  ;;  %v7571_v55 = vld [vmem:[%s9422_s1 + $0xe20] sm:$0xff]  }
 0x1b4   :  { %7003 = vmatprep.subr.bf16.mxu1 %v7538_v60  ;;  %6982 = vmatpush3.bf16.msra.mxu0 %v7539_v63 }
 0x1b5   :  { %6983 = vmatprep.subr.bf16.mxu0 %v7541_v5 }
 0x1b6   :  { %v6681_v52 = vpop.f32.mrb[24].mxu0 }
 0x1b7   :  { %v6703_v54 = vpop.f32.mrb[24].mxu1  ;;  %v6682_v56 = vpop.f32.mrb[25].mxu0  ;;  %7004 = vmatpush3.bf16.msra.mxu1 %v7540_v2  ;;  %v7575_v2 = vld [vmem:[%s9422_s1 + $0xe28] sm:$0xff]  }
 0x1b8   :  { %v6683_v58 = vadd.f32 %v6682_v56, %v6681_v52  ;;  %v6704_v59 = vpop.f32.mrb[25].mxu1  ;;  %v6684_v62 = vpop.f32.mrb[26].mxu0  ;;  %7005 = vmatprep.subr.bf16.mxu1 %v7542_v8  ;;  %6984 = vmatpush3.bf16.msra.mxu0 %v7543_v10  ;;  %v7570_v52 = vld [vmem:[%s9422_s1 + $0xee0] sm:$0xff]   ;;  %v7579_v8 = vld [vmem:[%s9422_s1 + $0xe30] sm:$0xff]   ;;  %v7581_v10 = vld [vmem:[%s9422_s1 + $0xe78] sm:$0xff]  }
 0x1b9   :  { %v6705_v61 = vadd.f32 %v6704_v59, %v6703_v54  ;;  %v6706_v1 = vpop.f32.mrb[26].mxu1  ;;  %v6685_v3 = vpop.f32.mrb[27].mxu0  ;;  %6985 = vmatprep.subr.bf16.mxu0 %v7545_v14  ;;  %v40_v14 = vld [vmem:[%s9423_s0 + $0xe0] sm:$0xff] }
 0x1ba   :  { %v5019_v0 = vadd.f32 %v6683_v58, %v9028_v13  ;;  %v6686_v6 = vadd.f32 %v6685_v3, %v6684_v62  ;;  %v6707_v7 = vpop.f32.mrb[27].mxu1  ;;  %v7572_v58 = vld [vmem:[%s9422_s1 + $0xea0] sm:$0xff]  }
 0x1bb   :  { %v6708_v9 = vadd.f32 %v6707_v7, %v6706_v1  ;;  %7006 = vmatpush3.bf16.msra.mxu1 %v7544_v12  ;;  %v7578_v7 = vld [vmem:[%s9422_s1 + $0xef0] sm:$0xff]   ;;  %v7583_v12 = vld [vmem:[%s9422_s1 + $0xe38] sm:$0xff]  }
 0x1bc   :  { %v9139_v4 = vadd.f32 %v6705_v61, %v5019_v0  ;;  %v5022_v11 = vadd.f32 %v6686_v6, %v9043_v22  ;;  %7007 = vmatprep.subr.bf16.mxu1 %v7546_v15  ;;  %6986 = vmatpush3.bf16.msra.mxu0 %v7547_v16  ;;  %v38_v22 = vld [vmem:[%s9423_s0 + $0xd0] sm:$0xff]  ;;  %v7573_v61 = vld [vmem:[%s9422_s1 + $0xe68] sm:$0xff]   ;;  %v72_v15 = vld [vmem:[%s9423_s0 + $0x1e0] sm:$0xff] }
 0x1bd   :  { %6987 = vmatprep.subr.bf16.mxu0 %v7549_v18  ;;  %v5875_v24 = vcombine.low %v38_v22, %v70_v23  ;;  %v5876_v25 = vcombine.high %v38_v22, %v70_v23  ;;  %v7574_v0 = vld [vmem:[%s9422_s1 + $0xee8] sm:$0xff]   ;;  %v7577_v6 = vld [vmem:[%s9422_s1 + $0xe70] sm:$0xff]   ;;  %v5879_v18 = vcombine.low %v40_v14, %v72_v15  ;;  %v7585_v22 = vld [vmem:[%s9422_s1 + $0xf40] sm:$0xff]  }
 0x1be   :  { %v9154_v13 = vadd.f32 %v6708_v9, %v5022_v11  ;;  %v7580_v9 = vld [vmem:[%s9422_s1 + $0xeb0] sm:$0xff]   ;;  %v7582_v11 = vld [vmem:[%s9422_s1 + $0xef8] sm:$0xff]   ;;  %v41_v16 = vld [vmem:[%s9423_s0 + $0xe8] sm:$0xff] }
 0x1bf   :  { %7008 = vmatpush3.bf16.msra.mxu1 %v7548_v17  ;;  %5590 = vmatprep.mubr.bf16.mxu0 %v5876_v25  ;;  %v73_v17 = vld [vmem:[%s9423_s0 + $0x1e8] sm:$0xff]  ;;  %v7586_v23 = vld [vmem:[%s9422_s1 + $0xfc0] sm:$0xff]  }
 0x1c0   :  { %7009 = vmatprep.subr.bf16.mxu1 %v7550_v19  ;;  %6988 = vmatpush3.bf16.msra.mxu0 %v7551_v20  ;;  %v5880_v19 = vcombine.high %v40_v14, %v72_v15  ;;  %v5881_v20 = vcombine.low %v41_v16, %v73_v17  ;;  %v7588_v25 = vld [vmem:[%s9422_s1 + $0xf80] sm:$0xff]  }
 0x1c1   :  { %7017 = vmatprep.subr.bf16.mxu0 %v7553_v30  ;;  %v7593_v30 = vld [vmem:[%s9422_s1 + $0xf50] sm:$0xff]  }
 0x1c3   :  { %7010 = vmatpush3.bf16.msra.mxu1 %v7552_v21  ;;  %5591 = vmatmul.mubr.bf16.vlgmr.msra.gmra.mrb[52].mxu0 %v5875_v24  ;;  %v5882_v21 = vcombine.high %v41_v16, %v73_v17  ;;  %v7587_v24 = vld [vmem:[%s9422_s1 + $0xf00] sm:$0xff]  }
 0x1c4   :  { %7039 = vmatprep.subr.bf16.mxu1 %v7554_v31  ;;  %7018 = vmatpush3.bf16.msra.mxu0 %v7555_v32  ;;  %v7594_v31 = vld [vmem:[%s9422_s1 + $0xfd0] sm:$0xff]  }
 0x1c5   :  { %7019 = vmatprep.subr.bf16.mxu0 %v7557_v34  ;;  %5672 = vmatprep.mubr.bf16.mxu0 %v5880_v19  ;;  %v7595_v32 = vld [vmem:[%s9422_s1 + $0xf10] sm:$0xff]   ;;  %v7597_v34 = vld [vmem:[%s9422_s1 + $0xf58] sm:$0xff]  }
 0x1c6   :  { %5632 = vmatmul.mubr.bf16.vlgmr.msra.gmra.mrb[52].mxu1 %v5877_v28  ;;  %v7591_v28 = vld [vmem:[%s9422_s1 + $0xf08] sm:$0xff]  }
 0x1c7   :  { %7040 = vmatpush3.bf16.msra.mxu1 %v7556_v33  ;;  %5713 = vmatprep.mubr.bf16.mxu1 %v5882_v21  ;;  %v7596_v33 = vld [vmem:[%s9422_s1 + $0xf90] sm:$0xff]  }
 0x1c8   :  { %7041 = vmatprep.subr.bf16.mxu1 %v7558_v35  ;;  %7020 = vmatpush3.bf16.msra.mxu0 %v7559_v36  ;;  %v7598_v35 = vld [vmem:[%s9422_s1 + $0xfd8] sm:$0xff]  }
 0x1c9   :  { %7021 = vmatprep.subr.bf16.mxu0 %v7561_v38  ;;  %v7599_v36 = vld [vmem:[%s9422_s1 + $0xf18] sm:$0xff]  }
 0x1ca   :  { %v7600_v38 = vld [vmem:[%s9422_s1 + $0xf98] sm:$0xff]  }
 0x1cb   :  { %7042 = vmatpush3.bf16.msra.mxu1 %v7560_v37 }
 0x1cc   :  { %7043 = vmatprep.subr.bf16.mxu1 %v7562_v39  ;;  %7022 = vmatpush3.bf16.msra.mxu0 %v7563_v40  ;;  %v7601_v40 = vld [vmem:[%s9422_s1 + $0xf60] sm:$0xff]  }
 0x1cd   :  { %7023 = vmatprep.subr.bf16.mxu0 %v7565_v42  ;;  %v7602_v42 = vld [vmem:[%s9422_s1 + $0xfe0] sm:$0xff]  }
 0x1cf   :  { %7044 = vmatpush3.bf16.msra.mxu1 %v7564_v41 }
 0x1d0   :  { %7045 = vmatprep.subr.bf16.mxu1 %v7566_v43  ;;  %7024 = vmatpush3.bf16.msra.mxu0 %v7567_v45  ;;  %v7603_v45 = vld [vmem:[%s9422_s1 + $0xf20] sm:$0xff]  }
 0x1d1   :  { %7025 = vmatprep.subr.bf16.mxu0 %v7569_v49 }
 0x1d3   :  { %7046 = vmatpush3.bf16.msra.mxu1 %v7568_v47 }
 0x1d4   :  { %7047 = vmatprep.subr.bf16.mxu1 %v7570_v52  ;;  %7026 = vmatpush3.bf16.msra.mxu0 %v7571_v55 }
 0x1d5   :  { %7027 = vmatprep.subr.bf16.mxu0 %v7573_v61  ;;  %v7609_v61 = vld [vmem:[%s9422_s1 + $0xf70] sm:$0xff]  }
 0x1d6   :  { %v6725_v44 = vpop.f32.mrb[28].mxu0 }
 0x1d7   :  { %v6747_v46 = vpop.f32.mrb[28].mxu1  ;;  %v6726_v48 = vpop.f32.mrb[29].mxu0  ;;  %7048 = vmatpush3.bf16.msra.mxu1 %v7572_v58 }
 0x1d8   :  { %v6727_v50 = vadd.f32 %v6726_v48, %v6725_v44  ;;  %v6748_v51 = vpop.f32.mrb[29].mxu1  ;;  %v6728_v54 = vpop.f32.mrb[30].mxu0  ;;  %7049 = vmatprep.subr.bf16.mxu1 %v7574_v0  ;;  %7028 = vmatpush3.bf16.msra.mxu0 %v7575_v2  ;;  %v7604_v48 = vld [vmem:[%s9422_s1 + $0xfa0] sm:$0xff]   ;;  %v7611_v0 = vld [vmem:[%s9422_s1 + $0xf30] sm:$0xff]   ;;  %v7613_v2 = vld [vmem:[%s9422_s1 + $0xf78] sm:$0xff]  }
 0x1d9   :  { %v6749_v53 = vadd.f32 %v6748_v51, %v6747_v46  ;;  %v6750_v57 = vpop.f32.mrb[30].mxu1  ;;  %v6729_v59 = vpop.f32.mrb[31].mxu0  ;;  %7029 = vmatprep.subr.bf16.mxu0 %v7577_v6  ;;  %v7605_v51 = vld [vmem:[%s9422_s1 + $0xf68] sm:$0xff]   ;;  %v42_v6 = vld [vmem:[%s9423_s0 + $0xf0] sm:$0xff] }
 0x1da   :  { %v5101_v56 = vadd.f32 %v6727_v50, %v9139_v4  ;;  %v6730_v62 = vadd.f32 %v6729_v59, %v6728_v54  ;;  %v6751_v63 = vpop.f32.mrb[31].mxu1  ;;  %v7576_v4 = vld [vmem:[%s9422_s1 + $0xea8] sm:$0xff]  }
 0x1db   :  { %v6752_v1 = vadd.f32 %v6751_v63, %v6750_v57  ;;  %7050 = vmatpush3.bf16.msra.mxu1 %v7576_v4  ;;  %v7606_v54 = vld [vmem:[%s9422_s1 + $0xfe8] sm:$0xff]   ;;  %v7610_v63 = vld [vmem:[%s9422_s1 + $0xff0] sm:$0xff]   ;;  %v7615_v4 = vld [vmem:[%s9422_s1 + $0xf38] sm:$0xff]  }
 0x1dc   :  { %v9253_v60 = vadd.f32 %v6749_v53, %v5101_v56  ;;  %v5104_v3 = vadd.f32 %v6730_v62, %v9154_v13  ;;  %7051 = vmatprep.subr.bf16.mxu1 %v7578_v7  ;;  %7030 = vmatpush3.bf16.msra.mxu0 %v7579_v8  ;;  %v7584_v13 = vld [vmem:[%s9422_s1 + $0xeb8] sm:$0xff]   ;;  %v7607_v57 = vld [vmem:[%s9422_s1 + $0xf28] sm:$0xff]   ;;  %v74_v7 = vld [vmem:[%s9423_s0 + $0x1f0] sm:$0xff] }
 0x1dd   :  { %7031 = vmatprep.subr.bf16.mxu0 %v7581_v10  ;;  %v7608_v59 = vld [vmem:[%s9422_s1 + $0xfa8] sm:$0xff]   ;;  %v43_v8 = vld [vmem:[%s9423_s0 + $0xf8] sm:$0xff]  ;;  %v5884_v10 = vcombine.high %v42_v6, %v74_v7 }
 0x1de   :  { %v9268_v5 = vadd.f32 %v6752_v1, %v5104_v3  ;;  %v7612_v1 = vld [vmem:[%s9422_s1 + $0xfb0] sm:$0xff]   ;;  %v7614_v3 = vld [vmem:[%s9422_s1 + $0xff8] sm:$0xff]  }
 0x1df   :  { %7052 = vmatpush3.bf16.msra.mxu1 %v7580_v9  ;;  %v5883_v9 = vcombine.low %v42_v6, %v74_v7 }
 0x1e0   :  { %7053 = vmatprep.subr.bf16.mxu1 %v7582_v11  ;;  %7032 = vmatpush3.bf16.msra.mxu0 %v7583_v12  ;;  %v75_v11 = vld [vmem:[%s9423_s0 + $0x1f8] sm:$0xff] }
 0x1e1   :  { %7061 = vmatprep.subr.bf16.mxu0 %v7585_v22  ;;  %v5885_v12 = vcombine.low %v43_v8, %v75_v11 }
 0x1e3   :  { %7054 = vmatpush3.bf16.msra.mxu1 %v7584_v13  ;;  %5673 = vmatmul.mubr.bf16.vlgmr.msra.gmra.mrb[56].mxu0 %v5879_v18  ;;  %v5886_v13 = vcombine.high %v43_v8, %v75_v11 }
 0x1e4   :  { %7083 = vmatprep.subr.bf16.mxu1 %v7586_v23  ;;  %7062 = vmatpush3.bf16.msra.mxu0 %v7587_v24 }
 0x1e5   :  { %7063 = vmatprep.subr.bf16.mxu0 %v7589_v26  ;;  %5754 = vmatprep.mubr.bf16.mxu0 %v5884_v10 }
 0x1e6   :  { %5714 = vmatmul.mubr.bf16.vlgmr.msra.gmra.mrb[56].mxu1 %v5881_v20 }
 0x1e7   :  { %7084 = vmatpush3.bf16.msra.mxu1 %v7588_v25  ;;  %5795 = vmatprep.mubr.bf16.mxu1 %v5886_v13 }
 0x1e8   :  { %7085 = vmatprep.subr.bf16.mxu1 %v7590_v27  ;;  %7064 = vmatpush3.bf16.msra.mxu0 %v7591_v28 }
 0x1e9   :  { %7065 = vmatprep.subr.bf16.mxu0 %v7593_v30 }
 0x1eb   :  { %7086 = vmatpush3.bf16.msra.mxu1 %v7592_v29 }
 0x1ec   :  { %7087 = vmatprep.subr.bf16.mxu1 %v7594_v31  ;;  %7066 = vmatpush3.bf16.msra.mxu0 %v7595_v32 }
 0x1ed   :  { %7067 = vmatprep.subr.bf16.mxu0 %v7597_v34 }
 0x1ef   :  { %7088 = vmatpush3.bf16.msra.mxu1 %v7596_v33 }
 0x1f0   :  { %7089 = vmatprep.subr.bf16.mxu1 %v7598_v35  ;;  %7068 = vmatpush3.bf16.msra.mxu0 %v7599_v36 }
 0x1f1   :  { %7069 = vmatprep.subr.bf16.mxu0 %v7601_v40 }
 0x1f3   :  { %7090 = vmatpush3.bf16.msra.mxu1 %v7600_v38 }
 0x1f4   :  { %7091 = vmatprep.subr.bf16.mxu1 %v7602_v42  ;;  %7070 = vmatpush3.bf16.msra.mxu0 %v7603_v45 }
 0x1f5   :  { %7071 = vmatprep.subr.bf16.mxu0 %v7605_v51 }
 0x1f6   :  { %v6769_v37 = vpop.f32.mrb[32].mxu0 }
 0x1f7   :  { %v6770_v41 = vpop.f32.mrb[33].mxu0  ;;  %7092 = vmatpush3.bf16.msra.mxu1 %v7604_v48 }
 0x1f8   :  { %v6771_v43 = vadd.f32 %v6770_v41, %v6769_v37  ;;  %v6772_v47 = vpop.f32.mrb[34].mxu0  ;;  %7093 = vmatprep.subr.bf16.mxu1 %v7606_v54  ;;  %7072 = vmatpush3.bf16.msra.mxu0 %v7607_v57 }
 0x1f9   :  { %v6791_v39 = vpop.f32.mrb[32].mxu1  ;;  %v6773_v52 = vpop.f32.mrb[35].mxu0  ;;  %7073 = vmatprep.subr.bf16.mxu0 %v7609_v61 }
 0x1fa   :  { %v6792_v44 = vpop.f32.mrb[33].mxu1  ;;  %v5183_v49 = vadd.f32 %v6771_v43, %v9253_v60  ;;  %v6774_v55 = vadd.f32 %v6773_v52, %v6772_v47 }
 0x1fb   :  { %v6793_v46 = vadd.f32 %v6792_v44, %v6791_v39  ;;  %v6794_v50 = vpop.f32.mrb[34].mxu1  ;;  %7094 = vmatpush3.bf16.msra.mxu1 %v7608_v59 }
 0x1fc   :  { %v6795_v56 = vpop.f32.mrb[35].mxu1  ;;  %v5186_v60 = vadd.f32 %v6774_v55, %v9268_v5  ;;  %7095 = vmatprep.subr.bf16.mxu1 %v7610_v63  ;;  %7074 = vmatpush3.bf16.msra.mxu0 %v7611_v0  ;;  %v7616_v5 = vld [vmem:[%s9422_s1 + $0xfb8] sm:$0xff]  }
 0x1fd   :  { %v5224_v53 = vadd.f32 %v6793_v46, %v5183_v49  ;;  %v6796_v58 = vadd.f32 %v6795_v56, %v6794_v50  ;;  %7075 = vmatprep.subr.bf16.mxu0 %v7613_v2 }
 0x1ff   :  { %v5227_v62 = vadd.f32 %v6796_v58, %v5186_v60  ;;  %7096 = vmatpush3.bf16.msra.mxu1 %v7612_v1 }
 0x200   :  { %7097 = vmatprep.subr.bf16.mxu1 %v7614_v3  ;;  %7076 = vmatpush3.bf16.msra.mxu0 %v7615_v4 }
 0x203   :  { %7098 = vmatpush3.bf16.msra.mxu1 %v7616_v5  ;;  %5755 = vmatmul.mubr.bf16.vlgmr.msra.gmra.mrb[60].mxu0 %v5883_v9 }
 0x206   :  { %5796 = vmatmul.mubr.bf16.vlgmr.msra.gmra.mrb[60].mxu1 %v5885_v12 }
 0x216   :  { %v6813_v14 = vpop.f32.mrb[36].mxu0 }
 0x217   :  { %v6814_v16 = vpop.f32.mrb[37].mxu0 }
 0x218   :  { %v6815_v17 = vadd.f32 %v6814_v16, %v6813_v14  ;;  %v6816_v19 = vpop.f32.mrb[38].mxu0 }
 0x219   :  { %v6835_v15 = vpop.f32.mrb[36].mxu1  ;;  %v6817_v22 = vpop.f32.mrb[39].mxu0 }
 0x21a   :  { %v6836_v18 = vpop.f32.mrb[37].mxu1  ;;  %v5265_v23 = vadd.f32 %v6815_v17, %v5224_v53  ;;  %v6818_v24 = vadd.f32 %v6817_v22, %v6816_v19 }
 0x21b   :  { %v6837_v20 = vadd.f32 %v6836_v18, %v6835_v15  ;;  %v6838_v21 = vpop.f32.mrb[38].mxu1 }
 0x21c   :  { %v6839_v25 = vpop.f32.mrb[39].mxu1  ;;  %v5268_v28 = vadd.f32 %v6818_v24, %v5227_v62 }
 0x21d   :  { %v6840_v26 = vadd.f32 %v6839_v25, %v6838_v21  ;;  %v5306_v27 = vadd.f32 %v6837_v20, %v5265_v23 }
 0x21f   :  { %v5309_v29 = vadd.f32 %v6840_v26, %v5268_v28 }
 0x236   :  { %v6857_v30 = vpop.f32.mrb[40].mxu0 }
 0x237   :  { %v6858_v32 = vpop.f32.mrb[41].mxu0 }
 0x238   :  { %v6859_v33 = vadd.f32 %v6858_v32, %v6857_v30  ;;  %v6860_v35 = vpop.f32.mrb[42].mxu0 }
 0x239   :  { %v6879_v31 = vpop.f32.mrb[40].mxu1  ;;  %v6861_v38 = vpop.f32.mrb[43].mxu0 }
 0x23a   :  { %v6880_v34 = vpop.f32.mrb[41].mxu1  ;;  %v5347_v39 = vadd.f32 %v6859_v33, %v5306_v27  ;;  %v6862_v40 = vadd.f32 %v6861_v38, %v6860_v35 }
 0x23b   :  { %v6881_v36 = vadd.f32 %v6880_v34, %v6879_v31  ;;  %v6882_v37 = vpop.f32.mrb[42].mxu1 }
 0x23c   :  { %v6883_v41 = vpop.f32.mrb[43].mxu1  ;;  %v5350_v44 = vadd.f32 %v6862_v40, %v5309_v29 }
 0x23d   :  { %v6884_v42 = vadd.f32 %v6883_v41, %v6882_v37  ;;  %v5388_v43 = vadd.f32 %v6881_v36, %v5347_v39 }
 0x23f   :  { %v5391_v45 = vadd.f32 %v6884_v42, %v5350_v44 }
 0x256   :  { %v6901_v46 = vpop.f32.mrb[44].mxu0 }
 0x257   :  { %v6902_v48 = vpop.f32.mrb[45].mxu0 }
 0x258   :  { %v6903_v50 = vadd.f32 %v6902_v48, %v6901_v46  ;;  %v6904_v52 = vpop.f32.mrb[46].mxu0 }
 0x259   :  { %v6923_v47 = vpop.f32.mrb[44].mxu1  ;;  %v6905_v54 = vpop.f32.mrb[47].mxu0 }
 0x25a   :  { %v6924_v49 = vpop.f32.mrb[45].mxu1  ;;  %v5429_v56 = vadd.f32 %v6903_v50, %v5388_v43  ;;  %v6906_v57 = vadd.f32 %v6905_v54, %v6904_v52 }
 0x25b   :  { %v6925_v51 = vadd.f32 %v6924_v49, %v6923_v47  ;;  %v6926_v53 = vpop.f32.mrb[46].mxu1 }
 0x25c   :  { %v6927_v55 = vpop.f32.mrb[47].mxu1  ;;  %v5432_v60 = vadd.f32 %v6906_v57, %v5391_v45 }
 0x25d   :  { %v6928_v58 = vadd.f32 %v6927_v55, %v6926_v53  ;;  %v5470_v59 = vadd.f32 %v6925_v51, %v5429_v56 }
 0x25f   :  { %v5473_v61 = vadd.f32 %v6928_v58, %v5432_v60 }
 0x276   :  { %v6945_v62 = vpop.f32.mrb[48].mxu0 }
 0x277   :  { %v6946_v0 = vpop.f32.mrb[49].mxu0 }
 0x278   :  { %v6947_v1 = vadd.f32 %v6946_v0, %v6945_v62  ;;  %v6948_v3 = vpop.f32.mrb[50].mxu0 }
 0x279   :  { %v6967_v63 = vpop.f32.mrb[48].mxu1  ;;  %v6949_v6 = vpop.f32.mrb[51].mxu0 }
 0x27a   :  { %v6968_v2 = vpop.f32.mrb[49].mxu1  ;;  %v5511_v7 = vadd.f32 %v6947_v1, %v5470_v59  ;;  %v6950_v8 = vadd.f32 %v6949_v6, %v6948_v3 }
 0x27b   :  { %v6969_v4 = vadd.f32 %v6968_v2, %v6967_v63  ;;  %v6970_v5 = vpop.f32.mrb[50].mxu1 }
 0x27c   :  { %v6971_v9 = vpop.f32.mrb[51].mxu1  ;;  %v5514_v12 = vadd.f32 %v6950_v8, %v5473_v61 }
 0x27d   :  { %v6972_v10 = vadd.f32 %v6971_v9, %v6970_v5  ;;  %v5552_v11 = vadd.f32 %v6969_v4, %v5511_v7 }
 0x27f   :  { %v5555_v13 = vadd.f32 %v6972_v10, %v5514_v12 }
 0x296   :  { %v6989_v14 = vpop.f32.mrb[52].mxu0 }
 0x297   :  { %v6990_v16 = vpop.f32.mrb[53].mxu0 }
 0x298   :  { %v6991_v17 = vadd.f32 %v6990_v16, %v6989_v14  ;;  %v6992_v19 = vpop.f32.mrb[54].mxu0 }
 0x299   :  { %v7011_v15 = vpop.f32.mrb[52].mxu1  ;;  %v6993_v22 = vpop.f32.mrb[55].mxu0 }
 0x29a   :  { %v7012_v18 = vpop.f32.mrb[53].mxu1  ;;  %v5593_v23 = vadd.f32 %v6991_v17, %v5552_v11  ;;  %v6994_v24 = vadd.f32 %v6993_v22, %v6992_v19 }
 0x29b   :  { %v7013_v20 = vadd.f32 %v7012_v18, %v7011_v15  ;;  %v7014_v21 = vpop.f32.mrb[54].mxu1 }
 0x29c   :  { %v7015_v25 = vpop.f32.mrb[55].mxu1  ;;  %v5596_v28 = vadd.f32 %v6994_v24, %v5555_v13 }
 0x29d   :  { %v7016_v26 = vadd.f32 %v7015_v25, %v7014_v21  ;;  %v5634_v27 = vadd.f32 %v7013_v20, %v5593_v23 }
 0x29f   :  { %v5637_v29 = vadd.f32 %v7016_v26, %v5596_v28 }
 0x2b6   :  { %v7033_v30 = vpop.f32.mrb[56].mxu0 }
 0x2b7   :  { %v7034_v32 = vpop.f32.mrb[57].mxu0 }
 0x2b8   :  { %v7035_v34 = vadd.f32 %v7034_v32, %v7033_v30  ;;  %v7036_v36 = vpop.f32.mrb[58].mxu0 }
 0x2b9   :  { %v7055_v31 = vpop.f32.mrb[56].mxu1  ;;  %v7037_v38 = vpop.f32.mrb[59].mxu0 }
 0x2ba   :  { %v7056_v33 = vpop.f32.mrb[57].mxu1  ;;  %v5675_v40 = vadd.f32 %v7035_v34, %v5634_v27  ;;  %v7038_v41 = vadd.f32 %v7037_v38, %v7036_v36 }
 0x2bb   :  { %v7057_v35 = vadd.f32 %v7056_v33, %v7055_v31  ;;  %v7058_v37 = vpop.f32.mrb[58].mxu1 }
 0x2bc   :  { %v7059_v39 = vpop.f32.mrb[59].mxu1  ;;  %v5678_v44 = vadd.f32 %v7038_v41, %v5637_v29 }
 0x2bd   :  { %v7060_v42 = vadd.f32 %v7059_v39, %v7058_v37  ;;  %v5716_v43 = vadd.f32 %v7057_v35, %v5675_v40 }
 0x2bf   :  { %v5719_v45 = vadd.f32 %v7060_v42, %v5678_v44 }
 0x2d6   :  { %v7077_v46 = vpop.f32.mrb[60].mxu0 }
 0x2d7   :  { %v7078_v48 = vpop.f32.mrb[61].mxu0 }
 0x2d8   :  { %v7079_v49 = vadd.f32 %v7078_v48, %v7077_v46  ;;  %v7080_v51 = vpop.f32.mrb[62].mxu0 }
 0x2d9   :  { %v7099_v47 = vpop.f32.mrb[60].mxu1  ;;  %v7081_v54 = vpop.f32.mrb[63].mxu0 }
 0x2da   :  { %v7100_v50 = vpop.f32.mrb[61].mxu1  ;;  %v5757_v55 = vadd.f32 %v7079_v49, %v5716_v43  ;;  %v7082_v56 = vadd.f32 %v7081_v54, %v7080_v51 }
 0x2db   :  { %v7101_v52 = vadd.f32 %v7100_v50, %v7099_v47  ;;  %v7102_v53 = vpop.f32.mrb[62].mxu1 }
 0x2dc   :  { %v7103_v57 = vpop.f32.mrb[63].mxu1  ;;  %v5760_v60 = vadd.f32 %v7082_v56, %v5719_v45 }
 0x2dd   :  { %v7104_v58 = vadd.f32 %v7103_v57, %v7102_v53  ;;  %v5798_v59 = vadd.f32 %v7101_v52, %v5757_v55 }
 0x2df   :  { %v6399_v61 = vmul.f32 -1.442695, %v5798_v59  ;;  %v5801_v62 = vadd.f32 %v7104_v58, %v5760_v60 }
 0x2e1   :  { %7617 = vpow2.f32 %v6399_v61  ;;  %v6400_v63 = vmul.f32 -1.442695, %v5801_v62 }
 0x2e3   :  { %7619 = vpow2.f32 %v6400_v63 }
 0x2eb   :  { %v7618_v0 = vpop.eup %7617 }
 0x2ec   :  { %v5810_v1 = vadd.f32 1.0, %v7618_v0 }
 0x2ed   :  { %v7620_v2 = vpop.eup %7619 }
 0x2ee   :  { %7621 = vrcp.f32 %v5810_v1  ;;  %v5811_v3 = vadd.f32 1.0, %v7620_v2 }
 0x2f0   :  { %7623 = vrcp.f32 %v5811_v3 }
 0x2f8   :  { %v7622_v4 = vpop.eup %7621 }
 0x2f9   :  { %5817 = vst.msk [vmem:[%s9424_s2] sm:$0xff] %vm5816_vm0, %v7622_v4 }
 0x2fa   :  { %v7624_v5 = vpop.eup %7623 }
 0x2fb   :  { %5818 = vst.msk [vmem:[%s9424_s2 + $0x8] sm:$0xff] %vm5816_vm0, %v7624_v5 }

</bundles_post_ra>
